<compile_context>
chip_gen: v6e
topology: v6e:2x2x1
jax: 0.10.0
libtpu: 0.0.40
codegen_flags: <defaults>
</compile_context>

<pallas_src>
import jax
import jax.numpy as jnp
from jax.experimental import pallas as pl
from jax.experimental.pallas import tpu as pltpu

# Geometry implied by the module.
H_IN = W_IN = 28
K = 5
C1, C2 = 16, 32
H1 = W1 = H_IN - K + 1          # 24
H1P = W1P = H1 // 2             # 12
H2 = W2 = H1P - K + 1           # 8
H2P = W2P = H2 // 2             # 4
NCLS = 4
B_TILE = 16                     # images per grid step (conv1 M=384, conv2 M=128)


# ----------------------------------------------------------------------------
# Fused Pallas kernel: conv1+ReLU+pool -> conv2+ReLU+pool -> flatten+Linear
# One grid step == B_TILE images; everything stays in VMEM; only 2-D matmuls.
# ----------------------------------------------------------------------------
def _net_basic_kernel(xs_ref, w1s_ref, b1_ref, pw1_ref, sel2_ref, w2s_ref,
                      b2_ref, pw2_ref, wblk_ref, hmask_ref, gsum_ref,
                      cfold_ref, fcb_ref, o_ref):
    bt_h1 = xs_ref.shape[1]                         # B_TILE * 24
    bt_h2 = sel2_ref.shape[1]                       # B_TILE * 8

    # ---- conv1: 5 kj-folded taps, each ONE (bt*24, 28) @ (28, 384) bf16 matmul ----
    acc1 = jnp.zeros((bt_h1, W1 * C1), jnp.float32)
    for ki in range(K):
        acc1 = acc1 + jnp.dot(xs_ref[ki], w1s_ref[ki],
                              preferred_element_type=jnp.float32)
    a1 = jnp.maximum(acc1 + b1_ref[...], 0.0).astype(jnp.bfloat16)      # (bt*24, 384)

    # ---- AvgPool2d(2), W direction (H direction is folded into sel2 below) ----
    a1w = jnp.dot(a1, pw1_ref[...],
                  preferred_element_type=jnp.float32).astype(jnp.bfloat16)  # (bt*24, 192)

    # ---- conv2: lhs = (H-pool1 + row-shift ki) via block-diag sel2[ki], then weight ----
    acc2 = jnp.zeros((bt_h2, W2 * C2), jnp.float32)
    for ki in range(K):
        lhs = jnp.dot(sel2_ref[ki], a1w,
                      preferred_element_type=jnp.float32).astype(jnp.bfloat16)  # (bt*8, 192)
        acc2 = acc2 + jnp.dot(lhs, w2s_ref[ki],
                              preferred_element_type=jnp.float32)
    a2 = jnp.maximum(acc2 + b2_ref[...], 0.0).astype(jnp.bfloat16)      # (bt*8, 256)

    # ---- AvgPool2d(2), W direction ----
    a2p = jnp.dot(a2, pw2_ref[...], preferred_element_type=jnp.float32)  # (bt*8, 128)

    # ---- H-pool2 + NCHW flatten + Linear(512, 4), as three dense matmuls ----
    # q[b*8+h', h*4+k] holds the per-row FC partials for every hypothetical h; hmask
    # keeps only h'==h, gsum sums the 8 rows of each image, cfold collapses the h blocks.
    q = jnp.dot(a2p.astype(jnp.bfloat16), wblk_ref[...],
                preferred_element_type=jnp.float32)                      # (bt*8, 32)
    qm = (q * hmask_ref[...]).astype(jnp.bfloat16)
    s = jnp.dot(gsum_ref[...], qm,
                preferred_element_type=jnp.float32).astype(jnp.bfloat16)  # (bt, 32)
    o_ref[...] = jnp.dot(s, cfold_ref[...],
                         preferred_element_type=jnp.float32) + fcb_ref[...]  # (bt, 4)


# ----------------------------------------------------------------------------
# Host-side constant preparation (pure XLA, tiny)
# ----------------------------------------------------------------------------
def _shift_matrix(win, wout, off):
    m = jnp.zeros((win, wout), jnp.float32)
    return m.at[jnp.arange(wout) + off, jnp.arange(wout)].set(1.0)


def _expand_conv_weight_folded(w, win):
    """(kh, kw, cin, cout) -> (kh, win*cin, wout*cout), shift/block expansion summed
    over kj (the 5 kj taps of a tap-row ki all multiply the same lhs rows)."""
    kh, kw, cin, cout = w.shape
    wout = win - kw + 1
    taps = []
    for ki in range(kh):
        acc = jnp.zeros((win * cin, wout * cout), jnp.float32)
        for kj in range(kw):
            s = _shift_matrix(win, wout, kj)                   # (win, wout)
            acc = acc + jnp.einsum("wq,ic->wiqc", s, w[ki, kj]).reshape(
                win * cin, wout * cout)
        taps.append(acc)
    return jnp.stack(taps, axis=0)


def _pool_matrix(w):
    # (w, w//2): out[q] = 0.5 * (in[2q] + in[2q+1])
    sel = (jnp.arange(w)[:, None] // 2) == jnp.arange(w // 2)[None, :]
    return 0.5 * sel.astype(jnp.float32)


def _hpool_shift_matrix(ki, hout, hin):
    # (hout, hin): row h selects 0.5*(in[2*(h+ki)] + in[2*(h+ki)+1])
    r = jnp.arange(hin)[None, :]
    tgt = 2 * (jnp.arange(hout)[:, None] + ki)
    return 0.5 * ((r == tgt) | (r == tgt + 1)).astype(jnp.float32)


def _prepare_constants(params, b_tile):
    f32, bf16 = jnp.float32, jnp.bfloat16
    w1s = _expand_conv_weight_folded(params["w1"], W_IN).astype(bf16)     # (5, 28, 384)
    w2s = _expand_conv_weight_folded(params["w2"], W1P).astype(bf16)      # (5, 192, 256)
    b1r = jnp.tile(params["b1"], W1)[None, :].astype(f32)                 # (1, 384)
    b2r = jnp.tile(params["b2"], W2)[None, :].astype(f32)                 # (1, 256)
    pw1 = jnp.kron(_pool_matrix(W1), jnp.eye(C1, dtype=f32)).astype(bf16)  # (384, 192)
    pw2 = jnp.kron(_pool_matrix(W2), jnp.eye(C2, dtype=f32)).astype(bf16)  # (256, 128)
    # conv2 lhs selector: H-pool of pool1 + row-shift ki, block-diagonal over the tile.
    sel2 = jnp.stack(
        [jnp.kron(jnp.eye(b_tile, dtype=f32), _hpool_shift_matrix(ki, H2, H1))
         for ki in range(K)], axis=0).astype(bf16)                        # (5, bt*8, bt*24)
    # FC head: H-pool2 (factor 0.5) + PyTorch NCHW flatten folded into wblk; hmask/gsum/
    # cfold pick the matching h block per row and sum the 8 rows of each image.
    w4 = params["fc_w"].reshape(NCLS, C2, H2P, W2P)                       # [k, c, p, q]
    wtmp = w4[:, :, jnp.arange(H2) // 2, :]                               # [k, c, h, q]
    wblk = (0.5 * jnp.transpose(wtmp, (3, 1, 2, 0)).reshape(
        W2P * C2, H2 * NCLS)).astype(bf16)                                # (128, 32)
    hmask = jnp.tile(jnp.kron(jnp.eye(H2, dtype=f32), jnp.ones((1, NCLS), f32)),
                     (b_tile, 1))                                         # (bt*8, 32) f32
    gsum = jnp.kron(jnp.eye(b_tile, dtype=f32),
                    jnp.ones((1, H2), f32)).astype(bf16)                  # (bt, bt*8)
    cfold = jnp.tile(jnp.eye(NCLS, dtype=f32), (H2, 1)).astype(bf16)      # (32, 4)
    fcb = params["fc_b"][None, :].astype(f32)                             # (1, 4)
    return w1s, b1r, pw1, sel2, w2s, b2r, pw2, wblk, hmask, gsum, cfold, fcb


# ----------------------------------------------------------------------------
# Forward pass wrapper
# ----------------------------------------------------------------------------
def net_basic_forward(params, x, *, b_tile=B_TILE):
    """x: (B, 1, 28, 28) NCHW like the PyTorch module. Returns (B, 4) logits."""
    B = x.shape[0]
    bp = ((B + b_tile - 1) // b_tile) * b_tile
    x2d = x[:, 0, :, :]                                                   # (B, 28, 28)
    if bp != B:
        x2d = jnp.pad(x2d, ((0, bp - B), (0, 0), (0, 0)))

    # 5-tap shifted input stack (layout plumbing only): xs[ki] holds rows ki..ki+23 of
    # every image, batch-stacked along the sublane/M axis -> conv1 lhs is a direct read.
    xs = jnp.stack([x2d[:, ki:ki + H1, :].reshape(bp * H1, W_IN) for ki in range(K)],
                   axis=0).astype(jnp.bfloat16)                           # (5, bp*24, 28)

    consts = _prepare_constants(params, b_tile)

    def c2(shape):
        return pl.BlockSpec(shape, lambda i: (0, 0))

    def c3(shape):
        return pl.BlockSpec(shape, lambda i: (0, 0, 0))

    in_specs = [
        pl.BlockSpec((K, b_tile * H1, W_IN), lambda i: (0, i, 0)),  # shifted input stack
        c3((K, W_IN, W1 * C1)),                                     # conv1 weights (kj-folded)
        c2((1, W1 * C1)),                                           # conv1 bias row
        c2((W1 * C1, W1P * C1)),                                    # W-pool 1
        c3((K, b_tile * H2, b_tile * H1)),                          # H-pool1 + shift selectors
        c3((K, W1P * C1, W2 * C2)),                                 # conv2 weights (kj-folded)
        c2((1, W2 * C2)),                                           # conv2 bias row
        c2((W2 * C2, W2P * C2)),                                    # W-pool 2
        c2((W2P * C2, H2 * NCLS)),                                  # FC weights (pool2-H folded)
        c2((b_tile * H2, H2 * NCLS)),                               # h-block mask
        c2((b_tile, b_tile * H2)),                                  # per-image row sum
        c2((H2 * NCLS, NCLS)),                                      # h-block fold
        c2((1, NCLS)),                                              # FC bias
    ]

    out = pl.pallas_call(
        _net_basic_kernel,
        out_shape=jax.ShapeDtypeStruct((bp, NCLS), jnp.float32),
        grid=(bp // b_tile,),
        in_specs=in_specs,
        out_specs=pl.BlockSpec((b_tile, NCLS), lambda i: (i, 0)),
        compiler_params=pltpu.CompilerParams(
            dimension_semantics=("parallel",)),
    )(xs, *consts)
    return out[:B]


# ----------------------------------------------------------------------------
# Pure-JAX reference (for correctness check) and deterministic init
# ----------------------------------------------------------------------------
def _reference_forward(params, x):
    xh = jnp.transpose(x, (0, 2, 3, 1))                                   # NHWC
    y = jax.lax.conv_general_dilated(
        xh, params["w1"], (1, 1), "VALID",
        dimension_numbers=("NHWC", "HWIO", "NHWC"),
        precision="highest") + params["b1"]
    y = jax.nn.relu(y)
    y = y.reshape(y.shape[0], H1P, 2, W1P, 2, C1).mean(axis=(2, 4))
    y = jax.lax.conv_general_dilated(
        y, params["w2"], (1, 1), "VALID",
        dimension_numbers=("NHWC", "HWIO", "NHWC"),
        precision="highest") + params["b2"]
    y = jax.nn.relu(y)
    y = y.reshape(y.shape[0], H2P, 2, W2P, 2, C2).mean(axis=(2, 4))
    y = jnp.transpose(y, (0, 3, 1, 2)).reshape(y.shape[0], C2 * H2P * W2P)
    return jnp.dot(y, params["fc_w"].T, precision="highest") + params["fc_b"]


def init_params(key):
    ks = jax.random.split(key, 6)
    return {
        "w1": jax.random.normal(ks[0], (K, K, 1, C1), jnp.float32)
        * (2.0 / (K * K * 1)) ** 0.5,
        "b1": jax.random.normal(ks[1], (C1,), jnp.float32) * 0.01,
        "w2": jax.random.normal(ks[2], (K, K, C1, C2), jnp.float32)
        * (2.0 / (K * K * C1)) ** 0.5,
        "b2": jax.random.normal(ks[3], (C2,), jnp.float32) * 0.01,
        "fc_w": jax.random.normal(ks[4], (NCLS, C2 * H2P * W2P), jnp.float32)
        * (1.0 / (C2 * H2P * W2P)) ** 0.5,
        "fc_b": jax.random.normal(ks[5], (NCLS,), jnp.float32) * 0.01,
    }


# ----------------------------------------------------------------------------
if __name__ == "__main__":
    key = jax.random.PRNGKey(0)
    k_param, k_x = jax.random.split(key)
    params = init_params(k_param)

    # PyTorch-style NCHW input; 32 images -> 2 grid steps of B_TILE=16 (even step count
    # so both v7x TensorCores get equal work).
    x = jax.random.normal(k_x, (32, 1, H_IN, W_IN), jnp.float32)

    fwd = jax.jit(net_basic_forward)
    logits = fwd(params, x)
    jax.block_until_ready(logits)

    assert logits.shape == (32, NCLS) and logits.dtype == jnp.float32
    assert bool(jnp.all(jnp.isfinite(logits)))

    ref = _reference_forward(params, x)
    # bf16 MXU operands with f32 accumulation: validate at a bf16-appropriate tolerance.
    assert bool(jnp.allclose(logits, ref, rtol=3e-2, atol=3e-2)), (
        f"max abs err {float(jnp.max(jnp.abs(logits - ref)))}")

    print("KERNEL_OK")
</pallas_src>

<mosaic_0001>
module attributes {stable_mosaic.version = 11 : i64} {
  func.func @_net_basic_kernel(%arg0: i32, %arg1: memref<5x384x28xbf16, #tpu.memory_space<vmem>>, %arg2: memref<5x28x384xbf16, #tpu.memory_space<vmem>>, %arg3: memref<1x384xf32, #tpu.memory_space<vmem>>, %arg4: memref<384x192xbf16, #tpu.memory_space<vmem>>, %arg5: memref<5x128x384xbf16, #tpu.memory_space<vmem>>, %arg6: memref<5x192x256xbf16, #tpu.memory_space<vmem>>, %arg7: memref<1x256xf32, #tpu.memory_space<vmem>>, %arg8: memref<256x128xbf16, #tpu.memory_space<vmem>>, %arg9: memref<128x32xbf16, #tpu.memory_space<vmem>>, %arg10: memref<128x32xf32, #tpu.memory_space<vmem>>, %arg11: memref<16x128xbf16, #tpu.memory_space<vmem>>, %arg12: memref<32x4xbf16, #tpu.memory_space<vmem>>, %arg13: memref<1x4xf32, #tpu.memory_space<vmem>>, %arg14: memref<16x4xf32, #tpu.memory_space<vmem>>) attributes {dimension_semantics = [#tpu.dimension_semantics<parallel>], iteration_bounds = array<i64: 2>, scalar_prefetch = 0 : i64, scratch_operands = 0 : i64, tpu.core_type = #tpu.core_type<tc>, window_params = [{transform_indices = @transform_0, window_bounds = array<i64: 5, 384, 28>}, {pipeline_mode = #tpu.pipeline_mode<synchronous>, transform_indices = @transform_1, window_bounds = array<i64: 5, 28, 384>}, {pipeline_mode = #tpu.pipeline_mode<synchronous>, transform_indices = @transform_2, window_bounds = array<i64: 1, 384>}, {pipeline_mode = #tpu.pipeline_mode<synchronous>, transform_indices = @transform_3, window_bounds = array<i64: 384, 192>}, {pipeline_mode = #tpu.pipeline_mode<synchronous>, transform_indices = @transform_4, window_bounds = array<i64: 5, 128, 384>}, {pipeline_mode = #tpu.pipeline_mode<synchronous>, transform_indices = @transform_5, window_bounds = array<i64: 5, 192, 256>}, {pipeline_mode = #tpu.pipeline_mode<synchronous>, transform_indices = @transform_6, window_bounds = array<i64: 1, 256>}, {pipeline_mode = #tpu.pipeline_mode<synchronous>, transform_indices = @transform_7, window_bounds = array<i64: 256, 128>}, {pipeline_mode = #tpu.pipeline_mode<synchronous>, transform_indices = @transform_8, window_bounds = array<i64: 128, 32>}, {pipeline_mode = #tpu.pipeline_mode<synchronous>, transform_indices = @transform_9, window_bounds = array<i64: 128, 32>}, {pipeline_mode = #tpu.pipeline_mode<synchronous>, transform_indices = @transform_10, window_bounds = array<i64: 16, 128>}, {pipeline_mode = #tpu.pipeline_mode<synchronous>, transform_indices = @transform_11, window_bounds = array<i64: 32, 4>}, {pipeline_mode = #tpu.pipeline_mode<synchronous>, transform_indices = @transform_12, window_bounds = array<i64: 1, 4>}, {transform_indices = @transform_13, window_bounds = array<i64: 16, 4>}]} {
    %cst = arith.constant 0.000000e+00 : f32
    %0 = vector.broadcast %cst : f32 to vector<384x384xf32>
    %c0 = arith.constant 0 : index
    %c0_0 = arith.constant 0 : index
    %c0_1 = arith.constant 0 : index
    %1 = vector.load %arg1[%c0, %c0_0, %c0_1] : memref<5x384x28xbf16, #tpu.memory_space<vmem>>, vector<1x384x28xbf16>
    %2 = vector.shape_cast %1 : vector<1x384x28xbf16> to vector<384x28xbf16>
    %c0_2 = arith.constant 0 : index
    %c0_3 = arith.constant 0 : index
    %c0_4 = arith.constant 0 : index
    %3 = vector.load %arg2[%c0_2, %c0_3, %c0_4] : memref<5x28x384xbf16, #tpu.memory_space<vmem>>, vector<1x28x384xbf16>
    %4 = vector.shape_cast %3 : vector<1x28x384xbf16> to vector<28x384xbf16>
    %cst_5 = arith.constant dense<0.000000e+00> : vector<384x384xf32>
    %5 = tpu.matmul %2, %4, %cst_5 {dimension_numbers = #tpu.dot_dimension_numbers<[1], [0], [0], [1], [0, 0, 1, 1], [], []>} : vector<384x28xbf16>, vector<28x384xbf16>, vector<384x384xf32> -> vector<384x384xf32>
    %6 = arith.addf %0, %5 : vector<384x384xf32>
    %c1 = arith.constant 1 : index
    %c0_6 = arith.constant 0 : index
    %c0_7 = arith.constant 0 : index
    %7 = vector.load %arg1[%c1, %c0_6, %c0_7] : memref<5x384x28xbf16, #tpu.memory_space<vmem>>, vector<1x384x28xbf16>
    %8 = vector.shape_cast %7 : vector<1x384x28xbf16> to vector<384x28xbf16>
    %c1_8 = arith.constant 1 : index
    %c0_9 = arith.constant 0 : index
    %c0_10 = arith.constant 0 : index
    %9 = vector.load %arg2[%c1_8, %c0_9, %c0_10] : memref<5x28x384xbf16, #tpu.memory_space<vmem>>, vector<1x28x384xbf16>
    %10 = vector.shape_cast %9 : vector<1x28x384xbf16> to vector<28x384xbf16>
    %cst_11 = arith.constant dense<0.000000e+00> : vector<384x384xf32>
    %11 = tpu.matmul %8, %10, %cst_11 {dimension_numbers = #tpu.dot_dimension_numbers<[1], [0], [0], [1], [0, 0, 1, 1], [], []>} : vector<384x28xbf16>, vector<28x384xbf16>, vector<384x384xf32> -> vector<384x384xf32>
    %12 = arith.addf %6, %11 : vector<384x384xf32>
    %c2 = arith.constant 2 : index
    %c0_12 = arith.constant 0 : index
    %c0_13 = arith.constant 0 : index
    %13 = vector.load %arg1[%c2, %c0_12, %c0_13] : memref<5x384x28xbf16, #tpu.memory_space<vmem>>, vector<1x384x28xbf16>
    %14 = vector.shape_cast %13 : vector<1x384x28xbf16> to vector<384x28xbf16>
    %c2_14 = arith.constant 2 : index
    %c0_15 = arith.constant 0 : index
    %c0_16 = arith.constant 0 : index
    %15 = vector.load %arg2[%c2_14, %c0_15, %c0_16] : memref<5x28x384xbf16, #tpu.memory_space<vmem>>, vector<1x28x384xbf16>
    %16 = vector.shape_cast %15 : vector<1x28x384xbf16> to vector<28x384xbf16>
    %cst_17 = arith.constant dense<0.000000e+00> : vector<384x384xf32>
    %17 = tpu.matmul %14, %16, %cst_17 {dimension_numbers = #tpu.dot_dimension_numbers<[1], [0], [0], [1], [0, 0, 1, 1], [], []>} : vector<384x28xbf16>, vector<28x384xbf16>, vector<384x384xf32> -> vector<384x384xf32>
    %18 = arith.addf %12, %17 : vector<384x384xf32>
    %c3 = arith.constant 3 : index
    %c0_18 = arith.constant 0 : index
    %c0_19 = arith.constant 0 : index
    %19 = vector.load %arg1[%c3, %c0_18, %c0_19] : memref<5x384x28xbf16, #tpu.memory_space<vmem>>, vector<1x384x28xbf16>
    %20 = vector.shape_cast %19 : vector<1x384x28xbf16> to vector<384x28xbf16>
    %c3_20 = arith.constant 3 : index
    %c0_21 = arith.constant 0 : index
    %c0_22 = arith.constant 0 : index
    %21 = vector.load %arg2[%c3_20, %c0_21, %c0_22] : memref<5x28x384xbf16, #tpu.memory_space<vmem>>, vector<1x28x384xbf16>
    %22 = vector.shape_cast %21 : vector<1x28x384xbf16> to vector<28x384xbf16>
    %cst_23 = arith.constant dense<0.000000e+00> : vector<384x384xf32>
    %23 = tpu.matmul %20, %22, %cst_23 {dimension_numbers = #tpu.dot_dimension_numbers<[1], [0], [0], [1], [0, 0, 1, 1], [], []>} : vector<384x28xbf16>, vector<28x384xbf16>, vector<384x384xf32> -> vector<384x384xf32>
    %24 = arith.addf %18, %23 : vector<384x384xf32>
    %c4 = arith.constant 4 : index
    %c0_24 = arith.constant 0 : index
    %c0_25 = arith.constant 0 : index
    %25 = vector.load %arg1[%c4, %c0_24, %c0_25] : memref<5x384x28xbf16, #tpu.memory_space<vmem>>, vector<1x384x28xbf16>
    %26 = vector.shape_cast %25 : vector<1x384x28xbf16> to vector<384x28xbf16>
    %c4_26 = arith.constant 4 : index
    %c0_27 = arith.constant 0 : index
    %c0_28 = arith.constant 0 : index
    %27 = vector.load %arg2[%c4_26, %c0_27, %c0_28] : memref<5x28x384xbf16, #tpu.memory_space<vmem>>, vector<1x28x384xbf16>
    %28 = vector.shape_cast %27 : vector<1x28x384xbf16> to vector<28x384xbf16>
    %cst_29 = arith.constant dense<0.000000e+00> : vector<384x384xf32>
    %29 = tpu.matmul %26, %28, %cst_29 {dimension_numbers = #tpu.dot_dimension_numbers<[1], [0], [0], [1], [0, 0, 1, 1], [], []>} : vector<384x28xbf16>, vector<28x384xbf16>, vector<384x384xf32> -> vector<384x384xf32>
    %30 = arith.addf %24, %29 : vector<384x384xf32>
    %c0_30 = arith.constant 0 : index
    %c0_31 = arith.constant 0 : index
    %31 = vector.load %arg3[%c0_30, %c0_31] : memref<1x384xf32, #tpu.memory_space<vmem>>, vector<1x384xf32>
    %32 = vector.broadcast %31 : vector<1x384xf32> to vector<384x384xf32>
    %33 = arith.addf %30, %32 : vector<384x384xf32>
    %cst_32 = arith.constant 0.000000e+00 : f32
    %34 = vector.broadcast %cst_32 : f32 to vector<384x384xf32>
    %35 = arith.maximumf %33, %34 : vector<384x384xf32>
    %36 = arith.truncf %35 : vector<384x384xf32> to vector<384x384xbf16>
    %c0_33 = arith.constant 0 : index
    %c0_34 = arith.constant 0 : index
    %37 = vector.load %arg4[%c0_33, %c0_34] : memref<384x192xbf16, #tpu.memory_space<vmem>>, vector<384x192xbf16>
    %cst_35 = arith.constant dense<0.000000e+00> : vector<384x192xf32>
    %38 = tpu.matmul %36, %37, %cst_35 {dimension_numbers = #tpu.dot_dimension_numbers<[1], [0], [0], [1], [0, 0, 1, 1], [], []>} : vector<384x384xbf16>, vector<384x192xbf16>, vector<384x192xf32> -> vector<384x192xf32>
    %39 = arith.truncf %38 : vector<384x192xf32> to vector<384x192xbf16>
    %cst_36 = arith.constant 0.000000e+00 : f32
    %40 = vector.broadcast %cst_36 : f32 to vector<128x256xf32>
    %c0_37 = arith.constant 0 : index
    %c0_38 = arith.constant 0 : index
    %c0_39 = arith.constant 0 : index
    %41 = vector.load %arg5[%c0_37, %c0_38, %c0_39] : memref<5x128x384xbf16, #tpu.memory_space<vmem>>, vector<1x128x384xbf16>
    %42 = vector.shape_cast %41 : vector<1x128x384xbf16> to vector<128x384xbf16>
    %cst_40 = arith.constant dense<0.000000e+00> : vector<128x192xf32>
    %43 = tpu.matmul %42, %39, %cst_40 {dimension_numbers = #tpu.dot_dimension_numbers<[1], [0], [0], [1], [0, 0, 1, 1], [], []>} : vector<128x384xbf16>, vector<384x192xbf16>, vector<128x192xf32> -> vector<128x192xf32>
    %44 = arith.truncf %43 : vector<128x192xf32> to vector<128x192xbf16>
    %c0_41 = arith.constant 0 : index
    %c0_42 = arith.constant 0 : index
    %c0_43 = arith.constant 0 : index
    %45 = vector.load %arg6[%c0_41, %c0_42, %c0_43] : memref<5x192x256xbf16, #tpu.memory_space<vmem>>, vector<1x192x256xbf16>
    %46 = vector.shape_cast %45 : vector<1x192x256xbf16> to vector<192x256xbf16>
    %cst_44 = arith.constant dense<0.000000e+00> : vector<128x256xf32>
    %47 = tpu.matmul %44, %46, %cst_44 {dimension_numbers = #tpu.dot_dimension_numbers<[1], [0], [0], [1], [0, 0, 1, 1], [], []>} : vector<128x192xbf16>, vector<192x256xbf16>, vector<128x256xf32> -> vector<128x256xf32>
    %48 = arith.addf %40, %47 : vector<128x256xf32>
    %c1_45 = arith.constant 1 : index
    %c0_46 = arith.constant 0 : index
    %c0_47 = arith.constant 0 : index
    %49 = vector.load %arg5[%c1_45, %c0_46, %c0_47] : memref<5x128x384xbf16, #tpu.memory_space<vmem>>, vector<1x128x384xbf16>
    %50 = vector.shape_cast %49 : vector<1x128x384xbf16> to vector<128x384xbf16>
    %cst_48 = arith.constant dense<0.000000e+00> : vector<128x192xf32>
    %51 = tpu.matmul %50, %39, %cst_48 {dimension_numbers = #tpu.dot_dimension_numbers<[1], [0], [0], [1], [0, 0, 1, 1], [], []>} : vector<128x384xbf16>, vector<384x192xbf16>, vector<128x192xf32> -> vector<128x192xf32>
    %52 = arith.truncf %51 : vector<128x192xf32> to vector<128x192xbf16>
    %c1_49 = arith.constant 1 : index
    %c0_50 = arith.constant 0 : index
    %c0_51 = arith.constant 0 : index
    %53 = vector.load %arg6[%c1_49, %c0_50, %c0_51] : memref<5x192x256xbf16, #tpu.memory_space<vmem>>, vector<1x192x256xbf16>
    %54 = vector.shape_cast %53 : vector<1x192x256xbf16> to vector<192x256xbf16>
    %cst_52 = arith.constant dense<0.000000e+00> : vector<128x256xf32>
    %55 = tpu.matmul %52, %54, %cst_52 {dimension_numbers = #tpu.dot_dimension_numbers<[1], [0], [0], [1], [0, 0, 1, 1], [], []>} : vector<128x192xbf16>, vector<192x256xbf16>, vector<128x256xf32> -> vector<128x256xf32>
    %56 = arith.addf %48, %55 : vector<128x256xf32>
    %c2_53 = arith.constant 2 : index
    %c0_54 = arith.constant 0 : index
    %c0_55 = arith.constant 0 : index
    %57 = vector.load %arg5[%c2_53, %c0_54, %c0_55] : memref<5x128x384xbf16, #tpu.memory_space<vmem>>, vector<1x128x384xbf16>
    %58 = vector.shape_cast %57 : vector<1x128x384xbf16> to vector<128x384xbf16>
    %cst_56 = arith.constant dense<0.000000e+00> : vector<128x192xf32>
    %59 = tpu.matmul %58, %39, %cst_56 {dimension_numbers = #tpu.dot_dimension_numbers<[1], [0], [0], [1], [0, 0, 1, 1], [], []>} : vector<128x384xbf16>, vector<384x192xbf16>, vector<128x192xf32> -> vector<128x192xf32>
    %60 = arith.truncf %59 : vector<128x192xf32> to vector<128x192xbf16>
    %c2_57 = arith.constant 2 : index
    %c0_58 = arith.constant 0 : index
    %c0_59 = arith.constant 0 : index
    %61 = vector.load %arg6[%c2_57, %c0_58, %c0_59] : memref<5x192x256xbf16, #tpu.memory_space<vmem>>, vector<1x192x256xbf16>
    %62 = vector.shape_cast %61 : vector<1x192x256xbf16> to vector<192x256xbf16>
    %cst_60 = arith.constant dense<0.000000e+00> : vector<128x256xf32>
    %63 = tpu.matmul %60, %62, %cst_60 {dimension_numbers = #tpu.dot_dimension_numbers<[1], [0], [0], [1], [0, 0, 1, 1], [], []>} : vector<128x192xbf16>, vector<192x256xbf16>, vector<128x256xf32> -> vector<128x256xf32>
    %64 = arith.addf %56, %63 : vector<128x256xf32>
    %c3_61 = arith.constant 3 : index
    %c0_62 = arith.constant 0 : index
    %c0_63 = arith.constant 0 : index
    %65 = vector.load %arg5[%c3_61, %c0_62, %c0_63] : memref<5x128x384xbf16, #tpu.memory_space<vmem>>, vector<1x128x384xbf16>
    %66 = vector.shape_cast %65 : vector<1x128x384xbf16> to vector<128x384xbf16>
    %cst_64 = arith.constant dense<0.000000e+00> : vector<128x192xf32>
    %67 = tpu.matmul %66, %39, %cst_64 {dimension_numbers = #tpu.dot_dimension_numbers<[1], [0], [0], [1], [0, 0, 1, 1], [], []>} : vector<128x384xbf16>, vector<384x192xbf16>, vector<128x192xf32> -> vector<128x192xf32>
    %68 = arith.truncf %67 : vector<128x192xf32> to vector<128x192xbf16>
    %c3_65 = arith.constant 3 : index
    %c0_66 = arith.constant 0 : index
    %c0_67 = arith.constant 0 : index
    %69 = vector.load %arg6[%c3_65, %c0_66, %c0_67] : memref<5x192x256xbf16, #tpu.memory_space<vmem>>, vector<1x192x256xbf16>
    %70 = vector.shape_cast %69 : vector<1x192x256xbf16> to vector<192x256xbf16>
    %cst_68 = arith.constant dense<0.000000e+00> : vector<128x256xf32>
    %71 = tpu.matmul %68, %70, %cst_68 {dimension_numbers = #tpu.dot_dimension_numbers<[1], [0], [0], [1], [0, 0, 1, 1], [], []>} : vector<128x192xbf16>, vector<192x256xbf16>, vector<128x256xf32> -> vector<128x256xf32>
    %72 = arith.addf %64, %71 : vector<128x256xf32>
    %c4_69 = arith.constant 4 : index
    %c0_70 = arith.constant 0 : index
    %c0_71 = arith.constant 0 : index
    %73 = vector.load %arg5[%c4_69, %c0_70, %c0_71] : memref<5x128x384xbf16, #tpu.memory_space<vmem>>, vector<1x128x384xbf16>
    %74 = vector.shape_cast %73 : vector<1x128x384xbf16> to vector<128x384xbf16>
    %cst_72 = arith.constant dense<0.000000e+00> : vector<128x192xf32>
    %75 = tpu.matmul %74, %39, %cst_72 {dimension_numbers = #tpu.dot_dimension_numbers<[1], [0], [0], [1], [0, 0, 1, 1], [], []>} : vector<128x384xbf16>, vector<384x192xbf16>, vector<128x192xf32> -> vector<128x192xf32>
    %76 = arith.truncf %75 : vector<128x192xf32> to vector<128x192xbf16>
    %c4_73 = arith.constant 4 : index
    %c0_74 = arith.constant 0 : index
    %c0_75 = arith.constant 0 : index
    %77 = vector.load %arg6[%c4_73, %c0_74, %c0_75] : memref<5x192x256xbf16, #tpu.memory_space<vmem>>, vector<1x192x256xbf16>
    %78 = vector.shape_cast %77 : vector<1x192x256xbf16> to vector<192x256xbf16>
    %cst_76 = arith.constant dense<0.000000e+00> : vector<128x256xf32>
    %79 = tpu.matmul %76, %78, %cst_76 {dimension_numbers = #tpu.dot_dimension_numbers<[1], [0], [0], [1], [0, 0, 1, 1], [], []>} : vector<128x192xbf16>, vector<192x256xbf16>, vector<128x256xf32> -> vector<128x256xf32>
    %80 = arith.addf %72, %79 : vector<128x256xf32>
    %c0_77 = arith.constant 0 : index
    %c0_78 = arith.constant 0 : index
    %81 = vector.load %arg7[%c0_77, %c0_78] : memref<1x256xf32, #tpu.memory_space<vmem>>, vector<1x256xf32>
    %82 = vector.broadcast %81 : vector<1x256xf32> to vector<128x256xf32>
    %83 = arith.addf %80, %82 : vector<128x256xf32>
    %cst_79 = arith.constant 0.000000e+00 : f32
    %84 = vector.broadcast %cst_79 : f32 to vector<128x256xf32>
    %85 = arith.maximumf %83, %84 : vector<128x256xf32>
    %86 = arith.truncf %85 : vector<128x256xf32> to vector<128x256xbf16>
    %c0_80 = arith.constant 0 : index
    %c0_81 = arith.constant 0 : index
    %87 = vector.load %arg8[%c0_80, %c0_81] : memref<256x128xbf16, #tpu.memory_space<vmem>>, vector<256x128xbf16>
    %cst_82 = arith.constant dense<0.000000e+00> : vector<128x128xf32>
    %88 = tpu.matmul %86, %87, %cst_82 {dimension_numbers = #tpu.dot_dimension_numbers<[1], [0], [0], [1], [0, 0, 1, 1], [], []>} : vector<128x256xbf16>, vector<256x128xbf16>, vector<128x128xf32> -> vector<128x128xf32>
    %89 = arith.truncf %88 : vector<128x128xf32> to vector<128x128xbf16>
    %c0_83 = arith.constant 0 : index
    %c0_84 = arith.constant 0 : index
    %90 = vector.load %arg9[%c0_83, %c0_84] : memref<128x32xbf16, #tpu.memory_space<vmem>>, vector<128x32xbf16>
    %cst_85 = arith.constant dense<0.000000e+00> : vector<128x32xf32>
    %91 = tpu.matmul %89, %90, %cst_85 {dimension_numbers = #tpu.dot_dimension_numbers<[1], [0], [0], [1], [0, 0, 1, 1], [], []>} : vector<128x128xbf16>, vector<128x32xbf16>, vector<128x32xf32> -> vector<128x32xf32>
    %c0_86 = arith.constant 0 : index
    %c0_87 = arith.constant 0 : index
    %92 = vector.load %arg10[%c0_86, %c0_87] : memref<128x32xf32, #tpu.memory_space<vmem>>, vector<128x32xf32>
    %93 = arith.mulf %91, %92 : vector<128x32xf32>
    %94 = arith.truncf %93 : vector<128x32xf32> to vector<128x32xbf16>
    %c0_88 = arith.constant 0 : index
    %c0_89 = arith.constant 0 : index
    %95 = vector.load %arg11[%c0_88, %c0_89] : memref<16x128xbf16, #tpu.memory_space<vmem>>, vector<16x128xbf16>
    %cst_90 = arith.constant dense<0.000000e+00> : vector<16x32xf32>
    %96 = tpu.matmul %95, %94, %cst_90 {dimension_numbers = #tpu.dot_dimension_numbers<[1], [0], [0], [1], [0, 0, 1, 1], [], []>} : vector<16x128xbf16>, vector<128x32xbf16>, vector<16x32xf32> -> vector<16x32xf32>
    %97 = arith.truncf %96 : vector<16x32xf32> to vector<16x32xbf16>
    %c0_91 = arith.constant 0 : index
    %c0_92 = arith.constant 0 : index
    %98 = vector.load %arg12[%c0_91, %c0_92] : memref<32x4xbf16, #tpu.memory_space<vmem>>, vector<32x4xbf16>
    %cst_93 = arith.constant dense<0.000000e+00> : vector<16x4xf32>
    %99 = tpu.matmul %97, %98, %cst_93 {dimension_numbers = #tpu.dot_dimension_numbers<[1], [0], [0], [1], [0, 0, 1, 1], [], []>} : vector<16x32xbf16>, vector<32x4xbf16>, vector<16x4xf32> -> vector<16x4xf32>
    %c0_94 = arith.constant 0 : index
    %c0_95 = arith.constant 0 : index
    %100 = vector.load %arg13[%c0_94, %c0_95] : memref<1x4xf32, #tpu.memory_space<vmem>>, vector<1x4xf32>
    %101 = vector.broadcast %100 : vector<1x4xf32> to vector<16x4xf32>
    %102 = arith.addf %99, %101 : vector<16x4xf32>
    %c0_96 = arith.constant 0 : index
    %c0_97 = arith.constant 0 : index
    %103 = vector.load %arg14[%c0_96, %c0_97] : memref<16x4xf32, #tpu.memory_space<vmem>>, vector<16x4xf32>
    tpu.vector_store %arg14[%c0_96, %c0_97], %102 {strides = array<i32>} : memref<16x4xf32, #tpu.memory_space<vmem>>, vector<16x4xf32>,
    return
  }
  func.func @transform_0(%arg0: i32) -> (i32, i32, i32) {
    %c0_i32 = arith.constant 0 : i32
    %c0_i32_0 = arith.constant 0 : i32
    %c0_i32_1 = arith.constant 0 : i32
    return %c0_i32, %arg0, %c0_i32_0 : i32, i32, i32
  }
  func.func @transform_1(%arg0: i32) -> (i32, i32, i32) {
    %c0_i32 = arith.constant 0 : i32
    %c0_i32_0 = arith.constant 0 : i32
    %c0_i32_1 = arith.constant 0 : i32
    %c0_i32_2 = arith.constant 0 : i32
    return %c0_i32, %c0_i32_0, %c0_i32_1 : i32, i32, i32
  }
  func.func @transform_2(%arg0: i32) -> (i32, i32) {
    %c0_i32 = arith.constant 0 : i32
    %c0_i32_0 = arith.constant 0 : i32
    %c0_i32_1 = arith.constant 0 : i32
    return %c0_i32, %c0_i32_0 : i32, i32
  }
  func.func @transform_3(%arg0: i32) -> (i32, i32) {
    %c0_i32 = arith.constant 0 : i32
    %c0_i32_0 = arith.constant 0 : i32
    %c0_i32_1 = arith.constant 0 : i32
    return %c0_i32, %c0_i32_0 : i32, i32
  }
  func.func @transform_4(%arg0: i32) -> (i32, i32, i32) {
    %c0_i32 = arith.constant 0 : i32
    %c0_i32_0 = arith.constant 0 : i32
    %c0_i32_1 = arith.constant 0 : i32
    %c0_i32_2 = arith.constant 0 : i32
    return %c0_i32, %c0_i32_0, %c0_i32_1 : i32, i32, i32
  }
  func.func @transform_5(%arg0: i32) -> (i32, i32, i32) {
    %c0_i32 = arith.constant 0 : i32
    %c0_i32_0 = arith.constant 0 : i32
    %c0_i32_1 = arith.constant 0 : i32
    %c0_i32_2 = arith.constant 0 : i32
    return %c0_i32, %c0_i32_0, %c0_i32_1 : i32, i32, i32
  }
  func.func @transform_6(%arg0: i32) -> (i32, i32) {
    %c0_i32 = arith.constant 0 : i32
    %c0_i32_0 = arith.constant 0 : i32
    %c0_i32_1 = arith.constant 0 : i32
    return %c0_i32, %c0_i32_0 : i32, i32
  }
  func.func @transform_7(%arg0: i32) -> (i32, i32) {
    %c0_i32 = arith.constant 0 : i32
    %c0_i32_0 = arith.constant 0 : i32
    %c0_i32_1 = arith.constant 0 : i32
    return %c0_i32, %c0_i32_0 : i32, i32
  }
  func.func @transform_8(%arg0: i32) -> (i32, i32) {
    %c0_i32 = arith.constant 0 : i32
    %c0_i32_0 = arith.constant 0 : i32
    %c0_i32_1 = arith.constant 0 : i32
    return %c0_i32, %c0_i32_0 : i32, i32
  }
  func.func @transform_9(%arg0: i32) -> (i32, i32) {
    %c0_i32 = arith.constant 0 : i32
    %c0_i32_0 = arith.constant 0 : i32
    %c0_i32_1 = arith.constant 0 : i32
    return %c0_i32, %c0_i32_0 : i32, i32
  }
  func.func @transform_10(%arg0: i32) -> (i32, i32) {
    %c0_i32 = arith.constant 0 : i32
    %c0_i32_0 = arith.constant 0 : i32
    %c0_i32_1 = arith.constant 0 : i32
    return %c0_i32, %c0_i32_0 : i32, i32
  }
  func.func @transform_11(%arg0: i32) -> (i32, i32) {
    %c0_i32 = arith.constant 0 : i32
    %c0_i32_0 = arith.constant 0 : i32
    %c0_i32_1 = arith.constant 0 : i32
    return %c0_i32, %c0_i32_0 : i32, i32
  }
  func.func @transform_12(%arg0: i32) -> (i32, i32) {
    %c0_i32 = arith.constant 0 : i32
    %c0_i32_0 = arith.constant 0 : i32
    %c0_i32_1 = arith.constant 0 : i32
    return %c0_i32, %c0_i32_0 : i32, i32
  }
  func.func @transform_13(%arg0: i32) -> (i32, i32) {
    %c0_i32 = arith.constant 0 : i32
    %c0_i32_0 = arith.constant 0 : i32
    return %arg0, %c0_i32 : i32, i32
  }
}

</mosaic_0001>

<bundles_post_ra>
// kernel: tile.23
= control target key start
LH: loop header
LB: loop body
LE: loop exit
PB: predicated region body
PF: predicated region fallthrough
CT: control target
= control target key end

     0   :  { %s34_s0 = inlined_call_operand.vmem [shape: f32[16], index: 0, kind: input, shape index: {}]   ;;  %s35_s1 = inlined_call_operand.vmem [shape: f32[24,16], index: 1, kind: output, shape index: {}]  }
   0x1   :  { %v4_v0 = vld [vmem:[%s34_s0] ss:$0 sm:$0xff] }
   0x2   :  { %5 = vst [vmem:[%s35_s1] sm:$0xff] %v4_v0  ;;  %10 = vst [vmem:[%s35_s1 + $0x8] sm:$0xff] %v4_v0 }
   0x3   :  { %11 = vst [vmem:[%s35_s1 + $0x10] sm:$0xff] %v4_v0 }

// kernel: tile.24
= control target key start
LH: loop header
LB: loop body
LE: loop exit
PB: predicated region body
PF: predicated region fallthrough
CT: control target
= control target key end

     0   :  { %s85_s8 = smov 112   ;;  %s86_s11 = smov 80   ;;  %vm3_vm0 = vcmask 130048   ;;  %vm9_vm1 = vcmask 1048448   ;;  %vm15_vm2 = vcmask 917248   ;;  %vm21_vm3 = vcmask 786048   ;;  %s135_s0 = inlined_call_operand.vmem [shape: f32[24,16], index: 0, kind: input, shape index: {}]   ;;  %s136_s1 = inlined_call_operand.vmem [shape: f32[1,384], index: 1, kind: output, shape index: {}]  }
   0x1   :  { %v69_v0 = vld [vmem:[%s135_s0 + $0x7] ss:$8 sm:$0x7]   ;;  %v71_v1 = vld [vmem:[%s135_s0 + $0x5] ss:$8 sm:$0x7]  }
   0x2   :  { %7 = vrot.lane.b32.xlu0 %v69_v0, %s85_s8  ;;  %19 = vrot.lane.b32.xlu1 %v71_v1, %s86_s11  ;;  %v70_v2 = vld [vmem:[%s135_s0 + $0x6] ss:$8 sm:$0x7]   ;;  %v72_v3 = vld [vmem:[%s135_s0 + $0x4] ss:$8 sm:$0x7]  }
   0x3   :  { %s87_s16 = smov 96   ;;  %v2_v4 = vld [vmem:[%s135_s0] ss:$8 sm:$0x7]   ;;  %s88_s19 = smov 64   ;;  %vm27_vm4 = vcmask 654848  }
   0x4   :  { %v73_v5 = vld [vmem:[%s135_s0 + $0x3] ss:$8 sm:$0x7]   ;;  %4 = vst.msk [vmem:[#allocation0] ss:$8 sm:$0x7] %vm3_vm0, %v2_v4  }
   0x5   :  { %v74_v6 = vld [vmem:[%s135_s0 + $0x2] ss:$8 sm:$0x7]   ;;  %s89_s24 = smov 48   ;;  %s90_s25 = smov 32   ;;  %vm33_vm5 = vcmask 523648  }
   0x6   :  { %13 = vrot.lane.b32.xlu0 %v70_v2, %s87_s16  ;;  %25 = vrot.lane.b32.xlu1 %v72_v3, %s88_s19  ;;  %v75_v7 = vld [vmem:[%s135_s0 + $0x1] ss:$8 sm:$0x7]   ;;  %s91_s0 = smov 16   ;;  %vm39_vm6 = vcmask 392448   ;;  %vm45_vm7 = vcmask 261248  }
   0xa   :  { %31 = vrot.lane.b32.xlu0 %v73_v5, %s89_s24  ;;  %37 = vrot.lane.b32.xlu1 %v74_v6, %s90_s25 }
   0xe   :  { %43 = vrot.lane.b32.xlu0 %v75_v7, %s91_s0 }
  0x74   :  { %v8_v8 = vpop.permute.xlu0 %7   ;;  %v20_v9 = vpop.permute.xlu1 %19  }
  0x75   :  { %10 = vst.msk [vmem:[#allocation0] ss:$8 sm:$0x7] %vm9_vm1, %v8_v8  }
  0x78   :  { %v14_v10 = vpop.permute.xlu0 %13   ;;  %v26_v11 = vpop.permute.xlu1 %25  }
  0x79   :  { %16 = vst.msk [vmem:[#allocation0] ss:$8 sm:$0x7] %vm15_vm2, %v14_v10  }
  0x7a   :  { %22 = vst.msk [vmem:[#allocation0] ss:$8 sm:$0x7] %vm21_vm3, %v20_v9  }
  0x7b   :  { %28 = vst.msk [vmem:[#allocation0] ss:$8 sm:$0x7] %vm27_vm4, %v26_v11  }
  0x7c   :  { %v32_v12 = vpop.permute.xlu0 %31   ;;  %v38_v13 = vpop.permute.xlu1 %37  }
  0x7d   :  { %34 = vst.msk [vmem:[#allocation0] ss:$8 sm:$0x7] %vm33_vm5, %v32_v12  }
  0x7e   :  { %40 = vst.msk [vmem:[#allocation0] ss:$8 sm:$0x7] %vm39_vm6, %v38_v13  }
  0x80   :  { %v44_v14 = vpop.permute.xlu0 %43  }
  0x81   :  { %46 = vst.msk [vmem:[#allocation0] ss:$8 sm:$0x7] %vm45_vm7, %v44_v14  }
  0x88   :  { %v51_v15 = vld [vmem:[#allocation0] sm:$0x1]  ;;  %v56_v16 = vld [vmem:[#allocation0 + $0x8] sm:$0x1]  ;;  %v62_v17 = vld [vmem:[#allocation0 + $0x10] sm:$0x1] }
  0x89   :  { %54 = vst [vmem:[%s136_s1] sm:$0x1] %v51_v15  ;;  %76 = vst [vmem:[%s136_s1 + $0x1] sm:$0x1] %v56_v16 }
  0x8a   :  { %77 = vst [vmem:[%s136_s1 + $0x2] sm:$0x1] %v62_v17 }

// kernel: tile.28
= control target key start
LH: loop header
LB: loop body
LE: loop exit
PB: predicated region body
PF: predicated region fallthrough
CT: control target
= control target key end

     0   :  { %s22_s0 = inlined_call_operand.vmem [shape: f32[32], index: 0, kind: input, shape index: {}]   ;;  %s23_s1 = inlined_call_operand.vmem [shape: f32[8,32], index: 1, kind: output, shape index: {}]  }
   0x1   :  { %v4_v0 = vld [vmem:[%s22_s0] ss:$0 sm:$0xff] }
   0x2   :  { %5 = vst [vmem:[%s23_s1] sm:$0xff] %v4_v0 }

// kernel: tile.29
= control target key start
LH: loop header
LB: loop body
LE: loop exit
PB: predicated region body
PF: predicated region fallthrough
CT: control target
= control target key end

     0   :  { %s7_s6 = smov 3  ;;  %s14_s9 = smov 3  ;;  %vm4_vm0 = vcmask 261120   ;;  %vm11_vm1 = vcmask 1048320   ;;  %vm18_vm2 = vcmask 785920   ;;  %vm25_vm3 = vcmask 523520   ;;  %s79_s0 = inlined_call_operand.vmem [shape: f32[8,32], index: 0, kind: input, shape index: {}]   ;;  %s80_s1 = inlined_call_operand.vmem [shape: f32[1,256], index: 1, kind: output, shape index: {}]  }
   0x1   :  { %v41_v0 = vld [vmem:[%s79_s0 + $0x3] ss:$4 sm:%s7_s6]   ;;  %s48_s10 = smov 96   ;;  %s21_s11 = smov 3  ;;  %v42_v1 = vld [vmem:[%s79_s0 + $0x2] ss:$4 sm:%s14_s9]  }
   0x2   :  { %9 = vrot.lane.b32.xlu0 %v41_v0, %s48_s10  ;;  %v43_v2 = vld [vmem:[%s79_s0 + $0x1] ss:$4 sm:%s21_s11]   ;;  %s2_s16 = smov 3  ;;  %s49_s17 = smov 32  }
   0x3   :  { %23 = vrot.lane.b32.xlu1 %v43_v2, %s49_s17  ;;  %v3_v3 = vld [vmem:[%s79_s0] ss:$4 sm:%s2_s16]   ;;  %s50_s0 = smov 64  }
   0x4   :  { %5 = vst.msk [vmem:[#allocation0] ss:$8 sm:$0x3] %vm4_vm0, %v3_v3  }
   0x6   :  { %16 = vrot.lane.b32.xlu0 %v42_v1, %s50_s0 }
  0x74   :  { %v10_v4 = vpop.permute.xlu0 %9  }
  0x75   :  { %12 = vst.msk [vmem:[#allocation0] ss:$8 sm:$0x3] %vm11_vm1, %v10_v4   ;;  %v24_v5 = vpop.permute.xlu1 %23  }
  0x78   :  { %v17_v6 = vpop.permute.xlu0 %16  }
  0x79   :  { %19 = vst.msk [vmem:[#allocation0] ss:$8 sm:$0x3] %vm18_vm2, %v17_v6  }
  0x7a   :  { %26 = vst.msk [vmem:[#allocation0] ss:$8 sm:$0x3] %vm25_vm3, %v24_v5  }
  0x81   :  { %v31_v7 = vld [vmem:[#allocation0] sm:$0x1]  ;;  %v36_v8 = vld [vmem:[#allocation0 + $0x8] sm:$0x1] }
  0x82   :  { %34 = vst [vmem:[%s80_s1] sm:$0x1] %v31_v7  ;;  %44 = vst [vmem:[%s80_s1 + $0x1] sm:$0x1] %v36_v8 }

// kernel: net_basic_forward.1
= control target key start
LH: loop header
LB: loop body
LE: loop exit
PB: predicated region body
PF: predicated region fallthrough
CT: control target
= control target key end

     0   :  { %s13777_s25 = smov 0   ;;  %s13779_s26 = smov 0   ;;  %s19319_s0 = inlined_call_operand.vmem [shape: bf16[5,768,28], index: 0, kind: input, shape index: {}]   ;;  %s19320_s1 = inlined_call_operand.vmem [shape: bf16[5,28,384], index: 1, kind: input, shape index: {}]   ;;  %s19321_s2 = inlined_call_operand.vmem [shape: f32[1,384], index: 2, kind: input, shape index: {}]   ;;  %s19322_s3 = inlined_call_operand.vmem [shape: bf16[384,192], index: 3, kind: input, shape index: {}]   ;;  %s19323_s4 = inlined_call_operand.vmem [shape: bf16[5,128,384], index: 4, kind: input, shape index: {}]   ;;  %s19324_s5 = inlined_call_operand.vmem [shape: bf16[5,192,256], index: 5, kind: input, shape index: {}]   ;;  %s19325_s6 = inlined_call_operand.vmem [shape: f32[1,256], index: 6, kind: input, shape index: {}]   ;;  %s19326_s7 = inlined_call_operand.vmem [shape: bf16[256,128], index: 7, kind: input, shape index: {}]   ;;  %s19327_s8 = inlined_call_operand.vmem [shape: bf16[128,32], index: 8, kind: input, shape index: {}]   ;;  %s19328_s9 = inlined_call_operand.vmem [shape: f32[128,32], index: 9, kind: input, shape index: {}]   ;;  %s19329_s10 = inlined_call_operand.vmem [shape: bf16[16,128], index: 10, kind: input, shape index: {}]   ;;  %s19330_s11 = inlined_call_operand.vmem [shape: bf16[32,4], index: 11, kind: input, shape index: {}]   ;;  %s19331_s12 = inlined_call_operand.vmem [shape: f32[1,4], index: 12, kind: input, shape index: {}]   ;;  %s19332_s13 = inlined_call_operand.vmem [shape: f32[32,4], index: 13, kind: output, shape index: {}]  }
   0x1   :  { %s13781_s27 = smov 0  }
   0x2 LB: > { %s11294_s28 = sadd.s32 4294967295, %s13702_s27   ;;  %s13794_s29 = sadd.s32 1, %s13702_s27   ;;  %s13702_s27 = sphi %s13781_s27, %s20515_s27   ;;  %s13698_s26 = sphi %s13779_s26, %s20514_s26   ;;  %s13694_s25 = sphi %s13777_s25, %s20513_s25  }
   0x3   : > { %s27_s30 = ssub.s32 %s13702_s27, %s13794_s29  ;;  %s30_s14 = sadd.s32 1, %s13698_s26 }
   0x4   : > { %p28_p0 = scmp.eq.s32.totalorder %s27_s30, 0  ;;  %p37_p1 = scmp.ne.s32.totalorder %s13698_s26, %s13694_s25 }
   0x5   : > { %p38_p2 = scmp.eq.s32.totalorder %s13702_s27, 0  ;;  %p11297_p4 = scmp.ge.s32.totalorder %s13702_s27, 2 }
   0x6   : > { %s13803_s15 = scalar_select %p28_p0, %s13698_s26, %s30_s14  }
   0x7   : > { %p39_p3 = por %p38_p2, %p37_p1  ;;  %377 = sbr.rel (%p11297_p4) target bundleno = 77 (0x4d), region = 64 }
   0xc   : > { %380 = sbr.rel (!%p39_p3) target bundleno = 77 (0x4d), region = 68  ;;  %s382_s16 = sand.u32 (%p39_p3), 1, %s13698_s26  }
   0xd   : > { %s12504_s17 = smul.u32 (%p39_p3), 192, %s13702_s27 }
   0xe   : > { %s13052_s18 = smul.u32 (%p39_p3), 960, %s382_s16 }
   0xf   : > { %s13811_s21 = scalar_lea.vmem (%p39_p3), %s19319_s0, %s12504_s17 }
  0x10   : > { %v404_v0 = vld [vmem:[%s13811_s21] sm:$0xff] (%p39_p3)   ;;  %v408_v1 = vld [vmem:[%s13811_s21 + $0x8] sm:$0xff] (%p39_p3)   ;;  %v412_v2 = vld [vmem:[%s13811_s21 + $0x10] sm:$0xff] (%p39_p3)   ;;  %s13816_s22 = scalar_lea.vmem (%p39_p3), [#allocation2], %s13052_s18 }
  0x11   : > { %405 = vst [vmem:[%s13816_s22] sm:$0xff] %v404_v0   ;;  %409 = vst [vmem:[%s13816_s22 + $0x8] sm:$0xff] %v408_v1   ;;  %v416_v3 = vld [vmem:[%s13811_s21 + $0x18] sm:$0xff]   ;;  %v420_v4 = vld [vmem:[%s13811_s21 + $0x20] sm:$0xff]  }
  0x12   : > { %413 = vst [vmem:[%s13816_s22 + $0x10] sm:$0xff] %v412_v2   ;;  %v424_v5 = vld [vmem:[%s13811_s21 + $0x28] sm:$0xff]   ;;  %417 = vst [vmem:[%s13816_s22 + $0x18] sm:$0xff] %v416_v3   ;;  %v428_v6 = vld [vmem:[%s13811_s21 + $0x30] sm:$0xff]  }
  0x13   : > { %421 = vst [vmem:[%s13816_s22 + $0x20] sm:$0xff] %v420_v4   ;;  %425 = vst [vmem:[%s13816_s22 + $0x28] sm:$0xff] %v424_v5   ;;  %v432_v7 = vld [vmem:[%s13811_s21 + $0x38] sm:$0xff]   ;;  %v436_v8 = vld [vmem:[%s13811_s21 + $0x40] sm:$0xff]  }
  0x14   : > { %429 = vst [vmem:[%s13816_s22 + $0x30] sm:$0xff] %v428_v6   ;;  %433 = vst [vmem:[%s13816_s22 + $0x38] sm:$0xff] %v432_v7   ;;  %v440_v9 = vld [vmem:[%s13811_s21 + $0x48] sm:$0xff]   ;;  %v444_v10 = vld [vmem:[%s13811_s21 + $0x50] sm:$0xff]  }
  0x15   : > { %437 = vst [vmem:[%s13816_s22 + $0x40] sm:$0xff] %v436_v8   ;;  %v448_v11 = vld [vmem:[%s13811_s21 + $0x58] sm:$0xff]   ;;  %441 = vst [vmem:[%s13816_s22 + $0x48] sm:$0xff] %v440_v9   ;;  %v452_v12 = vld [vmem:[%s13811_s21 + $0x60] sm:$0xff]  }
  0x16   : > { %445 = vst [vmem:[%s13816_s22 + $0x50] sm:$0xff] %v444_v10   ;;  %449 = vst [vmem:[%s13816_s22 + $0x58] sm:$0xff] %v448_v11   ;;  %v456_v13 = vld [vmem:[%s13811_s21 + $0x68] sm:$0xff]   ;;  %v460_v14 = vld [vmem:[%s13811_s21 + $0x70] sm:$0xff]  }
  0x17   : > { %453 = vst [vmem:[%s13816_s22 + $0x60] sm:$0xff] %v452_v12   ;;  %457 = vst [vmem:[%s13816_s22 + $0x68] sm:$0xff] %v456_v13   ;;  %v464_v15 = vld [vmem:[%s13811_s21 + $0x78] sm:$0xff]   ;;  %v468_v16 = vld [vmem:[%s13811_s21 + $0x80] sm:$0xff]  }
  0x18   : > { %461 = vst [vmem:[%s13816_s22 + $0x70] sm:$0xff] %v460_v14   ;;  %v472_v17 = vld [vmem:[%s13811_s21 + $0x88] sm:$0xff]   ;;  %465 = vst [vmem:[%s13816_s22 + $0x78] sm:$0xff] %v464_v15   ;;  %v476_v18 = vld [vmem:[%s13811_s21 + $0x90] sm:$0xff]  }
  0x19   : > { %469 = vst [vmem:[%s13816_s22 + $0x80] sm:$0xff] %v468_v16   ;;  %473 = vst [vmem:[%s13816_s22 + $0x88] sm:$0xff] %v472_v17   ;;  %v480_v19 = vld [vmem:[%s13811_s21 + $0x98] sm:$0xff]   ;;  %v484_v20 = vld [vmem:[%s13811_s21 + $0xa0] sm:$0xff]  }
  0x1a   : > { %477 = vst [vmem:[%s13816_s22 + $0x90] sm:$0xff] %v476_v18   ;;  %481 = vst [vmem:[%s13816_s22 + $0x98] sm:$0xff] %v480_v19   ;;  %v488_v21 = vld [vmem:[%s13811_s21 + $0xa8] sm:$0xff]   ;;  %v492_v22 = vld [vmem:[%s13811_s21 + $0xb0] sm:$0xff]  }
  0x1b   : > { %485 = vst [vmem:[%s13816_s22 + $0xa0] sm:$0xff] %v484_v20   ;;  %v496_v23 = vld [vmem:[%s13811_s21 + $0xb8] sm:$0xff]   ;;  %489 = vst [vmem:[%s13816_s22 + $0xa8] sm:$0xff] %v488_v21   ;;  %v500_v24 = vld [vmem:[%s13811_s21 + $0x180] sm:$0xff]  }
  0x1c   : > { %493 = vst [vmem:[%s13816_s22 + $0xb0] sm:$0xff] %v492_v22   ;;  %497 = vst [vmem:[%s13816_s22 + $0xb8] sm:$0xff] %v496_v23   ;;  %v504_v25 = vld [vmem:[%s13811_s21 + $0x188] sm:$0xff]   ;;  %v508_v26 = vld [vmem:[%s13811_s21 + $0x190] sm:$0xff]  }
  0x1d   : > { %501 = vst [vmem:[%s13816_s22 + $0xc0] sm:$0xff] %v500_v24   ;;  %505 = vst [vmem:[%s13816_s22 + $0xc8] sm:$0xff] %v504_v25   ;;  %v512_v27 = vld [vmem:[%s13811_s21 + $0x198] sm:$0xff]   ;;  %v516_v28 = vld [vmem:[%s13811_s21 + $0x1a0] sm:$0xff]  }
  0x1e   : > { %509 = vst [vmem:[%s13816_s22 + $0xd0] sm:$0xff] %v508_v26   ;;  %v520_v29 = vld [vmem:[%s13811_s21 + $0x1a8] sm:$0xff]   ;;  %513 = vst [vmem:[%s13816_s22 + $0xd8] sm:$0xff] %v512_v27   ;;  %v524_v30 = vld [vmem:[%s13811_s21 + $0x1b0] sm:$0xff]  }
  0x1f   : > { %517 = vst [vmem:[%s13816_s22 + $0xe0] sm:$0xff] %v516_v28   ;;  %521 = vst [vmem:[%s13816_s22 + $0xe8] sm:$0xff] %v520_v29   ;;  %v528_v31 = vld [vmem:[%s13811_s21 + $0x1b8] sm:$0xff]   ;;  %v532_v32 = vld [vmem:[%s13811_s21 + $0x1c0] sm:$0xff]  }
  0x20   : > { %525 = vst [vmem:[%s13816_s22 + $0xf0] sm:$0xff] %v524_v30   ;;  %529 = vst [vmem:[%s13816_s22 + $0xf8] sm:$0xff] %v528_v31   ;;  %v536_v33 = vld [vmem:[%s13811_s21 + $0x1c8] sm:$0xff]   ;;  %v540_v34 = vld [vmem:[%s13811_s21 + $0x1d0] sm:$0xff]  }
  0x21   : > { %533 = vst [vmem:[%s13816_s22 + $0x100] sm:$0xff] %v532_v32   ;;  %v544_v35 = vld [vmem:[%s13811_s21 + $0x1d8] sm:$0xff]   ;;  %537 = vst [vmem:[%s13816_s22 + $0x108] sm:$0xff] %v536_v33   ;;  %v548_v36 = vld [vmem:[%s13811_s21 + $0x1e0] sm:$0xff]  }
  0x22   : > { %541 = vst [vmem:[%s13816_s22 + $0x110] sm:$0xff] %v540_v34   ;;  %545 = vst [vmem:[%s13816_s22 + $0x118] sm:$0xff] %v544_v35   ;;  %v552_v37 = vld [vmem:[%s13811_s21 + $0x1e8] sm:$0xff]   ;;  %v556_v38 = vld [vmem:[%s13811_s21 + $0x1f0] sm:$0xff]  }
  0x23   : > { %549 = vst [vmem:[%s13816_s22 + $0x120] sm:$0xff] %v548_v36   ;;  %553 = vst [vmem:[%s13816_s22 + $0x128] sm:$0xff] %v552_v37   ;;  %v560_v39 = vld [vmem:[%s13811_s21 + $0x1f8] sm:$0xff]   ;;  %v564_v40 = vld [vmem:[%s13811_s21 + $0x200] sm:$0xff]  }
  0x24   : > { %557 = vst [vmem:[%s13816_s22 + $0x130] sm:$0xff] %v556_v38   ;;  %v568_v41 = vld [vmem:[%s13811_s21 + $0x208] sm:$0xff]   ;;  %561 = vst [vmem:[%s13816_s22 + $0x138] sm:$0xff] %v560_v39   ;;  %v572_v42 = vld [vmem:[%s13811_s21 + $0x210] sm:$0xff]  }
  0x25   : > { %565 = vst [vmem:[%s13816_s22 + $0x140] sm:$0xff] %v564_v40   ;;  %569 = vst [vmem:[%s13816_s22 + $0x148] sm:$0xff] %v568_v41   ;;  %v576_v43 = vld [vmem:[%s13811_s21 + $0x218] sm:$0xff]   ;;  %v580_v44 = vld [vmem:[%s13811_s21 + $0x220] sm:$0xff]  }
  0x26   : > { %573 = vst [vmem:[%s13816_s22 + $0x150] sm:$0xff] %v572_v42   ;;  %577 = vst [vmem:[%s13816_s22 + $0x158] sm:$0xff] %v576_v43   ;;  %v584_v45 = vld [vmem:[%s13811_s21 + $0x228] sm:$0xff]   ;;  %v588_v46 = vld [vmem:[%s13811_s21 + $0x230] sm:$0xff]  }
  0x27   : > { %581 = vst [vmem:[%s13816_s22 + $0x160] sm:$0xff] %v580_v44   ;;  %v592_v47 = vld [vmem:[%s13811_s21 + $0x238] sm:$0xff]   ;;  %585 = vst [vmem:[%s13816_s22 + $0x168] sm:$0xff] %v584_v45   ;;  %v596_v48 = vld [vmem:[%s13811_s21 + $0x300] sm:$0xff]  }
  0x28   : > { %589 = vst [vmem:[%s13816_s22 + $0x170] sm:$0xff] %v588_v46   ;;  %593 = vst [vmem:[%s13816_s22 + $0x178] sm:$0xff] %v592_v47   ;;  %v600_v49 = vld [vmem:[%s13811_s21 + $0x308] sm:$0xff]   ;;  %v604_v50 = vld [vmem:[%s13811_s21 + $0x310] sm:$0xff]  }
  0x29   : > { %597 = vst [vmem:[%s13816_s22 + $0x180] sm:$0xff] %v596_v48   ;;  %601 = vst [vmem:[%s13816_s22 + $0x188] sm:$0xff] %v600_v49   ;;  %v608_v51 = vld [vmem:[%s13811_s21 + $0x318] sm:$0xff]   ;;  %v612_v52 = vld [vmem:[%s13811_s21 + $0x320] sm:$0xff]  }
  0x2a   : > { %605 = vst [vmem:[%s13816_s22 + $0x190] sm:$0xff] %v604_v50   ;;  %v616_v53 = vld [vmem:[%s13811_s21 + $0x328] sm:$0xff]   ;;  %609 = vst [vmem:[%s13816_s22 + $0x198] sm:$0xff] %v608_v51   ;;  %v620_v54 = vld [vmem:[%s13811_s21 + $0x330] sm:$0xff]  }
  0x2b   : > { %613 = vst [vmem:[%s13816_s22 + $0x1a0] sm:$0xff] %v612_v52   ;;  %617 = vst [vmem:[%s13816_s22 + $0x1a8] sm:$0xff] %v616_v53   ;;  %v624_v55 = vld [vmem:[%s13811_s21 + $0x338] sm:$0xff]   ;;  %v628_v56 = vld [vmem:[%s13811_s21 + $0x340] sm:$0xff]  }
  0x2c   : > { %621 = vst [vmem:[%s13816_s22 + $0x1b0] sm:$0xff] %v620_v54   ;;  %625 = vst [vmem:[%s13816_s22 + $0x1b8] sm:$0xff] %v624_v55   ;;  %v632_v57 = vld [vmem:[%s13811_s21 + $0x348] sm:$0xff]   ;;  %v636_v58 = vld [vmem:[%s13811_s21 + $0x350] sm:$0xff]  }
  0x2d   : > { %629 = vst [vmem:[%s13816_s22 + $0x1c0] sm:$0xff] %v628_v56   ;;  %v640_v59 = vld [vmem:[%s13811_s21 + $0x358] sm:$0xff]   ;;  %633 = vst [vmem:[%s13816_s22 + $0x1c8] sm:$0xff] %v632_v57   ;;  %v644_v60 = vld [vmem:[%s13811_s21 + $0x360] sm:$0xff]  }
  0x2e   : > { %637 = vst [vmem:[%s13816_s22 + $0x1d0] sm:$0xff] %v636_v58   ;;  %641 = vst [vmem:[%s13816_s22 + $0x1d8] sm:$0xff] %v640_v59   ;;  %v648_v61 = vld [vmem:[%s13811_s21 + $0x368] sm:$0xff]   ;;  %v652_v62 = vld [vmem:[%s13811_s21 + $0x370] sm:$0xff]  }
  0x2f   : > { %645 = vst [vmem:[%s13816_s22 + $0x1e0] sm:$0xff] %v644_v60   ;;  %649 = vst [vmem:[%s13816_s22 + $0x1e8] sm:$0xff] %v648_v61   ;;  %v656_v63 = vld [vmem:[%s13811_s21 + $0x378] sm:$0xff]   ;;  %v660_v0 = vld [vmem:[%s13811_s21 + $0x380] sm:$0xff]  }
  0x30   : > { %653 = vst [vmem:[%s13816_s22 + $0x1f0] sm:$0xff] %v652_v62   ;;  %v664_v1 = vld [vmem:[%s13811_s21 + $0x388] sm:$0xff]   ;;  %657 = vst [vmem:[%s13816_s22 + $0x1f8] sm:$0xff] %v656_v63   ;;  %v668_v2 = vld [vmem:[%s13811_s21 + $0x390] sm:$0xff]  }
  0x31   : > { %661 = vst [vmem:[%s13816_s22 + $0x200] sm:$0xff] %v660_v0   ;;  %665 = vst [vmem:[%s13816_s22 + $0x208] sm:$0xff] %v664_v1   ;;  %v672_v3 = vld [vmem:[%s13811_s21 + $0x398] sm:$0xff]   ;;  %v676_v4 = vld [vmem:[%s13811_s21 + $0x3a0] sm:$0xff]  }
  0x32   : > { %669 = vst [vmem:[%s13816_s22 + $0x210] sm:$0xff] %v668_v2   ;;  %673 = vst [vmem:[%s13816_s22 + $0x218] sm:$0xff] %v672_v3   ;;  %v680_v5 = vld [vmem:[%s13811_s21 + $0x3a8] sm:$0xff]   ;;  %v684_v6 = vld [vmem:[%s13811_s21 + $0x3b0] sm:$0xff]  }
  0x33   : > { %677 = vst [vmem:[%s13816_s22 + $0x220] sm:$0xff] %v676_v4   ;;  %v688_v7 = vld [vmem:[%s13811_s21 + $0x3b8] sm:$0xff]   ;;  %681 = vst [vmem:[%s13816_s22 + $0x228] sm:$0xff] %v680_v5   ;;  %v692_v8 = vld [vmem:[%s13811_s21 + $0x480] sm:$0xff]  }
  0x34   : > { %685 = vst [vmem:[%s13816_s22 + $0x230] sm:$0xff] %v684_v6   ;;  %689 = vst [vmem:[%s13816_s22 + $0x238] sm:$0xff] %v688_v7   ;;  %v696_v9 = vld [vmem:[%s13811_s21 + $0x488] sm:$0xff]   ;;  %v700_v10 = vld [vmem:[%s13811_s21 + $0x490] sm:$0xff]  }
  0x35   : > { %693 = vst [vmem:[%s13816_s22 + $0x240] sm:$0xff] %v692_v8   ;;  %697 = vst [vmem:[%s13816_s22 + $0x248] sm:$0xff] %v696_v9   ;;  %v704_v11 = vld [vmem:[%s13811_s21 + $0x498] sm:$0xff]   ;;  %v708_v12 = vld [vmem:[%s13811_s21 + $0x4a0] sm:$0xff]  }
  0x36   : > { %701 = vst [vmem:[%s13816_s22 + $0x250] sm:$0xff] %v700_v10   ;;  %v712_v13 = vld [vmem:[%s13811_s21 + $0x4a8] sm:$0xff]   ;;  %705 = vst [vmem:[%s13816_s22 + $0x258] sm:$0xff] %v704_v11   ;;  %v716_v14 = vld [vmem:[%s13811_s21 + $0x4b0] sm:$0xff]  }
  0x37   : > { %709 = vst [vmem:[%s13816_s22 + $0x260] sm:$0xff] %v708_v12   ;;  %713 = vst [vmem:[%s13816_s22 + $0x268] sm:$0xff] %v712_v13   ;;  %v720_v15 = vld [vmem:[%s13811_s21 + $0x4b8] sm:$0xff]   ;;  %v724_v16 = vld [vmem:[%s13811_s21 + $0x4c0] sm:$0xff]  }
  0x38   : > { %717 = vst [vmem:[%s13816_s22 + $0x270] sm:$0xff] %v716_v14   ;;  %721 = vst [vmem:[%s13816_s22 + $0x278] sm:$0xff] %v720_v15   ;;  %v728_v17 = vld [vmem:[%s13811_s21 + $0x4c8] sm:$0xff]   ;;  %v732_v18 = vld [vmem:[%s13811_s21 + $0x4d0] sm:$0xff]  }
  0x39   : > { %725 = vst [vmem:[%s13816_s22 + $0x280] sm:$0xff] %v724_v16   ;;  %v736_v19 = vld [vmem:[%s13811_s21 + $0x4d8] sm:$0xff]   ;;  %729 = vst [vmem:[%s13816_s22 + $0x288] sm:$0xff] %v728_v17   ;;  %v740_v20 = vld [vmem:[%s13811_s21 + $0x4e0] sm:$0xff]  }
  0x3a   : > { %733 = vst [vmem:[%s13816_s22 + $0x290] sm:$0xff] %v732_v18   ;;  %737 = vst [vmem:[%s13816_s22 + $0x298] sm:$0xff] %v736_v19   ;;  %v744_v21 = vld [vmem:[%s13811_s21 + $0x4e8] sm:$0xff]   ;;  %v748_v22 = vld [vmem:[%s13811_s21 + $0x4f0] sm:$0xff]  }
  0x3b   : > { %741 = vst [vmem:[%s13816_s22 + $0x2a0] sm:$0xff] %v740_v20   ;;  %745 = vst [vmem:[%s13816_s22 + $0x2a8] sm:$0xff] %v744_v21   ;;  %v752_v23 = vld [vmem:[%s13811_s21 + $0x4f8] sm:$0xff]   ;;  %v756_v24 = vld [vmem:[%s13811_s21 + $0x500] sm:$0xff]  }
  0x3c   : > { %749 = vst [vmem:[%s13816_s22 + $0x2b0] sm:$0xff] %v748_v22   ;;  %v760_v25 = vld [vmem:[%s13811_s21 + $0x508] sm:$0xff]   ;;  %753 = vst [vmem:[%s13816_s22 + $0x2b8] sm:$0xff] %v752_v23   ;;  %v764_v26 = vld [vmem:[%s13811_s21 + $0x510] sm:$0xff]  }
  0x3d   : > { %757 = vst [vmem:[%s13816_s22 + $0x2c0] sm:$0xff] %v756_v24   ;;  %761 = vst [vmem:[%s13816_s22 + $0x2c8] sm:$0xff] %v760_v25   ;;  %v768_v27 = vld [vmem:[%s13811_s21 + $0x518] sm:$0xff]   ;;  %v772_v28 = vld [vmem:[%s13811_s21 + $0x520] sm:$0xff]  }
  0x3e   : > { %765 = vst [vmem:[%s13816_s22 + $0x2d0] sm:$0xff] %v764_v26   ;;  %769 = vst [vmem:[%s13816_s22 + $0x2d8] sm:$0xff] %v768_v27   ;;  %v776_v29 = vld [vmem:[%s13811_s21 + $0x528] sm:$0xff]   ;;  %v780_v30 = vld [vmem:[%s13811_s21 + $0x530] sm:$0xff]  }
  0x3f   : > { %773 = vst [vmem:[%s13816_s22 + $0x2e0] sm:$0xff] %v772_v28   ;;  %v784_v31 = vld [vmem:[%s13811_s21 + $0x538] sm:$0xff]   ;;  %777 = vst [vmem:[%s13816_s22 + $0x2e8] sm:$0xff] %v776_v29   ;;  %v788_v32 = vld [vmem:[%s13811_s21 + $0x600] sm:$0xff]  }
  0x40   : > { %781 = vst [vmem:[%s13816_s22 + $0x2f0] sm:$0xff] %v780_v30   ;;  %785 = vst [vmem:[%s13816_s22 + $0x2f8] sm:$0xff] %v784_v31   ;;  %v792_v33 = vld [vmem:[%s13811_s21 + $0x608] sm:$0xff]   ;;  %v796_v34 = vld [vmem:[%s13811_s21 + $0x610] sm:$0xff]  }
  0x41   : > { %789 = vst [vmem:[%s13816_s22 + $0x300] sm:$0xff] %v788_v32   ;;  %793 = vst [vmem:[%s13816_s22 + $0x308] sm:$0xff] %v792_v33   ;;  %v800_v35 = vld [vmem:[%s13811_s21 + $0x618] sm:$0xff]   ;;  %v804_v36 = vld [vmem:[%s13811_s21 + $0x620] sm:$0xff]  }
  0x42   : > { %797 = vst [vmem:[%s13816_s22 + $0x310] sm:$0xff] %v796_v34   ;;  %v808_v37 = vld [vmem:[%s13811_s21 + $0x628] sm:$0xff]   ;;  %801 = vst [vmem:[%s13816_s22 + $0x318] sm:$0xff] %v800_v35   ;;  %v812_v38 = vld [vmem:[%s13811_s21 + $0x630] sm:$0xff]  }
  0x43   : > { %805 = vst [vmem:[%s13816_s22 + $0x320] sm:$0xff] %v804_v36   ;;  %809 = vst [vmem:[%s13816_s22 + $0x328] sm:$0xff] %v808_v37   ;;  %v816_v39 = vld [vmem:[%s13811_s21 + $0x638] sm:$0xff]   ;;  %v820_v40 = vld [vmem:[%s13811_s21 + $0x640] sm:$0xff]  }
  0x44   : > { %813 = vst [vmem:[%s13816_s22 + $0x330] sm:$0xff] %v812_v38   ;;  %817 = vst [vmem:[%s13816_s22 + $0x338] sm:$0xff] %v816_v39   ;;  %v824_v41 = vld [vmem:[%s13811_s21 + $0x648] sm:$0xff]   ;;  %v828_v42 = vld [vmem:[%s13811_s21 + $0x650] sm:$0xff]  }
  0x45   : > { %821 = vst [vmem:[%s13816_s22 + $0x340] sm:$0xff] %v820_v40   ;;  %v832_v43 = vld [vmem:[%s13811_s21 + $0x658] sm:$0xff]   ;;  %825 = vst [vmem:[%s13816_s22 + $0x348] sm:$0xff] %v824_v41   ;;  %v836_v44 = vld [vmem:[%s13811_s21 + $0x660] sm:$0xff]  }
  0x46   : > { %829 = vst [vmem:[%s13816_s22 + $0x350] sm:$0xff] %v828_v42   ;;  %833 = vst [vmem:[%s13816_s22 + $0x358] sm:$0xff] %v832_v43   ;;  %v840_v45 = vld [vmem:[%s13811_s21 + $0x668] sm:$0xff]   ;;  %v844_v46 = vld [vmem:[%s13811_s21 + $0x670] sm:$0xff]  }
  0x47   : > { %837 = vst [vmem:[%s13816_s22 + $0x360] sm:$0xff] %v836_v44   ;;  %841 = vst [vmem:[%s13816_s22 + $0x368] sm:$0xff] %v840_v45   ;;  %v848_v47 = vld [vmem:[%s13811_s21 + $0x678] sm:$0xff]   ;;  %v852_v48 = vld [vmem:[%s13811_s21 + $0x680] sm:$0xff]  }
  0x48   : > { %845 = vst [vmem:[%s13816_s22 + $0x370] sm:$0xff] %v844_v46   ;;  %v856_v49 = vld [vmem:[%s13811_s21 + $0x688] sm:$0xff]   ;;  %849 = vst [vmem:[%s13816_s22 + $0x378] sm:$0xff] %v848_v47   ;;  %v860_v50 = vld [vmem:[%s13811_s21 + $0x690] sm:$0xff]  }
  0x49   : > { %853 = vst [vmem:[%s13816_s22 + $0x380] sm:$0xff] %v852_v48   ;;  %857 = vst [vmem:[%s13816_s22 + $0x388] sm:$0xff] %v856_v49   ;;  %v864_v51 = vld [vmem:[%s13811_s21 + $0x698] sm:$0xff]   ;;  %v868_v52 = vld [vmem:[%s13811_s21 + $0x6a0] sm:$0xff]  }
  0x4a   : > { %861 = vst [vmem:[%s13816_s22 + $0x390] sm:$0xff] %v860_v50   ;;  %865 = vst [vmem:[%s13816_s22 + $0x398] sm:$0xff] %v864_v51   ;;  %v872_v53 = vld [vmem:[%s13811_s21 + $0x6a8] sm:$0xff]   ;;  %v876_v54 = vld [vmem:[%s13811_s21 + $0x6b0] sm:$0xff]  }
  0x4b   : > { %869 = vst [vmem:[%s13816_s22 + $0x3a0] sm:$0xff] %v868_v52   ;;  %v880_v55 = vld [vmem:[%s13811_s21 + $0x6b8] sm:$0xff]   ;;  %873 = vst [vmem:[%s13816_s22 + $0x3a8] sm:$0xff] %v872_v53  }
  0x4c   : > { %877 = vst [vmem:[%s13816_s22 + $0x3b0] sm:$0xff] %v876_v54   ;;  %881 = vst [vmem:[%s13816_s22 + $0x3b8] sm:$0xff] %v880_v55  }
  0x4d PF: > { %p11299_p5 = scmp.ge.s32.totalorder %s13702_s27, 1  ;;  %p1386_p6 = scmp.lt.s32.totalorder %s13702_s27, 3 }
  0x4f   : > { %p1387_p7 = pnand %p11299_p5, %p1386_p6 }
  0x51   : > { %1390 = sbr.rel (%p1387_p7) target bundleno = 3469 (0xd8d), region = 109 }
  0x56   : > { %v13081_v56 = vld [vmem:[%s19320_s1 + $0x4c] ss:$12 sps:$4 sm:$0x3f]   ;;  %vm1780_vm0 = vcmask 1045504   ;;  %v13085_v59 = vld [vmem:[%s19320_s1 + $0x34] ss:$12 sps:$4 sm:$0xff]  }
  0x57   : > { %11388 = vmatprep.subr.msk.bf16.mxu0 %vm1780_vm0, %v13081_v56  ;;  %v13083_v57 = vld [vmem:[%s19320_s1 + $0x50] ss:$12 sps:$4 sm:$0x3f]   ;;  %v13084_v58 = vld [vmem:[%s19320_s1 + $0x48] ss:$12 sps:$4 sm:$0x3f]  }
  0x58   : > { %13047 = vmatprep.subr.msk.bf16.mxu1 %vm1780_vm0, %v13083_v57  ;;  %v1782_v60 = vsel %vm1780_vm0, %v13084_v58, 0  ;;  %v1788_v61 = vsel %vm1780_vm0, %v13083_v57, 0  ;;  %v13087_v62 = vld [vmem:[%s19320_s1 + $0x38] ss:$12 sps:$4 sm:$0xff]   ;;  %v19333_v63 = vmov 0   ;;  %s1393_s24 = sand.u32 1, %s13694_s25  }
  0x59   : > { %1822 = vmatprep.mubr.bf16.mxu0 %v19333_v63  ;;  %1803 = vmatpush1.bf16.msra.mxu0 %v1782_v60  ;;  %v13088_v0 = vld [vmem:[%s19320_s1 + $0x30] ss:$12 sps:$4 sm:$0xff]   ;;  %s13053_s30 = smul.u32 960, %s1393_s24  ;;  %v13115_v2 = vld [vmem:[%s19320_s1 + $0x18] ss:$12 sps:$4 sm:$0x3f]  }
  0x5a   : > { %12728 = vmatpush3.bf16.msra.mxu1 %v1788_v61  ;;  %1804 = vmatprep.subr.bf16.mxu0 %v13085_v59  ;;  %v13113_v1 = vld [vmem:[%s19320_s1 + $0x1c] ss:$12 sps:$4 sm:$0x3f]   ;;  %vm1707_vm1 = vcmask 228352   ;;  %v13118_v4 = vld [vmem:[%s19320_s1 + $0x4] ss:$12 sps:$4 sm:$0xff]  }
  0x5b   : > { %12729 = vmatprep.subr.bf16.mxu1 %v13087_v62  ;;  %s14087_s19 = scalar_lea.vmem [#allocation2], %s13053_s30  ;;  %v2510_v7 = vsel %vm1780_vm0, %v13115_v2, 0  ;;  %v13116_v8 = vld [vmem:[%s19320_s1] ss:$12 sps:$4 sm:$0xff]   ;;  %v13132_v25 = vld [vmem:[%s19320_s1 + $0x8] ss:$12 sps:$4 sm:$0xff]  }
  0x5c   : > { %v13089_v3 = vld [vmem:[%s14087_s19 + $0xc0] sm:$0xff]   ;;  %v13090_v5 = vld [vmem:[%s14087_s19 + $0xc8] sm:$0xff]   ;;  %v13091_v6 = vld [vmem:[%s14087_s19 + $0xd0] sm:$0xff]   ;;  %vm8039_vm2 = vcmask 523264   ;;  %vm13706_vm3 = vmmov 0   ;;  %vm11184_vm4 = vcmask 261120  }
  0x5d   : > { %1805 = vmatpush1.bf16.msra.mxu0 %v13088_v0  ;;  %12731 = vmatprep.mubr.msk.bf16.mxu1 %vm1707_vm1, %v13089_v3  ;;  %v13092_v9 = vld [vmem:[%s14087_s19 + $0xd8] sm:$0xff]   ;;  %v13093_v10 = vld [vmem:[%s14087_s19 + $0xe0] sm:$0xff]   ;;  %v13094_v11 = vld [vmem:[%s14087_s19 + $0xe8] sm:$0xff]   ;;  %s11300_s21 = sshll.u32 %s11294_s28, 1  ;;  %vm11229_vm5 = vcmask 31744  }
  0x5e   : > { %12730 = vmatpush3.bf16.msra.mxu1 %v13087_v62  ;;  %v13095_v12 = vld [vmem:[%s14087_s19 + $0xf0] sm:$0xff]   ;;  %v13096_v13 = vld [vmem:[%s14087_s19 + $0xf8] sm:$0xff]   ;;  %v13097_v14 = vld [vmem:[%s14087_s19 + $0x100] sm:$0xff]   ;;  %p1438_p8 = scmp.lt.s32.totalorder %s11300_s21, 3 }
  0x5f   : > { %11467 = vmatprep.subr.msk.bf16.mxu1 %vm1780_vm0, %v13113_v1  ;;  %v13120_v15 = vld [vmem:[%s19320_s1 + $0x20] ss:$12 sps:$4 sm:$0x3f]   ;;  %v13099_v18 = vld [vmem:[%s14087_s19 + $0x110] sm:$0xff]   ;;  %v13100_v19 = vld [vmem:[%s14087_s19 + $0x118] sm:$0xff]  }
  0x60   : > { %11389 = vmatmul.mubr.msk.bf16.vlgmr.msra.gmra.mxu0 %vm1707_vm1, %v13089_v3  ;;  %v2516_v16 = vsel %vm1780_vm0, %v13120_v15, 0  ;;  %13048 = vmatprep.subr.msk.bf16.mxu0 %vm1780_vm0, %v13120_v15  ;;  %v13098_v17 = vld [vmem:[%s14087_s19 + $0x108] sm:$0xff]   ;;  %v13101_v20 = vld [vmem:[%s14087_s19 + $0x120] sm:$0xff]   ;;  %v13103_v22 = vld [vmem:[%s14087_s19 + $0x130] sm:$0xff]   ;;  %s20517_s21 = smov (!%p1438_p8, %s11300_s21), 3 }
  0x61   : > { %12732 = vmatmul.mubr.msk.bf16.vlgmr.msra.gmra.mxu1 %vm1707_vm1, %v13090_v5  ;;  %1832 = vmatprep.mubr.bf16.mxu0 %v19333_v63  ;;  %v13102_v21 = vld [vmem:[%s14087_s19 + $0x128] sm:$0xff]   ;;  %v13104_v23 = vld [vmem:[%s14087_s19 + $0x138] sm:$0xff]   ;;  %v13105_v24 = vld [vmem:[%s14087_s19 + $0x140] sm:$0xff]   ;;  %s11301_s22 = sshll.u32 %s20517_s21, 3 }
  0x62   : > { %12735 = vmatprep.mubr.msk.bf16.mxu1 %vm1707_vm1, %v13091_v6  ;;  %2531 = vmatpush1.bf16.msra.mxu1 %v2510_v7  ;;  %v13106_v26 = vld [vmem:[%s14087_s19 + $0x148] sm:$0xff]   ;;  %v13107_v27 = vld [vmem:[%s14087_s19 + $0x150] sm:$0xff]   ;;  %v13108_v29 = vld [vmem:[%s14087_s19 + $0x158] sm:$0xff]  }
  0x63   : > { %2532 = vmatprep.subr.bf16.mxu1 %v13118_v4  ;;  %12780 = vmatpush3.bf16.msra.mxu0 %v2516_v16  ;;  %v13134_v28 = vld [vmem:[%s19320_s1 + $0x80] ss:$12 sps:$4 sm:$0x3f]   ;;  %v14178_v32 = vld [vmem:[%s14087_s19 + $0x170] sm:$0xff]   ;;  %v14187_v33 = vld [vmem:[%s14087_s19 + $0x178] sm:$0xff]  }
  0x64   : > { %12781 = vmatprep.subr.bf16.mxu0 %v13132_v25  ;;  %v14167_v30 = vld [vmem:[%s14087_s19 + $0x160] sm:$0xff]   ;;  %v14175_v31 = vld [vmem:[%s14087_s19 + $0x168] sm:$0xff]   ;;  %v3302_v35 = vsel %vm1780_vm0, %v13134_v28, 0  ;;  %v14212_v37 = vld [vmem:[%s14087_s19 + $0x10] sm:$0xff]  }
  0x65   : > { %v14195_v34 = vld [vmem:[%s14087_s19] sm:$0xff]   ;;  %v14204_v36 = vld [vmem:[%s14087_s19 + $0x8] sm:$0xff]   ;;  %v14220_v38 = vld [vmem:[%s14087_s19 + $0x18] sm:$0xff]  }
  0x66   : > { %2533 = vmatpush1.bf16.msra.mxu1 %v13116_v8  ;;  %v14228_v39 = vld [vmem:[%s14087_s19 + $0x20] sm:$0xff]   ;;  %v14236_v40 = vld [vmem:[%s14087_s19 + $0x28] sm:$0xff]   ;;  %v14244_v41 = vld [vmem:[%s14087_s19 + $0x30] sm:$0xff]  }
  0x67   : > { %12782 = vmatpush3.bf16.msra.mxu0 %v13132_v25  ;;  %13049 = vmatprep.subr.msk.bf16.mxu1 %vm1780_vm0, %v13134_v28  ;;  %v14252_v42 = vld [vmem:[%s14087_s19 + $0x38] sm:$0xff]   ;;  %v13152_v44 = vld [vmem:[%s19320_s1 + $0x68] ss:$12 sps:$4 sm:$0xff]   ;;  %v14267_v45 = vld [vmem:[%s14087_s19 + $0x40] sm:$0xff]  }
  0x68   : > { %11390 = vmatmul.mubr.msk.bf16.gmra.mxu0 %vm1707_vm1, %v13090_v5  ;;  %v13146_v43 = vld [vmem:[%s19320_s1 + $0x7c] ss:$12 sps:$4 sm:$0x3f]   ;;  %v14285_v47 = vld [vmem:[%s14087_s19 + $0x50] sm:$0xff]   ;;  %v14307_v50 = vld [vmem:[%s14087_s19 + $0x60] sm:$0xff]  }
  0x69   : > { %12736 = vmatmul.mubr.msk.bf16.gmra.mxu1 %vm1707_vm1, %v13092_v9  ;;  %1842 = vmatprep.mubr.bf16.mxu0 %v19333_v63  ;;  %v14276_v46 = vld [vmem:[%s14087_s19 + $0x48] sm:$0xff]   ;;  %v14294_v48 = vld [vmem:[%s14087_s19 + $0x58] sm:$0xff]   ;;  %v13151_v51 = vld [vmem:[%s19320_s1 + $0x64] ss:$12 sps:$4 sm:$0xff]  }
  0x6a   : > { %12739 = vmatprep.mubr.msk.bf16.mxu1 %vm1707_vm1, %v13093_v10  ;;  %11602 = vmatprep.subr.msk.bf16.mxu0 %vm1780_vm0, %v13146_v43  ;;  %v13148_v49 = vld [vmem:[%s19320_s1 + $0x78] ss:$12 sps:$4 sm:$0x3f]   ;;  %v13149_v55 = vld [vmem:[%s19320_s1 + $0x60] ss:$12 sps:$4 sm:$0xff]   ;;  %v13136_v4 = vld [vmem:[%s14087_s19 + $0x70] sm:$0xff]  }
  0x6b   : > { %v3296_v52 = vsel %vm1780_vm0, %v13148_v49, 0  ;;  %v14332_v58 = vld [vmem:[%s14087_s19 + $0x68] sm:$0xff]  }
  0x70   : > { %11391 = vmatmul.mubr.msk.bf16.gmra.mxu0 %vm1707_vm1, %v13091_v6 }
  0x71   : > { %12740 = vmatmul.mubr.msk.bf16.gmra.mxu1 %vm1707_vm1, %v13094_v11  ;;  %1852 = vmatprep.mubr.bf16.mxu0 %v19333_v63 }
  0x72   : > { %12743 = vmatprep.mubr.msk.bf16.mxu1 %vm1707_vm1, %v13095_v12 }
  0x78   : > { %11392 = vmatmul.mubr.msk.bf16.gmra.mxu0 %vm1707_vm1, %v13092_v9 }
  0x79   : > { %12744 = vmatmul.mubr.msk.bf16.gmra.mxu1 %vm1707_vm1, %v13096_v13  ;;  %1862 = vmatprep.mubr.bf16.mxu0 %v19333_v63 }
  0x7a   : > { %12747 = vmatprep.mubr.msk.bf16.mxu1 %vm1707_vm1, %v13097_v14 }
  0x80   : > { %11393 = vmatmul.mubr.msk.bf16.gmra.mxu0 %vm1707_vm1, %v13093_v10 }
  0x81   : > { %12748 = vmatmul.mubr.msk.bf16.gmra.mxu1 %vm1707_vm1, %v13098_v17  ;;  %1872 = vmatprep.mubr.bf16.mxu0 %v19333_v63 }
  0x82   : > { %12751 = vmatprep.mubr.msk.bf16.mxu1 %vm1707_vm1, %v13099_v18 }
  0x88   : > { %11394 = vmatmul.mubr.msk.bf16.gmra.mxu0 %vm1707_vm1, %v13094_v11 }
  0x89   : > { %12752 = vmatmul.mubr.msk.bf16.gmra.mxu1 %vm1707_vm1, %v13100_v19  ;;  %1882 = vmatprep.mubr.bf16.mxu0 %v19333_v63 }
  0x8a   : > { %12755 = vmatprep.mubr.msk.bf16.mxu1 %vm1707_vm1, %v13101_v20 }
  0x90   : > { %11395 = vmatmul.mubr.msk.bf16.gmra.mxu0 %vm1707_vm1, %v13095_v12 }
  0x91   : > { %12756 = vmatmul.mubr.msk.bf16.gmra.mxu1 %vm1707_vm1, %v13102_v21  ;;  %1892 = vmatprep.mubr.bf16.mxu0 %v19333_v63 }
  0x92   : > { %12759 = vmatprep.mubr.msk.bf16.mxu1 %vm1707_vm1, %v13103_v22 }
  0x98   : > { %11396 = vmatmul.mubr.msk.bf16.gmra.mxu0 %vm1707_vm1, %v13096_v13  ;;  %v13137_v13 = vld [vmem:[%s14087_s19 + $0x78] sm:$0xff]  }
  0x99   : > { %12760 = vmatmul.mubr.msk.bf16.gmra.mxu1 %vm1707_vm1, %v13104_v23  ;;  %1902 = vmatprep.mubr.bf16.mxu0 %v19333_v63 }
  0x9a   : > { %12763 = vmatprep.mubr.msk.bf16.mxu1 %vm1707_vm1, %v13105_v24 }
  0xa0   : > { %11397 = vmatmul.mubr.msk.bf16.gmra.mxu0 %vm1707_vm1, %v13097_v14 }
  0xa1   : > { %12764 = vmatmul.mubr.msk.bf16.gmra.mxu1 %vm1707_vm1, %v13106_v26  ;;  %1912 = vmatprep.mubr.bf16.mxu0 %v19333_v63 }
  0xa2   : > { %12767 = vmatprep.mubr.msk.bf16.mxu1 %vm1707_vm1, %v13107_v27 }
  0xa8   : > { %11398 = vmatmul.mubr.msk.bf16.gmra.mxu0 %vm1707_vm1, %v13098_v17 }
  0xa9   : > { %12768 = vmatmul.mubr.msk.bf16.gmra.mxu1 %vm1707_vm1, %v13108_v29  ;;  %1922 = vmatprep.mubr.bf16.mxu0 %v19333_v63 }
  0xaa   : > { %12771 = vmatprep.mubr.msk.bf16.mxu1 %vm1707_vm1, %v14167_v30 }
  0xb0   : > { %11399 = vmatmul.mubr.msk.bf16.gmra.mxu0 %vm1707_vm1, %v13099_v18 }
  0xb1   : > { %12772 = vmatmul.mubr.msk.bf16.gmra.mxu1 %vm1707_vm1, %v14175_v31  ;;  %1932 = vmatprep.mubr.bf16.mxu0 %v19333_v63 }
  0xb2   : > { %12775 = vmatprep.mubr.msk.bf16.mxu1 %vm1707_vm1, %v14178_v32 }
  0xb8   : > { %11400 = vmatmul.mubr.msk.bf16.gmra.mxu0 %vm1707_vm1, %v13100_v19 }
  0xb9   : > { %12776 = vmatmul.mubr.msk.bf16.gmra.mxu1 %vm1707_vm1, %v14187_v33  ;;  %1942 = vmatprep.mubr.bf16.mxu0 %v19333_v63 }
  0xba   : > { %2550 = vmatprep.mubr.bf16.mxu1 %v19333_v63 }
  0xc0   : > { %11401 = vmatmul.mubr.msk.bf16.gmra.mxu0 %vm1707_vm1, %v13101_v20 }
  0xc1   : > { %11468 = vmatmul.mubr.msk.bf16.vlgmr.msra.gmra.mxu1 %vm1707_vm1, %v14195_v34  ;;  %1952 = vmatprep.mubr.bf16.mxu0 %v19333_v63 }
  0xc2   : > { %2560 = vmatprep.mubr.bf16.mxu1 %v19333_v63  ;;  %12832 = vmatpush3.bf16.msra.mxu1 %v3302_v35 }
  0xc3   : > { %12833 = vmatprep.subr.bf16.mxu1 %v13152_v44 }
  0xc6   : > { %12834 = vmatpush3.bf16.msra.mxu1 %v13152_v44 }
  0xc8   : > { %11402 = vmatmul.mubr.msk.bf16.gmra.mxu0 %vm1707_vm1, %v13102_v21 }
  0xc9   : > { %11469 = vmatmul.mubr.msk.bf16.gmra.mxu1 %vm1707_vm1, %v14204_v36  ;;  %1962 = vmatprep.mubr.bf16.mxu0 %v19333_v63 }
  0xca   : > { %2570 = vmatprep.mubr.bf16.mxu1 %v19333_v63 }
  0xd0   : > { %11403 = vmatmul.mubr.msk.bf16.gmra.mxu0 %vm1707_vm1, %v13103_v22  ;;  %v13138_v22 = vld [vmem:[%s14087_s19 + $0x80] sm:$0xff]  }
  0xd1   : > { %11470 = vmatmul.mubr.msk.bf16.gmra.mxu1 %vm1707_vm1, %v14212_v37  ;;  %1972 = vmatprep.mubr.bf16.mxu0 %v19333_v63 }
  0xd2   : > { %2580 = vmatprep.mubr.bf16.mxu1 %v19333_v63 }
  0xd8   : > { %11404 = vmatmul.mubr.msk.bf16.gmra.mxu0 %vm1707_vm1, %v13104_v23 }
  0xd9   : > { %11471 = vmatmul.mubr.msk.bf16.gmra.mxu1 %vm1707_vm1, %v14220_v38  ;;  %1982 = vmatprep.mubr.bf16.mxu0 %v19333_v63 }
  0xda   : > { %2590 = vmatprep.mubr.bf16.mxu1 %v19333_v63 }
  0xe0   : > { %11405 = vmatmul.mubr.msk.bf16.gmra.mxu0 %vm1707_vm1, %v13105_v24 }
  0xe1   : > { %11472 = vmatmul.mubr.msk.bf16.gmra.mxu1 %vm1707_vm1, %v14228_v39  ;;  %1992 = vmatprep.mubr.bf16.mxu0 %v19333_v63 }
  0xe2   : > { %2600 = vmatprep.mubr.bf16.mxu1 %v19333_v63 }
  0xe8   : > { %11406 = vmatmul.mubr.msk.bf16.gmra.mxu0 %vm1707_vm1, %v13106_v26 }
  0xe9   : > { %11473 = vmatmul.mubr.msk.bf16.gmra.mxu1 %vm1707_vm1, %v14236_v40  ;;  %2002 = vmatprep.mubr.bf16.mxu0 %v19333_v63 }
  0xea   : > { %2610 = vmatprep.mubr.bf16.mxu1 %v19333_v63 }
  0xf0   : > { %11407 = vmatmul.mubr.msk.bf16.gmra.mxu0 %vm1707_vm1, %v13107_v27 }
  0xf1   : > { %11474 = vmatmul.mubr.msk.bf16.gmra.mxu1 %vm1707_vm1, %v14244_v41  ;;  %2012 = vmatprep.mubr.bf16.mxu0 %v19333_v63 }
  0xf2   : > { %2620 = vmatprep.mubr.bf16.mxu1 %v19333_v63 }
  0xf8   : > { %11408 = vmatmul.mubr.msk.bf16.gmra.mxu0 %vm1707_vm1, %v13108_v29 }
  0xf9   : > { %11475 = vmatmul.mubr.msk.bf16.gmra.mxu1 %vm1707_vm1, %v14252_v42  ;;  %2022 = vmatprep.mubr.bf16.mxu0 %v19333_v63 }
  0xfa   : > { %2630 = vmatprep.mubr.bf16.mxu1 %v19333_v63 }
 0x100   : > { %11409 = vmatmul.mubr.msk.bf16.gmra.mxu0 %vm1707_vm1, %v14167_v30 }
 0x101   : > { %11476 = vmatmul.mubr.msk.bf16.gmra.mxu1 %vm1707_vm1, %v14267_v45  ;;  %2032 = vmatprep.mubr.bf16.mxu0 %v19333_v63 }
 0x102   : > { %2640 = vmatprep.mubr.bf16.mxu1 %v19333_v63 }
 0x108   : > { %11410 = vmatmul.mubr.msk.bf16.gmra.mxu0 %vm1707_vm1, %v14175_v31  ;;  %v13139_v31 = vld [vmem:[%s14087_s19 + $0x88] sm:$0xff]  }
 0x109   : > { %11477 = vmatmul.mubr.msk.bf16.gmra.mxu1 %vm1707_vm1, %v14276_v46  ;;  %2042 = vmatprep.mubr.bf16.mxu0 %v19333_v63 }
 0x10a   : > { %2650 = vmatprep.mubr.bf16.mxu1 %v19333_v63 }
 0x110   : > { %11411 = vmatmul.mubr.msk.bf16.gmra.mxu0 %vm1707_vm1, %v14178_v32 }
 0x111   : > { %11478 = vmatmul.mubr.msk.bf16.gmra.mxu1 %vm1707_vm1, %v14285_v47  ;;  %2052 = vmatprep.mubr.bf16.mxu0 %v19333_v63 }
 0x112   : > { %2660 = vmatprep.mubr.bf16.mxu1 %v19333_v63 }
 0x118   : > { %11412 = vmatmul.mubr.msk.bf16.gmra.mxu0 %vm1707_vm1, %v14187_v33 }
 0x119   : > { %11479 = vmatmul.mubr.msk.bf16.gmra.mxu1 %vm1707_vm1, %v14294_v48  ;;  %12783 = vmatprep.mubr.msk.bf16.mxu0 %vm1707_vm1, %v14195_v34 }
 0x11a   : > { %2670 = vmatprep.mubr.bf16.mxu1 %v19333_v63 }
 0x120   : > { %v14313_v53 = vpop.f32.mrf.mxu0  ;;  %12784 = vmatmul.mubr.msk.bf16.vlgmr.msra.gmra.mxu0 %vm1707_vm1, %v14204_v36 }
 0x121   : > { %v14315_v54 = vpop.f32.mrf.mxu1  ;;  %11480 = vmatmul.mubr.msk.bf16.gmra.mxu1 %vm1707_vm1, %v14307_v50  ;;  %12787 = vmatprep.mubr.msk.bf16.mxu0 %vm1707_vm1, %v14212_v37 }
 0x122   : > { %2680 = vmatprep.mubr.bf16.mxu1 %v19333_v63  ;;  %v14327_v56 = vpop.f32.mrf.mxu0  ;;  %3317 = vmatpush1.bf16.msra.mxu0 %v3296_v52 }
 0x123   : > { %v14329_v57 = vpop.f32.mrf.mxu1  ;;  %3318 = vmatprep.subr.bf16.mxu0 %v13151_v51  ;;  %v13141_v51 = vld [vmem:[%s14087_s19 + $0x98] sm:$0xff]  }
 0x124   : > { %v14334_v59 = vpop.f32.mrf.mxu0 }
 0x125   : > { %v14336_v60 = vpop.f32.mrf.mxu1 }
 0x126   : > { %v14338_v61 = vpop.f32.mrf.mxu0  ;;  %3319 = vmatpush1.bf16.msra.mxu0 %v13149_v55 }
 0x127   : > { %v14340_v62 = vpop.f32.mrf.mxu1 }
 0x128   : > { %v14342_v0 = vpop.f32.mrf.mxu0  ;;  %12788 = vmatmul.mubr.msk.bf16.gmra.mxu0 %vm1707_vm1, %v14220_v38 }
 0x129   : > { %v14344_v1 = vpop.f32.mrf.mxu1  ;;  %11481 = vmatmul.mubr.msk.bf16.gmra.mxu1 %vm1707_vm1, %v14332_v58  ;;  %12791 = vmatprep.mubr.msk.bf16.mxu0 %vm1707_vm1, %v14228_v39 }
 0x12a   : > { %2690 = vmatprep.mubr.bf16.mxu1 %v19333_v63  ;;  %v14353_v2 = vpop.f32.mrf.mxu0 }
 0x12b   : > { %v14355_v3 = vpop.f32.mrf.mxu1 }
 0x12c   : > { %v14358_v5 = vpop.f32.mrf.mxu0 }
 0x12d   : > { %v14360_v6 = vpop.f32.mrf.mxu1 }
 0x12e   : > { %v14362_v7 = vpop.f32.mrf.mxu0 }
 0x12f   : > { %v14364_v8 = vpop.f32.mrf.mxu1 }
 0x130   : > { %v14366_v9 = vpop.f32.mrf.mxu0  ;;  %12792 = vmatmul.mubr.msk.bf16.gmra.mxu0 %vm1707_vm1, %v14236_v40  ;;  %v13140_v40 = vld [vmem:[%s14087_s19 + $0x90] sm:$0xff]  }
 0x131   : > { %v14368_v10 = vpop.f32.mrf.mxu1  ;;  %11482 = vmatmul.mubr.msk.bf16.gmra.mxu1 %vm1707_vm1, %v13136_v4  ;;  %12795 = vmatprep.mubr.msk.bf16.mxu0 %vm1707_vm1, %v14244_v41 }
 0x132   : > { %2700 = vmatprep.mubr.bf16.mxu1 %v19333_v63  ;;  %v14376_v11 = vpop.f32.mrf.mxu0 }
 0x133   : > { %v14378_v12 = vpop.f32.mrf.mxu1 }
 0x134   : > { %v14381_v14 = vpop.f32.mrf.mxu0 }
 0x135   : > { %v14383_v15 = vpop.f32.mrf.mxu1 }
 0x136   : > { %19431 = vst [vmem:[#allocation3_spill] sm:$0xff] %v14383_v15  ;;  %v14385_v16 = vpop.f32.mrf.mxu0 }
 0x137   : > { %19432 = vst [vmem:[#allocation4_spill] sm:$0xff] %v14385_v16  ;;  %v14387_v17 = vpop.f32.mrf.mxu1 }
 0x138   : > { %19433 = vst [vmem:[#allocation5_spill] sm:$0xff] %v14387_v17  ;;  %v14389_v18 = vpop.f32.mrf.mxu0  ;;  %12796 = vmatmul.mubr.msk.bf16.gmra.mxu0 %vm1707_vm1, %v14252_v42 }
 0x139   : > { %19434 = vst [vmem:[#allocation6_spill] sm:$0xff] %v14389_v18  ;;  %v14391_v19 = vpop.f32.mrf.mxu1  ;;  %11483 = vmatmul.mubr.msk.bf16.gmra.mxu1 %vm1707_vm1, %v13137_v13  ;;  %12799 = vmatprep.mubr.msk.bf16.mxu0 %vm1707_vm1, %v14267_v45  ;;  %v14999_v18 = vld [vmem:[%s14087_s19 + $0x258] sm:$0xff]  }
 0x13a   : > { %19435 = vst [vmem:[#allocation7_spill] sm:$0xff] %v14391_v19  ;;  %2710 = vmatprep.mubr.bf16.mxu1 %v19333_v63  ;;  %v14399_v20 = vpop.f32.mrf.mxu0 }
 0x13b   : > { %19436 = vst [vmem:[#allocation8_spill] sm:$0xff] %v14399_v20  ;;  %v14401_v21 = vpop.f32.mrf.mxu1 }
 0x13c   : > { %19437 = vst [vmem:[#allocation9_spill] sm:$0xff] %v14401_v21  ;;  %v14404_v23 = vpop.f32.mrf.mxu0 }
 0x13d   : > { %19438 = vst [vmem:[#allocation10_spill] sm:$0xff] %v14404_v23  ;;  %v14406_v24 = vpop.f32.mrf.mxu1 }
 0x13e   : > { %19439 = vst [vmem:[#allocation11_spill] sm:$0xff] %v14406_v24  ;;  %v14408_v25 = vpop.f32.mrf.mxu0 }
 0x13f   : > { %19440 = vst [vmem:[#allocation12_spill] sm:$0xff] %v14408_v25  ;;  %v14410_v26 = vpop.f32.mrf.mxu1 }
 0x140   : > { %19441 = vst [vmem:[#allocation13_spill] sm:$0xff] %v14410_v26  ;;  %v14412_v27 = vpop.f32.mrf.mxu0  ;;  %12800 = vmatmul.mubr.msk.bf16.gmra.mxu0 %vm1707_vm1, %v14276_v46 }
 0x141   : > { %19442 = vst [vmem:[#allocation14_spill] sm:$0xff] %v14412_v27  ;;  %v14414_v28 = vpop.f32.mrf.mxu1  ;;  %11484 = vmatmul.mubr.msk.bf16.gmra.mxu1 %vm1707_vm1, %v13138_v22  ;;  %12803 = vmatprep.mubr.msk.bf16.mxu0 %vm1707_vm1, %v14285_v47 }
 0x142   : > { %19443 = vst [vmem:[#allocation15_spill] sm:$0xff] %v14414_v28  ;;  %2720 = vmatprep.mubr.bf16.mxu1 %v19333_v63  ;;  %v14422_v29 = vpop.f32.mrf.mxu0 }
 0x143   : > { %19444 = vst [vmem:[#allocation16_spill] sm:$0xff] %v14422_v29  ;;  %v14424_v30 = vpop.f32.mrf.mxu1  ;;  %v14720_v29 = vld [vmem:[%s14087_s19 + $0x1d8] sm:$0xff]  }
 0x144   : > { %19445 = vst [vmem:[#allocation17_spill] sm:$0xff] %v14424_v30  ;;  %v14427_v32 = vpop.f32.mrf.mxu0 }
 0x145   : > { %19446 = vst [vmem:[#allocation18_spill] sm:$0xff] %v14427_v32  ;;  %v14429_v33 = vpop.f32.mrf.mxu1 }
 0x146   : > { %19447 = vst [vmem:[#allocation19_spill] sm:$0xff] %v14429_v33  ;;  %v14431_v34 = vpop.f32.mrf.mxu0 }
 0x147   : > { %19448 = vst [vmem:[#allocation20_spill] sm:$0xff] %v14431_v34  ;;  %v14433_v35 = vpop.f32.mrf.mxu1 }
 0x148   : > { %19449 = vst [vmem:[#allocation21_spill] sm:$0xff] %v14433_v35  ;;  %v14435_v36 = vpop.f32.mrf.mxu0  ;;  %12804 = vmatmul.mubr.msk.bf16.gmra.mxu0 %vm1707_vm1, %v14294_v48 }
 0x149   : > { %19450 = vst [vmem:[#allocation22_spill] sm:$0xff] %v14435_v36  ;;  %v14437_v37 = vpop.f32.mrf.mxu1  ;;  %11485 = vmatmul.mubr.msk.bf16.gmra.mxu1 %vm1707_vm1, %v13139_v31  ;;  %12807 = vmatprep.mubr.msk.bf16.mxu0 %vm1707_vm1, %v14307_v50 }
 0x14a   : > { %19451 = vst [vmem:[#allocation23_spill] sm:$0xff] %v14437_v37  ;;  %2730 = vmatprep.mubr.bf16.mxu1 %v19333_v63  ;;  %v14445_v38 = vpop.f32.mrf.mxu0 }
 0x14b   : > { %19452 = vst [vmem:[#allocation24_spill] sm:$0xff] %v14445_v38  ;;  %v14447_v39 = vpop.f32.mrf.mxu1 }
 0x14c   : > { %19453 = vst [vmem:[#allocation25_spill] sm:$0xff] %v14447_v39  ;;  %v14450_v41 = vpop.f32.mrf.mxu0  ;;  %v14668_v39 = vld [vmem:[%s14087_s19 + $0x1c0] sm:$0xff]  }
 0x14d   : > { %19454 = vst [vmem:[#allocation26_spill] sm:$0xff] %v14450_v41  ;;  %v14452_v42 = vpop.f32.mrf.mxu1 }
 0x14e   : > { %19455 = vst [vmem:[#allocation27_spill] sm:$0xff] %v14452_v42  ;;  %v14454_v43 = vpop.f32.mrf.mxu0 }
 0x14f   : > { %19456 = vst [vmem:[#allocation28_spill] sm:$0xff] %v14454_v43  ;;  %v14456_v44 = vpop.f32.mrf.mxu1 }
 0x150   : > { %19457 = vst [vmem:[#allocation29_spill] sm:$0xff] %v14456_v44  ;;  %v14458_v45 = vpop.f32.mrf.mxu0  ;;  %12808 = vmatmul.mubr.msk.bf16.gmra.mxu0 %vm1707_vm1, %v14332_v58  ;;  %v13177_v58 = vld [vmem:[%s19320_s1 + $0xac] ss:$12 sps:$4 sm:$0x3f]  }
 0x151   : > { %19458 = vst [vmem:[#allocation30_spill] sm:$0xff] %v14458_v45  ;;  %v14460_v46 = vpop.f32.mrf.mxu1  ;;  %11486 = vmatmul.mubr.msk.bf16.gmra.mxu1 %vm1707_vm1, %v13140_v40  ;;  %12811 = vmatprep.mubr.msk.bf16.mxu0 %vm1707_vm1, %v13136_v4 }
 0x152   : > { %19459 = vst [vmem:[#allocation31_spill] sm:$0xff] %v14460_v46  ;;  %2740 = vmatprep.mubr.bf16.mxu1 %v19333_v63  ;;  %v14467_v47 = vpop.f32.mrf.mxu0  ;;  %11737 = vmatprep.subr.msk.bf16.mxu1 %vm1780_vm0, %v13177_v58 }
 0x153   : > { %19460 = vst [vmem:[#allocation32_spill] sm:$0xff] %v14467_v47  ;;  %v14469_v48 = vpop.f32.mrf.mxu1 }
 0x154   : > { %19461 = vst [vmem:[#allocation33_spill] sm:$0xff] %v14469_v48  ;;  %v14471_v49 = vpop.f32.mrf.mxu0 }
 0x155   : > { %19462 = vst [vmem:[#allocation34_spill] sm:$0xff] %v14471_v49  ;;  %v14473_v50 = vpop.f32.mrf.mxu1  ;;  %v19468_v49 = vmov 0  }
 0x156   : > { %19463 = vst [vmem:[#allocation35_spill] sm:$0xff] %v14473_v50  ;;  %v14476_v52 = vpop.f32.mrf.mxu0 }
 0x157   : > { %19464 = vst [vmem:[#allocation36_spill] sm:$0xff] %v14476_v52  ;;  %v14478_v55 = vpop.f32.mrf.mxu1 }
 0x158   : > { %19465 = vst [vmem:[#allocation37_spill] sm:$0xff] %v14478_v55  ;;  %v14483_v63 = vpop.f32.mrf.mxu0  ;;  %12812 = vmatmul.mubr.msk.bf16.gmra.mxu0 %vm1707_vm1, %v13137_v13 }
 0x159   : > { %19466 = vst [vmem:[#allocation38_spill] sm:$0xff] %v14483_v63  ;;  %v14485_v4 = vpop.f32.mrf.mxu1  ;;  %11487 = vmatmul.mubr.msk.bf16.gmra.mxu1 %vm1707_vm1, %v13141_v51  ;;  %12815 = vmatprep.mubr.msk.bf16.mxu0 %vm1707_vm1, %v13138_v22  ;;  %v13184_v22 = vld [vmem:[%s19320_s1 + $0xb0] ss:$12 sps:$4 sm:$0x3f]  }
 0x15a   : > { %19467 = vst [vmem:[#allocation39_spill] sm:$0xff] %v14485_v4  ;;  %2750 = vmatprep.mubr.bf16.mxu1 %v19468_v49  ;;  %v14491_v50 = vpop.f32.mrf.mxu0  ;;  %v13142_v4 = vld [vmem:[%s14087_s19 + $0xa0] sm:$0xff]   ;;  %13050 = vmatprep.subr.msk.bf16.mxu0 %vm1780_vm0, %v13184_v22 }
 0x15b   : > { %19469 = vst [vmem:[#allocation40_spill] sm:$0xff] %v14491_v50  ;;  %v14493_v52 = vpop.f32.mrf.mxu1 }
 0x15c   : > { %19470 = vst [vmem:[#allocation41_spill] sm:$0xff] %v14493_v52  ;;  %v14496_v55 = vpop.f32.mrf.mxu0 }
 0x15d   : > { %19471 = vst [vmem:[#allocation42_spill] sm:$0xff] %v14496_v55  ;;  %v14498_v48 = vpop.f32.mrf.mxu1 }
 0x15e   : > { %19472 = vst [vmem:[#allocation43_spill] sm:$0xff] %v14498_v48  ;;  %v14501_v63 = vpop.f32.mrf.mxu0 }
 0x15f   : > { %19473 = vst [vmem:[#allocation44_spill] sm:$0xff] %v14501_v63  ;;  %v14503_v47 = vpop.f32.mrf.mxu1 }
 0x160   : > { %19474 = vst [vmem:[#allocation45_spill] sm:$0xff] %v14503_v47  ;;  %v14505_v13 = vpop.f32.mrf.mxu0  ;;  %12816 = vmatmul.mubr.msk.bf16.gmra.mxu0 %vm1707_vm1, %v13139_v31  ;;  %v13143_v31 = vld [vmem:[%s14087_s19 + $0xa8] sm:$0xff]  }
 0x161   : > { %19475 = vst [vmem:[#allocation46_spill] sm:$0xff] %v14505_v13  ;;  %v14507_v46 = vpop.f32.mrf.mxu1  ;;  %11488 = vmatmul.mubr.msk.bf16.gmra.mxu1 %vm1707_vm1, %v13142_v4  ;;  %12819 = vmatprep.mubr.msk.bf16.mxu0 %vm1707_vm1, %v13140_v40 }
 0x162   : > { %19476 = vst [vmem:[#allocation47_spill] sm:$0xff] %v14507_v46  ;;  %2760 = vmatprep.mubr.bf16.mxu1 %v19468_v49  ;;  %v14516_v58 = vpop.f32.mrf.mxu0 }
 0x163   : > { %19477 = vst [vmem:[#allocation48_spill] sm:$0xff] %v14516_v58  ;;  %v14518_v63 = vpop.f32.mrf.mxu1 }
 0x164   : > { %19478 = vst [vmem:[#allocation49_spill] sm:$0xff] %v14518_v63  ;;  %v14521_v46 = vpop.f32.mrf.mxu0 }
 0x165   : > { %19479 = vst [vmem:[#allocation50_spill] sm:$0xff] %v14521_v46  ;;  %v14523_v13 = vpop.f32.mrf.mxu1 }
 0x166   : > { %19480 = vst [vmem:[#allocation51_spill] sm:$0xff] %v14523_v13  ;;  %v14526_v47 = vpop.f32.mrf.mxu0 }
 0x167   : > { %19481 = vst [vmem:[#allocation52_spill] sm:$0xff] %v14526_v47  ;;  %v14528_v48 = vpop.f32.mrf.mxu1 }
 0x168   : > { %19482 = vst [vmem:[#allocation53_spill] sm:$0xff] %v14528_v48  ;;  %v14530_v40 = vpop.f32.mrf.mxu0  ;;  %12820 = vmatmul.mubr.msk.bf16.gmra.mxu0 %vm1707_vm1, %v13141_v51 }
 0x169   : > { %19483 = vst [vmem:[#allocation54_spill] sm:$0xff] %v14530_v40  ;;  %v14532_v55 = vpop.f32.mrf.mxu1  ;;  %11489 = vmatmul.mubr.msk.bf16.gmra.mxu1 %vm1707_vm1, %v13143_v31  ;;  %12823 = vmatprep.mubr.msk.bf16.mxu0 %vm1707_vm1, %v13142_v4  ;;  %v13144_v40 = vld [vmem:[%s14087_s19 + $0xb0] sm:$0xff]  }
 0x16a   : > { %19484 = vst [vmem:[#allocation55_spill] sm:$0xff] %v14532_v55  ;;  %2770 = vmatprep.mubr.bf16.mxu1 %v19468_v49  ;;  %v14538_v46 = vpop.f32.mrf.mxu0 }
 0x16b   : > { %19485 = vst [vmem:[#allocation56_spill] sm:$0xff] %v14538_v46  ;;  %v14540_v13 = vpop.f32.mrf.mxu1 }
 0x16c   : > { %19486 = vst [vmem:[#allocation57_spill] sm:$0xff] %v14540_v13  ;;  %v14542_v47 = vpop.f32.mrf.mxu0 }
 0x16d   : > { %19487 = vst [vmem:[#allocation58_spill] sm:$0xff] %v14542_v47  ;;  %v14544_v48 = vpop.f32.mrf.mxu1 }
 0x16e   : > { %19488 = vst [vmem:[#allocation59_spill] sm:$0xff] %v14544_v48  ;;  %v14547_v55 = vpop.f32.mrf.mxu0 }
 0x16f   : > { %19489 = vst [vmem:[#allocation60_spill] sm:$0xff] %v14547_v55  ;;  %v14549_v63 = vpop.f32.mrf.mxu1 }
 0x170   : > { %19490 = vst [vmem:[#allocation61_spill] sm:$0xff] %v14549_v63  ;;  %v14551_v51 = vpop.f32.mrf.mxu0  ;;  %12824 = vmatmul.mubr.msk.bf16.gmra.mxu0 %vm1707_vm1, %v13143_v31 }
 0x171   : > { %19491 = vst [vmem:[#allocation62_spill] sm:$0xff] %v14551_v51  ;;  %v14553_v58 = vpop.f32.mrf.mxu1  ;;  %11490 = vmatmul.mubr.msk.bf16.gmra.mxu1 %vm1707_vm1, %v13144_v40  ;;  %12827 = vmatprep.mubr.msk.bf16.mxu0 %vm1707_vm1, %v13144_v40  ;;  %v13145_v51 = vld [vmem:[%s14087_s19 + $0xb8] sm:$0xff]  }
 0x172   : > { %19492 = vst [vmem:[#allocation63_spill] sm:$0xff] %v14553_v58  ;;  %2780 = vmatprep.mubr.bf16.mxu1 %v19468_v49  ;;  %v14559_v4 = vpop.f32.mrf.mxu0  ;;  %v13153_v58 = vld [vmem:[%s14087_s19 + $0x180] sm:$0xff]  }
 0x173   : > { %19493 = vst [vmem:[#allocation64_spill] sm:$0xff] %v14559_v4  ;;  %v14561_v48 = vpop.f32.mrf.mxu1 }
 0x174   : > { %19494 = vst [vmem:[#allocation65_spill] sm:$0xff] %v14561_v48  ;;  %v14563_v47 = vpop.f32.mrf.mxu0 }
 0x175   : > { %19495 = vst [vmem:[#allocation66_spill] sm:$0xff] %v14563_v47  ;;  %v14565_v55 = vpop.f32.mrf.mxu1  ;;  %v13155_v47 = vld [vmem:[%s14087_s19 + $0x190] sm:$0xff]  }
 0x176   : > { %19496 = vst [vmem:[#allocation67_spill] sm:$0xff] %v14565_v55  ;;  %v14569_v63 = vpop.f32.mrf.mxu0 }
 0x177   : > { %19497 = vst [vmem:[#allocation68_spill] sm:$0xff] %v14569_v63  ;;  %v14571_v13 = vpop.f32.mrf.mxu1 }
 0x178   : > { %19498 = vst [vmem:[#allocation69_spill] sm:$0xff] %v14571_v13  ;;  %v14573_v31 = vpop.f32.mrf.mxu0  ;;  %12828 = vmatmul.mubr.msk.bf16.gmra.mxu0 %vm1707_vm1, %v13145_v51  ;;  %v13179_v13 = vld [vmem:[%s19320_s1 + $0xa8] ss:$12 sps:$4 sm:$0x3f]  }
 0x179   : > { %19499 = vst [vmem:[#allocation70_spill] sm:$0xff] %v14573_v31  ;;  %v14575_v46 = vpop.f32.mrf.mxu1  ;;  %11491 = vmatmul.mubr.msk.bf16.gmra.mxu1 %vm1707_vm1, %v13145_v51  ;;  %3336 = vmatprep.mubr.bf16.mxu0 %v19468_v49  ;;  %v4226_v4 = vsel %vm1780_vm0, %v13179_v13, 0 }
 0x17a   : > { %19500 = vst [vmem:[#allocation71_spill] sm:$0xff] %v14575_v46  ;;  %12835 = vmatprep.mubr.msk.bf16.mxu1 %vm1707_vm1, %v13153_v58  ;;  %v14581_v40 = vpop.f32.mrf.mxu0  ;;  %v13154_v46 = vld [vmem:[%s14087_s19 + $0x188] sm:$0xff]  }
 0x17b   : > { %19501 = vst [vmem:[#allocation72_spill] sm:$0xff] %v14581_v40  ;;  %v14583_v55 = vpop.f32.mrf.mxu1  ;;  %v4232_v40 = vsel %vm1780_vm0, %v13184_v22, 0  ;;  %v13180_v22 = vld [vmem:[%s19320_s1 + $0x90] ss:$12 sps:$4 sm:$0xff]  }
 0x17c   : > { %19502 = vst [vmem:[#allocation73_spill] sm:$0xff] %v14583_v55  ;;  %v14588_v63 = vpop.f32.mrf.mxu0  ;;  %v13182_v55 = vld [vmem:[%s19320_s1 + $0x94] ss:$12 sps:$4 sm:$0xff]  }
 0x17d   : > { %19503 = vst [vmem:[#allocation74_spill] sm:$0xff] %v14588_v63  ;;  %v14590_v31 = vpop.f32.mrf.mxu1 }
 0x17e   : > { %19504 = vst [vmem:[#allocation75_spill] sm:$0xff] %v14590_v31  ;;  %v14594_v48 = vpop.f32.mrf.mxu0  ;;  %v13157_v31 = vld [vmem:[%s14087_s19 + $0x1a0] sm:$0xff]  }
 0x17f   : > { %19505 = vst [vmem:[#allocation76_spill] sm:$0xff] %v14594_v48  ;;  %v14596_v51 = vpop.f32.mrf.mxu1  ;;  %v13156_v48 = vld [vmem:[%s14087_s19 + $0x198] sm:$0xff]  }
 0x180   : > { %19506 = vst [vmem:[#allocation77_spill] sm:$0xff] %v14596_v51  ;;  %v14603_v52 = vpop.f32.mrf.mxu0  ;;  %11603 = vmatmul.mubr.msk.bf16.vlgmr.msra.gmra.mxu0 %vm1707_vm1, %v13153_v58 }
 0x181   : > { %19507 = vst [vmem:[#allocation78_spill] sm:$0xff] %v14603_v52  ;;  %v14605_v63 = vpop.f32.mrf.mxu1  ;;  %12836 = vmatmul.mubr.msk.bf16.vlgmr.msra.gmra.mxu1 %vm1707_vm1, %v13154_v46  ;;  %3346 = vmatprep.mubr.bf16.mxu0 %v19468_v49 }
 0x182   : > { %12839 = vmatprep.mubr.msk.bf16.mxu1 %vm1707_vm1, %v13155_v47  ;;  %v14611_v13 = vpop.f32.mrf.mxu0  ;;  %4247 = vmatpush1.bf16.msra.mxu1 %v4226_v4 }
 0x183   : > { %19508 = vst [vmem:[#allocation79_spill] sm:$0xff] %v14611_v13  ;;  %v14613_v51 = vpop.f32.mrf.mxu1  ;;  %12884 = vmatpush3.bf16.msra.mxu0 %v4232_v40  ;;  %4248 = vmatprep.subr.bf16.mxu1 %v13182_v55 }
 0x184   : > { %v14618_v52 = vpop.f32.mrf.mxu0 }
 0x185   : > { %19509 = vst [vmem:[#allocation80_spill] sm:$0xff] %v14618_v52  ;;  %v14620_v58 = vpop.f32.mrf.mxu1  ;;  %v13159_v52 = vld [vmem:[%s14087_s19 + $0x1b0] sm:$0xff]  }
 0x186   : > { %v14624_v50 = vpop.f32.mrf.mxu0  ;;  %4249 = vmatpush1.bf16.msra.mxu1 %v13180_v22 }
 0x187   : > { %19510 = vst [vmem:[#allocation81_spill] sm:$0xff] %v14624_v50  ;;  %v14626_v13 = vpop.f32.mrf.mxu1 }
 0x188   : > { %v14628_v4 = vpop.f32.mrf.mxu0  ;;  %11604 = vmatmul.mubr.msk.bf16.gmra.mxu0 %vm1707_vm1, %v13154_v46 }
 0x189   : > { %19511 = vst [vmem:[#allocation82_spill] sm:$0xff] %v14628_v4  ;;  %v14630_v45 = vpop.f32.mrf.mxu1  ;;  %12840 = vmatmul.mubr.msk.bf16.gmra.mxu1 %vm1707_vm1, %v13156_v48  ;;  %3356 = vmatprep.mubr.bf16.mxu0 %v19468_v49  ;;  %v13158_v4 = vld [vmem:[%s14087_s19 + $0x1a8] sm:$0xff]  }
 0x18a   : > { %12843 = vmatprep.mubr.msk.bf16.mxu1 %vm1707_vm1, %v13157_v31  ;;  %v14636_v55 = vpop.f32.mrf.mxu0 }
 0x18b   : > { %19512 = vst [vmem:[#allocation83_spill] sm:$0xff] %v14636_v55  ;;  %v14638_v40 = vpop.f32.mrf.mxu1 }
 0x18c   : > { %v14640_v50 = vpop.f32.mrf.mxu0 }
 0x18d   : > { %19513 = vst [vmem:[#allocation84_spill] sm:$0xff] %v14640_v50  ;;  %v14642_v22 = vpop.f32.mrf.mxu1 }
 0x18e   : > { %v14646_v44 = vpop.f32.mrf.mxu0 }
 0x18f   : > { %19514 = vst [vmem:[#allocation85_spill] sm:$0xff] %v14646_v44  ;;  %v14648_v46 = vpop.f32.mrf.mxu1 }
 0x190   : > { %v14650_v43 = vpop.f32.mrf.mxu0  ;;  %11605 = vmatmul.mubr.msk.bf16.gmra.mxu0 %vm1707_vm1, %v13155_v47 }
 0x191   : > { %19515 = vst [vmem:[#allocation86_spill] sm:$0xff] %v14650_v43  ;;  %v14652_v42 = vpop.f32.mrf.mxu1  ;;  %12844 = vmatmul.mubr.msk.bf16.gmra.mxu1 %vm1707_vm1, %v13158_v4  ;;  %3366 = vmatprep.mubr.bf16.mxu0 %v19468_v49  ;;  %v13160_v43 = vld [vmem:[%s14087_s19 + $0x1b8] sm:$0xff]  }
 0x192   : > { %12847 = vmatprep.mubr.msk.bf16.mxu1 %vm1707_vm1, %v13159_v52  ;;  %v14658_v50 = vpop.f32.mrf.mxu0 }
 0x193   : > { %19516 = vst [vmem:[#allocation87_spill] sm:$0xff] %v14658_v50  ;;  %v14660_v55 = vpop.f32.mrf.mxu1 }
 0x194   : > { %v14662_v41 = vpop.f32.mrf.mxu0 }
 0x195   : > { %19517 = vst [vmem:[#allocation88_spill] sm:$0xff] %v14662_v41  ;;  %v14664_v44 = vpop.f32.mrf.mxu1 }
 0x196   : > { %v14670_v47 = vpop.f32.mrf.mxu0 }
 0x197   : > { %19518 = vst [vmem:[#allocation89_spill] sm:$0xff] %v14670_v47  ;;  %v14672_v38 = vpop.f32.mrf.mxu1 }
 0x198   : > { %19519 = vst [vmem:[#allocation90_spill] sm:$0xff] %v14672_v38  ;;  %v14674_v37 = vpop.f32.mrf.mxu0  ;;  %11606 = vmatmul.mubr.msk.bf16.gmra.mxu0 %vm1707_vm1, %v13156_v48  ;;  %v14695_v48 = vld [vmem:[%s14087_s19 + $0x1d0] sm:$0xff]  }
 0x199   : > { %19520 = vst [vmem:[#allocation91_spill] sm:$0xff] %v14674_v37  ;;  %v14676_v36 = vpop.f32.mrf.mxu1  ;;  %12848 = vmatmul.mubr.msk.bf16.gmra.mxu1 %vm1707_vm1, %v13160_v43  ;;  %3376 = vmatprep.mubr.bf16.mxu0 %v19468_v49  ;;  %v14692_v37 = vld [vmem:[%s14087_s19 + $0x1c8] sm:$0xff]  }
 0x19a   : > { %19521 = vst [vmem:[#allocation92_spill] sm:$0xff] %v14676_v36  ;;  %12851 = vmatprep.mubr.msk.bf16.mxu1 %vm1707_vm1, %v14668_v39  ;;  %v14683_v41 = vpop.f32.mrf.mxu0 }
 0x19b   : > { %19522 = vst [vmem:[#allocation93_spill] sm:$0xff] %v14683_v41  ;;  %v14685_v50 = vpop.f32.mrf.mxu1 }
 0x19c   : > { %19523 = vst [vmem:[#allocation94_spill] sm:$0xff] %v14685_v50  ;;  %v14687_v47 = vpop.f32.mrf.mxu0 }
 0x19d   : > { %19524 = vst [vmem:[#allocation95_spill] sm:$0xff] %v14687_v47  ;;  %v14689_v35 = vpop.f32.mrf.mxu1 }
 0x19e   : > { %19525 = vst [vmem:[#allocation96_spill] sm:$0xff] %v14689_v35  ;;  %v14697_v34 = vpop.f32.mrf.mxu0 }
 0x19f   : > { %19526 = vst [vmem:[#allocation97_spill] sm:$0xff] %v14697_v34  ;;  %v14699_v33 = vpop.f32.mrf.mxu1 }
 0x1a0   : > { %19527 = vst [vmem:[#allocation98_spill] sm:$0xff] %v14699_v33  ;;  %v14701_v32 = vpop.f32.mrf.mxu0  ;;  %11607 = vmatmul.mubr.msk.bf16.gmra.mxu0 %vm1707_vm1, %v13157_v31  ;;  %v14723_v31 = vld [vmem:[%s14087_s19 + $0x1e0] sm:$0xff]  }
 0x1a1   : > { %19528 = vst [vmem:[#allocation99_spill] sm:$0xff] %v14701_v32  ;;  %v14703_v30 = vpop.f32.mrf.mxu1  ;;  %12852 = vmatmul.mubr.msk.bf16.gmra.mxu1 %vm1707_vm1, %v14692_v37  ;;  %3386 = vmatprep.mubr.bf16.mxu0 %v19468_v49 }
 0x1a2   : > { %19529 = vst [vmem:[#allocation100_spill] sm:$0xff] %v14703_v30  ;;  %12855 = vmatprep.mubr.msk.bf16.mxu1 %vm1707_vm1, %v14695_v48  ;;  %v14711_v47 = vpop.f32.mrf.mxu0 }
 0x1a3   : > { %19530 = vst [vmem:[#allocation101_spill] sm:$0xff] %v14711_v47  ;;  %v14713_v41 = vpop.f32.mrf.mxu1 }
 0x1a4   : > { %19531 = vst [vmem:[#allocation102_spill] sm:$0xff] %v14713_v41  ;;  %v14715_v34 = vpop.f32.mrf.mxu0 }
 0x1a5   : > { %19532 = vst [vmem:[#allocation103_spill] sm:$0xff] %v14715_v34  ;;  %v14717_v32 = vpop.f32.mrf.mxu1 }
 0x1a6   : > { %19533 = vst [vmem:[#allocation104_spill] sm:$0xff] %v14717_v32  ;;  %v14725_v28 = vpop.f32.mrf.mxu0 }
 0x1a7   : > { %19534 = vst [vmem:[#allocation105_spill] sm:$0xff] %v14725_v28  ;;  %v14727_v30 = vpop.f32.mrf.mxu1 }
 0x1a8   : > { %19535 = vst [vmem:[#allocation106_spill] sm:$0xff] %v14727_v30  ;;  %v14729_v27 = vpop.f32.mrf.mxu0  ;;  %11608 = vmatmul.mubr.msk.bf16.gmra.mxu0 %vm1707_vm1, %v13158_v4  ;;  %v14751_v4 = vld [vmem:[%s14087_s19 + $0x1f0] sm:$0xff]  }
 0x1a9   : > { %19536 = vst [vmem:[#allocation107_spill] sm:$0xff] %v14729_v27  ;;  %v14731_v26 = vpop.f32.mrf.mxu1  ;;  %12856 = vmatmul.mubr.msk.bf16.gmra.mxu1 %vm1707_vm1, %v14720_v29  ;;  %3396 = vmatprep.mubr.bf16.mxu0 %v19468_v49 }
 0x1aa   : > { %19537 = vst [vmem:[#allocation108_spill] sm:$0xff] %v14731_v26  ;;  %12859 = vmatprep.mubr.msk.bf16.mxu1 %vm1707_vm1, %v14723_v31  ;;  %v14739_v34 = vpop.f32.mrf.mxu0  ;;  %v14748_v26 = vld [vmem:[%s14087_s19 + $0x1e8] sm:$0xff]  }
 0x1ab   : > { %19538 = vst [vmem:[#allocation109_spill] sm:$0xff] %v14739_v34  ;;  %v14741_v47 = vpop.f32.mrf.mxu1 }
 0x1ac   : > { %19539 = vst [vmem:[#allocation110_spill] sm:$0xff] %v14741_v47  ;;  %v14743_v28 = vpop.f32.mrf.mxu0 }
 0x1ad   : > { %19540 = vst [vmem:[#allocation111_spill] sm:$0xff] %v14743_v28  ;;  %v14745_v27 = vpop.f32.mrf.mxu1 }
 0x1ae   : > { %19541 = vst [vmem:[#allocation112_spill] sm:$0xff] %v14745_v27  ;;  %v14753_v30 = vpop.f32.mrf.mxu0 }
 0x1af   : > { %19542 = vst [vmem:[#allocation113_spill] sm:$0xff] %v14753_v30  ;;  %v14755_v32 = vpop.f32.mrf.mxu1 }
 0x1b0   : > { %19543 = vst [vmem:[#allocation114_spill] sm:$0xff] %v14755_v32  ;;  %v14757_v41 = vpop.f32.mrf.mxu0  ;;  %11609 = vmatmul.mubr.msk.bf16.gmra.mxu0 %vm1707_vm1, %v13159_v52  ;;  %v14779_v52 = vld [vmem:[%s14087_s19 + $0x200] sm:$0xff]  }
 0x1b1   : > { %19544 = vst [vmem:[#allocation115_spill] sm:$0xff] %v14757_v41  ;;  %v14759_v33 = vpop.f32.mrf.mxu1  ;;  %12860 = vmatmul.mubr.msk.bf16.gmra.mxu1 %vm1707_vm1, %v14748_v26  ;;  %3406 = vmatprep.mubr.bf16.mxu0 %v19468_v49  ;;  %v14776_v41 = vld [vmem:[%s14087_s19 + $0x1f8] sm:$0xff]  }
 0x1b2   : > { %19545 = vst [vmem:[#allocation116_spill] sm:$0xff] %v14759_v33  ;;  %12863 = vmatprep.mubr.msk.bf16.mxu1 %vm1707_vm1, %v14751_v4  ;;  %v14767_v28 = vpop.f32.mrf.mxu0 }
 0x1b3   : > { %19546 = vst [vmem:[#allocation117_spill] sm:$0xff] %v14767_v28  ;;  %v14769_v34 = vpop.f32.mrf.mxu1 }
 0x1b4   : > { %19547 = vst [vmem:[#allocation118_spill] sm:$0xff] %v14769_v34  ;;  %v14771_v30 = vpop.f32.mrf.mxu0 }
 0x1b5   : > { %19548 = vst [vmem:[#allocation119_spill] sm:$0xff] %v14771_v30  ;;  %v14773_v32 = vpop.f32.mrf.mxu1 }
 0x1b6   : > { %19549 = vst [vmem:[#allocation120_spill] sm:$0xff] %v14773_v32  ;;  %v14781_v33 = vpop.f32.mrf.mxu0 }
 0x1b7   : > { %19550 = vst [vmem:[#allocation121_spill] sm:$0xff] %v14781_v33  ;;  %v14783_v27 = vpop.f32.mrf.mxu1 }
 0x1b8   : > { %19551 = vst [vmem:[#allocation122_spill] sm:$0xff] %v14783_v27  ;;  %v14785_v47 = vpop.f32.mrf.mxu0  ;;  %11610 = vmatmul.mubr.msk.bf16.gmra.mxu0 %vm1707_vm1, %v13160_v43  ;;  %v14807_v43 = vld [vmem:[%s14087_s19 + $0x208] sm:$0xff]   ;;  %v14810_v27 = vld [vmem:[%s14087_s19 + $0x210] sm:$0xff]  }
 0x1b9   : > { %19552 = vst [vmem:[#allocation123_spill] sm:$0xff] %v14785_v47  ;;  %v14787_v25 = vpop.f32.mrf.mxu1  ;;  %12864 = vmatmul.mubr.msk.bf16.gmra.mxu1 %vm1707_vm1, %v14776_v41  ;;  %3416 = vmatprep.mubr.bf16.mxu0 %v19468_v49  ;;  %v13196_v47 = vld [vmem:[%s19320_s1 + $0x98] ss:$12 sps:$4 sm:$0xff]  }
 0x1ba   : > { %19553 = vst [vmem:[#allocation124_spill] sm:$0xff] %v14787_v25  ;;  %12867 = vmatprep.mubr.msk.bf16.mxu1 %vm1707_vm1, %v14779_v52  ;;  %v14795_v30 = vpop.f32.mrf.mxu0  ;;  %12885 = vmatprep.subr.bf16.mxu0 %v13196_v47 }
 0x1bb   : > { %19554 = vst [vmem:[#allocation125_spill] sm:$0xff] %v14795_v30  ;;  %v14797_v28 = vpop.f32.mrf.mxu1  ;;  %12886 = vmatpush3.bf16.msra.mxu0 %v13196_v47  ;;  %v13198_v47 = vld [vmem:[%s19320_s1 + $0xe0] ss:$12 sps:$4 sm:$0x3f]  }
 0x1bc   : > { %19555 = vst [vmem:[#allocation126_spill] sm:$0xff] %v14797_v28  ;;  %v14802_v33 = vpop.f32.mrf.mxu0  ;;  %13051 = vmatprep.subr.msk.bf16.mxu1 %vm1780_vm0, %v13198_v47 }
 0x1bd   : > { %19556 = vst [vmem:[#allocation127_spill] sm:$0xff] %v14802_v33  ;;  %v14804_v25 = vpop.f32.mrf.mxu1 }
 0x1be   : > { %19557 = vst [vmem:[#allocation128_spill] sm:$0xff] %v14804_v25  ;;  %v14812_v32 = vpop.f32.mrf.mxu0 }
 0x1bf   : > { %19558 = vst [vmem:[#allocation129_spill] sm:$0xff] %v14812_v32  ;;  %v14814_v30 = vpop.f32.mrf.mxu1 }
 0x1c0   : > { %19559 = vst [vmem:[#allocation130_spill] sm:$0xff] %v14814_v30  ;;  %v14816_v28 = vpop.f32.mrf.mxu0  ;;  %11611 = vmatmul.mubr.msk.bf16.gmra.mxu0 %vm1707_vm1, %v14668_v39  ;;  %v14843_v30 = vld [vmem:[%s14087_s19 + $0x220] sm:$0xff]  }
 0x1c1   : > { %19560 = vst [vmem:[#allocation131_spill] sm:$0xff] %v14816_v28  ;;  %v14818_v34 = vpop.f32.mrf.mxu1  ;;  %12868 = vmatmul.mubr.msk.bf16.gmra.mxu1 %vm1707_vm1, %v14807_v43  ;;  %3426 = vmatprep.mubr.bf16.mxu0 %v19468_v49 }
 0x1c2   : > { %19561 = vst [vmem:[#allocation132_spill] sm:$0xff] %v14818_v34  ;;  %12871 = vmatprep.mubr.msk.bf16.mxu1 %vm1707_vm1, %v14810_v27  ;;  %v14830_v32 = vpop.f32.mrf.mxu0  ;;  %v14840_v34 = vld [vmem:[%s14087_s19 + $0x218] sm:$0xff]  }
 0x1c3   : > { %19562 = vst [vmem:[#allocation133_spill] sm:$0xff] %v14830_v32  ;;  %v14832_v28 = vpop.f32.mrf.mxu1 }
 0x1c4   : > { %19563 = vst [vmem:[#allocation134_spill] sm:$0xff] %v14832_v28  ;;  %v14835_v33 = vpop.f32.mrf.mxu0 }
 0x1c5   : > { %19564 = vst [vmem:[#allocation135_spill] sm:$0xff] %v14835_v33  ;;  %v14837_v39 = vpop.f32.mrf.mxu1 }
 0x1c6   : > { %19565 = vst [vmem:[#allocation136_spill] sm:$0xff] %v14837_v39  ;;  %v14845_v25 = vpop.f32.mrf.mxu0 }
 0x1c7   : > { %19566 = vst [vmem:[#allocation137_spill] sm:$0xff] %v14845_v25  ;;  %v14847_v24 = vpop.f32.mrf.mxu1 }
 0x1c8   : > { %19567 = vst [vmem:[#allocation138_spill] sm:$0xff] %v14847_v24  ;;  %v14849_v35 = vpop.f32.mrf.mxu0  ;;  %11612 = vmatmul.mubr.msk.bf16.gmra.mxu0 %vm1707_vm1, %v14692_v37  ;;  %v14872_v37 = vld [vmem:[%s14087_s19 + $0x230] sm:$0xff]  }
 0x1c9   : > { %19568 = vst [vmem:[#allocation139_spill] sm:$0xff] %v14849_v35  ;;  %v14851_v32 = vpop.f32.mrf.mxu1  ;;  %12872 = vmatmul.mubr.msk.bf16.gmra.mxu1 %vm1707_vm1, %v14840_v34  ;;  %3436 = vmatprep.mubr.bf16.mxu0 %v19468_v49 }
 0x1ca   : > { %19569 = vst [vmem:[#allocation140_spill] sm:$0xff] %v14851_v32  ;;  %12875 = vmatprep.mubr.msk.bf16.mxu1 %vm1707_vm1, %v14843_v30  ;;  %v14860_v33 = vpop.f32.mrf.mxu0  ;;  %v14869_v32 = vld [vmem:[%s14087_s19 + $0x228] sm:$0xff]  }
 0x1cb   : > { %19570 = vst [vmem:[#allocation141_spill] sm:$0xff] %v14860_v33  ;;  %v14862_v25 = vpop.f32.mrf.mxu1 }
 0x1cc   : > { %19571 = vst [vmem:[#allocation142_spill] sm:$0xff] %v14862_v25  ;;  %v14864_v24 = vpop.f32.mrf.mxu0 }
 0x1cd   : > { %19572 = vst [vmem:[#allocation143_spill] sm:$0xff] %v14864_v24  ;;  %v14866_v35 = vpop.f32.mrf.mxu1 }
 0x1ce   : > { %19573 = vst [vmem:[#allocation144_spill] sm:$0xff] %v14866_v35  ;;  %v14874_v39 = vpop.f32.mrf.mxu0 }
 0x1cf   : > { %19574 = vst [vmem:[#allocation145_spill] sm:$0xff] %v14874_v39  ;;  %v14876_v28 = vpop.f32.mrf.mxu1 }
 0x1d0   : > { %19575 = vst [vmem:[#allocation146_spill] sm:$0xff] %v14876_v28  ;;  %v14878_v23 = vpop.f32.mrf.mxu0  ;;  %11613 = vmatmul.mubr.msk.bf16.gmra.mxu0 %vm1707_vm1, %v14695_v48 }
 0x1d1   : > { %19576 = vst [vmem:[#allocation147_spill] sm:$0xff] %v14878_v23  ;;  %v14880_v21 = vpop.f32.mrf.mxu1  ;;  %12876 = vmatmul.mubr.msk.bf16.gmra.mxu1 %vm1707_vm1, %v14869_v32  ;;  %3446 = vmatprep.mubr.bf16.mxu0 %v19468_v49 }
 0x1d2   : > { %19577 = vst [vmem:[#allocation148_spill] sm:$0xff] %v14880_v21  ;;  %12879 = vmatprep.mubr.msk.bf16.mxu1 %vm1707_vm1, %v14872_v37  ;;  %v14889_v24 = vpop.f32.mrf.mxu0  ;;  %v14898_v21 = vld [vmem:[%s14087_s19 + $0x238] sm:$0xff]  }
 0x1d3   : > { %19578 = vst [vmem:[#allocation149_spill] sm:$0xff] %v14889_v24  ;;  %v14891_v39 = vpop.f32.mrf.mxu1 }
 0x1d4   : > { %19579 = vst [vmem:[#allocation150_spill] sm:$0xff] %v14891_v39  ;;  %v14893_v33 = vpop.f32.mrf.mxu0 }
 0x1d5   : > { %19580 = vst [vmem:[#allocation151_spill] sm:$0xff] %v14893_v33  ;;  %v14895_v23 = vpop.f32.mrf.mxu1 }
 0x1d6   : > { %19581 = vst [vmem:[#allocation152_spill] sm:$0xff] %v14895_v23  ;;  %v14900_v48 = vpop.f32.mrf.mxu0  ;;  %v5162_v23 = vsel %vm1780_vm0, %v13198_v47, 0 }
 0x1d7   : > { %19582 = vst [vmem:[#allocation153_spill] sm:$0xff] %v14900_v48  ;;  %v14902_v28 = vpop.f32.mrf.mxu1 }
 0x1d8   : > { %19583 = vst [vmem:[#allocation154_spill] sm:$0xff] %v14902_v28  ;;  %v14904_v35 = vpop.f32.mrf.mxu0  ;;  %11614 = vmatmul.mubr.msk.bf16.gmra.mxu0 %vm1707_vm1, %v14720_v29 }
 0x1d9   : > { %19584 = vst [vmem:[#allocation155_spill] sm:$0xff] %v14904_v35  ;;  %v14906_v25 = vpop.f32.mrf.mxu1  ;;  %12880 = vmatmul.mubr.msk.bf16.gmra.mxu1 %vm1707_vm1, %v14898_v21  ;;  %3456 = vmatprep.mubr.bf16.mxu0 %v19468_v49  ;;  %v14923_v35 = vld [vmem:[%s14087_s19 + $0x240] sm:$0xff]  }
 0x1da   : > { %19585 = vst [vmem:[#allocation156_spill] sm:$0xff] %v14906_v25  ;;  %4266 = vmatprep.mubr.bf16.mxu1 %v19468_v49  ;;  %v14914_v33 = vpop.f32.mrf.mxu0 }
 0x1db   : > { %19586 = vst [vmem:[#allocation157_spill] sm:$0xff] %v14914_v33  ;;  %v14916_v24 = vpop.f32.mrf.mxu1 }
 0x1dc   : > { %19587 = vst [vmem:[#allocation158_spill] sm:$0xff] %v14916_v24  ;;  %v14918_v48 = vpop.f32.mrf.mxu0 }
 0x1dd   : > { %19588 = vst [vmem:[#allocation159_spill] sm:$0xff] %v14918_v48  ;;  %v14920_v28 = vpop.f32.mrf.mxu1 }
 0x1de   : > { %19589 = vst [vmem:[#allocation160_spill] sm:$0xff] %v14920_v28  ;;  %v14925_v25 = vpop.f32.mrf.mxu0 }
 0x1df   : > { %19590 = vst [vmem:[#allocation161_spill] sm:$0xff] %v14925_v25  ;;  %v14927_v29 = vpop.f32.mrf.mxu1 }
 0x1e0   : > { %19591 = vst [vmem:[#allocation162_spill] sm:$0xff] %v14927_v29  ;;  %v14932_v50 = vpop.f32.mrf.mxu0  ;;  %11615 = vmatmul.mubr.msk.bf16.gmra.mxu0 %vm1707_vm1, %v14723_v31 }
 0x1e1   : > { %v14930_v39 = vpop.f32.mrf.mxu1  ;;  %11738 = vmatmul.mubr.msk.bf16.vlgmr.msra.gmra.mxu1 %vm1707_vm1, %v14923_v35  ;;  %3466 = vmatprep.mubr.bf16.mxu0 %v19468_v49 }
 0x1e2   : > { %19592 = vst [vmem:[#allocation163_spill] sm:$0xff] %v14930_v39  ;;  %4276 = vmatprep.mubr.bf16.mxu1 %v19468_v49  ;;  %v14942_v25 = vpop.f32.mrf.mxu0  ;;  %12936 = vmatpush3.bf16.msra.mxu1 %v5162_v23  ;;  %v14949_v39 = vld [vmem:[%s14087_s19 + $0x248] sm:$0xff]  }
 0x1e3   : > { %v14940_v48 = vpop.f32.mrf.mxu1 }
 0x1e4   : > { %19593 = vst [vmem:[#allocation164_spill] sm:$0xff] %v14940_v48  ;;  %v14946_v33 = vpop.f32.mrf.mxu0  ;;  %v14974_v48 = vld [vmem:[%s14087_s19 + $0x250] sm:$0xff]  }
 0x1e5   : > { %v14944_v47 = vpop.f32.mrf.mxu1 }
 0x1e6   : > { %19594 = vst [vmem:[#allocation165_spill] sm:$0xff] %v14944_v47  ;;  %v14953_v29 = vpop.f32.mrf.mxu0 }
 0x1e7   : > { %v14951_v31 = vpop.f32.mrf.mxu1 }
 0x1e8   : > { %19595 = vst [vmem:[#allocation166_spill] sm:$0xff] %v14951_v31  ;;  %v14957_v24 = vpop.f32.mrf.mxu0  ;;  %11616 = vmatmul.mubr.msk.bf16.gmra.mxu0 %vm1707_vm1, %v14748_v26 }
 0x1e9   : > { %v14955_v28 = vpop.f32.mrf.mxu1  ;;  %11739 = vmatmul.mubr.msk.bf16.gmra.mxu1 %vm1707_vm1, %v14949_v39  ;;  %3476 = vmatprep.mubr.bf16.mxu0 %v19468_v49 }
 0x1ea   : > { %19596 = vst [vmem:[#allocation167_spill] sm:$0xff] %v14955_v28  ;;  %4286 = vmatprep.mubr.bf16.mxu1 %v19468_v49  ;;  %v14967_v47 = vpop.f32.mrf.mxu0 }
 0x1eb   : > { %v14965_v23 = vpop.f32.mrf.mxu1 }
 0x1ec   : > { %19597 = vst [vmem:[#allocation168_spill] sm:$0xff] %v14965_v23  ;;  %v14971_v28 = vpop.f32.mrf.mxu0 }
 0x1ed   : > { %v14969_v31 = vpop.f32.mrf.mxu1 }
 0x1ee   : > { %19598 = vst [vmem:[#allocation169_spill] sm:$0xff] %v14969_v31  ;;  %v14978_v26 = vpop.f32.mrf.mxu0 }
 0x1ef   : > { %v14976_v20 = vpop.f32.mrf.mxu1 }
 0x1f0   : > { %19599 = vst [vmem:[#allocation170_spill] sm:$0xff] %v14976_v20  ;;  %v14982_v36 = vpop.f32.mrf.mxu0  ;;  %11617 = vmatmul.mubr.msk.bf16.gmra.mxu0 %vm1707_vm1, %v14751_v4 }
 0x1f1   : > { %v14980_v19 = vpop.f32.mrf.mxu1  ;;  %11740 = vmatmul.mubr.msk.bf16.gmra.mxu1 %vm1707_vm1, %v14974_v48  ;;  %3486 = vmatprep.mubr.bf16.mxu0 %v19468_v49 }
 0x1f2   : > { %19600 = vst [vmem:[#allocation171_spill] sm:$0xff] %v14980_v19  ;;  %4296 = vmatprep.mubr.bf16.mxu1 %v19468_v49  ;;  %v14992_v23 = vpop.f32.mrf.mxu0 }
 0x1f3   : > { %v14990_v31 = vpop.f32.mrf.mxu1 }
 0x1f4   : > { %19601 = vst [vmem:[#allocation172_spill] sm:$0xff] %v14990_v31  ;;  %v14996_v19 = vpop.f32.mrf.mxu0 }
 0x1f5   : > { %v14994_v20 = vpop.f32.mrf.mxu1  ;;  %19603 = vst [vmem:[#allocation174_spill] sm:$0xff] %v14996_v19 }
 0x1f6   : > { %19602 = vst [vmem:[#allocation173_spill] sm:$0xff] %v14994_v20  ;;  %v15003_v4 = vpop.f32.mrf.mxu0 }
 0x1f7   : > { %v15001_v17 = vpop.f32.mrf.mxu1  ;;  %19605 = vst [vmem:[#allocation176_spill] sm:$0xff] %v15003_v4 }
 0x1f8   : > { %19604 = vst [vmem:[#allocation175_spill] sm:$0xff] %v15001_v17  ;;  %v15007_v16 = vpop.f32.mrf.mxu0  ;;  %11618 = vmatmul.mubr.msk.bf16.gmra.mxu0 %vm1707_vm1, %v14776_v41 }
 0x1f9   : > { %v15005_v38 = vpop.f32.mrf.mxu1  ;;  %19607 = vst [vmem:[#allocation178_spill] sm:$0xff] %v15007_v16  ;;  %11741 = vmatmul.mubr.msk.bf16.gmra.mxu1 %vm1707_vm1, %v14999_v18  ;;  %3496 = vmatprep.mubr.bf16.mxu0 %v19468_v49  ;;  %v15024_v16 = vld [vmem:[%s14087_s19 + $0x260] sm:$0xff]  }
 0x1fa   : > { %19606 = vst [vmem:[#allocation177_spill] sm:$0xff] %v15005_v38  ;;  %4306 = vmatprep.mubr.bf16.mxu1 %v19468_v49  ;;  %v15017_v31 = vpop.f32.mrf.mxu0 }
 0x1fb   : > { %v15015_v20 = vpop.f32.mrf.mxu1  ;;  %19609 = vst [vmem:[#allocation180_spill] sm:$0xff] %v15017_v31 }
 0x1fc   : > { %19608 = vst [vmem:[#allocation179_spill] sm:$0xff] %v15015_v20  ;;  %v15021_v38 = vpop.f32.mrf.mxu0 }
 0x1fd   : > { %v15019_v17 = vpop.f32.mrf.mxu1  ;;  %19611 = vst [vmem:[#allocation182_spill] sm:$0xff] %v15021_v38 }
 0x1fe   : > { %19610 = vst [vmem:[#allocation181_spill] sm:$0xff] %v15019_v17  ;;  %v15028_v41 = vpop.f32.mrf.mxu0 }
 0x1ff   : > { %v15026_v4 = vpop.f32.mrf.mxu1  ;;  %19613 = vst [vmem:[#allocation184_spill] sm:$0xff] %v15028_v41 }
 0x200   : > { %19612 = vst [vmem:[#allocation183_spill] sm:$0xff] %v15026_v4  ;;  %v15032_v15 = vpop.f32.mrf.mxu0  ;;  %11619 = vmatmul.mubr.msk.bf16.gmra.mxu0 %vm1707_vm1, %v14779_v52 }
 0x201   : > { %v15030_v19 = vpop.f32.mrf.mxu1  ;;  %19615 = vst [vmem:[#allocation186_spill] sm:$0xff] %v15032_v15  ;;  %11742 = vmatmul.mubr.msk.bf16.gmra.mxu1 %vm1707_vm1, %v15024_v16  ;;  %3506 = vmatprep.mubr.bf16.mxu0 %v19468_v49  ;;  %v15049_v15 = vld [vmem:[%s14087_s19 + $0x268] sm:$0xff]  }
 0x202   : > { %19614 = vst [vmem:[#allocation185_spill] sm:$0xff] %v15030_v19  ;;  %4316 = vmatprep.mubr.bf16.mxu1 %v19468_v49  ;;  %v15042_v20 = vpop.f32.mrf.mxu0 }
 0x203   : > { %v15040_v17 = vpop.f32.mrf.mxu1  ;;  %19617 = vst [vmem:[#allocation188_spill] sm:$0xff] %v15042_v20 }
 0x204   : > { %19616 = vst [vmem:[#allocation187_spill] sm:$0xff] %v15040_v17  ;;  %v15046_v19 = vpop.f32.mrf.mxu0 }
 0x205   : > { %v15044_v4 = vpop.f32.mrf.mxu1  ;;  %19619 = vst [vmem:[#allocation190_spill] sm:$0xff] %v15046_v19 }
 0x206   : > { %19618 = vst [vmem:[#allocation189_spill] sm:$0xff] %v15044_v4  ;;  %v15053_v52 = vpop.f32.mrf.mxu0 }
 0x207   : > { %v15051_v41 = vpop.f32.mrf.mxu1  ;;  %19621 = vst [vmem:[#allocation192_spill] sm:$0xff] %v15053_v52 }
 0x208   : > { %19620 = vst [vmem:[#allocation191_spill] sm:$0xff] %v15051_v41  ;;  %v15057_v31 = vpop.f32.mrf.mxu0  ;;  %11620 = vmatmul.mubr.msk.bf16.gmra.mxu0 %vm1707_vm1, %v14807_v43 }
 0x209   : > { %v15055_v38 = vpop.f32.mrf.mxu1  ;;  %19623 = vst [vmem:[#allocation194_spill] sm:$0xff] %v15057_v31  ;;  %11743 = vmatmul.mubr.msk.bf16.gmra.mxu1 %vm1707_vm1, %v15049_v15  ;;  %3516 = vmatprep.mubr.bf16.mxu0 %v19468_v49  ;;  %v15074_v31 = vld [vmem:[%s14087_s19 + $0x270] sm:$0xff]  }
 0x20a   : > { %19622 = vst [vmem:[#allocation193_spill] sm:$0xff] %v15055_v38  ;;  %4326 = vmatprep.mubr.bf16.mxu1 %v19468_v49  ;;  %v15067_v17 = vpop.f32.mrf.mxu0 }
 0x20b   : > { %v15065_v4 = vpop.f32.mrf.mxu1  ;;  %19625 = vst [vmem:[#allocation196_spill] sm:$0xff] %v15067_v17 }
 0x20c   : > { %19624 = vst [vmem:[#allocation195_spill] sm:$0xff] %v15065_v4  ;;  %v15071_v38 = vpop.f32.mrf.mxu0 }
 0x20d   : > { %v15069_v41 = vpop.f32.mrf.mxu1  ;;  %19627 = vst [vmem:[#allocation198_spill] sm:$0xff] %v15071_v38  ;;  %v13210_v38 = vld [vmem:[%s19320_s1 + $0xdc] ss:$12 sps:$4 sm:$0x3f]  }
 0x20e   : > { %19626 = vst [vmem:[#allocation197_spill] sm:$0xff] %v15069_v41  ;;  %v15078_v43 = vpop.f32.mrf.mxu0  ;;  %11872 = vmatprep.subr.msk.bf16.mxu0 %vm1780_vm0, %v13210_v38 }
 0x20f   : > { %v15076_v52 = vpop.f32.mrf.mxu1  ;;  %19629 = vst [vmem:[#allocation200_spill] sm:$0xff] %v15078_v43 }
 0x210   : > { %19628 = vst [vmem:[#allocation199_spill] sm:$0xff] %v15076_v52  ;;  %v15082_v20 = vpop.f32.mrf.mxu0  ;;  %11621 = vmatmul.mubr.msk.bf16.gmra.mxu0 %vm1707_vm1, %v14810_v27 }
 0x211   : > { %v15080_v19 = vpop.f32.mrf.mxu1  ;;  %19631 = vst [vmem:[#allocation202_spill] sm:$0xff] %v15082_v20  ;;  %11744 = vmatmul.mubr.msk.bf16.gmra.mxu1 %vm1707_vm1, %v15074_v31  ;;  %3526 = vmatprep.mubr.bf16.mxu0 %v19468_v49 }
 0x212   : > { %19630 = vst [vmem:[#allocation201_spill] sm:$0xff] %v15080_v19  ;;  %4336 = vmatprep.mubr.bf16.mxu1 %v19468_v49  ;;  %v15092_v4 = vpop.f32.mrf.mxu0  ;;  %v15099_v19 = vld [vmem:[%s14087_s19 + $0x278] sm:$0xff]  }
 0x213   : > { %v15090_v41 = vpop.f32.mrf.mxu1  ;;  %19633 = vst [vmem:[#allocation204_spill] sm:$0xff] %v15092_v4 }
 0x214   : > { %19632 = vst [vmem:[#allocation203_spill] sm:$0xff] %v15090_v41  ;;  %v15096_v43 = vpop.f32.mrf.mxu0 }
 0x215   : > { %v15094_v52 = vpop.f32.mrf.mxu1  ;;  %19635 = vst [vmem:[#allocation206_spill] sm:$0xff] %v15096_v43 }
 0x216   : > { %19634 = vst [vmem:[#allocation205_spill] sm:$0xff] %v15094_v52  ;;  %v15103_v27 = vpop.f32.mrf.mxu0 }
 0x217   : > { %v15101_v20 = vpop.f32.mrf.mxu1  ;;  %19637 = vst [vmem:[#allocation208_spill] sm:$0xff] %v15103_v27  ;;  %v15131_v27 = vld [vmem:[%s14087_s19 + $0x280] sm:$0xff]  }
 0x218   : > { %19636 = vst [vmem:[#allocation207_spill] sm:$0xff] %v15101_v20  ;;  %v15110_v41 = vpop.f32.mrf.mxu0  ;;  %11622 = vmatmul.mubr.msk.bf16.gmra.mxu0 %vm1707_vm1, %v14840_v34 }
 0x219   : > { %v15108_v17 = vpop.f32.mrf.mxu1  ;;  %19639 = vst [vmem:[#allocation210_spill] sm:$0xff] %v15110_v41  ;;  %11745 = vmatmul.mubr.msk.bf16.gmra.mxu1 %vm1707_vm1, %v15099_v19  ;;  %3536 = vmatprep.mubr.bf16.mxu0 %v19468_v49 }
 0x21a   : > { %19638 = vst [vmem:[#allocation209_spill] sm:$0xff] %v15108_v17  ;;  %4346 = vmatprep.mubr.bf16.mxu1 %v19468_v49  ;;  %v15120_v52 = vpop.f32.mrf.mxu0  ;;  %v13216_v17 = vld [vmem:[%s19320_s1 + $0xc8] ss:$12 sps:$4 sm:$0xff]  }
 0x21b   : > { %v15118_v20 = vpop.f32.mrf.mxu1  ;;  %19641 = vst [vmem:[#allocation212_spill] sm:$0xff] %v15120_v52  ;;  %12937 = vmatprep.subr.bf16.mxu1 %v13216_v17 }
 0x21c   : > { %19640 = vst [vmem:[#allocation211_spill] sm:$0xff] %v15118_v20  ;;  %v15128_v34 = vpop.f32.mrf.mxu0  ;;  %12938 = vmatpush3.bf16.msra.mxu1 %v13216_v17 }
 0x21d   : > { %v15126_v41 = vpop.f32.mrf.mxu1  ;;  %19643 = vst [vmem:[#allocation214_spill] sm:$0xff] %v15128_v34 }
 0x21e   : > { %19642 = vst [vmem:[#allocation213_spill] sm:$0xff] %v15126_v41  ;;  %v15135_v20 = vpop.f32.mrf.mxu0 }
 0x21f   : > { %v15133_v43 = vpop.f32.mrf.mxu1  ;;  %19645 = vst [vmem:[#allocation216_spill] sm:$0xff] %v15135_v20 }
 0x220   : > { %19644 = vst [vmem:[#allocation215_spill] sm:$0xff] %v15133_v43  ;;  %v15139_v38 = vpop.f32.mrf.mxu0  ;;  %11623 = vmatmul.mubr.msk.bf16.gmra.mxu0 %vm1707_vm1, %v14843_v30 }
 0x221   : > { %v15137_v52 = vpop.f32.mrf.mxu1  ;;  %19647 = vst [vmem:[#allocation218_spill] sm:$0xff] %v15139_v38  ;;  %11746 = vmatmul.mubr.msk.bf16.gmra.mxu1 %vm1707_vm1, %v15131_v27  ;;  %3546 = vmatprep.mubr.bf16.mxu0 %v19468_v49  ;;  %v15156_v38 = vld [vmem:[%s14087_s19 + $0x288] sm:$0xff]  }
 0x222   : > { %19646 = vst [vmem:[#allocation217_spill] sm:$0xff] %v15137_v52  ;;  %4356 = vmatprep.mubr.bf16.mxu1 %v19468_v49  ;;  %v15149_v17 = vpop.f32.mrf.mxu0 }
 0x223   : > { %v15147_v41 = vpop.f32.mrf.mxu1  ;;  %19649 = vst [vmem:[#allocation220_spill] sm:$0xff] %v15149_v17 }
 0x224   : > { %19648 = vst [vmem:[#allocation219_spill] sm:$0xff] %v15147_v41  ;;  %v15153_v52 = vpop.f32.mrf.mxu0 }
 0x225   : > { %v15151_v43 = vpop.f32.mrf.mxu1  ;;  %19651 = vst [vmem:[#allocation222_spill] sm:$0xff] %v15153_v52 }
 0x226   : > { %19650 = vst [vmem:[#allocation221_spill] sm:$0xff] %v15151_v43  ;;  %v15160_v30 = vpop.f32.mrf.mxu0 }
 0x227   : > { %v15158_v20 = vpop.f32.mrf.mxu1  ;;  %19653 = vst [vmem:[#allocation224_spill] sm:$0xff] %v15160_v30 }
 0x228   : > { %19652 = vst [vmem:[#allocation223_spill] sm:$0xff] %v15158_v20  ;;  %v15164_v4 = vpop.f32.mrf.mxu0  ;;  %11624 = vmatmul.mubr.msk.bf16.gmra.mxu0 %vm1707_vm1, %v14869_v32 }
 0x229   : > { %v15162_v34 = vpop.f32.mrf.mxu1  ;;  %19655 = vst [vmem:[#allocation226_spill] sm:$0xff] %v15164_v4  ;;  %11747 = vmatmul.mubr.msk.bf16.gmra.mxu1 %vm1707_vm1, %v15156_v38  ;;  %3556 = vmatprep.mubr.bf16.mxu0 %v19468_v49  ;;  %v15181_v4 = vld [vmem:[%s14087_s19 + $0x290] sm:$0xff]  }
 0x22a   : > { %19654 = vst [vmem:[#allocation225_spill] sm:$0xff] %v15162_v34  ;;  %4366 = vmatprep.mubr.bf16.mxu1 %v19468_v49  ;;  %v15174_v41 = vpop.f32.mrf.mxu0 }
 0x22b   : > { %v15172_v43 = vpop.f32.mrf.mxu1  ;;  %19657 = vst [vmem:[#allocation228_spill] sm:$0xff] %v15174_v41 }
 0x22c   : > { %19656 = vst [vmem:[#allocation227_spill] sm:$0xff] %v15172_v43  ;;  %v15178_v34 = vpop.f32.mrf.mxu0 }
 0x22d   : > { %v15176_v20 = vpop.f32.mrf.mxu1  ;;  %19659 = vst [vmem:[#allocation230_spill] sm:$0xff] %v15178_v34 }
 0x22e   : > { %19658 = vst [vmem:[#allocation229_spill] sm:$0xff] %v15176_v20  ;;  %v15185_v32 = vpop.f32.mrf.mxu0 }
 0x22f   : > { %v15183_v30 = vpop.f32.mrf.mxu1  ;;  %19661 = vst [vmem:[#allocation232_spill] sm:$0xff] %v15185_v32 }
 0x230   : > { %19660 = vst [vmem:[#allocation231_spill] sm:$0xff] %v15183_v30  ;;  %v15189_v17 = vpop.f32.mrf.mxu0  ;;  %11625 = vmatmul.mubr.msk.bf16.gmra.mxu0 %vm1707_vm1, %v14872_v37 }
 0x231   : > { %v15187_v52 = vpop.f32.mrf.mxu1  ;;  %19663 = vst [vmem:[#allocation234_spill] sm:$0xff] %v15189_v17  ;;  %11748 = vmatmul.mubr.msk.bf16.gmra.mxu1 %vm1707_vm1, %v15181_v4  ;;  %3566 = vmatprep.mubr.bf16.mxu0 %v19468_v49  ;;  %v15206_v17 = vld [vmem:[%s14087_s19 + $0x298] sm:$0xff]  }
 0x232   : > { %19662 = vst [vmem:[#allocation233_spill] sm:$0xff] %v15187_v52  ;;  %4376 = vmatprep.mubr.bf16.mxu1 %v19468_v49  ;;  %v15199_v43 = vpop.f32.mrf.mxu0  ;;  %19668 = vst [vmem:[#allocation239_spill] sm:$0xff] %v15206_v17 }
 0x233   : > { %v15197_v20 = vpop.f32.mrf.mxu1  ;;  %19665 = vst [vmem:[#allocation236_spill] sm:$0xff] %v15199_v43 }
 0x234   : > { %19664 = vst [vmem:[#allocation235_spill] sm:$0xff] %v15197_v20  ;;  %v15203_v52 = vpop.f32.mrf.mxu0 }
 0x235   : > { %v15201_v30 = vpop.f32.mrf.mxu1  ;;  %19667 = vst [vmem:[#allocation238_spill] sm:$0xff] %v15203_v52 }
 0x236   : > { %19666 = vst [vmem:[#allocation237_spill] sm:$0xff] %v15201_v30  ;;  %v15210_v37 = vpop.f32.mrf.mxu0 }
 0x237   : > { %v15208_v32 = vpop.f32.mrf.mxu1  ;;  %19670 = vst [vmem:[#allocation241_spill] sm:$0xff] %v15210_v37 }
 0x238   : > { %19669 = vst [vmem:[#allocation240_spill] sm:$0xff] %v15208_v32  ;;  %v15214_v41 = vpop.f32.mrf.mxu0  ;;  %11626 = vmatmul.mubr.msk.bf16.gmra.mxu0 %vm1707_vm1, %v14898_v21  ;;  %v15235_v21 = vld [vmem:[%s14087_s19 + $0x2a0] sm:$0xff]  }
 0x239   : > { %v15212_v34 = vpop.f32.mrf.mxu1  ;;  %19672 = vst [vmem:[#allocation243_spill] sm:$0xff] %v15214_v41  ;;  %11749 = vmatmul.mubr.msk.bf16.gmra.mxu1 %vm1707_vm1, %v15206_v17  ;;  %12887 = vmatprep.mubr.msk.bf16.mxu0 %vm1707_vm1, %v14923_v35  ;;  %v2553_v35 = vadd.f32 %v14605_v63, %v14313_v53  ;;  %v2826_v63 = vadd.f32 %v14942_v25, %v14329_v57 }
 0x23a   : > { %19671 = vst [vmem:[#allocation242_spill] sm:$0xff] %v15212_v34  ;;  %4386 = vmatprep.mubr.bf16.mxu1 %v19468_v49  ;;  %v15225_v32 = vpop.f32.mrf.mxu0  ;;  %v13212_v34 = vld [vmem:[%s19320_s1 + $0xd8] ss:$12 sps:$4 sm:$0x3f]   ;;  %v2557_v57 = vadd.f32 %v14620_v58, %v14334_v59  ;;  %v2837_v25 = vadd.f32 %v14946_v33, %v14336_v60  ;;  %v2850_v58 = vadd.f32 %v14957_v24, %v14344_v1 }
 0x23b   : > { %v15223_v30 = vpop.f32.mrf.mxu1  ;;  %19674 = vst [vmem:[#allocation245_spill] sm:$0xff] %v15225_v32  ;;  %v5156_v32 = vsel %vm1780_vm0, %v13212_v34, 0 }
 0x23c   : > { %19673 = vst [vmem:[#allocation244_spill] sm:$0xff] %v15223_v30  ;;  %v15232_v41 = vpop.f32.mrf.mxu0  ;;  %v2834_v30 = vadd.f32 %v14932_v50, %v14315_v54 }
 0x23d   : > { %v15230_v20 = vpop.f32.mrf.mxu1  ;;  %19676 = vst [vmem:[#allocation247_spill] sm:$0xff] %v15232_v41  ;;  %v2555_v41 = vadd.f32 %v14613_v51, %v14327_v56  ;;  %v13213_v51 = vld [vmem:[%s19320_s1 + $0xc0] ss:$12 sps:$4 sm:$0xff]  }
 0x23e   : > { %19675 = vst [vmem:[#allocation246_spill] sm:$0xff] %v15230_v20  ;;  %v15239_v52 = vpop.f32.mrf.mxu0  ;;  %v13215_v20 = vld [vmem:[%s19320_s1 + $0xc4] ss:$12 sps:$4 sm:$0xff]  }
 0x23f   : > { %v15237_v37 = vpop.f32.mrf.mxu1 }
 0x240   : > { %19677 = vst [vmem:[#allocation248_spill] sm:$0xff] %v15237_v37  ;;  %v3338_v43 = vpop.f32.mrf.mxu0  ;;  %12888 = vmatmul.mubr.msk.bf16.vlgmr.msra.gmra.mxu0 %vm1707_vm1, %v14949_v39 }
 0x241   : > { %v12837_v17 = vpop.f32.mrf.mxu1  ;;  %11750 = vmatmul.mubr.msk.bf16.gmra.mxu1 %vm1707_vm1, %v15235_v21  ;;  %v15257_v53 = vadd.f32 %v3338_v43, %v2553_v35  ;;  %12891 = vmatprep.mubr.msk.bf16.mxu0 %vm1707_vm1, %v14974_v48 }
 0x242   : > { %v15259_v54 = vadd.f32 %v12837_v17, %v2834_v30  ;;  %4396 = vmatprep.mubr.bf16.mxu1 %v19468_v49  ;;  %v3340_v56 = vpop.f32.mrf.mxu0  ;;  %5177 = vmatpush1.bf16.msra.mxu0 %v5156_v32  ;;  %v15276_v17 = vld [vmem:[%s14087_s19 + $0x2a8] sm:$0xff]   ;;  %v2559_v30 = vadd.f32 %v14626_v13, %v14338_v61  ;;  %v2829_v32 = vadd.f32 %v14953_v29, %v14340_v62 }
 0x243   : > { %v3611_v50 = vpop.f32.mrf.mxu1  ;;  %v15271_v39 = vadd.f32 %v3340_v56, %v2555_v41  ;;  %5178 = vmatprep.subr.bf16.mxu0 %v13215_v20  ;;  %v2563_v20 = vadd.f32 %v14630_v45, %v14342_v0  ;;  %v2565_v61 = vadd.f32 %v14638_v40, %v14353_v2  ;;  %v2842_v0 = vadd.f32 %v14967_v47, %v14355_v3 }
 0x244   : > { %19678 = vst [vmem:[#allocation249_spill] sm:$0xff] %v15259_v54  ;;  %v15273_v43 = vadd.f32 %v3611_v50, %v2826_v63  ;;  %v3342_v34 = vpop.f32.mrf.mxu0  ;;  %v2567_v40 = vadd.f32 %v14642_v22, %v14358_v5  ;;  %v15318_v50 = vld [vmem:[%s14087_s19 + $0x2b0] sm:$0xff]  }
 0x245   : > { %v12838_v48 = vpop.f32.mrf.mxu1  ;;  %v15282_v35 = vadd.f32 %v3342_v34, %v2557_v57 }
 0x246   : > { %19679 = vst [vmem:[#allocation250_spill] sm:$0xff] %v15273_v43  ;;  %v15284_v59 = vadd.f32 %v12838_v48, %v2837_v25  ;;  %v3344_v60 = vpop.f32.mrf.mxu0  ;;  %5179 = vmatpush1.bf16.msra.mxu0 %v13213_v51  ;;  %v2569_v51 = vadd.f32 %v14648_v46, %v14362_v7  ;;  %v2866_v25 = vadd.f32 %v14982_v36, %v14368_v10 }
 0x247   : > { %v3614_v33 = vpop.f32.mrf.mxu1  ;;  %v15290_v41 = vadd.f32 %v3344_v60, %v2559_v30  ;;  %v2575_v7 = vadd.f32 %v14660_v55, %v14376_v11  ;;  %v2577_v55 = vadd.f32 %v14664_v44, %v14381_v14  ;;  %v19688_v30 = vld [vmem:[#allocation174_spill] sm:$0xff] }
 0x248   : > { %19680 = vst [vmem:[#allocation251_spill] sm:$0xff] %v15284_v59  ;;  %v15292_v63 = vadd.f32 %v3614_v33, %v2829_v32  ;;  %v3348_v62 = vpop.f32.mrf.mxu0  ;;  %12892 = vmatmul.mubr.msk.bf16.gmra.mxu0 %vm1707_vm1, %v14999_v18  ;;  %v2853_v18 = vadd.f32 %v14971_v28, %v14360_v6  ;;  %v2573_v28 = vadd.f32 %v14652_v42, %v14366_v9  ;;  %v15360_v33 = vld [vmem:[%s14087_s19 + $0x2b8] sm:$0xff]  }
 0x249   : > { %v12841_v13 = vpop.f32.mrf.mxu1  ;;  %11751 = vmatmul.mubr.msk.bf16.gmra.mxu1 %vm1707_vm1, %v15276_v17  ;;  %v15302_v1 = vadd.f32 %v3348_v62, %v2563_v20  ;;  %12895 = vmatprep.mubr.msk.bf16.mxu0 %vm1707_vm1, %v15024_v16  ;;  %v2845_v16 = vadd.f32 %v14978_v26, %v14364_v8  ;;  %v2858_v9 = vadd.f32 %v14992_v23, %v14378_v12  ;;  %v19687_v26 = vld [vmem:[#allocation3_spill] sm:$0xff]  ;;  %v19690_v20 = vld [vmem:[#allocation4_spill] sm:$0xff] }
 0x24a   : > { %19681 = vst [vmem:[#allocation252_spill] sm:$0xff] %v15292_v63  ;;  %v15304_v24 = vadd.f32 %v12841_v13, %v2850_v58  ;;  %4406 = vmatprep.mubr.bf16.mxu1 %v19468_v49  ;;  %v3350_v2 = vpop.f32.mrf.mxu0  ;;  %v19691_v58 = vld [vmem:[#allocation90_spill] sm:$0xff]  ;;  %v19693_v62 = vld [vmem:[#allocation176_spill] sm:$0xff] }
 0x24b   : > { %v3627_v45 = vpop.f32.mrf.mxu1  ;;  %v15313_v29 = vadd.f32 %v3350_v2, %v2565_v61  ;;  %v2579_v61 = vadd.f32 %v19691_v58, %v19690_v20  ;;  %v19707_v20 = vld [vmem:[#allocation11_spill] sm:$0xff]  ;;  %v19708_v58 = vld [vmem:[#allocation182_spill] sm:$0xff] }
 0x24c   : > { %19682 = vst [vmem:[#allocation253_spill] sm:$0xff] %v15304_v24  ;;  %v15315_v3 = vadd.f32 %v3627_v45, %v2842_v0  ;;  %v3352_v47 = vpop.f32.mrf.mxu0  ;;  %v19695_v45 = vld [vmem:[#allocation6_spill] sm:$0xff] }
 0x24d   : > { %v12842_v56 = vpop.f32.mrf.mxu1  ;;  %v15324_v57 = vadd.f32 %v3352_v47, %v2567_v40  ;;  %v19696_v40 = vld [vmem:[#allocation92_spill] sm:$0xff]  ;;  %v19697_v47 = vld [vmem:[#allocation7_spill] sm:$0xff] }
 0x24e   : > { %19683 = vst [vmem:[#allocation254_spill] sm:$0xff] %v15315_v3  ;;  %v15326_v5 = vadd.f32 %v12842_v56, %v2853_v18  ;;  %v3354_v22 = vpop.f32.mrf.mxu0  ;;  %v2583_v18 = vadd.f32 %v19696_v40, %v19695_v45  ;;  %v19698_v56 = vld [vmem:[#allocation178_spill] sm:$0xff] }
 0x24f   : > { %v3630_v6 = vpop.f32.mrf.mxu1  ;;  %v15332_v34 = vadd.f32 %v3354_v22, %v2569_v51  ;;  %v2882_v51 = vadd.f32 %v19698_v56, %v19697_v47  ;;  %v19711_v45 = vld [vmem:[#allocation98_spill] sm:$0xff] }
 0x250   : > { %19684 = vst [vmem:[#allocation255_spill] sm:$0xff] %v15326_v5  ;;  %v15334_v48 = vadd.f32 %v3630_v6, %v2845_v16  ;;  %v3358_v8 = vpop.f32.mrf.mxu0  ;;  %12896 = vmatmul.mubr.msk.bf16.gmra.mxu0 %vm1707_vm1, %v15049_v15  ;;  %v2869_v15 = vadd.f32 %v19688_v30, %v19687_v26  ;;  %v19700_v6 = vld [vmem:[#allocation8_spill] sm:$0xff] }
 0x251   : > { %v12845_v46 = vpop.f32.mrf.mxu1  ;;  %11752 = vmatmul.mubr.msk.bf16.gmra.mxu1 %vm1707_vm1, %v15318_v50  ;;  %v15344_v10 = vadd.f32 %v3358_v8, %v2573_v28  ;;  %12899 = vmatprep.mubr.msk.bf16.mxu0 %vm1707_vm1, %v15074_v31  ;;  %v19692_v31 = vld [vmem:[#allocation5_spill] sm:$0xff]  ;;  %v19701_v28 = vld [vmem:[#allocation94_spill] sm:$0xff] }
 0x252   : > { %19685 = vst [vmem:[#allocation256_spill] sm:$0xff] %v15334_v48  ;;  %v15346_v36 = vadd.f32 %v12845_v46, %v2866_v25  ;;  %4416 = vmatprep.mubr.bf16.mxu1 %v19468_v49  ;;  %v3360_v11 = vpop.f32.mrf.mxu0  ;;  %v2861_v13 = vadd.f32 %v19693_v62, %v19692_v31  ;;  %v2585_v25 = vadd.f32 %v19701_v28, %v19700_v6  ;;  %v19702_v46 = vld [vmem:[#allocation9_spill] sm:$0xff] }
 0x253   : > { %v3643_v42 = vpop.f32.mrf.mxu1  ;;  %v15355_v32 = vadd.f32 %v3360_v11, %v2575_v7 }
 0x254   : > { %19686 = vst [vmem:[#allocation257_spill] sm:$0xff] %v15346_v36  ;;  %v15357_v12 = vadd.f32 %v3643_v42, %v2858_v9  ;;  %v3362_v23 = vpop.f32.mrf.mxu0  ;;  %v19703_v9 = vld [vmem:[#allocation180_spill] sm:$0xff] }
 0x255   : > { %v12846_v60 = vpop.f32.mrf.mxu1  ;;  %v15366_v0 = vadd.f32 %v3362_v23, %v2577_v55  ;;  %v2874_v11 = vadd.f32 %v19703_v9, %v19702_v46  ;;  %v19706_v23 = vld [vmem:[#allocation96_spill] sm:$0xff]  ;;  %v19717_v46 = vld [vmem:[#allocation15_spill] sm:$0xff]  ;;  %v19718_v9 = vld [vmem:[#allocation186_spill] sm:$0xff] }
 0x256   : > { %19689 = vst [vmem:[#allocation3_spill] sm:$0xff] %v15357_v12  ;;  %v15368_v14 = vadd.f32 %v12846_v60, %v2869_v15  ;;  %v3364_v44 = vpop.f32.mrf.mxu0  ;;  %v19705_v15 = vld [vmem:[#allocation10_spill] sm:$0xff] }
 0x257   : > { %v3646_v2 = vpop.f32.mrf.mxu1  ;;  %v15374_v16 = vadd.f32 %v3364_v44, %v2579_v61  ;;  %v2587_v60 = vadd.f32 %v19706_v23, %v19705_v15  ;;  %v15402_v44 = vld [vmem:[%s14087_s19 + $0x2c0] sm:$0xff]   ;;  %v19720_v15 = vld [vmem:[#allocation16_spill] sm:$0xff]  ;;  %v19721_v23 = vld [vmem:[#allocation102_spill] sm:$0xff] }
 0x258   : > { %19694 = vst [vmem:[#allocation174_spill] sm:$0xff] %v15368_v14  ;;  %v15376_v22 = vadd.f32 %v3646_v2, %v2861_v13  ;;  %v3368_v7 = vpop.f32.mrf.mxu0  ;;  %12900 = vmatmul.mubr.msk.bf16.gmra.mxu0 %vm1707_vm1, %v15099_v19  ;;  %v2885_v19 = vadd.f32 %v19708_v58, %v19707_v20  ;;  %v19710_v2 = vld [vmem:[#allocation12_spill] sm:$0xff]  ;;  %v2595_v20 = vadd.f32 %v19721_v23, %v19720_v15  ;;  %v19731_v23 = vld [vmem:[#allocation106_spill] sm:$0xff] }
 0x259   : > { %v12849_v8 = vpop.f32.mrf.mxu1  ;;  %11753 = vmatmul.mubr.msk.bf16.gmra.mxu1 %vm1707_vm1, %v15360_v33  ;;  %v15386_v42 = vadd.f32 %v3368_v7, %v2583_v18  ;;  %12903 = vmatprep.mubr.msk.bf16.mxu0 %vm1707_vm1, %v15131_v27  ;;  %v2589_v40 = vadd.f32 %v19711_v45, %v19710_v2  ;;  %v19712_v27 = vld [vmem:[#allocation13_spill] sm:$0xff]  ;;  %v19713_v18 = vld [vmem:[#allocation184_spill] sm:$0xff] }
 0x25a   : > { %19699 = vst [vmem:[#allocation4_spill] sm:$0xff] %v15376_v22  ;;  %v15388_v55 = vadd.f32 %v12849_v8, %v2882_v51  ;;  %4426 = vmatprep.mubr.bf16.mxu1 %v19468_v49  ;;  %v3370_v26 = vpop.f32.mrf.mxu0  ;;  %v2877_v47 = vadd.f32 %v19713_v18, %v19712_v27  ;;  %v19716_v7 = vld [vmem:[#allocation100_spill] sm:$0xff]  ;;  %v19725_v18 = vld [vmem:[#allocation18_spill] sm:$0xff] }
 0x25b   : > { %v3659_v30 = vpop.f32.mrf.mxu1  ;;  %v15397_v61 = vadd.f32 %v3370_v26, %v2585_v25  ;;  %v19715_v25 = vld [vmem:[#allocation14_spill] sm:$0xff]  ;;  %v19730_v15 = vld [vmem:[#allocation20_spill] sm:$0xff] }
 0x25c   : > { %19704 = vst [vmem:[#allocation90_spill] sm:$0xff] %v15388_v55  ;;  %v15399_v31 = vadd.f32 %v3659_v30, %v2874_v11  ;;  %v3372_v62 = vpop.f32.mrf.mxu0  ;;  %v2593_v8 = vadd.f32 %v19716_v7, %v19715_v25  ;;  %v2898_v11 = vadd.f32 %v19718_v9, %v19717_v46  ;;  %v19728_v25 = vld [vmem:[#allocation190_spill] sm:$0xff] }
 0x25d   : > { %v12850_v13 = vpop.f32.mrf.mxu1  ;;  %v15408_v56 = vadd.f32 %v3372_v62, %v2587_v60  ;;  %v19723_v62 = vld [vmem:[#allocation188_spill] sm:$0xff] }
 0x25e   : > { %19709 = vst [vmem:[#allocation5_spill] sm:$0xff] %v15399_v31  ;;  %v15410_v51 = vadd.f32 %v12850_v13, %v2885_v19  ;;  %v3374_v6 = vpop.f32.mrf.mxu0  ;;  %v19722_v19 = vld [vmem:[#allocation17_spill] sm:$0xff] }
 0x25f   : > { %v3662_v28 = vpop.f32.mrf.mxu1  ;;  %v15416_v26 = vadd.f32 %v3374_v6, %v2589_v40  ;;  %v2890_v13 = vadd.f32 %v19723_v62, %v19722_v19 }
 0x260   : > { %19714 = vst [vmem:[#allocation176_spill] sm:$0xff] %v15410_v51  ;;  %v15418_v30 = vadd.f32 %v3662_v28, %v2877_v47  ;;  %v3378_v58 = vpop.f32.mrf.mxu0  ;;  %12904 = vmatmul.mubr.msk.bf16.gmra.mxu0 %vm1707_vm1, %v15156_v38  ;;  %v19726_v47 = vld [vmem:[#allocation104_spill] sm:$0xff]  ;;  %v19727_v28 = vld [vmem:[#allocation19_spill] sm:$0xff] }
 0x261   : > { %v12853_v60 = vpop.f32.mrf.mxu1  ;;  %11754 = vmatmul.mubr.msk.bf16.gmra.mxu1 %vm1707_vm1, %v15402_v44  ;;  %v15428_v2 = vadd.f32 %v3378_v58, %v2593_v8  ;;  %12907 = vmatprep.mubr.msk.bf16.mxu0 %vm1707_vm1, %v15181_v4  ;;  %v2597_v6 = vadd.f32 %v19726_v47, %v19725_v18  ;;  %v2901_v38 = vadd.f32 %v19728_v25, %v19727_v28  ;;  %v19732_v4 = vld [vmem:[#allocation21_spill] sm:$0xff]  ;;  %v19738_v25 = vld [vmem:[#allocation194_spill] sm:$0xff] }
 0x262   : > { %19719 = vst [vmem:[#allocation6_spill] sm:$0xff] %v15418_v30  ;;  %v15430_v45 = vadd.f32 %v12853_v60, %v2898_v11  ;;  %4436 = vmatprep.mubr.bf16.mxu1 %v19468_v49  ;;  %v3380_v40 = vpop.f32.mrf.mxu0  ;;  %v15444_v11 = vld [vmem:[%s14087_s19 + $0x2c8] sm:$0xff]   ;;  %v2599_v58 = vadd.f32 %v19731_v23, %v19730_v15  ;;  %v19741_v23 = vld [vmem:[#allocation110_spill] sm:$0xff] }
 0x263   : > { %v3675_v27 = vpop.f32.mrf.mxu1  ;;  %v15439_v7 = vadd.f32 %v3380_v40, %v2595_v20  ;;  %v19733_v60 = vld [vmem:[#allocation192_spill] sm:$0xff]  ;;  %v19735_v20 = vld [vmem:[#allocation22_spill] sm:$0xff] }
 0x264   : > { %19724 = vst [vmem:[#allocation92_spill] sm:$0xff] %v15430_v45  ;;  %v15441_v46 = vadd.f32 %v3675_v27, %v2890_v13  ;;  %v3382_v8 = vpop.f32.mrf.mxu0  ;;  %v2893_v19 = vadd.f32 %v19733_v60, %v19732_v4  ;;  %v19736_v40 = vld [vmem:[#allocation108_spill] sm:$0xff]  ;;  %v19737_v27 = vld [vmem:[#allocation23_spill] sm:$0xff] }
 0x265   : > { %v12854_v9 = vpop.f32.mrf.mxu1  ;;  %v15450_v62 = vadd.f32 %v3382_v8, %v2597_v6  ;;  %v2603_v13 = vadd.f32 %v19736_v40, %v19735_v20  ;;  %v19740_v15 = vld [vmem:[#allocation24_spill] sm:$0xff]  ;;  %v19743_v8 = vld [vmem:[#allocation25_spill] sm:$0xff] }
 0x266   : > { %19729 = vst [vmem:[#allocation7_spill] sm:$0xff] %v15441_v46  ;;  %v15452_v18 = vadd.f32 %v12854_v9, %v2901_v38  ;;  %v3384_v47 = vpop.f32.mrf.mxu0  ;;  %v2914_v46 = vadd.f32 %v19738_v25, %v19737_v27  ;;  %v2605_v51 = vadd.f32 %v19741_v23, %v19740_v15  ;;  %v19742_v38 = vld [vmem:[#allocation239_spill] sm:$0xff]  ;;  %v19744_v9 = vld [vmem:[#allocation196_spill] sm:$0xff]  ;;  %v19749_v15 = vld [vmem:[#allocation198_spill] sm:$0xff] }
 0x267   : > { %v3678_v28 = vpop.f32.mrf.mxu1  ;;  %v15458_v45 = vadd.f32 %v3384_v47, %v2599_v58  ;;  %v2906_v60 = vadd.f32 %v19744_v9, %v19743_v8  ;;  %v19747_v40 = vld [vmem:[#allocation112_spill] sm:$0xff]  ;;  %v19748_v25 = vld [vmem:[#allocation27_spill] sm:$0xff]  ;;  %v19752_v9 = vld [vmem:[#allocation114_spill] sm:$0xff] }
 0x268   : > { %19734 = vst [vmem:[#allocation178_spill] sm:$0xff] %v15452_v18  ;;  %v15460_v30 = vadd.f32 %v3678_v28, %v2893_v19  ;;  %v3388_v4 = vpop.f32.mrf.mxu0  ;;  %12908 = vmatmul.mubr.msk.bf16.gmra.mxu0 %vm1707_vm1, %v19742_v38  ;;  %v19746_v28 = vld [vmem:[#allocation26_spill] sm:$0xff]  ;;  %v2917_v23 = vadd.f32 %v19749_v15, %v19748_v25 }
 0x269   : > { %v12857_v6 = vpop.f32.mrf.mxu1  ;;  %11755 = vmatmul.mubr.msk.bf16.gmra.mxu1 %vm1707_vm1, %v15444_v11  ;;  %v15470_v20 = vadd.f32 %v3388_v4, %v2603_v13  ;;  %12911 = vmatprep.mubr.msk.bf16.mxu0 %vm1707_vm1, %v15235_v21  ;;  %v2607_v27 = vadd.f32 %v19747_v40, %v19746_v28  ;;  %v15486_v4 = vld [vmem:[%s14087_s19 + $0x2d0] sm:$0xff]   ;;  %v19759_v15 = vld [vmem:[#allocation202_spill] sm:$0xff] }
 0x26a   : > { %19739 = vst [vmem:[#allocation8_spill] sm:$0xff] %v15460_v30  ;;  %v15472_v58 = vadd.f32 %v12857_v6, %v2914_v46  ;;  %4446 = vmatprep.mubr.bf16.mxu1 %v19468_v49  ;;  %v3390_v19 = vpop.f32.mrf.mxu0  ;;  %v19751_v6 = vld [vmem:[#allocation28_spill] sm:$0xff]  ;;  %v19753_v21 = vld [vmem:[#allocation29_spill] sm:$0xff] }
 0x26b   : > { %v3691_v47 = vpop.f32.mrf.mxu1  ;;  %v15481_v38 = vadd.f32 %v3390_v19, %v2605_v51  ;;  %v19754_v30 = vld [vmem:[#allocation200_spill] sm:$0xff]  ;;  %v19756_v51 = vld [vmem:[#allocation30_spill] sm:$0xff] }
 0x26c   : > { %19745 = vst [vmem:[#allocation94_spill] sm:$0xff] %v15472_v58  ;;  %v15483_v8 = vadd.f32 %v3691_v47, %v2906_v60  ;;  %v3392_v13 = vpop.f32.mrf.mxu0  ;;  %v2609_v58 = vadd.f32 %v19752_v9, %v19751_v6  ;;  %v2909_v18 = vadd.f32 %v19754_v30, %v19753_v21  ;;  %v19757_v19 = vld [vmem:[#allocation116_spill] sm:$0xff]  ;;  %v19758_v47 = vld [vmem:[#allocation31_spill] sm:$0xff]  ;;  %v19762_v9 = vld [vmem:[#allocation118_spill] sm:$0xff] }
 0x26d   : > { %v12858_v46 = vpop.f32.mrf.mxu1  ;;  %v15492_v31 = vadd.f32 %v3392_v13, %v2607_v27  ;;  %v2613_v60 = vadd.f32 %v19757_v19, %v19756_v51  ;;  %v19761_v6 = vld [vmem:[#allocation32_spill] sm:$0xff] }
 0x26e   : > { %19750 = vst [vmem:[#allocation9_spill] sm:$0xff] %v15483_v8  ;;  %v15494_v28 = vadd.f32 %v12858_v46, %v2917_v23  ;;  %v3394_v40 = vpop.f32.mrf.mxu0  ;;  %v2930_v8 = vadd.f32 %v19759_v15, %v19758_v47  ;;  %v2615_v14 = vadd.f32 %v19762_v9, %v19761_v6  ;;  %v19763_v23 = vld [vmem:[#allocation33_spill] sm:$0xff]  ;;  %v19764_v13 = vld [vmem:[#allocation204_spill] sm:$0xff]  ;;  %v19768_v47 = vld [vmem:[#allocation35_spill] sm:$0xff] }
 0x26f   : > { %v3694_v25 = vpop.f32.mrf.mxu1  ;;  %v15500_v55 = vadd.f32 %v3394_v40, %v2609_v58  ;;  %v2922_v46 = vadd.f32 %v19764_v13, %v19763_v23  ;;  %v19767_v51 = vld [vmem:[#allocation120_spill] sm:$0xff]  ;;  %v19769_v15 = vld [vmem:[#allocation206_spill] sm:$0xff] }
 0x270   : > { %19755 = vst [vmem:[#allocation180_spill] sm:$0xff] %v15494_v28  ;;  %v15502_v22 = vadd.f32 %v3694_v25, %v2909_v18  ;;  %v3398_v30 = vpop.f32.mrf.mxu0  ;;  %12912 = vmatmul.mubr.msk.bf16.gmra.mxu0 %vm1707_vm1, %v15276_v17  ;;  %v19766_v25 = vld [vmem:[#allocation34_spill] sm:$0xff]  ;;  %v2933_v17 = vadd.f32 %v19769_v15, %v19768_v47 }
 0x271   : > { %v12861_v27 = vpop.f32.mrf.mxu1  ;;  %11756 = vmatmul.mubr.msk.bf16.gmra.mxu1 %vm1707_vm1, %v15486_v4  ;;  %v15512_v21 = vadd.f32 %v3398_v30, %v2613_v60  ;;  %12915 = vmatprep.mubr.msk.bf16.mxu0 %vm1707_vm1, %v15318_v50  ;;  %v2617_v19 = vadd.f32 %v19767_v51, %v19766_v25  ;;  %v15528_v30 = vld [vmem:[%s14087_s19 + $0x2d8] sm:$0xff]   ;;  %v19773_v50 = vld [vmem:[#allocation37_spill] sm:$0xff] }
 0x272   : > { %19760 = vst [vmem:[#allocation10_spill] sm:$0xff] %v15502_v22  ;;  %v15514_v58 = vadd.f32 %v12861_v27, %v2930_v8  ;;  %4456 = vmatprep.mubr.bf16.mxu1 %v19468_v49  ;;  %v3400_v18 = vpop.f32.mrf.mxu0  ;;  %v19771_v27 = vld [vmem:[#allocation36_spill] sm:$0xff]  ;;  %v19772_v23 = vld [vmem:[#allocation122_spill] sm:$0xff] }
 0x273   : > { %v3707_v40 = vpop.f32.mrf.mxu1  ;;  %v15523_v6 = vadd.f32 %v3400_v18, %v2615_v14  ;;  %v2619_v13 = vadd.f32 %v19772_v23, %v19771_v27  ;;  %v19776_v14 = vld [vmem:[#allocation38_spill] sm:$0xff]  ;;  %v19777_v18 = vld [vmem:[#allocation124_spill] sm:$0xff] }
 0x274   : > { %19765 = vst [vmem:[#allocation96_spill] sm:$0xff] %v15514_v58  ;;  %v15525_v9 = vadd.f32 %v3707_v40, %v2922_v46  ;;  %v3402_v60 = vpop.f32.mrf.mxu0  ;;  %v19774_v58 = vld [vmem:[#allocation208_spill] sm:$0xff]  ;;  %v2623_v46 = vadd.f32 %v19777_v18, %v19776_v14  ;;  %v19778_v40 = vld [vmem:[#allocation39_spill] sm:$0xff]  ;;  %v19779_v15 = vld [vmem:[#allocation210_spill] sm:$0xff] }
 0x275   : > { %v12862_v8 = vpop.f32.mrf.mxu1  ;;  %v2925_v22 = vadd.f32 %v19774_v58, %v19773_v50  ;;  %v15534_v28 = vadd.f32 %v3402_v60, %v2617_v19  ;;  %v19781_v27 = vld [vmem:[#allocation40_spill] sm:$0xff]  ;;  %v19782_v23 = vld [vmem:[#allocation126_spill] sm:$0xff] }
 0x276   : > { %19770 = vst [vmem:[#allocation11_spill] sm:$0xff] %v15525_v9  ;;  %v15536_v25 = vadd.f32 %v12862_v8, %v2933_v17  ;;  %v3404_v51 = vpop.f32.mrf.mxu0  ;;  %v2946_v9 = vadd.f32 %v19779_v15, %v19778_v40  ;;  %v2625_v48 = vadd.f32 %v19782_v23, %v19781_v27  ;;  %v19783_v17 = vld [vmem:[#allocation41_spill] sm:$0xff]  ;;  %v19784_v60 = vld [vmem:[#allocation212_spill] sm:$0xff]  ;;  %v19788_v40 = vld [vmem:[#allocation43_spill] sm:$0xff] }
 0x277   : > { %v3710_v47 = vpop.f32.mrf.mxu1  ;;  %v15542_v12 = vadd.f32 %v3404_v51, %v2619_v13  ;;  %v2938_v8 = vadd.f32 %v19784_v60, %v19783_v17  ;;  %v19787_v14 = vld [vmem:[#allocation128_spill] sm:$0xff]  ;;  %v19789_v15 = vld [vmem:[#allocation214_spill] sm:$0xff] }
 0x278   : > { %19775 = vst [vmem:[#allocation182_spill] sm:$0xff] %v15536_v25  ;;  %v15544_v36 = vadd.f32 %v3710_v47, %v2925_v22  ;;  %v3408_v58 = vpop.f32.mrf.mxu0  ;;  %12916 = vmatmul.mubr.msk.bf16.gmra.mxu0 %vm1707_vm1, %v15360_v33  ;;  %v19786_v47 = vld [vmem:[#allocation42_spill] sm:$0xff]  ;;  %v2949_v33 = vadd.f32 %v19789_v15, %v19788_v40 }
 0x279   : > { %v12865_v19 = vpop.f32.mrf.mxu1  ;;  %11757 = vmatmul.mubr.msk.bf16.gmra.mxu1 %vm1707_vm1, %v15528_v30  ;;  %v15554_v50 = vadd.f32 %v3408_v58, %v2623_v46  ;;  %12919 = vmatprep.mubr.msk.bf16.mxu0 %vm1707_vm1, %v15402_v44  ;;  %v2627_v18 = vadd.f32 %v19787_v14, %v19786_v47  ;;  %v13206_v58 = vld [vmem:[%s14087_s19 + $0x2e0] sm:$0xff]   ;;  %v19792_v17 = vld [vmem:[#allocation130_spill] sm:$0xff]  ;;  %v19794_v44 = vld [vmem:[#allocation216_spill] sm:$0xff] }
 0x27a   : > { %19780 = vst [vmem:[#allocation12_spill] sm:$0xff] %v15544_v36  ;;  %v15556_v13 = vadd.f32 %v12865_v19, %v2946_v9  ;;  %4466 = vmatprep.mubr.bf16.mxu1 %v19468_v49  ;;  %v3410_v22 = vpop.f32.mrf.mxu0  ;;  %v19791_v19 = vld [vmem:[#allocation44_spill] sm:$0xff]  ;;  %v19796_v40 = vld [vmem:[#allocation46_spill] sm:$0xff] }
 0x27b   : > { %v3723_v51 = vpop.f32.mrf.mxu1  ;;  %v15565_v27 = vadd.f32 %v3410_v22, %v2625_v48  ;;  %v2629_v60 = vadd.f32 %v19792_v17, %v19791_v19  ;;  %v19797_v48 = vld [vmem:[#allocation132_spill] sm:$0xff]  ;;  %v19802_v17 = vld [vmem:[#allocation134_spill] sm:$0xff] }
 0x27c   : > { %19785 = vst [vmem:[#allocation98_spill] sm:$0xff] %v15556_v13  ;;  %v15567_v23 = vadd.f32 %v3723_v51, %v2938_v8  ;;  %v3412_v46 = vpop.f32.mrf.mxu0  ;;  %v19793_v13 = vld [vmem:[#allocation45_spill] sm:$0xff]  ;;  %v2633_v22 = vadd.f32 %v19797_v48, %v19796_v40  ;;  %v19798_v8 = vld [vmem:[#allocation47_spill] sm:$0xff]  ;;  %v19799_v51 = vld [vmem:[#allocation218_spill] sm:$0xff] }
 0x27d   : > { %v12866_v9 = vpop.f32.mrf.mxu1  ;;  %v2941_v36 = vadd.f32 %v19794_v44, %v19793_v13  ;;  %v15574_v25 = vadd.f32 %v3412_v46, %v2627_v18  ;;  %v2962_v15 = vadd.f32 %v19799_v51, %v19798_v8  ;;  %v19801_v19 = vld [vmem:[#allocation48_spill] sm:$0xff]  ;;  %v19808_v8 = vld [vmem:[#allocation51_spill] sm:$0xff]  ;;  %v19809_v51 = vld [vmem:[#allocation222_spill] sm:$0xff] }
 0x27e   : > { %19790 = vst [vmem:[#allocation13_spill] sm:$0xff] %v15567_v23  ;;  %v15576_v5 = vadd.f32 %v12866_v9, %v2949_v33  ;;  %v3414_v47 = vpop.f32.mrf.mxu0  ;;  %v2635_v24 = vadd.f32 %v19802_v17, %v19801_v19  ;;  %v19803_v33 = vld [vmem:[#allocation49_spill] sm:$0xff]  ;;  %v19804_v46 = vld [vmem:[#allocation220_spill] sm:$0xff] }
 0x27f   : > { %v3726_v14 = vpop.f32.mrf.mxu1  ;;  %v15582_v23 = vadd.f32 %v3414_v47, %v2629_v60  ;;  %v2954_v9 = vadd.f32 %v19804_v46, %v19803_v33  ;;  %v19807_v40 = vld [vmem:[#allocation136_spill] sm:$0xff]  ;;  %v19812_v33 = vld [vmem:[#allocation138_spill] sm:$0xff] }
 0x280   : > { %19795 = vst [vmem:[#allocation184_spill] sm:$0xff] %v15576_v5  ;;  %v15584_v3 = vadd.f32 %v3726_v14, %v2941_v36  ;;  %v3418_v13 = vpop.f32.mrf.mxu0  ;;  %12920 = vmatmul.mubr.msk.bf16.gmra.mxu0 %vm1707_vm1, %v15444_v11  ;;  %v19806_v14 = vld [vmem:[#allocation50_spill] sm:$0xff]  ;;  %v2965_v11 = vadd.f32 %v19809_v51, %v19808_v8 }
 0x281   : > { %v12869_v18 = vpop.f32.mrf.mxu1  ;;  %11758 = vmatmul.mubr.msk.bf16.gmra.mxu1 %vm1707_vm1, %v13206_v58  ;;  %v15593_v44 = vadd.f32 %v3418_v13, %v2633_v22  ;;  %12923 = vmatprep.mubr.msk.bf16.mxu0 %vm1707_vm1, %v15486_v4  ;;  %v2637_v48 = vadd.f32 %v19807_v40, %v19806_v14  ;;  %v13207_v13 = vld [vmem:[%s14087_s19 + $0x2e8] sm:$0xff]   ;;  %v19816_v8 = vld [vmem:[#allocation54_spill] sm:$0xff] }
 0x282   : > { %19800 = vst [vmem:[#allocation14_spill] sm:$0xff] %v15584_v3  ;;  %v15595_v60 = vadd.f32 %v12869_v18, %v2962_v15  ;;  %4476 = vmatprep.mubr.bf16.mxu1 %v19468_v49  ;;  %v3420_v36 = vpop.f32.mrf.mxu0  ;;  %v19811_v18 = vld [vmem:[#allocation52_spill] sm:$0xff] }
 0x283   : > { %v3739_v47 = vpop.f32.mrf.mxu1  ;;  %v15604_v19 = vadd.f32 %v3420_v36, %v2635_v24  ;;  %v2639_v46 = vadd.f32 %v19812_v33, %v19811_v18  ;;  %v19814_v4 = vld [vmem:[#allocation224_spill] sm:$0xff]  ;;  %v19823_v33 = vld [vmem:[#allocation142_spill] sm:$0xff] }
 0x284   : > { %19805 = vst [vmem:[#allocation100_spill] sm:$0xff] %v15595_v60  ;;  %v15606_v17 = vadd.f32 %v3739_v47, %v2954_v9  ;;  %v3422_v22 = vpop.f32.mrf.mxu0  ;;  %v19813_v60 = vld [vmem:[#allocation53_spill] sm:$0xff]  ;;  %v19817_v24 = vld [vmem:[#allocation140_spill] sm:$0xff]  ;;  %v19818_v9 = vld [vmem:[#allocation55_spill] sm:$0xff] }
 0x285   : > { %v12870_v15 = vpop.f32.mrf.mxu1  ;;  %v2957_v3 = vadd.f32 %v19814_v4, %v19813_v60  ;;  %v15613_v5 = vadd.f32 %v3422_v22, %v2637_v48  ;;  %v2643_v36 = vadd.f32 %v19817_v24, %v19816_v8  ;;  %v19819_v47 = vld [vmem:[#allocation226_spill] sm:$0xff]  ;;  %v19822_v18 = vld [vmem:[#allocation56_spill] sm:$0xff] }
 0x286   : > { %19810 = vst [vmem:[#allocation15_spill] sm:$0xff] %v15606_v17  ;;  %v15615_v63 = vadd.f32 %v12870_v15, %v2965_v11  ;;  %v3424_v14 = vpop.f32.mrf.mxu0  ;;  %v2978_v51 = vadd.f32 %v19819_v47, %v19818_v9  ;;  %v2645_v43 = vadd.f32 %v19823_v33, %v19822_v18  ;;  %v19824_v11 = vld [vmem:[#allocation57_spill] sm:$0xff]  ;;  %v19825_v22 = vld [vmem:[#allocation228_spill] sm:$0xff]  ;;  %v19829_v9 = vld [vmem:[#allocation59_spill] sm:$0xff] }
 0x287   : > { %v3742_v40 = vpop.f32.mrf.mxu1  ;;  %v15621_v17 = vadd.f32 %v3424_v14, %v2639_v46  ;;  %v2970_v15 = vadd.f32 %v19825_v22, %v19824_v11  ;;  %v19828_v8 = vld [vmem:[#allocation144_spill] sm:$0xff]  ;;  %v19830_v47 = vld [vmem:[#allocation230_spill] sm:$0xff] }
 0x288   : > { %19815 = vst [vmem:[#allocation186_spill] sm:$0xff] %v15615_v63  ;;  %v15623_v59 = vadd.f32 %v3742_v40, %v2957_v3  ;;  %v3428_v60 = vpop.f32.mrf.mxu0  ;;  %12924 = vmatmul.mubr.msk.bf16.gmra.mxu0 %vm1707_vm1, %v15528_v30  ;;  %v19827_v40 = vld [vmem:[#allocation58_spill] sm:$0xff]  ;;  %v2981_v18 = vadd.f32 %v19830_v47, %v19829_v9 }
 0x289   : > { %19820 = vst [vmem:[#allocation16_spill] sm:$0xff] %v15621_v17  ;;  %v12873_v48 = vpop.f32.mrf.mxu1  ;;  %11759 = vmatmul.mubr.msk.bf16.gmra.mxu1 %vm1707_vm1, %v13207_v13  ;;  %v15632_v4 = vadd.f32 %v3428_v60, %v2643_v36  ;;  %12927 = vmatprep.mubr.msk.bf16.mxu0 %vm1707_vm1, %v13206_v58  ;;  %v2647_v24 = vadd.f32 %v19828_v8, %v19827_v40  ;;  %v19833_v11 = vld [vmem:[#allocation146_spill] sm:$0xff]  ;;  %v19834_v17 = vld [vmem:[#allocation61_spill] sm:$0xff]  ;;  %v19835_v58 = vld [vmem:[#allocation232_spill] sm:$0xff] }
 0x28a   : > { %19821 = vst [vmem:[#allocation102_spill] sm:$0xff] %v15623_v59  ;;  %v15634_v46 = vadd.f32 %v12873_v48, %v2978_v51  ;;  %4486 = vmatprep.mubr.bf16.mxu1 %v19468_v49  ;;  %v3430_v3 = vpop.f32.mrf.mxu0  ;;  %v13208_v51 = vld [vmem:[%s14087_s19 + $0x2f0] sm:$0xff]   ;;  %v19832_v48 = vld [vmem:[#allocation60_spill] sm:$0xff]  ;;  %v19837_v9 = vld [vmem:[#allocation62_spill] sm:$0xff] }
 0x28b   : > { %v3755_v14 = vpop.f32.mrf.mxu1  ;;  %v15642_v30 = vadd.f32 %v3430_v3, %v2645_v43  ;;  %v2649_v22 = vadd.f32 %v19833_v11, %v19832_v48  ;;  %v19838_v43 = vld [vmem:[#allocation148_spill] sm:$0xff]  ;;  %v19844_v11 = vld [vmem:[#allocation150_spill] sm:$0xff] }
 0x28c   : > { %19826 = vst [vmem:[#allocation17_spill] sm:$0xff] %v15634_v46  ;;  %v15644_v33 = vadd.f32 %v3755_v14, %v2970_v15  ;;  %v3432_v36 = vpop.f32.mrf.mxu0  ;;  %v2973_v46 = vadd.f32 %v19835_v58, %v19834_v17  ;;  %v2653_v3 = vadd.f32 %v19838_v43, %v19837_v9  ;;  %v19839_v15 = vld [vmem:[#allocation63_spill] sm:$0xff]  ;;  %v19840_v14 = vld [vmem:[#allocation234_spill] sm:$0xff]  ;;  %v19843_v48 = vld [vmem:[#allocation64_spill] sm:$0xff] }
 0x28d   : > { %v12874_v60 = vpop.f32.mrf.mxu1  ;;  %v15651_v59 = vadd.f32 %v3432_v36, %v2647_v24  ;;  %v2994_v47 = vadd.f32 %v19840_v14, %v19839_v15  ;;  %v2655_v37 = vadd.f32 %v19844_v11, %v19843_v48  ;;  %v19846_v36 = vld [vmem:[#allocation236_spill] sm:$0xff]  ;;  %v19851_v15 = vld [vmem:[#allocation67_spill] sm:$0xff]  ;;  %v19852_v14 = vld [vmem:[#allocation238_spill] sm:$0xff] }
 0x28e   : > { %19831 = vst [vmem:[#allocation188_spill] sm:$0xff] %v15644_v33  ;;  %v15653_v63 = vadd.f32 %v12874_v60, %v2981_v18  ;;  %v3434_v40 = vpop.f32.mrf.mxu0  ;;  %v19845_v18 = vld [vmem:[#allocation65_spill] sm:$0xff] }
 0x28f   : > { %v3758_v8 = vpop.f32.mrf.mxu1  ;;  %v15659_v33 = vadd.f32 %v3434_v40, %v2649_v22  ;;  %v2986_v60 = vadd.f32 %v19846_v36, %v19845_v18  ;;  %v19856_v18 = vld [vmem:[#allocation154_spill] sm:$0xff] }
 0x290   : > { %19836 = vst [vmem:[#allocation18_spill] sm:$0xff] %v15653_v63  ;;  %v15661_v54 = vadd.f32 %v3758_v8, %v2973_v46  ;;  %v3438_v17 = vpop.f32.mrf.mxu0  ;;  %12928 = vmatmul.mubr.msk.bf16.gmra.mxu0 %vm1707_vm1, %v13207_v13  ;;  %v13243_v46 = vld [vmem:[%s19322_s3 + $0x174] ss:$8 sps:$4 sm:$0xff]   ;;  %v19850_v8 = vld [vmem:[#allocation152_spill] sm:$0xff] }
 0x291   : > { %19841 = vst [vmem:[#allocation104_spill] sm:$0xff] %v15659_v33  ;;  %v12877_v24 = vpop.f32.mrf.mxu1  ;;  %11760 = vmatmul.mubr.msk.bf16.gmra.mxu1 %vm1707_vm1, %v13208_v51  ;;  %v15669_v58 = vadd.f32 %v3438_v17, %v2653_v3  ;;  %12931 = vmatprep.mubr.msk.bf16.mxu0 %vm1707_vm1, %v13208_v51  ;;  %v19849_v13 = vld [vmem:[#allocation66_spill] sm:$0xff]  ;;  %v2997_v3 = vadd.f32 %v19852_v14, %v19851_v15  ;;  %v19857_v33 = vld [vmem:[#allocation69_spill] sm:$0xff]  ;;  %v19863_v14 = vld [vmem:[#allocation243_spill] sm:$0xff] }
 0x292   : > { %19842 = vst [vmem:[#allocation19_spill] sm:$0xff] %v15661_v54  ;;  %v15671_v9 = vadd.f32 %v12877_v24, %v2994_v47  ;;  %4496 = vmatprep.mubr.bf16.mxu1 %v19468_v49  ;;  %v3440_v22 = vpop.f32.mrf.mxu0  ;;  %v2657_v43 = vadd.f32 %v19850_v8, %v19849_v13  ;;  %6744 = vmatprep.subr.bf16.mxu0 %v13243_v46  ;;  %v13209_v17 = vld [vmem:[%s14087_s19 + $0x2f8] sm:$0xff]   ;;  %v19855_v24 = vld [vmem:[#allocation68_spill] sm:$0xff]  ;;  %v13217_v8 = vld [vmem:[%s14087_s19 + $0x300] sm:$0xff]  }
 0x293   : > { %19847 = vst [vmem:[#allocation190_spill] sm:$0xff] %v15669_v58  ;;  %v3771_v40 = vpop.f32.mrf.mxu1  ;;  %v15682_v48 = vadd.f32 %v3440_v22, %v2655_v37  ;;  %v2659_v36 = vadd.f32 %v19856_v18, %v19855_v24  ;;  %v19860_v22 = vld [vmem:[#allocation70_spill] sm:$0xff]  ;;  %v19862_v46 = vld [vmem:[#allocation71_spill] sm:$0xff]  ;;  %v19866_v24 = vld [vmem:[#allocation72_spill] sm:$0xff] }
 0x294   : > { %19848 = vst [vmem:[#allocation20_spill] sm:$0xff] %v15671_v9  ;;  %v15684_v47 = vadd.f32 %v3771_v40, %v2986_v60  ;;  %v3442_v11 = vpop.f32.mrf.mxu0  ;;  %v19858_v9 = vld [vmem:[#allocation241_spill] sm:$0xff]  ;;  %v19861_v60 = vld [vmem:[#allocation156_spill] sm:$0xff]  ;;  %v19867_v18 = vld [vmem:[#allocation158_spill] sm:$0xff] }
 0x295   : > { %19853 = vst [vmem:[#allocation106_spill] sm:$0xff] %v15682_v48  ;;  %v12878_v51 = vpop.f32.mrf.mxu1  ;;  %v2989_v54 = vadd.f32 %v19858_v9, %v19857_v33  ;;  %v15691_v63 = vadd.f32 %v3442_v11, %v2657_v43  ;;  %v2663_v40 = vadd.f32 %v19861_v60, %v19860_v22  ;;  %v2665_v33 = vadd.f32 %v19867_v18, %v19866_v24  ;;  %v19869_v11 = vld [vmem:[#allocation245_spill] sm:$0xff]  ;;  %v19875_v24 = vld [vmem:[#allocation247_spill] sm:$0xff] }
 0x296   : > { %19854 = vst [vmem:[#allocation21_spill] sm:$0xff] %v15684_v47  ;;  %v15693_v13 = vadd.f32 %v12878_v51, %v2997_v3  ;;  %v3444_v15 = vpop.f32.mrf.mxu0  ;;  %v3010_v47 = vadd.f32 %v19863_v14, %v19862_v46  ;;  %v19868_v3 = vld [vmem:[#allocation73_spill] sm:$0xff]  ;;  %v19874_v14 = vld [vmem:[#allocation75_spill] sm:$0xff] }
 0x297   : > { %v3774_v37 = vpop.f32.mrf.mxu1  ;;  %v15700_v48 = vadd.f32 %v3444_v15, %v2659_v36  ;;  %v3002_v51 = vadd.f32 %v19869_v11, %v19868_v3  ;;  %v19872_v15 = vld [vmem:[#allocation74_spill] sm:$0xff] }
 0x298   : > { %19859 = vst [vmem:[#allocation192_spill] sm:$0xff] %v15693_v13  ;;  %v15702_v58 = vadd.f32 %v3774_v37, %v2989_v54  ;;  %v3448_v9 = vpop.f32.mrf.mxu0  ;;  %12932 = vmatmul.mubr.msk.bf16.gmra.mxu0 %vm1707_vm1, %v13209_v17  ;;  %v19873_v37 = vld [vmem:[#allocation160_spill] sm:$0xff]  ;;  %v19878_v11 = vld [vmem:[#allocation162_spill] sm:$0xff] }
 0x299   : > { %19864 = vst [vmem:[#allocation22_spill] sm:$0xff] %v15700_v48  ;;  %v12881_v43 = vpop.f32.mrf.mxu1  ;;  %11761 = vmatmul.mubr.msk.bf16.gmra.mxu1 %vm1707_vm1, %v13209_v17  ;;  %v15710_v22 = vadd.f32 %v3448_v9, %v2663_v40  ;;  %5196 = vmatprep.mubr.bf16.mxu0 %v19468_v49  ;;  %v2667_v46 = vadd.f32 %v19873_v37, %v19872_v15  ;;  %v13218_v9 = vld [vmem:[%s14087_s19 + $0x308] sm:$0xff]   ;;  %v15734_v15 = vld [vmem:[%s14087_s19 + $0x310] sm:$0xff]  }
 0x29a   : > { %19865 = vst [vmem:[#allocation108_spill] sm:$0xff] %v15702_v58  ;;  %v15712_v60 = vadd.f32 %v12881_v43, %v3010_v47  ;;  %12939 = vmatprep.mubr.msk.bf16.mxu1 %vm1707_vm1, %v13217_v8  ;;  %v3450_v54 = vpop.f32.mrf.mxu0  ;;  %v3013_v17 = vadd.f32 %v19875_v24, %v19874_v14  ;;  %v19877_v43 = vld [vmem:[#allocation76_spill] sm:$0xff] }
 0x29b   : > { %19870 = vst [vmem:[#allocation23_spill] sm:$0xff] %v15710_v22  ;;  %v3787_v36 = vpop.f32.mrf.mxu1  ;;  %v15720_v18 = vadd.f32 %v3450_v54, %v2665_v33  ;;  %v2669_v48 = vadd.f32 %v19878_v11, %v19877_v43  ;;  %v19881_v54 = vld [vmem:[#allocation78_spill] sm:$0xff] }
 0x29c   : > { %19871 = vst [vmem:[#allocation194_spill] sm:$0xff] %v15712_v60  ;;  %v15722_v3 = vadd.f32 %v3787_v36, %v3002_v51  ;;  %v3452_v40 = vpop.f32.mrf.mxu0  ;;  %v19879_v60 = vld [vmem:[#allocation77_spill] sm:$0xff]  ;;  %v19882_v36 = vld [vmem:[#allocation163_spill] sm:$0xff] }
 0x29d   : > { %v12882_v47 = vpop.f32.mrf.mxu1  ;;  %v3005_v58 = vadd.f32 %v15239_v52, %v19879_v60  ;;  %v15729_v13 = vadd.f32 %v3452_v40, %v2667_v46  ;;  %v13241_v51 = vld [vmem:[%s19322_s3 + $0x170] ss:$8 sps:$4 sm:$0xff]   ;;  %v2673_v14 = vadd.f32 %v19882_v36, %v19881_v54  ;;  %v19885_v46 = vld [vmem:[#allocation79_spill] sm:$0xff] }
 0x29e   : > { %19876 = vst [vmem:[#allocation24_spill] sm:$0xff] %v15722_v3  ;;  %v15731_v22 = vadd.f32 %v12882_v47, %v3013_v17  ;;  %v3454_v37 = vpop.f32.mrf.mxu0  ;;  %v19886_v17 = vld [vmem:[#allocation164_spill] sm:$0xff] }
 0x29f   : > { %v3790_v33 = vpop.f32.mrf.mxu1  ;;  %v15741_v24 = vadd.f32 %v3454_v37, %v2669_v48  ;;  %v2675_v40 = vadd.f32 %v19886_v17, %v19885_v46  ;;  %v19889_v37 = vld [vmem:[#allocation165_spill] sm:$0xff]  ;;  %v19892_v46 = vld [vmem:[#allocation166_spill] sm:$0xff] }
 0x2a0   : > { %19880 = vst [vmem:[#allocation110_spill] sm:$0xff] %v15731_v22  ;;  %v15743_v43 = vadd.f32 %v3790_v33, %v3005_v58  ;;  %v3458_v52 = vpop.f32.mrf.mxu0  ;;  %11873 = vmatmul.mubr.msk.bf16.vlgmr.msra.gmra.mxu0 %vm1707_vm1, %v13217_v8  ;;  %v19888_v8 = vld [vmem:[#allocation80_spill] sm:$0xff] }
 0x2a1   : > { %19883 = vst [vmem:[#allocation239_spill] sm:$0xff] %v15741_v24  ;;  %v4268_v60 = vpop.f32.mrf.mxu1  ;;  %12940 = vmatmul.mubr.msk.bf16.vlgmr.msra.gmra.mxu1 %vm1707_vm1, %v13218_v9  ;;  %v15749_v47 = vadd.f32 %v3458_v52, %v2673_v14  ;;  %5206 = vmatprep.mubr.bf16.mxu0 %v19468_v49  ;;  %v2677_v33 = vadd.f32 %v19889_v37, %v19888_v8  ;;  %v19895_v37 = vld [vmem:[#allocation167_spill] sm:$0xff] }
 0x2a2   : > { %19884 = vst [vmem:[#allocation25_spill] sm:$0xff] %v15743_v43  ;;  %v15752_v11 = vadd.f32 %v4268_v60, %v15257_v53  ;;  %12943 = vmatprep.mubr.msk.bf16.mxu1 %vm1707_vm1, %v15734_v15  ;;  %v3460_v58 = vpop.f32.mrf.mxu0  ;;  %6745 = vmatpush1.bf16.msra.mxu0 %v13241_v51  ;;  %v15765_v53 = vld [vmem:[%s14087_s19 + $0x318] sm:$0xff]   ;;  %v19891_v60 = vld [vmem:[#allocation81_spill] sm:$0xff]  ;;  %v15775_v51 = vld [vmem:[%s14087_s19 + $0x320] sm:$0xff]  }
 0x2a3   : > { %v4270_v48 = vpop.f32.mrf.mxu1  ;;  %v15759_v54 = vadd.f32 %v3460_v58, %v2675_v40  ;;  %v2679_v17 = vadd.f32 %v19892_v46, %v19891_v60  ;;  %v19894_v58 = vld [vmem:[#allocation82_spill] sm:$0xff] }
 0x2a4   : > { %19887 = vst [vmem:[#allocation196_spill] sm:$0xff] %v15752_v11  ;;  %v15762_v36 = vadd.f32 %v4270_v48, %v15271_v39  ;;  %v3462_v14 = vpop.f32.mrf.mxu0  ;;  %v2683_v39 = vadd.f32 %v19895_v37, %v19894_v58 }
 0x2a5   : > { %v4272_v52 = vpop.f32.mrf.mxu1  ;;  %v15769_v24 = vadd.f32 %v3462_v14, %v2677_v33  ;;  %v19899_v33 = vld [vmem:[#allocation168_spill] sm:$0xff] }
 0x2a6   : > { %19890 = vst [vmem:[#allocation26_spill] sm:$0xff] %v15762_v36  ;;  %v15772_v11 = vadd.f32 %v4272_v52, %v15282_v35  ;;  %v3464_v8 = vpop.f32.mrf.mxu0  ;;  %v19898_v35 = vld [vmem:[#allocation83_spill] sm:$0xff] }
 0x2a7   : > { %v4274_v40 = vpop.f32.mrf.mxu1  ;;  %v15779_v48 = vadd.f32 %v3464_v8, %v2679_v17  ;;  %v2685_v14 = vadd.f32 %v19899_v33, %v19898_v35  ;;  %v19901_v17 = vld [vmem:[#allocation84_spill] sm:$0xff]  ;;  %v19902_v8 = vld [vmem:[#allocation169_spill] sm:$0xff]  ;;  %v19905_v33 = vld [vmem:[#allocation170_spill] sm:$0xff] }
 0x2a8   : > { %19893 = vst [vmem:[#allocation112_spill] sm:$0xff] %v15772_v11  ;;  %v15782_v36 = vadd.f32 %v4274_v40, %v15290_v41  ;;  %v3468_v43 = vpop.f32.mrf.mxu0  ;;  %11874 = vmatmul.mubr.msk.bf16.gmra.mxu0 %vm1707_vm1, %v13218_v9  ;;  %v13244_v41 = vld [vmem:[%s19322_s3 + $0x160] ss:$8 sps:$4 sm:$0xff]   ;;  %v13246_v9 = vld [vmem:[%s19322_s3 + $0x164] ss:$8 sps:$4 sm:$0xff]   ;;  %v19904_v35 = vld [vmem:[#allocation85_spill] sm:$0xff] }
 0x2a9   : > { %19896 = vst [vmem:[#allocation27_spill] sm:$0xff] %v15779_v48  ;;  %v4278_v22 = vpop.f32.mrf.mxu1  ;;  %12944 = vmatmul.mubr.msk.bf16.gmra.mxu1 %vm1707_vm1, %v15765_v53  ;;  %v15789_v52 = vadd.f32 %v3468_v43, %v2683_v39  ;;  %5216 = vmatprep.mubr.bf16.mxu0 %v19468_v49  ;;  %v15811_v39 = vld [vmem:[%s14087_s19 + $0x328] sm:$0xff]   ;;  %v2689_v48 = vadd.f32 %v19905_v33, %v19904_v35 }
 0x2aa   : > { %19897 = vst [vmem:[#allocation198_spill] sm:$0xff] %v15782_v36  ;;  %v15792_v60 = vadd.f32 %v4278_v22, %v15302_v1  ;;  %12947 = vmatprep.mubr.msk.bf16.mxu1 %vm1707_vm1, %v15775_v51  ;;  %v3470_v46 = vpop.f32.mrf.mxu0  ;;  %v2687_v1 = vadd.f32 %v19902_v8, %v19901_v17  ;;  %6746 = vmatprep.subr.bf16.mxu0 %v13246_v9  ;;  %v15821_v17 = vld [vmem:[%s14087_s19 + $0x330] sm:$0xff]   ;;  %v19907_v9 = vld [vmem:[#allocation86_spill] sm:$0xff]  ;;  %v19912_v33 = vld [vmem:[#allocation172_spill] sm:$0xff] }
 0x2ab   : > { %v4280_v43 = vpop.f32.mrf.mxu1  ;;  %v15805_v22 = vadd.f32 %v3470_v46, %v2685_v14  ;;  %6747 = vmatpush1.bf16.msra.mxu0 %v13244_v41 }
 0x2ac   : > { %19900 = vst [vmem:[#allocation28_spill] sm:$0xff] %v15792_v60  ;;  %v15808_v40 = vadd.f32 %v4280_v43, %v15313_v29  ;;  %v3472_v58 = vpop.f32.mrf.mxu0  ;;  %v13249_v29 = vld [vmem:[%s19322_s3 + $0x74] ss:$8 sps:$4 sm:$0xff]   ;;  %v19908_v43 = vld [vmem:[#allocation171_spill] sm:$0xff] }
 0x2ad   : > { %v4282_v37 = vpop.f32.mrf.mxu1  ;;  %v15815_v60 = vadd.f32 %v3472_v58, %v2687_v1  ;;  %v2693_v8 = vadd.f32 %v19908_v43, %v19907_v9  ;;  %6471 = vmatprep.subr.bf16.mxu1 %v13249_v29  ;;  %v19914_v43 = vld [vmem:[#allocation88_spill] sm:$0xff]  ;;  %v15864_v29 = vld [vmem:[%s14087_s19 + $0x338] sm:$0xff]  }
 0x2ae   : > { %19903 = vst [vmem:[#allocation114_spill] sm:$0xff] %v15808_v40  ;;  %v15818_v36 = vadd.f32 %v4282_v37, %v15324_v57  ;;  %v3474_v14 = vpop.f32.mrf.mxu0  ;;  %v13247_v57 = vld [vmem:[%s19322_s3 + $0x70] ss:$8 sps:$4 sm:$0xff]   ;;  %v19911_v37 = vld [vmem:[#allocation87_spill] sm:$0xff] }
 0x2af   : > { %v4284_v46 = vpop.f32.mrf.mxu1  ;;  %v15828_v41 = vadd.f32 %v3474_v14, %v2689_v48  ;;  %v2695_v9 = vadd.f32 %v19912_v33, %v19911_v37  ;;  %v19915_v37 = vld [vmem:[#allocation173_spill] sm:$0xff]  ;;  %6472 = vmatpush1.bf16.msra.mxu1 %v13247_v57 }
 0x2b0   : > { %19906 = vst [vmem:[#allocation29_spill] sm:$0xff] %v15818_v36  ;;  %v15831_v35 = vadd.f32 %v4284_v46, %v15332_v34  ;;  %v3478_v1 = vpop.f32.mrf.mxu0  ;;  %11875 = vmatmul.mubr.msk.bf16.gmra.mxu0 %vm1707_vm1, %v15734_v15  ;;  %v13252_v46 = vld [vmem:[%s19322_s3 + $0x64] ss:$8 sps:$4 sm:$0xff]  }
 0x2b1   : > { %19909 = vst [vmem:[#allocation200_spill] sm:$0xff] %v15828_v41  ;;  %v4288_v58 = vpop.f32.mrf.mxu1  ;;  %12948 = vmatmul.mubr.msk.bf16.gmra.mxu1 %vm1707_vm1, %v15811_v39  ;;  %v15842_v48 = vadd.f32 %v3478_v1, %v2693_v8  ;;  %5226 = vmatprep.mubr.bf16.mxu0 %v19468_v49  ;;  %v2697_v8 = vadd.f32 %v19915_v37, %v19914_v43  ;;  %v19920_v43 = vld [vmem:[#allocation91_spill] sm:$0xff]  ;;  %v19921_v37 = vld [vmem:[#allocation177_spill] sm:$0xff] }
 0x2b2   : > { %19910 = vst [vmem:[#allocation30_spill] sm:$0xff] %v15831_v35  ;;  %v15845_v34 = vadd.f32 %v4288_v58, %v15344_v10  ;;  %12951 = vmatprep.mubr.msk.bf16.mxu1 %vm1707_vm1, %v15821_v17  ;;  %v3480_v14 = vpop.f32.mrf.mxu0  ;;  %v13250_v58 = vld [vmem:[%s19322_s3 + $0x60] ss:$8 sps:$4 sm:$0xff]   ;;  %6473 = vmatprep.subr.bf16.mxu1 %v13252_v46 }
 0x2b3   : > { %v4290_v15 = vpop.f32.mrf.mxu1  ;;  %v15855_v1 = vadd.f32 %v3480_v14, %v2695_v9  ;;  %v19918_v35 = vld [vmem:[#allocation175_spill] sm:$0xff]  ;;  %6474 = vmatpush1.bf16.msra.mxu1 %v13250_v58 }
 0x2b4   : > { %19913 = vst [vmem:[#allocation116_spill] sm:$0xff] %v15845_v34  ;;  %v15858_v10 = vadd.f32 %v4290_v15, %v15355_v32  ;;  %v3482_v33 = vpop.f32.mrf.mxu0  ;;  %v19917_v34 = vld [vmem:[#allocation89_spill] sm:$0xff]  ;;  %v15874_v32 = vld [vmem:[%s14087_s19 + $0x340] sm:$0xff]  }
 0x2b5   : > { %v4292_v41 = vpop.f32.mrf.mxu1  ;;  %v2699_v36 = vadd.f32 %v19918_v35, %v19917_v34  ;;  %v15868_v40 = vadd.f32 %v3482_v33, %v2697_v8  ;;  %v13255_v15 = vld [vmem:[%s19322_s3 + $0x54] ss:$8 sps:$4 sm:$0xff]   ;;  %v19925_v33 = vld [vmem:[#allocation179_spill] sm:$0xff] }
 0x2b6   : > { %19916 = vst [vmem:[#allocation31_spill] sm:$0xff] %v15858_v10  ;;  %v15871_v9 = vadd.f32 %v4292_v41, %v15366_v0  ;;  %v3484_v57 = vpop.f32.mrf.mxu0  ;;  %v2703_v10 = vadd.f32 %v19921_v37, %v19920_v43  ;;  %v13253_v0 = vld [vmem:[%s19322_s3 + $0x50] ss:$8 sps:$4 sm:$0xff]   ;;  %6475 = vmatprep.subr.bf16.mxu1 %v13255_v15  ;;  %v19927_v43 = vld [vmem:[#allocation95_spill] sm:$0xff]  ;;  %v15917_v15 = vld [vmem:[%s14087_s19 + $0x348] sm:$0xff]  }
 0x2b7   : > { %v4294_v14 = vpop.f32.mrf.mxu1  ;;  %v15881_v46 = vadd.f32 %v3484_v57, %v2699_v36  ;;  %v19924_v8 = vld [vmem:[#allocation93_spill] sm:$0xff]  ;;  %6476 = vmatpush1.bf16.msra.mxu1 %v13253_v0 }
 0x2b8   : > { %19919 = vst [vmem:[#allocation202_spill] sm:$0xff] %v15871_v9  ;;  %v15884_v35 = vadd.f32 %v4294_v14, %v15374_v16  ;;  %v3488_v41 = vpop.f32.mrf.mxu0  ;;  %11876 = vmatmul.mubr.msk.bf16.gmra.mxu0 %vm1707_vm1, %v15765_v53  ;;  %v2705_v36 = vadd.f32 %v19925_v33, %v19924_v8  ;;  %v13258_v14 = vld [vmem:[%s19322_s3 + $0x44] ss:$8 sps:$4 sm:$0xff]   ;;  %v19928_v37 = vld [vmem:[#allocation181_spill] sm:$0xff] }
 0x2b9   : > { %19922 = vst [vmem:[#allocation32_spill] sm:$0xff] %v15881_v46  ;;  %v4298_v34 = vpop.f32.mrf.mxu1  ;;  %12952 = vmatmul.mubr.msk.bf16.gmra.mxu1 %vm1707_vm1, %v15864_v29  ;;  %v15895_v57 = vadd.f32 %v3488_v41, %v2703_v10  ;;  %5236 = vmatprep.mubr.bf16.mxu0 %v19468_v49  ;;  %v2707_v10 = vadd.f32 %v19928_v37, %v19927_v43  ;;  %v19930_v46 = vld [vmem:[#allocation97_spill] sm:$0xff]  ;;  %v19933_v43 = vld [vmem:[#allocation99_spill] sm:$0xff] }
 0x2ba   : > { %19923 = vst [vmem:[#allocation118_spill] sm:$0xff] %v15884_v35  ;;  %v15898_v16 = vadd.f32 %v4298_v34, %v15386_v42  ;;  %12955 = vmatprep.mubr.msk.bf16.mxu1 %vm1707_vm1, %v15874_v32  ;;  %v3490_v58 = vpop.f32.mrf.mxu0  ;;  %v13256_v34 = vld [vmem:[%s19322_s3 + $0x40] ss:$8 sps:$4 sm:$0xff]   ;;  %6477 = vmatprep.subr.bf16.mxu1 %v13258_v14  ;;  %v19934_v37 = vld [vmem:[#allocation185_spill] sm:$0xff] }
 0x2bb   : > { %v4300_v53 = vpop.f32.mrf.mxu1  ;;  %v15908_v41 = vadd.f32 %v3490_v58, %v2705_v36  ;;  %6478 = vmatpush1.bf16.msra.mxu1 %v13256_v34  ;;  %v13264_v34 = vld [vmem:[%s19322_s3 + $0x154] ss:$8 sps:$4 sm:$0xff]  }
 0x2bc   : > { %19926 = vst [vmem:[#allocation33_spill] sm:$0xff] %v15898_v16  ;;  %v15911_v42 = vadd.f32 %v4300_v53, %v15397_v61  ;;  %v3492_v8 = vpop.f32.mrf.mxu0  ;;  %v19931_v16 = vld [vmem:[#allocation183_spill] sm:$0xff]  ;;  %v15927_v61 = vld [vmem:[%s14087_s19 + $0x350] sm:$0xff]   ;;  %6748 = vmatprep.subr.bf16.mxu0 %v13264_v34 }
 0x2bd   : > { %v4302_v33 = vpop.f32.mrf.mxu1  ;;  %v2709_v35 = vadd.f32 %v19931_v16, %v19930_v46  ;;  %v15921_v9 = vadd.f32 %v3492_v8, %v2707_v10  ;;  %v13261_v53 = vld [vmem:[%s19322_s3 + $0x34] ss:$8 sps:$4 sm:$0xff]   ;;  %v15986_v34 = vld [vmem:[%s14087_s19 + $0x360] sm:$0xff]  }
 0x2be   : > { %19929 = vst [vmem:[#allocation204_spill] sm:$0xff] %v15911_v42  ;;  %v15924_v36 = vadd.f32 %v4302_v33, %v15408_v56  ;;  %v3494_v0 = vpop.f32.mrf.mxu0  ;;  %v2713_v42 = vadd.f32 %v19934_v37, %v19933_v43  ;;  %v13259_v56 = vld [vmem:[%s19322_s3 + $0x30] ss:$8 sps:$4 sm:$0xff]   ;;  %v19938_v33 = vld [vmem:[#allocation187_spill] sm:$0xff]  ;;  %6479 = vmatprep.subr.bf16.mxu1 %v13261_v53 }
 0x2bf   : > { %v4304_v58 = vpop.f32.mrf.mxu1  ;;  %v15934_v14 = vadd.f32 %v3494_v0, %v2709_v35  ;;  %v19937_v8 = vld [vmem:[#allocation101_spill] sm:$0xff]  ;;  %v19940_v43 = vld [vmem:[#allocation103_spill] sm:$0xff]  ;;  %6480 = vmatpush1.bf16.msra.mxu1 %v13259_v56 }
 0x2c0   : > { %19932 = vst [vmem:[#allocation34_spill] sm:$0xff] %v15924_v36  ;;  %v15937_v46 = vadd.f32 %v4304_v58, %v15416_v26  ;;  %v3498_v16 = vpop.f32.mrf.mxu0  ;;  %11877 = vmatmul.mubr.msk.bf16.gmra.mxu0 %vm1707_vm1, %v15775_v51  ;;  %v2715_v35 = vadd.f32 %v19938_v33, %v19937_v8  ;;  %v13262_v51 = vld [vmem:[%s19322_s3 + $0x150] ss:$8 sps:$4 sm:$0xff]   ;;  %v13265_v33 = vld [vmem:[%s19322_s3 + $0x20] ss:$8 sps:$4 sm:$0xff]  }
 0x2c1   : > { %19935 = vst [vmem:[#allocation120_spill] sm:$0xff] %v15934_v14  ;;  %v4308_v10 = vpop.f32.mrf.mxu1  ;;  %12956 = vmatmul.mubr.msk.bf16.gmra.mxu1 %vm1707_vm1, %v15917_v15  ;;  %v15948_v0 = vadd.f32 %v3498_v16, %v2713_v42  ;;  %5246 = vmatprep.mubr.bf16.mxu0 %v19468_v49  ;;  %v19941_v37 = vld [vmem:[#allocation189_spill] sm:$0xff]  ;;  %v19944_v36 = vld [vmem:[#allocation191_spill] sm:$0xff] }
 0x2c2   : > { %19936 = vst [vmem:[#allocation35_spill] sm:$0xff] %v15937_v46  ;;  %v15951_v26 = vadd.f32 %v4308_v10, %v15428_v2  ;;  %12959 = vmatprep.mubr.msk.bf16.mxu1 %vm1707_vm1, %v15927_v61  ;;  %v3500_v58 = vpop.f32.mrf.mxu0  ;;  %v13267_v2 = vld [vmem:[%s19322_s3 + $0x24] ss:$8 sps:$4 sm:$0xff]   ;;  %v2717_v16 = vadd.f32 %v19941_v37, %v19940_v43  ;;  %6749 = vmatpush1.bf16.msra.mxu0 %v13262_v51  ;;  %v19943_v46 = vld [vmem:[#allocation105_spill] sm:$0xff] }
 0x2c3   : > { %v4310_v42 = vpop.f32.mrf.mxu1  ;;  %v15967_v10 = vadd.f32 %v3500_v58, %v2715_v35  ;;  %6481 = vmatprep.subr.bf16.mxu1 %v13267_v2  ;;  %v2719_v43 = vadd.f32 %v19944_v36, %v19943_v46  ;;  %v19946_v37 = vld [vmem:[#allocation107_spill] sm:$0xff] }
 0x2c4   : > { %19939 = vst [vmem:[#allocation206_spill] sm:$0xff] %v15951_v26  ;;  %v15970_v8 = vadd.f32 %v4310_v42, %v15439_v7  ;;  %v3502_v53 = vpop.f32.mrf.mxu0  ;;  %v15976_v26 = vld [vmem:[%s14087_s19 + $0x358] sm:$0xff]   ;;  %6482 = vmatpush1.bf16.msra.mxu1 %v13265_v33 }
 0x2c5   : > { %v4312_v14 = vpop.f32.mrf.mxu1  ;;  %v15980_v35 = vadd.f32 %v3502_v53, %v2717_v16  ;;  %v13270_v42 = vld [vmem:[%s19322_s3 + $0x14] ss:$8 sps:$4 sm:$0xff]  }
 0x2c6   : > { %19942 = vst [vmem:[#allocation36_spill] sm:$0xff] %v15970_v8  ;;  %v15983_v7 = vadd.f32 %v4312_v14, %v15450_v62  ;;  %v3504_v56 = vpop.f32.mrf.mxu0  ;;  %v19947_v8 = vld [vmem:[#allocation193_spill] sm:$0xff]  ;;  %6483 = vmatprep.subr.bf16.mxu1 %v13270_v42  ;;  %v16029_v42 = vld [vmem:[%s14087_s19 + $0x368] sm:$0xff]  }
 0x2c7   : > { %v4314_v58 = vpop.f32.mrf.mxu1  ;;  %v2723_v51 = vadd.f32 %v19947_v8, %v19946_v37  ;;  %v15993_v2 = vadd.f32 %v3504_v56, %v2719_v43  ;;  %v13268_v62 = vld [vmem:[%s19322_s3 + $0x10] ss:$8 sps:$4 sm:$0xff]   ;;  %v19951_v8 = vld [vmem:[#allocation195_spill] sm:$0xff] }
 0x2c8   : > { %19945 = vst [vmem:[#allocation122_spill] sm:$0xff] %v15983_v7  ;;  %v15996_v36 = vadd.f32 %v4314_v58, %v15458_v45  ;;  %v3508_v14 = vpop.f32.mrf.mxu0  ;;  %11878 = vmatmul.mubr.msk.bf16.gmra.mxu0 %vm1707_vm1, %v15811_v39  ;;  %v19950_v16 = vld [vmem:[#allocation109_spill] sm:$0xff]  ;;  %v13273_v56 = vld [vmem:[%s19322_s3 + $0x4] ss:$8 sps:$4 sm:$0xff]   ;;  %6484 = vmatpush1.bf16.msra.mxu1 %v13268_v62 }
 0x2c9   : > { %19948 = vst [vmem:[#allocation37_spill] sm:$0xff] %v15993_v2  ;;  %v4318_v46 = vpop.f32.mrf.mxu1  ;;  %12960 = vmatmul.mubr.msk.bf16.gmra.mxu1 %vm1707_vm1, %v15976_v26  ;;  %v2725_v53 = vadd.f32 %v19951_v8, %v19950_v16  ;;  %v16007_v43 = vadd.f32 %v3508_v14, %v2723_v51  ;;  %5256 = vmatprep.mubr.bf16.mxu0 %v19468_v49  ;;  %v19953_v58 = vld [vmem:[#allocation111_spill] sm:$0xff]  ;;  %v19954_v37 = vld [vmem:[#allocation197_spill] sm:$0xff] }
 0x2ca   : > { %19949 = vst [vmem:[#allocation208_spill] sm:$0xff] %v15996_v36  ;;  %v16010_v45 = vadd.f32 %v4318_v46, %v15470_v20  ;;  %12963 = vmatprep.mubr.msk.bf16.mxu1 %vm1707_vm1, %v15986_v34  ;;  %v3510_v33 = vpop.f32.mrf.mxu0  ;;  %v2727_v51 = vadd.f32 %v19954_v37, %v19953_v58  ;;  %v13271_v46 = vld [vmem:[%s19322_s3] ss:$8 sps:$4 sm:$0xff]   ;;  %6485 = vmatprep.subr.bf16.mxu1 %v13273_v56  ;;  %v19956_v2 = vld [vmem:[#allocation113_spill] sm:$0xff] }
 0x2cb   : > { %v4320_v39 = vpop.f32.mrf.mxu1  ;;  %v16020_v14 = vadd.f32 %v3510_v33, %v2725_v53  ;;  %v19959_v58 = vld [vmem:[#allocation115_spill] sm:$0xff]  ;;  %v19960_v37 = vld [vmem:[#allocation201_spill] sm:$0xff] }
 0x2cc   : > { %19952 = vst [vmem:[#allocation38_spill] sm:$0xff] %v16010_v45  ;;  %v16023_v20 = vadd.f32 %v4320_v39, %v15481_v38  ;;  %v3512_v16 = vpop.f32.mrf.mxu0  ;;  %v19957_v45 = vld [vmem:[#allocation199_spill] sm:$0xff]  ;;  %v16039_v38 = vld [vmem:[%s14087_s19 + $0x370] sm:$0xff]   ;;  %6486 = vmatpush1.bf16.msra.mxu1 %v13271_v46 }
 0x2cd   : > { %v4322_v8 = vpop.f32.mrf.mxu1  ;;  %v2729_v36 = vadd.f32 %v19957_v45, %v19956_v2  ;;  %v16033_v7 = vadd.f32 %v3512_v16, %v2727_v51  ;;  %v13276_v39 = vld [vmem:[%s19322_s3 + $0xf4] ss:$8 sps:$4 sm:$0xff]  }
 0x2ce   : > { %19955 = vst [vmem:[#allocation124_spill] sm:$0xff] %v16023_v20  ;;  %v16036_v53 = vadd.f32 %v4322_v8, %v15492_v31  ;;  %v3514_v62 = vpop.f32.mrf.mxu0  ;;  %v2733_v20 = vadd.f32 %v19960_v37, %v19959_v58  ;;  %v13274_v31 = vld [vmem:[%s19322_s3 + $0xf0] ss:$8 sps:$4 sm:$0xff]   ;;  %v19964_v8 = vld [vmem:[#allocation203_spill] sm:$0xff]  ;;  %6487 = vmatprep.subr.bf16.mxu1 %v13276_v39 }
 0x2cf   : > { %v4324_v33 = vpop.f32.mrf.mxu1  ;;  %v16046_v56 = vadd.f32 %v3514_v62, %v2729_v36  ;;  %v19963_v16 = vld [vmem:[#allocation117_spill] sm:$0xff]  ;;  %v19966_v58 = vld [vmem:[#allocation119_spill] sm:$0xff]  ;;  %v16082_v39 = vld [vmem:[%s14087_s19 + $0x378] sm:$0xff]  }
 0x2d0   : > { %19958 = vst [vmem:[#allocation39_spill] sm:$0xff] %v16036_v53  ;;  %v16049_v2 = vadd.f32 %v4324_v33, %v15500_v55  ;;  %v3518_v45 = vpop.f32.mrf.mxu0  ;;  %11879 = vmatmul.mubr.msk.bf16.gmra.mxu0 %vm1707_vm1, %v15821_v17  ;;  %v2735_v36 = vadd.f32 %v19964_v8, %v19963_v16  ;;  %v13279_v33 = vld [vmem:[%s19322_s3 + $0xe4] ss:$8 sps:$4 sm:$0xff]   ;;  %v19967_v37 = vld [vmem:[#allocation205_spill] sm:$0xff]  ;;  %6488 = vmatpush2.bf16.msra.mxu1 %v13274_v31 }
 0x2d1   : > { %19961 = vst [vmem:[#allocation210_spill] sm:$0xff] %v16046_v56  ;;  %v4328_v51 = vpop.f32.mrf.mxu1  ;;  %12964 = vmatmul.mubr.msk.bf16.gmra.mxu1 %vm1707_vm1, %v16029_v42  ;;  %v16060_v62 = vadd.f32 %v3518_v45, %v2733_v20  ;;  %5266 = vmatprep.mubr.bf16.mxu0 %v19468_v49  ;;  %v2737_v20 = vadd.f32 %v19967_v37, %v19966_v58  ;;  %v19969_v56 = vld [vmem:[#allocation121_spill] sm:$0xff]  ;;  %v19972_v58 = vld [vmem:[#allocation123_spill] sm:$0xff] }
 0x2d2   : > { %19962 = vst [vmem:[#allocation40_spill] sm:$0xff] %v16049_v2  ;;  %v16063_v55 = vadd.f32 %v4328_v51, %v15512_v21  ;;  %12967 = vmatprep.mubr.msk.bf16.mxu1 %vm1707_vm1, %v16039_v38  ;;  %v3520_v46 = vpop.f32.mrf.mxu0  ;;  %v13277_v51 = vld [vmem:[%s19322_s3 + $0xe0] ss:$8 sps:$4 sm:$0xff]   ;;  %6489 = vmatprep.subr.bf16.mxu1 %v13279_v33  ;;  %v19973_v37 = vld [vmem:[#allocation209_spill] sm:$0xff] }
 0x2d3   : > { %v4330_v17 = vpop.f32.mrf.mxu1  ;;  %v16073_v45 = vadd.f32 %v3520_v46, %v2735_v36 }
 0x2d4   : > { %19965 = vst [vmem:[#allocation126_spill] sm:$0xff] %v16063_v55  ;;  %v16076_v21 = vadd.f32 %v4330_v17, %v15523_v6  ;;  %v3522_v16 = vpop.f32.mrf.mxu0  ;;  %v19970_v55 = vld [vmem:[#allocation207_spill] sm:$0xff]  ;;  %v13282_v17 = vld [vmem:[%s19322_s3 + $0xd4] ss:$8 sps:$4 sm:$0xff]   ;;  %6490 = vmatpush2.bf16.msra.mxu1 %v13277_v51 }
 0x2d5   : > { %v4332_v8 = vpop.f32.mrf.mxu1  ;;  %v2739_v2 = vadd.f32 %v19970_v55, %v19969_v56  ;;  %v16086_v53 = vadd.f32 %v3522_v16, %v2737_v20  ;;  %v16092_v6 = vld [vmem:[%s14087_s19 + $0x380] sm:$0xff]   ;;  %v19976_v16 = vld [vmem:[#allocation125_spill] sm:$0xff]  ;;  %6491 = vmatprep.subr.bf16.mxu1 %v13282_v17 }
 0x2d6   : > { %19968 = vst [vmem:[#allocation41_spill] sm:$0xff] %v16076_v21  ;;  %v16089_v36 = vadd.f32 %v4332_v8, %v15534_v28  ;;  %v3524_v31 = vpop.f32.mrf.mxu0  ;;  %v2743_v21 = vadd.f32 %v19973_v37, %v19972_v58  ;;  %v13280_v28 = vld [vmem:[%s19322_s3 + $0xd0] ss:$8 sps:$4 sm:$0xff]   ;;  %v19977_v8 = vld [vmem:[#allocation211_spill] sm:$0xff] }
 0x2d7   : > { %v4334_v46 = vpop.f32.mrf.mxu1  ;;  %v16099_v33 = vadd.f32 %v3524_v31, %v2739_v2  ;;  %v2745_v2 = vadd.f32 %v19977_v8, %v19976_v16  ;;  %v13285_v51 = vld [vmem:[%s19322_s3 + $0x144] ss:$8 sps:$4 sm:$0xff]   ;;  %v19980_v37 = vld [vmem:[#allocation213_spill] sm:$0xff]  ;;  %v13286_v8 = vld [vmem:[%s19322_s3 + $0xc0] ss:$8 sps:$4 sm:$0xff]  }
 0x2d8   : > { %19971 = vst [vmem:[#allocation212_spill] sm:$0xff] %v16089_v36  ;;  %v16102_v56 = vadd.f32 %v4334_v46, %v15542_v12  ;;  %v3528_v55 = vpop.f32.mrf.mxu0  ;;  %11880 = vmatmul.mubr.msk.bf16.gmra.mxu0 %vm1707_vm1, %v15864_v29  ;;  %v13283_v29 = vld [vmem:[%s19322_s3 + $0x140] ss:$8 sps:$4 sm:$0xff]   ;;  %6750 = vmatprep.subr.bf16.mxu0 %v13285_v51  ;;  %v16151_v51 = vld [vmem:[%s14087_s19 + $0x390] sm:$0xff]  }
 0x2d9   : > { %19974 = vst [vmem:[#allocation42_spill] sm:$0xff] %v16099_v33  ;;  %v4338_v20 = vpop.f32.mrf.mxu1  ;;  %12968 = vmatmul.mubr.msk.bf16.gmra.mxu1 %vm1707_vm1, %v16082_v39  ;;  %v16113_v31 = vadd.f32 %v3528_v55, %v2743_v21  ;;  %5276 = vmatprep.mubr.bf16.mxu0 %v19468_v49  ;;  %v19979_v58 = vld [vmem:[#allocation127_spill] sm:$0xff] }
 0x2da   : > { %19975 = vst [vmem:[#allocation128_spill] sm:$0xff] %v16102_v56  ;;  %v16116_v12 = vadd.f32 %v4338_v20, %v15554_v50  ;;  %12971 = vmatprep.mubr.msk.bf16.mxu1 %vm1707_vm1, %v16092_v6  ;;  %v3530_v46 = vpop.f32.mrf.mxu0  ;;  %v13288_v50 = vld [vmem:[%s19322_s3 + $0xc4] ss:$8 sps:$4 sm:$0xff]   ;;  %v2747_v55 = vadd.f32 %v19980_v37, %v19979_v58  ;;  %6492 = vmatpush2.bf16.msra.mxu1 %v13280_v28  ;;  %v19982_v56 = vld [vmem:[#allocation129_spill] sm:$0xff] }
 0x2db   : > { %v4340_v21 = vpop.f32.mrf.mxu1  ;;  %v16132_v20 = vadd.f32 %v3530_v46, %v2745_v2  ;;  %6751 = vmatpush1.bf16.msra.mxu0 %v13283_v29  ;;  %6493 = vmatprep.subr.bf16.mxu1 %v13288_v50  ;;  %v19983_v36 = vld [vmem:[#allocation215_spill] sm:$0xff]  ;;  %v13291_v28 = vld [vmem:[%s19322_s3 + $0x134] ss:$8 sps:$4 sm:$0xff]   ;;  %v13289_v29 = vld [vmem:[%s19322_s3 + $0x130] ss:$8 sps:$4 sm:$0xff]  }
 0x2dc   : > { %19978 = vst [vmem:[#allocation43_spill] sm:$0xff] %v16116_v12  ;;  %v16135_v16 = vadd.f32 %v4340_v21, %v15565_v27  ;;  %v3532_v17 = vpop.f32.mrf.mxu0  ;;  %v16141_v12 = vld [vmem:[%s14087_s19 + $0x388] sm:$0xff]   ;;  %v2749_v58 = vadd.f32 %v19983_v36, %v19982_v56  ;;  %v13294_v36 = vld [vmem:[%s19322_s3 + $0xb4] ss:$8 sps:$4 sm:$0xff]   ;;  %v19985_v56 = vld [vmem:[#allocation131_spill] sm:$0xff]  ;;  %6752 = vmatprep.subr.bf16.mxu0 %v13291_v28 }
 0x2dd   : > { %v4342_v33 = vpop.f32.mrf.mxu1  ;;  %v16145_v2 = vadd.f32 %v3532_v17, %v2747_v55  ;;  %v19986_v50 = vld [vmem:[#allocation217_spill] sm:$0xff] }
 0x2de   : > { %19981 = vst [vmem:[#allocation214_spill] sm:$0xff] %v16135_v16  ;;  %v16148_v27 = vadd.f32 %v4342_v33, %v15574_v25  ;;  %v3534_v46 = vpop.f32.mrf.mxu0  ;;  %v2753_v25 = vadd.f32 %v19986_v50, %v19985_v56  ;;  %6494 = vmatpush2.bf16.msra.mxu1 %v13286_v8  ;;  %v13292_v55 = vld [vmem:[%s19322_s3 + $0xb0] ss:$8 sps:$4 sm:$0xff]  }
 0x2df   : > { %v4344_v21 = vpop.f32.mrf.mxu1  ;;  %v16164_v33 = vadd.f32 %v3534_v46, %v2749_v58  ;;  %v19989_v56 = vld [vmem:[#allocation133_spill] sm:$0xff]  ;;  %v19990_v58 = vld [vmem:[#allocation219_spill] sm:$0xff]  ;;  %6495 = vmatprep.subr.bf16.mxu1 %v13294_v36  ;;  %6753 = vmatpush1.bf16.msra.mxu0 %v13289_v29 }
 0x2e0   : > { %19984 = vst [vmem:[#allocation44_spill] sm:$0xff] %v16148_v27  ;;  %v16167_v37 = vadd.f32 %v4344_v21, %v15582_v23  ;;  %v3538_v17 = vpop.f32.mrf.mxu0  ;;  %11881 = vmatmul.mubr.msk.bf16.gmra.mxu0 %vm1707_vm1, %v15874_v32  ;;  %v2755_v46 = vadd.f32 %v19990_v58, %v19989_v56  ;;  %v13297_v32 = vld [vmem:[%s19322_s3 + $0x124] ss:$8 sps:$4 sm:$0xff]   ;;  %v19993_v21 = vld [vmem:[#allocation221_spill] sm:$0xff] }
 0x2e1   : > { %19987 = vst [vmem:[#allocation130_spill] sm:$0xff] %v16164_v33  ;;  %v4348_v27 = vpop.f32.mrf.mxu1  ;;  %12972 = vmatmul.mubr.msk.bf16.gmra.mxu1 %vm1707_vm1, %v16141_v12  ;;  %v16178_v50 = vadd.f32 %v3538_v17, %v2753_v25  ;;  %5286 = vmatprep.mubr.bf16.mxu0 %v19468_v49  ;;  %v13300_v36 = vld [vmem:[%s19322_s3 + $0xa4] ss:$8 sps:$4 sm:$0xff]   ;;  %v16203_v33 = vld [vmem:[%s14087_s19 + $0x398] sm:$0xff]   ;;  %v20000_v16 = vld [vmem:[#allocation225_spill] sm:$0xff] }
 0x2e2   : > { %19988 = vst [vmem:[#allocation45_spill] sm:$0xff] %v16167_v37  ;;  %v16181_v23 = vadd.f32 %v4348_v27, %v15593_v44  ;;  %12975 = vmatprep.mubr.msk.bf16.mxu1 %vm1707_vm1, %v16151_v51  ;;  %v3540_v8 = vpop.f32.mrf.mxu0  ;;  %v13295_v44 = vld [vmem:[%s19322_s3 + $0x120] ss:$8 sps:$4 sm:$0xff]   ;;  %6496 = vmatpush2.bf16.msra.mxu1 %v13292_v55 }
 0x2e3   : > { %v4350_v28 = vpop.f32.mrf.mxu1  ;;  %v19992_v27 = vld [vmem:[#allocation135_spill] sm:$0xff]  ;;  %v16194_v17 = vadd.f32 %v3540_v8, %v2755_v46  ;;  %6754 = vmatprep.subr.bf16.mxu0 %v13297_v32  ;;  %6497 = vmatprep.subr.bf16.mxu1 %v13300_v36 }
 0x2e4   : > { %19991 = vst [vmem:[#allocation216_spill] sm:$0xff] %v16181_v23  ;;  %v2757_v25 = vadd.f32 %v19993_v21, %v19992_v27  ;;  %v16197_v56 = vadd.f32 %v4350_v28, %v15604_v19  ;;  %v3542_v58 = vpop.f32.mrf.mxu0  ;;  %v13298_v23 = vld [vmem:[%s19322_s3 + $0xa0] ss:$8 sps:$4 sm:$0xff]   ;;  %v19995_v27 = vld [vmem:[#allocation137_spill] sm:$0xff]  ;;  %6755 = vmatpush1.bf16.msra.mxu0 %v13295_v44 }
 0x2e5   : > { %v4352_v29 = vpop.f32.mrf.mxu1  ;;  %v19996_v46 = vld [vmem:[#allocation223_spill] sm:$0xff] }
 0x2e6   : > { %19994 = vst [vmem:[#allocation46_spill] sm:$0xff] %v16197_v56  ;;  %v2759_v8 = vadd.f32 %v19996_v46, %v19995_v27  ;;  %v16210_v21 = vadd.f32 %v3542_v58, %v2757_v25  ;;  %v16213_v19 = vadd.f32 %v4352_v29, %v15613_v5  ;;  %v16216_v55 = vld [vmem:[%s14087_s19 + $0x3a0] sm:$0xff]   ;;  %v3544_v32 = vpop.f32.mrf.mxu0  ;;  %v13303_v56 = vld [vmem:[%s19322_s3 + $0x114] ss:$8 sps:$4 sm:$0xff]   ;;  %6498 = vmatpush2.bf16.msra.mxu1 %v13298_v23  ;;  %v13301_v5 = vld [vmem:[%s19322_s3 + $0x110] ss:$8 sps:$4 sm:$0xff]  }
 0x2e7   : > { %v16218_v28 = vpop.f32.mrf.mxu1  ;;  %v19999_v37 = vld [vmem:[#allocation139_spill] sm:$0xff]  ;;  %v13306_v25 = vld [vmem:[%s19322_s3 + $0x94] ss:$8 sps:$4 sm:$0xff]   ;;  %6756 = vmatprep.subr.bf16.mxu0 %v13303_v56 }
 0x2e8   : > { %19997 = vst [vmem:[#allocation132_spill] sm:$0xff] %v16213_v19  ;;  %19998 = vst [vmem:[#allocation47_spill] sm:$0xff] %v16218_v28  ;;  %v2763_v11 = vadd.f32 %v20000_v16, %v19999_v37  ;;  %v16225_v27 = vadd.f32 %v3544_v32, %v2759_v8  ;;  %v3548_v36 = vpop.f32.mrf.mxu0  ;;  %11882 = vmatmul.mubr.msk.bf16.gmra.mxu0 %vm1707_vm1, %v15917_v15  ;;  %v13304_v16 = vld [vmem:[%s19322_s3 + $0x90] ss:$8 sps:$4 sm:$0xff]   ;;  %v20003_v23 = vld [vmem:[#allocation227_spill] sm:$0xff]  ;;  %6499 = vmatprep.subr.bf16.mxu1 %v13306_v25 }
 0x2e9   : > { %v4358_v44 = vpop.f32.mrf.mxu1  ;;  %12976 = vmatmul.mubr.msk.bf16.gmra.mxu1 %vm1707_vm1, %v16203_v33  ;;  %v20002_v37 = vld [vmem:[#allocation141_spill] sm:$0xff]  ;;  %5296 = vmatprep.mubr.bf16.mxu0 %v19468_v49  ;;  %v13309_v32 = vld [vmem:[%s19322_s3 + $0x104] ss:$8 sps:$4 sm:$0xff]   ;;  %v13307_v56 = vld [vmem:[%s19322_s3 + $0x100] ss:$8 sps:$4 sm:$0xff]  }
 0x2ea   : > { %20001 = vst [vmem:[#allocation218_spill] sm:$0xff] %v16225_v27  ;;  %v2765_v58 = vadd.f32 %v20003_v23, %v20002_v37  ;;  %v16242_v29 = vadd.f32 %v3548_v36, %v2763_v11  ;;  %v16245_v46 = vadd.f32 %v4358_v44, %v15632_v4  ;;  %12979 = vmatprep.mubr.msk.bf16.mxu1 %vm1707_vm1, %v16216_v55  ;;  %v3550_v15 = vpop.f32.mrf.mxu0  ;;  %v20005_v37 = vld [vmem:[#allocation143_spill] sm:$0xff]  ;;  %v20006_v11 = vld [vmem:[#allocation229_spill] sm:$0xff] }
 0x2eb   : > { %v4360_v8 = vpop.f32.mrf.mxu1  ;;  %v2767_v36 = vadd.f32 %v20006_v11, %v20005_v37  ;;  %6757 = vmatpush1.bf16.msra.mxu0 %v13301_v5  ;;  %6500 = vmatpush2.bf16.msra.mxu1 %v13304_v16  ;;  %v13312_v25 = vld [vmem:[%s19322_s3 + $0x84] ss:$8 sps:$4 sm:$0xff]   ;;  %v16280_v37 = vld [vmem:[%s14087_s19 + $0x3b0] sm:$0xff]  }
 0x2ec   : > { %20004 = vst [vmem:[#allocation48_spill] sm:$0xff] %v16245_v46  ;;  %v16255_v4 = vadd.f32 %v3550_v15, %v2765_v58  ;;  %v16258_v44 = vadd.f32 %v4360_v8, %v15642_v30  ;;  %v3552_v23 = vpop.f32.mrf.mxu0  ;;  %v16267_v46 = vld [vmem:[%s14087_s19 + $0x3a8] sm:$0xff]   ;;  %6758 = vmatprep.subr.bf16.mxu0 %v13309_v32  ;;  %v20009_v58 = vld [vmem:[#allocation145_spill] sm:$0xff]  ;;  %v20010_v5 = vld [vmem:[#allocation231_spill] sm:$0xff]  ;;  %6501 = vmatprep.subr.bf16.mxu1 %v13312_v25 }
 0x2ed   : > { %v4362_v27 = vpop.f32.mrf.mxu1  ;;  %v13310_v30 = vld [vmem:[%s19322_s3 + $0x80] ss:$8 sps:$4 sm:$0xff]   ;;  %v2769_v16 = vadd.f32 %v20010_v5, %v20009_v58  ;;  %v16274_v15 = vadd.f32 %v3552_v23, %v2767_v36  ;;  %v20014_v32 = vld [vmem:[#allocation233_spill] sm:$0xff]  ;;  %v20019_v58 = vld [vmem:[#allocation190_spill] sm:$0xff] }
 0x2ee   : > { %20007 = vst [vmem:[#allocation134_spill] sm:$0xff] %v16255_v4  ;;  %20008 = vst [vmem:[#allocation49_spill] sm:$0xff] %v16258_v44  ;;  %v16277_v8 = vadd.f32 %v4362_v27, %v15651_v59  ;;  %v3554_v11 = vpop.f32.mrf.mxu0  ;;  %v20013_v19 = vld [vmem:[#allocation147_spill] sm:$0xff]  ;;  %v20016_v59 = vld [vmem:[#allocation149_spill] sm:$0xff] }
 0x2ef   : > { %v16282_v44 = vpop.f32.mrf.mxu1  ;;  %v2773_v28 = vadd.f32 %v20014_v32, %v20013_v19  ;;  %v16286_v3 = vadd.f32 %v3554_v11, %v2769_v16  ;;  %6759 = vmatpush1.bf16.msra.mxu0 %v13307_v56  ;;  %6502 = vmatpush2.bf16.msra.mxu1 %v13310_v30  ;;  %v20017_v27 = vld [vmem:[#allocation235_spill] sm:$0xff]  ;;  %v20023_v32 = vld [vmem:[#allocation106_spill] sm:$0xff] }
 0x2f0   : > { %20011 = vst [vmem:[#allocation220_spill] sm:$0xff] %v16277_v8  ;;  %20012 = vst [vmem:[#allocation50_spill] sm:$0xff] %v16282_v44  ;;  %v3558_v4 = vpop.f32.mrf.mxu0  ;;  %11883 = vmatmul.mubr.msk.bf16.gmra.mxu0 %vm1707_vm1, %v15927_v61  ;;  %v2775_v25 = vadd.f32 %v20017_v27, %v20016_v59  ;;  %v20021_v5 = vld [vmem:[#allocation151_spill] sm:$0xff]  ;;  %v20022_v61 = vld [vmem:[#allocation237_spill] sm:$0xff] }
 0x2f1   : > { %20015 = vst [vmem:[#allocation136_spill] sm:$0xff] %v16286_v3  ;;  %v4368_v36 = vpop.f32.mrf.mxu1  ;;  %12980 = vmatmul.mubr.msk.bf16.gmra.mxu1 %vm1707_vm1, %v16267_v46  ;;  %v16294_v23 = vadd.f32 %v3558_v4, %v2773_v28  ;;  %5306 = vmatprep.mubr.bf16.mxu0 %v19468_v49  ;;  %v2777_v16 = vadd.f32 %v20022_v61, %v20021_v5  ;;  %v16310_v59 = vld [vmem:[%s14087_s19 + $0x3b8] sm:$0xff]   ;;  %v20026_v27 = vld [vmem:[#allocation240_spill] sm:$0xff]  ;;  %s1441_s19 = scalar_lea.vmem %s19332_s13, %s11301_s22 }
 0x2f2   : > { %v16297_v19 = vadd.f32 %v4368_v36, %v20019_v58  ;;  %12983 = vmatprep.mubr.msk.bf16.mxu1 %vm1707_vm1, %v16280_v37  ;;  %v3560_v56 = vpop.f32.mrf.mxu0  ;;  %v20025_v36 = vld [vmem:[#allocation153_spill] sm:$0xff] }
 0x2f3   : > { %20018 = vst [vmem:[#allocation51_spill] sm:$0xff] %v16294_v23  ;;  %v4370_v30 = vpop.f32.mrf.mxu1  ;;  %v16304_v11 = vadd.f32 %v3560_v56, %v2775_v25  ;;  %v2779_v58 = vadd.f32 %v20026_v27, %v20025_v36  ;;  %v20029_v25 = vld [vmem:[#allocation155_spill] sm:$0xff]  ;;  %v20030_v56 = vld [vmem:[#allocation242_spill] sm:$0xff] }
 0x2f4   : > { %20020 = vst [vmem:[#allocation222_spill] sm:$0xff] %v16297_v19  ;;  %v16307_v3 = vadd.f32 %v4370_v30, %v20023_v32  ;;  %v3562_v28 = vpop.f32.mrf.mxu0  ;;  %v2783_v5 = vadd.f32 %v20030_v56, %v20029_v25  ;;  %v20035_v36 = vld [vmem:[#allocation23_spill] sm:$0xff]  ;;  %v20038_v56 = vld [vmem:[#allocation246_spill] sm:$0xff] }
 0x2f5   : > { %v4372_v4 = vpop.f32.mrf.mxu1  ;;  %v16314_v19 = vadd.f32 %v3562_v28, %v2777_v16  ;;  %v20032_v16 = vld [vmem:[#allocation157_spill] sm:$0xff]  ;;  %v20033_v28 = vld [vmem:[#allocation244_spill] sm:$0xff]  ;;  %v20037_v25 = vld [vmem:[#allocation159_spill] sm:$0xff] }
 0x2f6   : > { %20024 = vst [vmem:[#allocation52_spill] sm:$0xff] %v16307_v3  ;;  %v16317_v8 = vadd.f32 %v4372_v4, %v15691_v63  ;;  %v3564_v44 = vpop.f32.mrf.mxu0  ;;  %v2785_v63 = vadd.f32 %v20033_v28, %v20032_v16  ;;  %v20040_v16 = vld [vmem:[#allocation161_spill] sm:$0xff] }
 0x2f7   : > { %v16319_v23 = vpop.f32.mrf.mxu1  ;;  %v16323_v30 = vadd.f32 %v3564_v44, %v2779_v58 }
 0x2f8   : > { %20027 = vst [vmem:[#allocation138_spill] sm:$0xff] %v16317_v8  ;;  %20028 = vst [vmem:[#allocation53_spill] sm:$0xff] %v16319_v23  ;;  %v3568_v61 = vpop.f32.mrf.mxu0  ;;  %11884 = vmatmul.mubr.msk.bf16.gmra.mxu0 %vm1707_vm1, %v15976_v26 }
 0x2f9   : > { %20031 = vst [vmem:[#allocation224_spill] sm:$0xff] %v16323_v30  ;;  %v4378_v32 = vpop.f32.mrf.mxu1  ;;  %12984 = vmatmul.mubr.msk.bf16.gmra.mxu1 %vm1707_vm1, %v16310_v59  ;;  %v16331_v4 = vadd.f32 %v3568_v61, %v2783_v5  ;;  %5316 = vmatprep.mubr.bf16.mxu0 %v19468_v49  ;;  %v2787_v30 = vadd.f32 %v20038_v56, %v20037_v25  ;;  %v20041_v5 = vld [vmem:[#allocation248_spill] sm:$0xff] }
 0x2fa   : > { %v16334_v27 = vadd.f32 %v4378_v32, %v20035_v36  ;;  %v3570_v44 = vpop.f32.mrf.mxu0  ;;  %v2789_v61 = vadd.f32 %v20041_v5, %v20040_v16 }
 0x2fb   : > { %20034 = vst [vmem:[#allocation54_spill] sm:$0xff] %v16331_v4  ;;  %v4380_v58 = vpop.f32.mrf.mxu1  ;;  %v16339_v8 = vadd.f32 %v3570_v44, %v2785_v63 }
 0x2fc   : > { %20036 = vst [vmem:[#allocation140_spill] sm:$0xff] %v16334_v27  ;;  %v16342_v26 = vadd.f32 %v4380_v58, %v15720_v18  ;;  %v3572_v3 = vpop.f32.mrf.mxu0  ;;  %v20046_v58 = vld [vmem:[#allocation249_spill] sm:$0xff] }
 0x2fd   : > { %v4382_v23 = vpop.f32.mrf.mxu1  ;;  %v16346_v28 = vadd.f32 %v3572_v3, %v2787_v30  ;;  %v20048_v30 = vld [vmem:[#allocation250_spill] sm:$0xff] }
 0x2fe   : > { %20039 = vst [vmem:[#allocation55_spill] sm:$0xff] %v16342_v26  ;;  %v16349_v32 = vadd.f32 %v4382_v23, %v15729_v13  ;;  %v3574_v36 = vpop.f32.mrf.mxu0 }
 0x2ff   : > { %v16351_v27 = vpop.f32.mrf.mxu1  ;;  %v16353_v4 = vadd.f32 %v3574_v36, %v2789_v61 }
 0x300   : > { %20042 = vst [vmem:[#allocation226_spill] sm:$0xff] %v16349_v32  ;;  %20043 = vst [vmem:[#allocation56_spill] sm:$0xff] %v16351_v27  ;;  %v12889_v44 = vpop.f32.mrf.mxu0  ;;  %11885 = vmatmul.mubr.msk.bf16.gmra.mxu0 %vm1707_vm1, %v15986_v34 }
 0x301   : > { %20044 = vst [vmem:[#allocation142_spill] sm:$0xff] %v16353_v4  ;;  %v4388_v63 = vpop.f32.mrf.mxu1  ;;  %v16361_v25 = vadd.f32 %v12889_v44, %v20046_v58  ;;  %5326 = vmatprep.mubr.bf16.mxu0 %v19468_v49  ;;  %v20052_v44 = vld [vmem:[#allocation252_spill] sm:$0xff] }
 0x302   : > { %v16358_v18 = vadd.f32 %v4388_v63, %v15749_v47  ;;  %v4541_v3 = vpop.f32.mrf.mxu0  ;;  %v20050_v47 = vld [vmem:[#allocation251_spill] sm:$0xff] }
 0x303   : > { %v4390_v13 = vpop.f32.mrf.mxu1  ;;  %v16368_v56 = vadd.f32 %v4541_v3, %v20048_v30  ;;  %v20054_v3 = vld [vmem:[#allocation253_spill] sm:$0xff] }
 0x304   : > { %20045 = vst [vmem:[#allocation57_spill] sm:$0xff] %v16358_v18  ;;  %v16365_v23 = vadd.f32 %v4390_v13, %v15759_v54  ;;  %v12890_v5 = vpop.f32.mrf.mxu0 }
 0x305   : > { %v4392_v16 = vpop.f32.mrf.mxu1  ;;  %v16374_v61 = vadd.f32 %v12890_v5, %v20050_v47  ;;  %v20056_v47 = vld [vmem:[#allocation254_spill] sm:$0xff] }
 0x306   : > { %20047 = vst [vmem:[#allocation228_spill] sm:$0xff] %v16365_v23  ;;  %v16371_v34 = vadd.f32 %v4392_v16, %v15769_v24  ;;  %v4544_v63 = vpop.f32.mrf.mxu0 }
 0x307   : > { %v16376_v36 = vpop.f32.mrf.mxu1  ;;  %v16379_v58 = vadd.f32 %v4544_v63, %v20052_v44 }
 0x308   : > { %20049 = vst [vmem:[#allocation58_spill] sm:$0xff] %v16371_v34  ;;  %20051 = vst [vmem:[#allocation144_spill] sm:$0xff] %v16376_v36  ;;  %v12893_v54 = vpop.f32.mrf.mxu0  ;;  %11886 = vmatmul.mubr.msk.bf16.gmra.mxu0 %vm1707_vm1, %v16029_v42 }
 0x309   : > { %v4398_v4 = vpop.f32.mrf.mxu1  ;;  %v16387_v24 = vadd.f32 %v12893_v54, %v20054_v3  ;;  %5336 = vmatprep.mubr.bf16.mxu0 %v19468_v49 }
 0x30a   : > { %v16384_v13 = vadd.f32 %v4398_v4, %v15789_v52  ;;  %v4557_v16 = vpop.f32.mrf.mxu0  ;;  %v20058_v52 = vld [vmem:[#allocation255_spill] sm:$0xff] }
 0x30b   : > { %v4400_v30 = vpop.f32.mrf.mxu1  ;;  %v16394_v63 = vadd.f32 %v4557_v16, %v20056_v47  ;;  %v20062_v16 = vld [vmem:[#allocation257_spill] sm:$0xff] }
 0x30c   : > { %20053 = vst [vmem:[#allocation59_spill] sm:$0xff] %v16384_v13  ;;  %v16391_v5 = vadd.f32 %v4400_v30, %v15805_v22  ;;  %v12894_v34 = vpop.f32.mrf.mxu0  ;;  %v20060_v13 = vld [vmem:[#allocation256_spill] sm:$0xff] }
 0x30d   : > { %v4402_v44 = vpop.f32.mrf.mxu1  ;;  %v16400_v4 = vadd.f32 %v12894_v34, %v20058_v52 }
 0x30e   : > { %20055 = vst [vmem:[#allocation230_spill] sm:$0xff] %v16391_v5  ;;  %v16397_v42 = vadd.f32 %v4402_v44, %v15815_v60  ;;  %v4560_v3 = vpop.f32.mrf.mxu0 }
 0x30f   : > { %v16402_v54 = vpop.f32.mrf.mxu1  ;;  %v16405_v23 = vadd.f32 %v4560_v3, %v20060_v13  ;;  %v20064_v13 = vld [vmem:[#allocation3_spill] sm:$0xff] }
 0x310   : > { %20057 = vst [vmem:[#allocation60_spill] sm:$0xff] %v16397_v42  ;;  %20059 = vst [vmem:[#allocation146_spill] sm:$0xff] %v16402_v54  ;;  %v12897_v22 = vpop.f32.mrf.mxu0  ;;  %11887 = vmatmul.mubr.msk.bf16.gmra.mxu0 %vm1707_vm1, %v16039_v38 }
 0x311   : > { %v4408_v36 = vpop.f32.mrf.mxu1  ;;  %v16413_v60 = vadd.f32 %v12897_v22, %v20062_v16  ;;  %5346 = vmatprep.mubr.bf16.mxu0 %v19468_v49 }
 0x312   : > { %v16410_v30 = vadd.f32 %v4408_v36, %v15842_v48  ;;  %v4573_v47 = vpop.f32.mrf.mxu0  ;;  %v20066_v48 = vld [vmem:[#allocation174_spill] sm:$0xff] }
 0x313   : > { %v4410_v34 = vpop.f32.mrf.mxu1  ;;  %v16420_v52 = vadd.f32 %v4573_v47, %v20064_v13  ;;  %v20070_v47 = vld [vmem:[#allocation90_spill] sm:$0xff] }
 0x314   : > { %20061 = vst [vmem:[#allocation61_spill] sm:$0xff] %v16410_v30  ;;  %v16417_v44 = vadd.f32 %v4410_v34, %v15855_v1  ;;  %v12898_v42 = vpop.f32.mrf.mxu0  ;;  %v20068_v30 = vld [vmem:[#allocation4_spill] sm:$0xff] }
 0x315   : > { %v4412_v3 = vpop.f32.mrf.mxu1  ;;  %v16426_v36 = vadd.f32 %v12898_v42, %v20066_v48 }
 0x316   : > { %20063 = vst [vmem:[#allocation232_spill] sm:$0xff] %v16417_v44  ;;  %v16423_v38 = vadd.f32 %v4412_v3, %v15868_v40  ;;  %v4576_v16 = vpop.f32.mrf.mxu0 }
 0x317   : > { %v16428_v22 = vpop.f32.mrf.mxu1  ;;  %v16431_v54 = vadd.f32 %v4576_v16, %v20068_v30  ;;  %v20072_v30 = vld [vmem:[#allocation5_spill] sm:$0xff] }
 0x318   : > { %20065 = vst [vmem:[#allocation62_spill] sm:$0xff] %v16423_v38  ;;  %20067 = vst [vmem:[#allocation148_spill] sm:$0xff] %v16428_v22  ;;  %v12901_v1 = vpop.f32.mrf.mxu0  ;;  %11888 = vmatmul.mubr.msk.bf16.gmra.mxu0 %vm1707_vm1, %v16082_v39 }
 0x319   : > { %v4418_v5 = vpop.f32.mrf.mxu1  ;;  %v16439_v40 = vadd.f32 %v12901_v1, %v20070_v47  ;;  %5356 = vmatprep.mubr.bf16.mxu0 %v19468_v49 }
 0x31a   : > { %v16436_v34 = vadd.f32 %v4418_v5, %v15895_v57  ;;  %v4589_v13 = vpop.f32.mrf.mxu0  ;;  %v20074_v57 = vld [vmem:[#allocation176_spill] sm:$0xff] }
 0x31b   : > { %v4420_v42 = vpop.f32.mrf.mxu1  ;;  %v16446_v48 = vadd.f32 %v4589_v13, %v20072_v30  ;;  %v20078_v13 = vld [vmem:[#allocation92_spill] sm:$0xff] }
 0x31c   : > { %20069 = vst [vmem:[#allocation63_spill] sm:$0xff] %v16436_v34  ;;  %v16443_v3 = vadd.f32 %v4420_v42, %v15908_v41  ;;  %v12902_v38 = vpop.f32.mrf.mxu0  ;;  %v20076_v34 = vld [vmem:[#allocation6_spill] sm:$0xff] }
 0x31d   : > { %v4422_v16 = vpop.f32.mrf.mxu1  ;;  %v16452_v5 = vadd.f32 %v12902_v38, %v20074_v57 }
 0x31e   : > { %20071 = vst [vmem:[#allocation234_spill] sm:$0xff] %v16443_v3  ;;  %v16449_v39 = vadd.f32 %v4422_v16, %v15921_v9  ;;  %v4592_v47 = vpop.f32.mrf.mxu0 }
 0x31f   : > { %v16454_v1 = vpop.f32.mrf.mxu1  ;;  %v16457_v22 = vadd.f32 %v4592_v47, %v20076_v34  ;;  %v20080_v34 = vld [vmem:[#allocation7_spill] sm:$0xff] }
 0x320   : > { %20073 = vst [vmem:[#allocation64_spill] sm:$0xff] %v16449_v39  ;;  %20075 = vst [vmem:[#allocation150_spill] sm:$0xff] %v16454_v1  ;;  %v12905_v41 = vpop.f32.mrf.mxu0  ;;  %11889 = vmatmul.mubr.msk.bf16.gmra.mxu0 %vm1707_vm1, %v16092_v6 }
 0x321   : > { %v4428_v44 = vpop.f32.mrf.mxu1  ;;  %v16465_v9 = vadd.f32 %v12905_v41, %v20078_v13  ;;  %5366 = vmatprep.mubr.bf16.mxu0 %v19468_v49 }
 0x322   : > { %v16462_v42 = vadd.f32 %v4428_v44, %v15948_v0  ;;  %v4605_v30 = vpop.f32.mrf.mxu0  ;;  %v20082_v0 = vld [vmem:[#allocation178_spill] sm:$0xff] }
 0x323   : > { %v4430_v38 = vpop.f32.mrf.mxu1  ;;  %v16472_v57 = vadd.f32 %v4605_v30, %v20080_v34  ;;  %v20086_v30 = vld [vmem:[#allocation94_spill] sm:$0xff] }
 0x324   : > { %20077 = vst [vmem:[#allocation65_spill] sm:$0xff] %v16462_v42  ;;  %v16469_v16 = vadd.f32 %v4430_v38, %v15967_v10  ;;  %v12906_v39 = vpop.f32.mrf.mxu0  ;;  %v20084_v42 = vld [vmem:[#allocation8_spill] sm:$0xff] }
 0x325   : > { %v4432_v47 = vpop.f32.mrf.mxu1  ;;  %v16478_v44 = vadd.f32 %v12906_v39, %v20082_v0 }
 0x326   : > { %20079 = vst [vmem:[#allocation236_spill] sm:$0xff] %v16469_v16  ;;  %v16475_v6 = vadd.f32 %v4432_v47, %v15980_v35  ;;  %v4608_v13 = vpop.f32.mrf.mxu0 }
 0x327   : > { %v16480_v41 = vpop.f32.mrf.mxu1  ;;  %v16483_v1 = vadd.f32 %v4608_v13, %v20084_v42  ;;  %v20088_v42 = vld [vmem:[#allocation9_spill] sm:$0xff] }
 0x328   : > { %20081 = vst [vmem:[#allocation66_spill] sm:$0xff] %v16475_v6  ;;  %20083 = vst [vmem:[#allocation152_spill] sm:$0xff] %v16480_v41  ;;  %v12909_v10 = vpop.f32.mrf.mxu0  ;;  %11890 = vmatmul.mubr.msk.bf16.gmra.mxu0 %vm1707_vm1, %v16141_v12 }
 0x329   : > { %v4438_v3 = vpop.f32.mrf.mxu1  ;;  %v16491_v35 = vadd.f32 %v12909_v10, %v20086_v30  ;;  %5376 = vmatprep.mubr.bf16.mxu0 %v19468_v49 }
 0x32a   : > { %v16488_v38 = vadd.f32 %v4438_v3, %v16007_v43  ;;  %v4621_v34 = vpop.f32.mrf.mxu0  ;;  %v20090_v43 = vld [vmem:[#allocation180_spill] sm:$0xff] }
 0x32b   : > { %v4440_v39 = vpop.f32.mrf.mxu1  ;;  %v16498_v0 = vadd.f32 %v4621_v34, %v20088_v42  ;;  %v20094_v34 = vld [vmem:[#allocation96_spill] sm:$0xff] }
 0x32c   : > { %20085 = vst [vmem:[#allocation67_spill] sm:$0xff] %v16488_v38  ;;  %v16495_v47 = vadd.f32 %v4440_v39, %v16020_v14  ;;  %v12910_v6 = vpop.f32.mrf.mxu0  ;;  %v20092_v38 = vld [vmem:[#allocation10_spill] sm:$0xff] }
 0x32d   : > { %v4442_v13 = vpop.f32.mrf.mxu1  ;;  %v16504_v3 = vadd.f32 %v12910_v6, %v20090_v43 }
 0x32e   : > { %20087 = vst [vmem:[#allocation238_spill] sm:$0xff] %v16495_v47  ;;  %v16501_v12 = vadd.f32 %v4442_v13, %v16033_v7  ;;  %v4624_v30 = vpop.f32.mrf.mxu0 }
 0x32f   : > { %v16506_v10 = vpop.f32.mrf.mxu1  ;;  %v16509_v41 = vadd.f32 %v4624_v30, %v20092_v38  ;;  %v20096_v38 = vld [vmem:[#allocation11_spill] sm:$0xff] }
 0x330   : > { %20089 = vst [vmem:[#allocation68_spill] sm:$0xff] %v16501_v12  ;;  %20091 = vst [vmem:[#allocation154_spill] sm:$0xff] %v16506_v10  ;;  %v12913_v14 = vpop.f32.mrf.mxu0  ;;  %11891 = vmatmul.mubr.msk.bf16.gmra.mxu0 %vm1707_vm1, %v16151_v51 }
 0x331   : > { %v4448_v16 = vpop.f32.mrf.mxu1  ;;  %v16517_v7 = vadd.f32 %v12913_v14, %v20094_v34  ;;  %5386 = vmatprep.mubr.bf16.mxu0 %v19468_v49 }
 0x332   : > { %v16514_v39 = vadd.f32 %v4448_v16, %v16060_v62  ;;  %v4637_v42 = vpop.f32.mrf.mxu0  ;;  %v20098_v62 = vld [vmem:[#allocation182_spill] sm:$0xff] }
 0x333   : > { %v4450_v6 = vpop.f32.mrf.mxu1  ;;  %v16524_v43 = vadd.f32 %v4637_v42, %v20096_v38  ;;  %v20102_v42 = vld [vmem:[#allocation98_spill] sm:$0xff] }
 0x334   : > { %20093 = vst [vmem:[#allocation69_spill] sm:$0xff] %v16514_v39  ;;  %v16521_v13 = vadd.f32 %v4450_v6, %v16073_v45  ;;  %v12914_v12 = vpop.f32.mrf.mxu0  ;;  %v20100_v39 = vld [vmem:[#allocation12_spill] sm:$0xff] }
 0x335   : > { %v4452_v30 = vpop.f32.mrf.mxu1  ;;  %v16530_v16 = vadd.f32 %v12914_v12, %v20098_v62 }
 0x336   : > { %20095 = vst [vmem:[#allocation241_spill] sm:$0xff] %v16521_v13  ;;  %v16527_v51 = vadd.f32 %v4452_v30, %v16086_v53  ;;  %v4640_v34 = vpop.f32.mrf.mxu0 }
 0x337   : > { %v16532_v14 = vpop.f32.mrf.mxu1  ;;  %v16535_v10 = vadd.f32 %v4640_v34, %v20100_v39  ;;  %v20104_v39 = vld [vmem:[#allocation13_spill] sm:$0xff] }
 0x338   : > { %20097 = vst [vmem:[#allocation70_spill] sm:$0xff] %v16527_v51  ;;  %20099 = vst [vmem:[#allocation156_spill] sm:$0xff] %v16532_v14  ;;  %v12917_v45 = vpop.f32.mrf.mxu0  ;;  %11892 = vmatmul.mubr.msk.bf16.gmra.mxu0 %vm1707_vm1, %v16203_v33 }
 0x339   : > { %v4458_v47 = vpop.f32.mrf.mxu1  ;;  %v16543_v53 = vadd.f32 %v12917_v45, %v20102_v42  ;;  %5396 = vmatprep.mubr.bf16.mxu0 %v19468_v49 }
 0x33a   : > { %v16540_v6 = vadd.f32 %v4458_v47, %v16113_v31  ;;  %v4653_v38 = vpop.f32.mrf.mxu0  ;;  %v20106_v31 = vld [vmem:[#allocation184_spill] sm:$0xff] }
 0x33b   : > { %v4460_v12 = vpop.f32.mrf.mxu1  ;;  %v16550_v62 = vadd.f32 %v4653_v38, %v20104_v39  ;;  %v20110_v38 = vld [vmem:[#allocation100_spill] sm:$0xff] }
 0x33c   : > { %20101 = vst [vmem:[#allocation71_spill] sm:$0xff] %v16540_v6  ;;  %v16547_v30 = vadd.f32 %v4460_v12, %v16132_v20  ;;  %v12918_v51 = vpop.f32.mrf.mxu0  ;;  %v20108_v6 = vld [vmem:[#allocation14_spill] sm:$0xff] }
 0x33d   : > { %v4462_v34 = vpop.f32.mrf.mxu1  ;;  %v16556_v47 = vadd.f32 %v12918_v51, %v20106_v31 }
 0x33e   : > { %20103 = vst [vmem:[#allocation243_spill] sm:$0xff] %v16547_v30  ;;  %v16553_v33 = vadd.f32 %v4462_v34, %v16145_v2  ;;  %v4656_v42 = vpop.f32.mrf.mxu0 }
 0x33f   : > { %v16558_v45 = vpop.f32.mrf.mxu1  ;;  %v16561_v14 = vadd.f32 %v4656_v42, %v20108_v6  ;;  %v20112_v6 = vld [vmem:[#allocation15_spill] sm:$0xff] }
 0x340   : > { %20105 = vst [vmem:[#allocation72_spill] sm:$0xff] %v16553_v33  ;;  %20107 = vst [vmem:[#allocation158_spill] sm:$0xff] %v16558_v45  ;;  %v12921_v20 = vpop.f32.mrf.mxu0  ;;  %11893 = vmatmul.mubr.msk.bf16.gmra.mxu0 %vm1707_vm1, %v16216_v55 }
 0x341   : > { %v4468_v13 = vpop.f32.mrf.mxu1  ;;  %v16569_v2 = vadd.f32 %v12921_v20, %v20110_v38  ;;  %5406 = vmatprep.mubr.bf16.mxu0 %v19468_v49 }
 0x342   : > { %v16566_v12 = vadd.f32 %v4468_v13, %v16178_v50  ;;  %v4669_v39 = vpop.f32.mrf.mxu0  ;;  %v20114_v50 = vld [vmem:[#allocation186_spill] sm:$0xff] }
 0x343   : > { %v4470_v51 = vpop.f32.mrf.mxu1  ;;  %v16576_v31 = vadd.f32 %v4669_v39, %v20112_v6  ;;  %v20118_v39 = vld [vmem:[#allocation17_spill] sm:$0xff] }
 0x344   : > { %20109 = vst [vmem:[#allocation73_spill] sm:$0xff] %v16566_v12  ;;  %v16573_v34 = vadd.f32 %v4470_v51, %v16194_v17  ;;  %v12922_v33 = vpop.f32.mrf.mxu0  ;;  %v20116_v12 = vld [vmem:[#allocation102_spill] sm:$0xff] }
 0x345   : > { %v4472_v42 = vpop.f32.mrf.mxu1  ;;  %v16582_v13 = vadd.f32 %v12922_v33, %v20114_v50 }
 0x346   : > { %20111 = vst [vmem:[#allocation245_spill] sm:$0xff] %v16573_v34  ;;  %v16579_v55 = vadd.f32 %v4472_v42, %v16210_v21  ;;  %v4672_v38 = vpop.f32.mrf.mxu0  ;;  %v20119_v42 = vld [vmem:[#allocation134_spill] sm:$0xff] }
 0x347   : > { %v16584_v20 = vpop.f32.mrf.mxu1  ;;  %v16587_v45 = vadd.f32 %v4672_v38, %v20116_v12  ;;  %v20121_v12 = vld [vmem:[#allocation188_spill] sm:$0xff] }
 0x348   : > { %20113 = vst [vmem:[#allocation74_spill] sm:$0xff] %v16579_v55  ;;  %20115 = vst [vmem:[#allocation160_spill] sm:$0xff] %v16584_v20  ;;  %v12925_v17 = vpop.f32.mrf.mxu0  ;;  %11894 = vmatmul.mubr.msk.bf16.gmra.mxu0 %vm1707_vm1, %v16267_v46 }
 0x349   : > { %v4478_v30 = vpop.f32.mrf.mxu1  ;;  %v16595_v21 = vadd.f32 %v12925_v17, %v20118_v39  ;;  %5416 = vmatprep.mubr.bf16.mxu0 %v19468_v49 }
 0x34a   : > { %v16592_v51 = vadd.f32 %v4478_v30, %v16242_v29  ;;  %v4685_v6 = vpop.f32.mrf.mxu0  ;;  %v20124_v29 = vld [vmem:[#allocation18_spill] sm:$0xff] }
 0x34b   : > { %v4480_v33 = vpop.f32.mrf.mxu1  ;;  %v16602_v38 = vadd.f32 %v4685_v6, %v20121_v12  ;;  %v20129_v6 = vld [vmem:[#allocation51_spill] sm:$0xff]  ;;  %v20131_v12 = vld [vmem:[#allocation20_spill] sm:$0xff] }
 0x34c   : > { %20117 = vst [vmem:[#allocation75_spill] sm:$0xff] %v16592_v51  ;;  %v16599_v50 = vadd.f32 %v4480_v33, %v20119_v42  ;;  %v12926_v20 = vpop.f32.mrf.mxu0  ;;  %v20127_v51 = vld [vmem:[#allocation19_spill] sm:$0xff] }
 0x34d   : > { %20122 = vst [vmem:[#allocation76_spill] sm:$0xff] %v16602_v38  ;;  %v4482_v55 = vpop.f32.mrf.mxu1  ;;  %v16608_v30 = vadd.f32 %v12926_v20, %v20124_v29  ;;  %v20162_v38 = vld [vmem:[#allocation114_spill] sm:$0xff] }
 0x34e   : > { %20120 = vst [vmem:[#allocation247_spill] sm:$0xff] %v16599_v50  ;;  %v16605_v46 = vadd.f32 %v4482_v55, %v16274_v15  ;;  %v4688_v39 = vpop.f32.mrf.mxu0  ;;  %v5808_v50 = vlaneseq }
 0x34f   : > { %20125 = vst [vmem:[#allocation77_spill] sm:$0xff] %v16608_v30  ;;  %v16610_v17 = vpop.f32.mrf.mxu1  ;;  %v16613_v34 = vadd.f32 %v4688_v39, %v20127_v51  ;;  %v20134_v51 = vld [vmem:[#allocation21_spill] sm:$0xff] }
 0x350   : > { %20123 = vst [vmem:[#allocation162_spill] sm:$0xff] %v16605_v46  ;;  %20126 = vst [vmem:[#allocation78_spill] sm:$0xff] %v16610_v17  ;;  %v12929_v33 = vpop.f32.mrf.mxu0  ;;  %11895 = vmatmul.mubr.msk.bf16.gmra.mxu0 %vm1707_vm1, %v16280_v37 }
 0x351   : > { %20128 = vst [vmem:[#allocation163_spill] sm:$0xff] %v16613_v34  ;;  %v4488_v18 = vpop.f32.mrf.mxu1  ;;  %v16621_v15 = vadd.f32 %v12929_v33, %v20131_v12  ;;  %5426 = vmatprep.mubr.bf16.mxu0 %v19468_v49 }
 0x352   : > { %v16618_v42 = vadd.f32 %v4488_v18, %v20129_v6  ;;  %v4701_v20 = vpop.f32.mrf.mxu0  ;;  %v20137_v18 = vld [vmem:[#allocation192_spill] sm:$0xff] }
 0x353   : > { %20132 = vst [vmem:[#allocation164_spill] sm:$0xff] %v16621_v15  ;;  %v4490_v55 = vpop.f32.mrf.mxu1  ;;  %v16628_v39 = vadd.f32 %v4701_v20, %v20134_v51  ;;  %v16643_v20 = vshrl.u32 %v5808_v50, 7  ;;  %v20143_v51 = vld [vmem:[#allocation54_spill] sm:$0xff] }
 0x354   : > { %20130 = vst [vmem:[#allocation79_spill] sm:$0xff] %v16618_v42  ;;  %v16625_v29 = vadd.f32 %v4490_v55, %v16304_v11  ;;  %v12930_v17 = vpop.f32.mrf.mxu0  ;;  %v20140_v42 = vld [vmem:[#allocation108_spill] sm:$0xff] }
 0x355   : > { %20135 = vst [vmem:[#allocation165_spill] sm:$0xff] %v16628_v39  ;;  %v4492_v46 = vpop.f32.mrf.mxu1  ;;  %v16634_v6 = vadd.f32 %v12930_v17, %v20137_v18  ;;  %20142 = vst [vmem:[#allocation83_spill] sm:$0xff] %v16643_v20 }
 0x356   : > { %20133 = vst [vmem:[#allocation80_spill] sm:$0xff] %v16625_v29  ;;  %v16631_v37 = vadd.f32 %v4492_v46, %v16314_v19  ;;  %v4704_v12 = vpop.f32.mrf.mxu0  ;;  %v20145_v19 = vld [vmem:[#allocation194_spill] sm:$0xff] }
 0x357   : > { %20138 = vst [vmem:[#allocation166_spill] sm:$0xff] %v16634_v6  ;;  %v16636_v33 = vpop.f32.mrf.mxu1  ;;  %v16639_v32 = vadd.f32 %v4704_v12, %v20140_v42  ;;  %v20148_v12 = vld [vmem:[#allocation24_spill] sm:$0xff]  ;;  %v20160_v6 = vld [vmem:[#allocation198_spill] sm:$0xff] }
 0x358   : > { %20136 = vst [vmem:[#allocation81_spill] sm:$0xff] %v16631_v37  ;;  %20139 = vst [vmem:[#allocation82_spill] sm:$0xff] %v16636_v33  ;;  %v12933_v55 = vpop.f32.mrf.mxu0  ;;  %11896 = vmatmul.mubr.msk.bf16.gmra.mxu0 %vm1707_vm1, %v16310_v59 }
 0x359   : > { %20141 = vst [vmem:[#allocation167_spill] sm:$0xff] %v16639_v32  ;;  %v4498_v11 = vpop.f32.mrf.mxu1  ;;  %v16649_v46 = vadd.f32 %v12933_v55, %v20145_v19  ;;  %6776 = vmatprep.mubr.bf16.mxu0 %v19468_v49  ;;  %v20151_v55 = vld [vmem:[#allocation110_spill] sm:$0xff] }
 0x35a   : > { %v16646_v29 = vadd.f32 %v4498_v11, %v20143_v51  ;;  %v4717_v18 = vpop.f32.mrf.mxu0  ;;  %v5818_v11 = vsub.s32 2, %v16643_v20 }
 0x35b   : > { %20146 = vst [vmem:[#allocation84_spill] sm:$0xff] %v16649_v46  ;;  %v4500_v17 = vpop.f32.mrf.mxu1  ;;  %v16656_v37 = vadd.f32 %v4717_v18, %v20148_v12  ;;  %v19336_v12 = vsub.s32 1, %v16643_v20 }
 0x35c   : > { %20144 = vst [vmem:[#allocation168_spill] sm:$0xff] %v16646_v29  ;;  %v16653_v42 = vadd.f32 %v4500_v17, %v16339_v8  ;;  %v12934_v59 = vpop.f32.mrf.mxu0  ;;  %v5806_v8 = vld [vmem:[%s19321_s2] sm:$0x7] }
 0x35d   : > { %20149 = vst [vmem:[#allocation85_spill] sm:$0xff] %v16656_v37  ;;  %v4502_v33 = vpop.f32.mrf.mxu1  ;;  %v16664_v19 = vadd.f32 %v12934_v59, %v20151_v55  ;;  %v20156_v37 = vsub.s32 0, %v16643_v20  ;;  %v16679_v59 = vrot.slane %v5806_v8, %v5818_v11  ;;  %v20157_v55 = vld [vmem:[#allocation196_spill] sm:$0xff] }
 0x35e   : > { %20147 = vst [vmem:[#allocation169_spill] sm:$0xff] %v16653_v42  ;;  %v16661_v51 = vadd.f32 %v4502_v33, %v16346_v28  ;;  %v4720_v18 = vpop.f32.mrf.mxu0  ;;  %v20154_v42 = vld [vmem:[#allocation25_spill] sm:$0xff] }
 0x35f   : > { %20152 = vst [vmem:[#allocation86_spill] sm:$0xff] %v16664_v19  ;;  %v16669_v17 = vpop.f32.mrf.mxu1  ;;  %v16673_v29 = vadd.f32 %v4720_v18, %v20154_v42  ;;  %v16677_v28 = vrot.slane %v5806_v8, %v20156_v37  ;;  %v20158_v42 = vld [vmem:[#allocation26_spill] sm:$0xff] }
 0x360   : > { %20150 = vst [vmem:[#allocation170_spill] sm:$0xff] %v16661_v51  ;;  %20153 = vst [vmem:[#allocation171_spill] sm:$0xff] %v16669_v17  ;;  %v5198_v50 = vpop.f32.mrf.mxu0  ;;  %v16685_v17 = vrot.slane %v5806_v8, %v19336_v12 }
 0x361   : > { %20155 = vst [vmem:[#allocation87_spill] sm:$0xff] %v16673_v29  ;;  %v12941_v33 = vpop.f32.mrf.mxu1  ;;  %v5662_v51 = vadd.f32 %v5198_v50, %v20157_v55 }
 0x362   : > { %v5670_v19 = vadd.f32 %v12941_v33, %v16361_v25  ;;  %v5200_v26 = vpop.f32.mrf.mxu0  ;;  %v20159_v33 = vld [vmem:[#allocation112_spill] sm:$0xff] }
 0x363   : > { %v5471_v46 = vpop.f32.mrf.mxu1  ;;  %v5663_v18 = vadd.f32 %v5200_v26, %v20158_v42  ;;  %v5823_v37 = vadd.f32 %v16677_v28, %v5662_v51 }
 0x364   : > { %v5664_v29 = vadd.f32 %v5471_v46, %v16368_v56  ;;  %v5831_v27 = vadd.f32 %v16679_v59, %v5670_v19  ;;  %v5202_v11 = vpop.f32.mrf.mxu0 }
 0x365   : > { %v12942_v32 = vpop.f32.mrf.mxu1  ;;  %v5824_v50 = vadd.f32 %v16685_v17, %v5663_v18  ;;  %v5665_v55 = vadd.f32 %v5202_v11, %v20159_v33  ;;  %v5967_v46 = vmax.f32 %v5823_v37, 0.0  ;;  %v20161_v33 = vld [vmem:[#allocation28_spill] sm:$0xff] }
 0x366   : > { %v5825_v25 = vadd.f32 %v16679_v59, %v5664_v29  ;;  %v5673_v8 = vadd.f32 %v12942_v32, %v16374_v61  ;;  %v5204_v12 = vpop.f32.mrf.mxu0  ;;  %v5975_v51 = vmax.f32 %v5831_v27, 0.0 }
 0x367   : > { %v5474_v20 = vpop.f32.mrf.mxu1  ;;  %v5666_v26 = vadd.f32 %v5204_v12, %v20160_v6  ;;  %v5826_v19 = vadd.f32 %v16677_v28, %v5665_v55  ;;  %v5968_v15 = vmax.f32 %v5824_v50, 0.0 }
 0x368   : > { %v5667_v56 = vadd.f32 %v5474_v20, %v16379_v58  ;;  %v5834_v42 = vadd.f32 %v16679_v59, %v5673_v8  ;;  %v5208_v39 = vpop.f32.mrf.mxu0  ;;  %v5969_v6 = vmax.f32 %v5825_v25, 0.0  ;;  %v20163_v25 = vld [vmem:[#allocation29_spill] sm:$0xff] }
 0x369   : > { %v12945_v18 = vpop.f32.mrf.mxu1  ;;  %v5827_v29 = vadd.f32 %v16685_v17, %v5666_v26  ;;  %v5668_v32 = vadd.f32 %v5208_v39, %v20161_v33  ;;  %v5970_v12 = vmax.f32 %v5826_v19, 0.0 }
 0x36a   : > { %v5828_v11 = vadd.f32 %v16679_v59, %v5667_v56  ;;  %v5682_v61 = vadd.f32 %v12945_v18, %v16387_v24  ;;  %v5978_v58 = vmax.f32 %v5834_v42, 0.0  ;;  %v5210_v20 = vpop.f32.mrf.mxu0 }
 0x36b   : > { %v5487_v27 = vpop.f32.mrf.mxu1  ;;  %v5971_v37 = vmax.f32 %v5827_v29, 0.0  ;;  %v5829_v8 = vadd.f32 %v16677_v28, %v5668_v32  ;;  %v6111_v30 = vpack.c.bf16 %v5970_v12, %v5967_v46  ;;  %v5669_v56 = vadd.f32 %v5210_v20, %v20162_v38 }
 0x36c   : > { %v5972_v55 = vmax.f32 %v5828_v11, 0.0  ;;  %v5843_v34 = vadd.f32 %v16679_v59, %v5682_v61  ;;  %v6116_v26 = vpack.c.bf16 %v5978_v58, %v5975_v51  ;;  %v5676_v39 = vadd.f32 %v5487_v27, %v16394_v63  ;;  %v5212_v33 = vpop.f32.mrf.mxu0  ;;  %v20164_v51 = vld [vmem:[#allocation30_spill] sm:$0xff] }
 0x36d   : > { %v12946_v24 = vpop.f32.mrf.mxu1  ;;  %v5671_v19 = vadd.f32 %v5212_v33, %v20163_v25  ;;  %v5830_v42 = vadd.f32 %v16685_v17, %v5669_v56  ;;  %v6112_v61 = vpack.c.bf16 %v5971_v37, %v5968_v15  ;;  %v5973_v12 = vmax.f32 %v5829_v8, 0.0  ;;  %v20165_v37 = vld [vmem:[#allocation116_spill] sm:$0xff] }
 0x36e   : > { %v6113_v50 = vpack.c.bf16 %v5972_v55, %v5969_v6  ;;  %v5837_v18 = vadd.f32 %v16679_v59, %v5676_v39  ;;  %v5685_v29 = vadd.f32 %v12946_v24, %v16400_v4  ;;  %v5214_v11 = vpop.f32.mrf.mxu0  ;;  %v5987_v6 = vmax.f32 %v5843_v34, 0.0 }
 0x36f   : > { %v5490_v32 = vpop.f32.mrf.mxu1  ;;  %v5832_v46 = vadd.f32 %v16677_v28, %v5671_v19  ;;  %v5672_v38 = vadd.f32 %v5214_v11, %v20164_v51  ;;  %6503 = vmatprep.mubr.bf16.mxu1 %v6112_v61  ;;  %v5974_v39 = vmax.f32 %v5830_v42, 0.0  ;;  %v20166_v61 = vld [vmem:[#allocation31_spill] sm:$0xff] }
 0x370   : > { %v5679_v63 = vadd.f32 %v5490_v32, %v16405_v23  ;;  %6777 = vmatmul.mubr.bf16.vlgmr.msra.gmra.mxu0 %v6113_v50  ;;  %v5846_v58 = vadd.f32 %v16679_v59, %v5685_v29  ;;  %v5218_v20 = vpop.f32.mrf.mxu0  ;;  %6504 = vmatmul.mubr.bf16.vlgmr.msra.gmra.mxu1 %v6111_v30  ;;  %v5981_v23 = vmax.f32 %v5837_v18, 0.0 }
 0x371   : > { %v12949_v27 = vpop.f32.mrf.mxu1  ;;  %6786 = vmatprep.mubr.bf16.mxu0 %v19468_v49  ;;  %v5976_v4 = vmax.f32 %v5832_v46, 0.0  ;;  %v5833_v55 = vadd.f32 %v16685_v17, %v5672_v38  ;;  %v5674_v56 = vadd.f32 %v5218_v20, %v20165_v37  ;;  %v20167_v38 = vld [vmem:[#allocation202_spill] sm:$0xff] }
 0x372   : > { %v5840_v15 = vadd.f32 %v16679_v59, %v5679_v63  ;;  %v5990_v33 = vmax.f32 %v5846_v58, 0.0  ;;  %v5694_v34 = vadd.f32 %v12949_v27, %v16413_v60  ;;  %v5220_v8 = vpop.f32.mrf.mxu0 }
 0x373   : > { %v5503_v24 = vpop.f32.mrf.mxu1  ;;  %v6114_v50 = vpack.c.bf16 %v5976_v4, %v5973_v12  ;;  %v5977_v25 = vmax.f32 %v5833_v55, 0.0  ;;  %v5835_v29 = vadd.f32 %v16677_v28, %v5674_v56  ;;  %v5675_v46 = vadd.f32 %v5220_v8, %v20166_v61  ;;  %v20169_v61 = vld [vmem:[#allocation33_spill] sm:$0xff] }
 0x374   : > { %v5984_v19 = vmax.f32 %v5840_v15, 0.0  ;;  %v16721_v11 = vpack.c.bf16 %v5990_v33, %v5987_v6  ;;  %v5855_v32 = vadd.f32 %v16679_v59, %v5694_v34  ;;  %v5688_v30 = vadd.f32 %v5503_v24, %v16420_v52  ;;  %v5222_v42 = vpop.f32.mrf.mxu0  ;;  %v20168_v15 = vld [vmem:[#allocation118_spill] sm:$0xff] }
 0x375   : > { %v12950_v18 = vpop.f32.mrf.mxu1  ;;  %v5677_v60 = vadd.f32 %v5222_v42, %v20167_v38  ;;  %v5836_v12 = vadd.f32 %v16685_v17, %v5675_v46  ;;  %v6115_v27 = vpack.c.bf16 %v5977_v25, %v5974_v39  ;;  %v5979_v56 = vmax.f32 %v5835_v29, 0.0 }
 0x376   : > { %v6119_v51 = vpack.c.bf16 %v5984_v19, %v5981_v23  ;;  %v5697_v63 = vadd.f32 %v12950_v18, %v16426_v36  ;;  %v5849_v58 = vadd.f32 %v16679_v59, %v5688_v30  ;;  %v5224_v20 = vpop.f32.mrf.mxu0  ;;  %v5999_v23 = vmax.f32 %v5855_v32, 0.0 }
 0x377   : > { %v5506_v6 = vpop.f32.mrf.mxu1  ;;  %v5838_v4 = vadd.f32 %v16677_v28, %v5677_v60  ;;  %v5678_v52 = vadd.f32 %v5224_v20, %v20168_v15  ;;  %6513 = vmatprep.mubr.bf16.mxu1 %v6115_v27  ;;  %v5980_v25 = vmax.f32 %v5836_v12, 0.0 }
 0x378   : > { %v5858_v55 = vadd.f32 %v16679_v59, %v5697_v63  ;;  %v5691_v37 = vadd.f32 %v5506_v6, %v16431_v54  ;;  %6787 = vmatmul.mubr.bf16.gmra.mxu0 %v6116_v26  ;;  %v5228_v36 = vpop.f32.mrf.mxu0  ;;  %6514 = vmatmul.mubr.bf16.gmra.mxu1 %v6114_v50  ;;  %v5993_v19 = vmax.f32 %v5849_v58, 0.0  ;;  %v20170_v63 = vld [vmem:[#allocation204_spill] sm:$0xff] }
 0x379   : > { %v12953_v33 = vpop.f32.mrf.mxu1  ;;  %6796 = vmatprep.mubr.bf16.mxu0 %v19468_v49  ;;  %v5982_v34 = vmax.f32 %v5838_v4, 0.0  ;;  %v5839_v39 = vadd.f32 %v16685_v17, %v5678_v52  ;;  %v5680_v46 = vadd.f32 %v5228_v36, %v20169_v61 }
 0x37a   : > { %v6002_v8 = vmax.f32 %v5858_v55, 0.0  ;;  %v5852_v24 = vadd.f32 %v16679_v59, %v5691_v37  ;;  %v5706_v54 = vadd.f32 %v12953_v33, %v16439_v40  ;;  %v5230_v26 = vpop.f32.mrf.mxu0  ;;  %v20171_v40 = vld [vmem:[#allocation34_spill] sm:$0xff] }
 0x37b   : > { %v5519_v29 = vpop.f32.mrf.mxu1  ;;  %v6117_v32 = vpack.c.bf16 %v5982_v34, %v5979_v56  ;;  %v5983_v42 = vmax.f32 %v5839_v39, 0.0  ;;  %v5841_v38 = vadd.f32 %v16677_v28, %v5680_v46  ;;  %v5681_v20 = vadd.f32 %v5230_v26, %v20170_v63 }
 0x37c   : > { %v16739_v30 = vpack.c.bf16 %v6002_v8, %v5999_v23  ;;  %v5996_v18 = vmax.f32 %v5852_v24, 0.0  ;;  %v5867_v60 = vadd.f32 %v16679_v59, %v5706_v54  ;;  %v5700_v50 = vadd.f32 %v5519_v29, %v16446_v48  ;;  %v5232_v12 = vpop.f32.mrf.mxu0  ;;  %v20172_v48 = vld [vmem:[#allocation35_spill] sm:$0xff]  ;;  %v20173_v29 = vld [vmem:[#allocation206_spill] sm:$0xff] }
 0x37d   : > { %v12954_v58 = vpop.f32.mrf.mxu1  ;;  %v5683_v27 = vadd.f32 %v5232_v12, %v20171_v40  ;;  %v6118_v55 = vpack.c.bf16 %v5983_v42, %v5980_v25  ;;  %v5842_v15 = vadd.f32 %v16685_v17, %v5681_v20  ;;  %v5985_v8 = vmax.f32 %v5841_v38, 0.0 }
 0x37e   : > { %v16745_v6 = vpack.c.bf16 %v5996_v18, %v5993_v19  ;;  %v5709_v4 = vadd.f32 %v12954_v58, %v16452_v5  ;;  %v5861_v52 = vadd.f32 %v16679_v59, %v5700_v50  ;;  %v5234_v37 = vpop.f32.mrf.mxu0  ;;  %v6011_v39 = vmax.f32 %v5867_v60, 0.0 }
 0x37f   : > { %v5522_v56 = vpop.f32.mrf.mxu1  ;;  %v5844_v23 = vadd.f32 %v16677_v28, %v5683_v27  ;;  %v5684_v33 = vadd.f32 %v5234_v37, %v20172_v48  ;;  %6523 = vmatprep.mubr.bf16.mxu1 %v6118_v55  ;;  %v5986_v54 = vmax.f32 %v5842_v15, 0.0 }
 0x380   : > { %v5870_v36 = vadd.f32 %v16679_v59, %v5709_v4  ;;  %v5703_v34 = vadd.f32 %v5522_v56, %v16457_v22  ;;  %6797 = vmatmul.mubr.bf16.gmra.mxu0 %v6119_v51  ;;  %v5238_v5 = vpop.f32.mrf.mxu0  ;;  %6524 = vmatmul.mubr.bf16.gmra.mxu1 %v6117_v32  ;;  %v6005_v26 = vmax.f32 %v5861_v52, 0.0  ;;  %v20174_v32 = vld [vmem:[#allocation36_spill] sm:$0xff] }
 0x381   : > { %v12957_v24 = vpop.f32.mrf.mxu1  ;;  %v5988_v25 = vmax.f32 %v5844_v23, 0.0  ;;  %v5845_v61 = vadd.f32 %v16685_v17, %v5684_v33  ;;  %6806 = vmatprep.mubr.bf16.mxu0 %v19468_v49  ;;  %v5686_v42 = vadd.f32 %v5238_v5, %v20173_v29 }
 0x382   : > { %v6014_v19 = vmax.f32 %v5870_v36, 0.0  ;;  %v5864_v46 = vadd.f32 %v16679_v59, %v5703_v34  ;;  %v5718_v22 = vadd.f32 %v12957_v24, %v16465_v9  ;;  %v5240_v18 = vpop.f32.mrf.mxu0  ;;  %v20175_v9 = vld [vmem:[#allocation122_spill] sm:$0xff] }
 0x383   : > { %v5535_v38 = vpop.f32.mrf.mxu1  ;;  %v6120_v51 = vpack.c.bf16 %v5988_v25, %v5985_v8  ;;  %v5989_v63 = vmax.f32 %v5845_v61, 0.0  ;;  %v5847_v50 = vadd.f32 %v16677_v28, %v5686_v42  ;;  %v5687_v58 = vadd.f32 %v5240_v18, %v20174_v32  ;;  %v20177_v42 = vld [vmem:[#allocation38_spill] sm:$0xff] }
 0x384   : > { %v16760_v60 = vpack.c.bf16 %v6014_v19, %v6011_v39  ;;  %v6008_v20 = vmax.f32 %v5864_v46, 0.0  ;;  %v5879_v12 = vadd.f32 %v16679_v59, %v5718_v22  ;;  %v5712_v40 = vadd.f32 %v5535_v38, %v16472_v57  ;;  %v5242_v27 = vpop.f32.mrf.mxu0  ;;  %v20176_v57 = vld [vmem:[#allocation208_spill] sm:$0xff] }
 0x385   : > { %v12958_v4 = vpop.f32.mrf.mxu1  ;;  %v5689_v15 = vadd.f32 %v5242_v27, %v20175_v9  ;;  %v6121_v37 = vpack.c.bf16 %v5989_v63, %v5986_v54  ;;  %v5848_v56 = vadd.f32 %v16685_v17, %v5687_v58  ;;  %v5991_v5 = vmax.f32 %v5847_v50, 0.0 }
 0x386   : > { %v16766_v55 = vpack.c.bf16 %v6008_v20, %v6005_v26  ;;  %v5721_v52 = vadd.f32 %v12958_v4, %v16478_v44  ;;  %v5873_v23 = vadd.f32 %v16679_v59, %v5712_v40  ;;  %v5244_v36 = vpop.f32.mrf.mxu0  ;;  %v6023_v24 = vmax.f32 %v5879_v12, 0.0 }
 0x387   : > { %v5538_v48 = vpop.f32.mrf.mxu1  ;;  %v5850_v33 = vadd.f32 %v16677_v28, %v5689_v15  ;;  %v5690_v8 = vadd.f32 %v5244_v36, %v20176_v57  ;;  %6533 = vmatprep.mubr.bf16.mxu1 %v6121_v37  ;;  %v5992_v26 = vmax.f32 %v5848_v56, 0.0 }
 0x388   : > { %v5882_v34 = vadd.f32 %v16679_v59, %v5721_v52  ;;  %v5715_v39 = vadd.f32 %v5538_v48, %v16483_v1  ;;  %6807 = vmatmul.mubr.bf16.gmra.mxu0 %v16721_v11  ;;  %v5248_v44 = vpop.f32.mrf.mxu0  ;;  %6534 = vmatmul.mubr.bf16.gmra.mxu1 %v6120_v51  ;;  %v6017_v29 = vmax.f32 %v5873_v23, 0.0  ;;  %v20178_v51 = vld [vmem:[#allocation124_spill] sm:$0xff] }
 0x389   : > { %v12961_v25 = vpop.f32.mrf.mxu1  ;;  %v5994_v19 = vmax.f32 %v5850_v33, 0.0  ;;  %v5851_v46 = vadd.f32 %v16685_v17, %v5690_v8  ;;  %6816 = vmatprep.mubr.bf16.mxu0 %v19468_v49  ;;  %v5692_v1 = vadd.f32 %v5248_v44, %v20177_v42 }
 0x38a   : > { %v6026_v61 = vmax.f32 %v5882_v34, 0.0  ;;  %v5876_v54 = vadd.f32 %v16679_v59, %v5715_v39  ;;  %v5730_v22 = vadd.f32 %v12961_v25, %v16491_v35  ;;  %v5250_v18 = vpop.f32.mrf.mxu0  ;;  %v20179_v35 = vld [vmem:[#allocation39_spill] sm:$0xff] }
 0x38b   : > { %v5551_v38 = vpop.f32.mrf.mxu1  ;;  %v6123_v11 = vpack.c.bf16 %v5994_v19, %v5991_v5  ;;  %v5995_v20 = vmax.f32 %v5851_v46, 0.0  ;;  %v5853_v12 = vadd.f32 %v16677_v28, %v5692_v1  ;;  %v5693_v58 = vadd.f32 %v5250_v18, %v20178_v51 }
 0x38c   : > { %v16782_v63 = vpack.c.bf16 %v6026_v61, %v6023_v24  ;;  %v6020_v50 = vmax.f32 %v5876_v54, 0.0  ;;  %v5891_v32 = vadd.f32 %v16679_v59, %v5730_v22  ;;  %v5724_v40 = vadd.f32 %v5551_v38, %v16498_v0  ;;  %v5252_v27 = vpop.f32.mrf.mxu0  ;;  %v20180_v0 = vld [vmem:[#allocation40_spill] sm:$0xff] }
 0x38d   : > { %v12962_v4 = vpop.f32.mrf.mxu1  ;;  %v5695_v15 = vadd.f32 %v5252_v27, %v20179_v35  ;;  %v6124_v37 = vpack.c.bf16 %v5995_v20, %v5992_v26  ;;  %v5854_v56 = vadd.f32 %v16685_v17, %v5693_v58  ;;  %v5997_v39 = vmax.f32 %v5853_v12, 0.0  ;;  %v20181_v26 = vld [vmem:[#allocation126_spill] sm:$0xff] }
 0x38e   : > { %v16788_v9 = vpack.c.bf16 %v6020_v50, %v6017_v29  ;;  %v5733_v52 = vadd.f32 %v12962_v4, %v16504_v3  ;;  %v5885_v23 = vadd.f32 %v16679_v59, %v5724_v40  ;;  %v5254_v36 = vpop.f32.mrf.mxu0  ;;  %v6035_v5 = vmax.f32 %v5891_v32, 0.0 }
 0x38f   : > { %v5554_v48 = vpop.f32.mrf.mxu1  ;;  %v5856_v33 = vadd.f32 %v16677_v28, %v5695_v15  ;;  %v5696_v57 = vadd.f32 %v5254_v36, %v20180_v0  ;;  %6543 = vmatprep.mubr.bf16.mxu1 %v6124_v37  ;;  %v5998_v46 = vmax.f32 %v5854_v56, 0.0 }
 0x390   : > { %v5894_v34 = vadd.f32 %v16679_v59, %v5733_v52  ;;  %v5727_v8 = vadd.f32 %v5554_v48, %v16509_v41  ;;  %6817 = vmatmul.mubr.bf16.gmra.mxu0 %v16745_v6  ;;  %v5258_v3 = vpop.f32.mrf.mxu0  ;;  %6544 = vmatmul.mubr.bf16.gmra.mxu1 %v6123_v11  ;;  %v6029_v54 = vmax.f32 %v5885_v23, 0.0  ;;  %v20182_v11 = vld [vmem:[#allocation41_spill] sm:$0xff] }
 0x391   : > { %v12965_v24 = vpop.f32.mrf.mxu1  ;;  %v6000_v44 = vmax.f32 %v5856_v33, 0.0  ;;  %v5857_v19 = vadd.f32 %v16685_v17, %v5696_v57  ;;  %6826 = vmatprep.mubr.bf16.mxu0 %v19468_v49  ;;  %v5698_v41 = vadd.f32 %v5258_v3, %v20181_v26 }
 0x392   : > { %v6038_v25 = vmax.f32 %v5894_v34, 0.0  ;;  %v5888_v61 = vadd.f32 %v16679_v59, %v5727_v8  ;;  %v5742_v29 = vadd.f32 %v12965_v24, %v16517_v7  ;;  %v5260_v42 = vpop.f32.mrf.mxu0  ;;  %v20183_v7 = vld [vmem:[#allocation212_spill] sm:$0xff] }
 0x393   : > { %v5567_v1 = vpop.f32.mrf.mxu1  ;;  %v6126_v6 = vpack.c.bf16 %v6000_v44, %v5997_v39  ;;  %v6001_v18 = vmax.f32 %v5857_v19, 0.0  ;;  %v5859_v20 = vadd.f32 %v16677_v28, %v5698_v41  ;;  %v5699_v12 = vadd.f32 %v5260_v42, %v20182_v11 }
 0x394   : > { %v16804_v22 = vpack.c.bf16 %v6038_v25, %v6035_v5  ;;  %v6032_v38 = vmax.f32 %v5888_v61, 0.0  ;;  %v5903_v50 = vadd.f32 %v16679_v59, %v5742_v29  ;;  %v5736_v32 = vadd.f32 %v5567_v1, %v16524_v43  ;;  %v5262_v51 = vpop.f32.mrf.mxu0  ;;  %v20184_v43 = vld [vmem:[#allocation128_spill] sm:$0xff]  ;;  %v20185_v25 = vld [vmem:[#allocation43_spill] sm:$0xff]  ;;  %v20186_v1 = vld [vmem:[#allocation214_spill] sm:$0xff] }
 0x395   : > { %v12966_v58 = vpop.f32.mrf.mxu1  ;;  %v5701_v27 = vadd.f32 %v5262_v51, %v20183_v7  ;;  %v6127_v35 = vpack.c.bf16 %v6001_v18, %v5998_v46  ;;  %v5860_v15 = vadd.f32 %v16685_v17, %v5699_v12  ;;  %v6003_v34 = vmax.f32 %v5859_v20, 0.0 }
 0x396   : > { %v16810_v40 = vpack.c.bf16 %v6032_v38, %v6029_v54  ;;  %v5745_v4 = vadd.f32 %v12966_v58, %v16530_v16  ;;  %v5897_v52 = vadd.f32 %v16679_v59, %v5736_v32  ;;  %v5264_v37 = vpop.f32.mrf.mxu0  ;;  %v6047_v0 = vmax.f32 %v5903_v50, 0.0 }
 0x397   : > { %v5570_v56 = vpop.f32.mrf.mxu1  ;;  %v5862_v23 = vadd.f32 %v16677_v28, %v5701_v27  ;;  %v5702_v48 = vadd.f32 %v5264_v37, %v20184_v43  ;;  %6553 = vmatprep.mubr.bf16.mxu1 %v6127_v35  ;;  %v6004_v24 = vmax.f32 %v5860_v15, 0.0  ;;  %v20189_v37 = vld [vmem:[#allocation16_spill] sm:$0xff] }
 0x398   : > { %v5906_v36 = vadd.f32 %v16679_v59, %v5745_v4  ;;  %v5739_v33 = vadd.f32 %v5570_v56, %v16535_v10  ;;  %6827 = vmatmul.mubr.bf16.gmra.mxu0 %v16739_v30  ;;  %v5268_v16 = vpop.f32.mrf.mxu0  ;;  %6554 = vmatmul.mubr.bf16.gmra.mxu1 %v6126_v6  ;;  %v6041_v44 = vmax.f32 %v5897_v52, 0.0  ;;  %v20190_v56 = vld [vmem:[#allocation47_spill] sm:$0xff] }
 0x399   : > { %v12969_v57 = vpop.f32.mrf.mxu1  ;;  %v6006_v8 = vmax.f32 %v5862_v23, 0.0  ;;  %v5863_v5 = vadd.f32 %v16685_v17, %v5702_v48  ;;  %6836 = vmatprep.mubr.bf16.mxu0 %v19468_v49  ;;  %v5704_v10 = vadd.f32 %v5268_v16, %v20185_v25  ;;  %v4784_v23 = vadd.f32 %v20190_v56, %v20189_v37 }
 0x39a   : > { %v6050_v39 = vmax.f32 %v5906_v36, 0.0  ;;  %v5900_v3 = vadd.f32 %v16679_v59, %v5739_v33  ;;  %v5754_v19 = vadd.f32 %v12969_v57, %v16543_v53  ;;  %v5270_v61 = vpop.f32.mrf.mxu0  ;;  %v20187_v53 = vld [vmem:[#allocation44_spill] sm:$0xff] }
 0x39b   : > { %v5583_v46 = vpop.f32.mrf.mxu1  ;;  %v6129_v30 = vpack.c.bf16 %v6006_v8, %v6003_v34  ;;  %v6007_v26 = vmax.f32 %v5863_v5, 0.0  ;;  %v5865_v29 = vadd.f32 %v16677_v28, %v5704_v10  ;;  %v5705_v6 = vadd.f32 %v5270_v61, %v20186_v1  ;;  %v20191_v8 = vld [vmem:[#allocation216_spill] sm:$0xff] }
 0x39c   : > { %v16826_v54 = vpack.c.bf16 %v6050_v39, %v6047_v0  ;;  %v6044_v41 = vmax.f32 %v5900_v3, 0.0  ;;  %v5915_v42 = vadd.f32 %v16679_v59, %v5754_v19  ;;  %v5748_v18 = vadd.f32 %v5583_v46, %v16550_v62  ;;  %v5272_v38 = vpop.f32.mrf.mxu0  ;;  %v20188_v62 = vld [vmem:[#allocation45_spill] sm:$0xff]  ;;  %v20192_v46 = vld [vmem:[#allocation46_spill] sm:$0xff] }
 0x39d   : > { %v12970_v20 = vpop.f32.mrf.mxu1  ;;  %v5707_v11 = vadd.f32 %v5272_v38, %v20187_v53  ;;  %v6130_v32 = vpack.c.bf16 %v6007_v26, %v6004_v24  ;;  %v5866_v51 = vadd.f32 %v16685_v17, %v5705_v6 }
 0x39e   : > { %v16832_v50 = vpack.c.bf16 %v6044_v41, %v6041_v44  ;;  %v5757_v12 = vadd.f32 %v12970_v20, %v16556_v47  ;;  %v5909_v58 = vadd.f32 %v16679_v59, %v5748_v18  ;;  %v5274_v7 = vpop.f32.mrf.mxu0  ;;  %v6009_v47 = vmax.f32 %v5865_v29, 0.0 }
 0x39f   : > { %v5586_v27 = vpop.f32.mrf.mxu1  ;;  %v5868_v4 = vadd.f32 %v16677_v28, %v5707_v11  ;;  %v5708_v15 = vadd.f32 %v5274_v7, %v20188_v62  ;;  %6563 = vmatprep.mubr.bf16.mxu1 %v6130_v32  ;;  %v6059_v36 = vmax.f32 %v5915_v42, 0.0  ;;  %v20195_v7 = vld [vmem:[#allocation50_spill] sm:$0xff] }
 0x3a0   : > { %v5918_v35 = vadd.f32 %v16679_v59, %v5757_v12  ;;  %v5751_v52 = vadd.f32 %v5586_v27, %v16561_v14  ;;  %6837 = vmatmul.mubr.bf16.gmra.mxu0 %v16766_v55  ;;  %v5278_v43 = vpop.f32.mrf.mxu0  ;;  %6564 = vmatmul.mubr.bf16.gmra.mxu1 %v6129_v30  ;;  %v6010_v14 = vmax.f32 %v5866_v51, 0.0  ;;  %v6053_v57 = vmax.f32 %v5909_v58, 0.0  ;;  %v20194_v58 = vld [vmem:[#allocation104_spill] sm:$0xff] }
 0x3a1   : > { %v12973_v48 = vpop.f32.mrf.mxu1  ;;  %v6012_v33 = vmax.f32 %v5868_v4, 0.0  ;;  %v5869_v0 = vadd.f32 %v16685_v17, %v5708_v15  ;;  %6846 = vmatprep.mubr.bf16.mxu0 %v19468_v49  ;;  %v5710_v39 = vadd.f32 %v5278_v43, %v20191_v8  ;;  %v4790_v27 = vadd.f32 %v20195_v7, %v20194_v58  ;;  %v20197_v8 = vld [vmem:[#allocation49_spill] sm:$0xff] }
 0x3a2   : > { %v6062_v34 = vmax.f32 %v5918_v35, 0.0  ;;  %v5912_v16 = vadd.f32 %v16679_v59, %v5751_v52  ;;  %v5766_v5 = vadd.f32 %v12973_v48, %v16569_v2  ;;  %v5280_v3 = vpop.f32.mrf.mxu0  ;;  %v20193_v2 = vld [vmem:[#allocation132_spill] sm:$0xff] }
 0x3a3   : > { %v5599_v24 = vpop.f32.mrf.mxu1  ;;  %v6132_v55 = vpack.c.bf16 %v6012_v33, %v6009_v47  ;;  %v6013_v25 = vmax.f32 %v5869_v0, 0.0  ;;  %v5871_v19 = vadd.f32 %v16677_v28, %v5710_v39  ;;  %v5711_v30 = vadd.f32 %v5280_v3, %v20192_v46  ;;  %v20196_v47 = vld [vmem:[#allocation48_spill] sm:$0xff] }
 0x3a4   : > { %v16850_v44 = vpack.c.bf16 %v6062_v34, %v6059_v36  ;;  %v6056_v10 = vmax.f32 %v5912_v16, 0.0  ;;  %v5927_v61 = vadd.f32 %v16679_v59, %v5766_v5  ;;  %v5760_v26 = vadd.f32 %v5599_v24, %v16576_v31  ;;  %v5282_v41 = vpop.f32.mrf.mxu0  ;;  %v20198_v5 = vld [vmem:[#allocation76_spill] sm:$0xff] }
 0x3a5   : > { %v12974_v29 = vpop.f32.mrf.mxu1  ;;  %v5713_v1 = vadd.f32 %v5282_v41, %v20193_v2  ;;  %v6133_v18 = vpack.c.bf16 %v6013_v25, %v6010_v14  ;;  %v5872_v38 = vadd.f32 %v16685_v17, %v5711_v30  ;;  %v6015_v4 = vmax.f32 %v5871_v19, 0.0  ;;  %v20200_v19 = vld [vmem:[#allocation77_spill] sm:$0xff] }
 0x3a6   : > { %v16856_v42 = vpack.c.bf16 %v6056_v10, %v6053_v57  ;;  %v5769_v6 = vadd.f32 %v12974_v29, %v16582_v13  ;;  %v5921_v20 = vadd.f32 %v16679_v59, %v5760_v26  ;;  %v5284_v53 = vpop.f32.mrf.mxu0  ;;  %v6071_v13 = vmax.f32 %v5927_v61, 0.0 }
 0x3a7   : > { %v5602_v11 = vpop.f32.mrf.mxu1  ;;  %v5874_v12 = vadd.f32 %v16677_v28, %v5713_v1  ;;  %v5714_v31 = vadd.f32 %v5284_v53, %v4784_v23  ;;  %6573 = vmatprep.mubr.bf16.mxu1 %v6133_v18  ;;  %v20201_v18 = vld [vmem:[#allocation163_spill] sm:$0xff]  ;;  %v20203_v53 = vld [vmem:[#allocation53_spill] sm:$0xff] }
 0x3a8   : > { %v5930_v32 = vadd.f32 %v16679_v59, %v5769_v6  ;;  %v5763_v51 = vadd.f32 %v5602_v11, %v16587_v45  ;;  %6847 = vmatmul.mubr.bf16.gmra.mxu0 %v16760_v60  ;;  %v5288_v35 = vpop.f32.mrf.mxu0  ;;  %6574 = vmatmul.mubr.bf16.gmra.mxu1 %v6132_v55  ;;  %v6016_v45 = vmax.f32 %v5872_v38, 0.0  ;;  %v6065_v23 = vmax.f32 %v5921_v20, 0.0  ;;  %v20202_v20 = vld [vmem:[#allocation22_spill] sm:$0xff] }
 0x3a9   : > { %v12977_v62 = vpop.f32.mrf.mxu1  ;;  %v6018_v15 = vmax.f32 %v5874_v12, 0.0  ;;  %v5875_v37 = vadd.f32 %v16685_v17, %v5714_v31  ;;  %6856 = vmatprep.mubr.bf16.mxu0 %v19468_v49  ;;  %v5716_v36 = vadd.f32 %v5288_v35, %v20196_v47  ;;  %v4796_v11 = vadd.f32 %v20203_v53, %v20202_v20 }
 0x3aa   : > { %v6074_v52 = vmax.f32 %v5930_v32, 0.0  ;;  %v5924_v56 = vadd.f32 %v16679_v59, %v5763_v51  ;;  %v5778_v43 = vadd.f32 %v12977_v62, %v16595_v21  ;;  %v5290_v48 = vpop.f32.mrf.mxu0  ;;  %v20199_v21 = vld [vmem:[#allocation220_spill] sm:$0xff]  ;;  %v20204_v62 = vld [vmem:[#allocation222_spill] sm:$0xff] }
 0x3ab   : > { %v5615_v33 = vpop.f32.mrf.mxu1  ;;  %v6135_v60 = vpack.c.bf16 %v6018_v15, %v6015_v4  ;;  %v6019_v0 = vmax.f32 %v5875_v37, 0.0  ;;  %v5877_v14 = vadd.f32 %v16677_v28, %v5716_v36  ;;  %v5717_v39 = vadd.f32 %v5290_v48, %v20197_v8 }
 0x3ac   : > { %v16873_v34 = vpack.c.bf16 %v6074_v52, %v6071_v13  ;;  %v6068_v16 = vmax.f32 %v5924_v56, 0.0  ;;  %v5939_v57 = vadd.f32 %v16679_v59, %v5778_v43  ;;  %v5772_v3 = vadd.f32 %v5615_v33, %v20198_v5  ;;  %v5292_v24 = vpop.f32.mrf.mxu0  ;;  %v20205_v52 = vld [vmem:[#allocation164_spill] sm:$0xff] }
 0x3ad   : > { %v12978_v55 = vpop.f32.mrf.mxu1  ;;  %v5719_v10 = vadd.f32 %v5292_v24, %v20199_v21  ;;  %v6136_v46 = vpack.c.bf16 %v6019_v0, %v6016_v45  ;;  %v5878_v30 = vadd.f32 %v16685_v17, %v5717_v39  ;;  %v6021_v12 = vmax.f32 %v5877_v14, 0.0  ;;  %v20206_v33 = vld [vmem:[#allocation52_spill] sm:$0xff]  ;;  %v20207_v0 = vld [vmem:[#allocation165_spill] sm:$0xff]  ;;  %v20208_v39 = vld [vmem:[#allocation138_spill] sm:$0xff] }
 0x3ae   : > { %v16879_v25 = vpack.c.bf16 %v6068_v16, %v6065_v23  ;;  %v5781_v61 = vadd.f32 %v12978_v55, %v20200_v19  ;;  %v5933_v26 = vadd.f32 %v16679_v59, %v5772_v3  ;;  %v5294_v41 = vpop.f32.mrf.mxu0  ;;  %v6083_v32 = vmax.f32 %v5939_v57, 0.0  ;;  %v20209_v3 = vld [vmem:[#allocation166_spill] sm:$0xff] }
 0x3af   : > { %v5618_v29 = vpop.f32.mrf.mxu1  ;;  %v5880_v2 = vadd.f32 %v16677_v28, %v5719_v10  ;;  %v5720_v6 = vadd.f32 %v5294_v41, %v4790_v27  ;;  %6583 = vmatprep.mubr.bf16.mxu1 %v6136_v46  ;;  %v6022_v27 = vmax.f32 %v5878_v30, 0.0  ;;  %v20210_v41 = vld [vmem:[#allocation167_spill] sm:$0xff] }
 0x3b0   : > { %v5942_v1 = vadd.f32 %v16679_v59, %v5781_v61  ;;  %v5775_v38 = vadd.f32 %v5618_v29, %v20201_v18  ;;  %6857 = vmatmul.mubr.bf16.gmra.mxu0 %v16788_v9  ;;  %v5298_v31 = vpop.f32.mrf.mxu0  ;;  %6584 = vmatmul.mubr.bf16.gmra.mxu1 %v6135_v60  ;;  %v6077_v35 = vmax.f32 %v5933_v26, 0.0 }
 0x3b1   : > { %v12981_v51 = vpop.f32.mrf.mxu1  ;;  %v6024_v58 = vmax.f32 %v5880_v2, 0.0  ;;  %v5881_v4 = vadd.f32 %v16685_v17, %v5720_v6  ;;  %6866 = vmatprep.mubr.bf16.mxu0 %v19468_v49  ;;  %v5722_v15 = vadd.f32 %v5298_v31, %v20204_v62  ;;  %v20211_v2 = vld [vmem:[#allocation239_spill] sm:$0xff] }
 0x3b2   : > { %v6086_v7 = vmax.f32 %v5942_v1, 0.0  ;;  %v5936_v13 = vadd.f32 %v16679_v59, %v5775_v38  ;;  %v5790_v37 = vadd.f32 %v12981_v51, %v20205_v52  ;;  %v5300_v56 = vpop.f32.mrf.mxu0  ;;  %v20212_v1 = vld [vmem:[#allocation56_spill] sm:$0xff] }
 0x3b3   : > { %v5631_v45 = vpop.f32.mrf.mxu1  ;;  %v6138_v9 = vpack.c.bf16 %v6024_v58, %v6021_v12  ;;  %v6025_v47 = vmax.f32 %v5881_v4, 0.0  ;;  %v5883_v43 = vadd.f32 %v16677_v28, %v5722_v15  ;;  %v5723_v60 = vadd.f32 %v5300_v56, %v20206_v33 }
 0x3b4   : > { %v16896_v23 = vpack.c.bf16 %v6086_v7, %v6083_v32  ;;  %v6080_v36 = vmax.f32 %v5936_v13, 0.0  ;;  %v5951_v48 = vadd.f32 %v16679_v59, %v5790_v37  ;;  %v5784_v16 = vadd.f32 %v5631_v45, %v20207_v0  ;;  %v5302_v14 = vpop.f32.mrf.mxu0  ;;  %v20213_v7 = vld [vmem:[#allocation140_spill] sm:$0xff]  ;;  %v20217_v0 = vld [vmem:[#allocation226_spill] sm:$0xff] }
 0x3b5   : > { %v12982_v57 = vpop.f32.mrf.mxu1  ;;  %v5725_v5 = vadd.f32 %v5302_v14, %v20208_v39  ;;  %v6139_v55 = vpack.c.bf16 %v6025_v47, %v6022_v27  ;;  %v5884_v21 = vadd.f32 %v16685_v17, %v5723_v60  ;;  %v4802_v6 = vadd.f32 %v20212_v1, %v20211_v2  ;;  %v20214_v13 = vld [vmem:[#allocation84_spill] sm:$0xff]  ;;  %v20218_v14 = vld [vmem:[#allocation86_spill] sm:$0xff] }
 0x3b6   : > { %v16902_v8 = vpack.c.bf16 %v6080_v36, %v6077_v35  ;;  %v5793_v24 = vadd.f32 %v12982_v57, %v20209_v3  ;;  %v5945_v10 = vadd.f32 %v16679_v59, %v5784_v16  ;;  %v5304_v19 = vpop.f32.mrf.mxu0  ;;  %v6027_v18 = vmax.f32 %v5883_v43, 0.0  ;;  %v20216_v36 = vld [vmem:[#allocation85_spill] sm:$0xff] }
 0x3b7   : > { %v5634_v61 = vpop.f32.mrf.mxu1  ;;  %v5886_v46 = vadd.f32 %v16677_v28, %v5725_v5  ;;  %v5726_v26 = vadd.f32 %v5304_v19, %v4796_v11  ;;  %6593 = vmatprep.mubr.bf16.mxu1 %v6139_v55  ;;  %v6095_v38 = vmax.f32 %v5951_v48, 0.0  ;;  %v6028_v11 = vmax.f32 %v5884_v21, 0.0 }
 0x3b8   : > { %v5954_v30 = vadd.f32 %v16679_v59, %v5793_v24  ;;  %v5787_v29 = vadd.f32 %v5634_v61, %v20210_v41  ;;  %6867 = vmatmul.mubr.bf16.gmra.mxu0 %v16782_v63  ;;  %v5308_v20 = vpop.f32.mrf.mxu0  ;;  %6594 = vmatmul.mubr.bf16.gmra.mxu1 %v6138_v9  ;;  %v6089_v58 = vmax.f32 %v5945_v10, 0.0  ;;  %v20215_v9 = vld [vmem:[#allocation55_spill] sm:$0xff] }
 0x3b9   : > { %v12985_v53 = vpop.f32.mrf.mxu1  ;;  %v6030_v12 = vmax.f32 %v5886_v46, 0.0  ;;  %v5887_v31 = vadd.f32 %v16685_v17, %v5726_v26  ;;  %6876 = vmatprep.mubr.bf16.mxu0 %v19468_v49  ;;  %v5728_v4 = vadd.f32 %v5308_v20, %v20213_v7  ;;  %v20219_v61 = vld [vmem:[#allocation87_spill] sm:$0xff] }
 0x3ba   : > { %v6098_v32 = vmax.f32 %v5954_v30, 0.0  ;;  %v5948_v51 = vadd.f32 %v16679_v59, %v5787_v29  ;;  %v5802_v27 = vadd.f32 %v12985_v53, %v20214_v13  ;;  %v5310_v35 = vpop.f32.mrf.mxu0 }
 0x3bb   : > { %v5647_v62 = vpop.f32.mrf.mxu1  ;;  %v6141_v63 = vpack.c.bf16 %v6030_v12, %v6027_v18  ;;  %v6031_v52 = vmax.f32 %v5887_v31, 0.0  ;;  %v5889_v56 = vadd.f32 %v16677_v28, %v5728_v4  ;;  %v5729_v47 = vadd.f32 %v5310_v35, %v20215_v9  ;;  %v20223_v4 = vld [vmem:[#allocation228_spill] sm:$0xff] }
 0x3bc   : > { %v16919_v15 = vpack.c.bf16 %v6098_v32, %v6095_v38  ;;  %v6092_v37 = vmax.f32 %v5948_v51, 0.0  ;;  %v5963_v45 = vadd.f32 %v16679_v59, %v5802_v27  ;;  %v5796_v43 = vadd.f32 %v5647_v62, %v20216_v36  ;;  %v5312_v48 = vpop.f32.mrf.mxu0  ;;  %v20224_v62 = vld [vmem:[#allocation58_spill] sm:$0xff] }
 0x3bd   : > { %v12986_v33 = vpop.f32.mrf.mxu1  ;;  %v5731_v16 = vadd.f32 %v5312_v48, %v20217_v0  ;;  %v6142_v39 = vpack.c.bf16 %v6031_v52, %v6028_v11  ;;  %v5890_v5 = vadd.f32 %v16685_v17, %v5729_v47  ;;  %v6033_v30 = vmax.f32 %v5889_v56, 0.0  ;;  %v20221_v11 = vld [vmem:[#allocation27_spill] sm:$0xff] }
 0x3be   : > { %v16925_v60 = vpack.c.bf16 %v6092_v37, %v6089_v58  ;;  %v5805_v57 = vadd.f32 %v12986_v33, %v20218_v14  ;;  %v5957_v3 = vadd.f32 %v16679_v59, %v5796_v43  ;;  %v5314_v24 = vpop.f32.mrf.mxu0  ;;  %v6107_v26 = vmax.f32 %v5963_v45, 0.0  ;;  %v20222_v58 = vld [vmem:[#allocation144_spill] sm:$0xff]  ;;  %v20225_v33 = vld [vmem:[#allocation59_spill] sm:$0xff] }
 0x3bf   : > { %v5650_v55 = vpop.f32.mrf.mxu1  ;;  %v5892_v21 = vadd.f32 %v16677_v28, %v5731_v16  ;;  %v5732_v19 = vadd.f32 %v5314_v24, %v4802_v6  ;;  %6603 = vmatprep.mubr.bf16.mxu1 %v6142_v39  ;;  %v6034_v38 = vmax.f32 %v5890_v5, 0.0  ;;  %v20220_v6 = vld [vmem:[#allocation57_spill] sm:$0xff]  ;;  %v4808_v7 = vadd.f32 %v20222_v58, %v20221_v11  ;;  %v20226_v5 = vld [vmem:[#allocation230_spill] sm:$0xff] }
 0x3c0   : > { %v5966_v10 = vadd.f32 %v16679_v59, %v5805_v57  ;;  %v5799_v46 = vadd.f32 %v5650_v55, %v20219_v61  ;;  %6877 = vmatmul.mubr.bf16.gmra.mxu0 %v16810_v40  ;;  %v5318_v41 = vpop.f32.mrf.mxu0  ;;  %6604 = vmatmul.mubr.bf16.gmra.mxu1 %v6141_v63  ;;  %v6101_v20 = vmax.f32 %v5957_v3, 0.0  ;;  %v20227_v55 = vld [vmem:[#allocation200_spill] sm:$0xff] }
 0x3c1   : > { %v6036_v29 = vmax.f32 %v5892_v21, 0.0  ;;  %v5893_v1 = vadd.f32 %v16685_v17, %v5732_v19  ;;  %6886 = vmatprep.mubr.bf16.mxu0 %v19468_v49  ;;  %v5734_v53 = vadd.f32 %v5318_v41, %v20220_v6  ;;  %v20228_v21 = vld [vmem:[#allocation146_spill] sm:$0xff]  ;;  %v20229_v19 = vld [vmem:[#allocation60_spill] sm:$0xff] }
 0x3c2   : > { %v6110_v2 = vmax.f32 %v5966_v10, 0.0  ;;  %v5960_v18 = vadd.f32 %v16679_v59, %v5799_v46  ;;  %v5320_v12 = vpop.f32.mrf.mxu0 }
 0x3c3   : > { %v6144_v32 = vpack.c.bf16 %v6036_v29, %v6033_v30  ;;  %v6037_v51 = vmax.f32 %v5893_v1, 0.0  ;;  %v5735_v13 = vadd.f32 %v5320_v12, %v20223_v4  ;;  %v5895_v35 = vadd.f32 %v16677_v28, %v5734_v53  ;;  %v20233_v4 = vld [vmem:[#allocation148_spill] sm:$0xff] }
 0x3c4   : > { %v16939_v31 = vpack.c.bf16 %v6110_v2, %v6107_v26  ;;  %v6104_v40 = vmax.f32 %v5960_v18, 0.0  ;;  %v5322_v27 = vpop.f32.mrf.mxu0 }
 0x3c5   : > { %v5737_v63 = vadd.f32 %v5322_v27, %v20224_v62  ;;  %v6145_v52 = vpack.c.bf16 %v6037_v51, %v6034_v38  ;;  %v5896_v56 = vadd.f32 %v16685_v17, %v5735_v13  ;;  %v6039_v36 = vmax.f32 %v5895_v35, 0.0  ;;  %v20234_v27 = vld [vmem:[#allocation62_spill] sm:$0xff] }
 0x3c6   : > { %v16944_v59 = vpack.c.bf16 %v6104_v40, %v6101_v20  ;;  %v5324_v37 = vpop.f32.mrf.mxu0  ;;  %v20230_v20 = vld [vmem:[#allocation61_spill] sm:$0xff]  ;;  %v20231_v40 = vld [vmem:[#allocation232_spill] sm:$0xff] }
 0x3c7   : > { %v5898_v45 = vadd.f32 %v16677_v28, %v5737_v63  ;;  %v5738_v9 = vadd.f32 %v5324_v37, %v4808_v7  ;;  %6613 = vmatprep.mubr.bf16.mxu1 %v6145_v52  ;;  %v6040_v14 = vmax.f32 %v5896_v56, 0.0  ;;  %v20232_v7 = vld [vmem:[#allocation32_spill] sm:$0xff] }
 0x3c8   : > { %6887 = vmatmul.mubr.bf16.gmra.mxu0 %v16804_v22  ;;  %v5328_v47 = vpop.f32.mrf.mxu0  ;;  %6614 = vmatmul.mubr.bf16.gmra.mxu1 %v6144_v32  ;;  %v4814_v22 = vadd.f32 %v20228_v21, %v20227_v55  ;;  %v20239_v21 = vld [vmem:[#allocation64_spill] sm:$0xff] }
 0x3c9   : > { %v6042_v43 = vmax.f32 %v5898_v45, 0.0  ;;  %v5899_v48 = vadd.f32 %v16685_v17, %v5738_v9  ;;  %v5740_v0 = vadd.f32 %v5328_v47, %v20225_v33  ;;  %6896 = vmatprep.mubr.bf16.mxu0 %v19468_v49 }
 0x3ca   : > { %v5330_v16 = vpop.f32.mrf.mxu0 }
 0x3cb   : > { %v6147_v57 = vpack.c.bf16 %v6042_v43, %v6039_v36  ;;  %v6043_v39 = vmax.f32 %v5899_v48, 0.0  ;;  %v5741_v3 = vadd.f32 %v5330_v16, %v20226_v5  ;;  %v5901_v10 = vadd.f32 %v16677_v28, %v5740_v0  ;;  %v20235_v43 = vld [vmem:[#allocation63_spill] sm:$0xff] }
 0x3cc   : > { %v5332_v24 = vpop.f32.mrf.mxu0 }
 0x3cd   : > { %v5743_v61 = vadd.f32 %v5332_v24, %v20229_v19  ;;  %v6148_v46 = vpack.c.bf16 %v6043_v39, %v6040_v14  ;;  %v5902_v26 = vadd.f32 %v16685_v17, %v5741_v3  ;;  %v6045_v1 = vmax.f32 %v5901_v10, 0.0  ;;  %v20237_v3 = vld [vmem:[#allocation120_spill] sm:$0xff]  ;;  %v20238_v24 = vld [vmem:[#allocation150_spill] sm:$0xff] }
 0x3ce   : > { %v5334_v30 = vpop.f32.mrf.mxu0 }
 0x3cf   : > { %v5904_v41 = vadd.f32 %v16677_v28, %v5743_v61  ;;  %v5744_v29 = vadd.f32 %v5334_v30, %v4814_v22  ;;  %6623 = vmatprep.mubr.bf16.mxu1 %v6148_v46  ;;  %v6046_v12 = vmax.f32 %v5902_v26, 0.0 }
 0x3d0   : > { %6897 = vmatmul.mubr.bf16.gmra.mxu0 %v16832_v50  ;;  %v5338_v2 = vpop.f32.mrf.mxu0  ;;  %6624 = vmatmul.mubr.bf16.gmra.mxu1 %v6147_v57  ;;  %v4820_v50 = vadd.f32 %v20233_v4, %v20232_v7  ;;  %v20236_v57 = vld [vmem:[#allocation234_spill] sm:$0xff] }
 0x3d1   : > { %v6048_v18 = vmax.f32 %v5904_v41, 0.0  ;;  %v5905_v38 = vadd.f32 %v16685_v17, %v5744_v29  ;;  %v5746_v6 = vadd.f32 %v5338_v2, %v20230_v20  ;;  %6906 = vmatprep.mubr.bf16.mxu0 %v19468_v49  ;;  %v20244_v7 = vld [vmem:[#allocation66_spill] sm:$0xff] }
 0x3d2   : > { %v5340_v53 = vpop.f32.mrf.mxu0 }
 0x3d3   : > { %v6150_v32 = vpack.c.bf16 %v6048_v18, %v6045_v1  ;;  %v6049_v51 = vmax.f32 %v5905_v38, 0.0  ;;  %v5747_v11 = vadd.f32 %v5340_v53, %v20231_v40  ;;  %v5907_v13 = vadd.f32 %v16677_v28, %v5746_v6  ;;  %v20240_v1 = vld [vmem:[#allocation65_spill] sm:$0xff] }
 0x3d4   : > { %v5342_v58 = vpop.f32.mrf.mxu0  ;;  %v20242_v40 = vld [vmem:[#allocation37_spill] sm:$0xff] }
 0x3d5   : > { %v5749_v35 = vadd.f32 %v5342_v58, %v20234_v27  ;;  %v6151_v62 = vpack.c.bf16 %v6049_v51, %v6046_v12  ;;  %v5908_v52 = vadd.f32 %v16685_v17, %v5747_v11  ;;  %v6051_v9 = vmax.f32 %v5907_v13, 0.0  ;;  %v20241_v12 = vld [vmem:[#allocation236_spill] sm:$0xff] }
 0x3d6   : > { %v5344_v63 = vpop.f32.mrf.mxu0  ;;  %v20243_v11 = vld [vmem:[#allocation152_spill] sm:$0xff] }
 0x3d7   : > { %v5910_v37 = vadd.f32 %v16677_v28, %v5749_v35  ;;  %v5750_v56 = vadd.f32 %v5344_v63, %v4820_v50  ;;  %6633 = vmatprep.mubr.bf16.mxu1 %v6151_v62  ;;  %v6052_v0 = vmax.f32 %v5908_v52, 0.0 }
 0x3d8   : > { %6907 = vmatmul.mubr.bf16.gmra.mxu0 %v16826_v54  ;;  %v5348_v45 = vpop.f32.mrf.mxu0  ;;  %6634 = vmatmul.mubr.bf16.gmra.mxu1 %v6150_v32  ;;  %v4826_v54 = vadd.f32 %v20238_v24, %v20237_v3 }
 0x3d9   : > { %v6054_v47 = vmax.f32 %v5910_v37, 0.0  ;;  %v5911_v36 = vadd.f32 %v16685_v17, %v5750_v56  ;;  %v5752_v48 = vadd.f32 %v5348_v45, %v20235_v43  ;;  %6916 = vmatprep.mubr.bf16.mxu0 %v19468_v49  ;;  %v20245_v45 = vld [vmem:[#allocation67_spill] sm:$0xff] }
 0x3da   : > { %v5350_v33 = vpop.f32.mrf.mxu0 }
 0x3db   : > { %v6153_v16 = vpack.c.bf16 %v6054_v47, %v6051_v9  ;;  %v6055_v14 = vmax.f32 %v5911_v36, 0.0  ;;  %v5753_v39 = vadd.f32 %v5350_v33, %v20236_v57  ;;  %v5913_v55 = vadd.f32 %v16677_v28, %v5752_v48  ;;  %v20246_v33 = vld [vmem:[#allocation238_spill] sm:$0xff] }
 0x3dc   : > { %v5352_v5 = vpop.f32.mrf.mxu0  ;;  %v20248_v57 = vld [vmem:[#allocation154_spill] sm:$0xff] }
 0x3dd   : > { %v5755_v22 = vadd.f32 %v5352_v5, %v20239_v21  ;;  %v6154_v10 = vpack.c.bf16 %v6055_v14, %v6052_v0  ;;  %v5914_v61 = vadd.f32 %v16685_v17, %v5753_v39  ;;  %v6057_v41 = vmax.f32 %v5913_v55, 0.0  ;;  %v20247_v14 = vld [vmem:[#allocation210_spill] sm:$0xff]  ;;  %v20249_v5 = vld [vmem:[#allocation68_spill] sm:$0xff] }
 0x3de   : > { %v5354_v19 = vpop.f32.mrf.mxu0 }
 0x3df   : > { %v5916_v46 = vadd.f32 %v16677_v28, %v5755_v22  ;;  %v5756_v30 = vadd.f32 %v5354_v19, %v4826_v54  ;;  %6643 = vmatprep.mubr.bf16.mxu1 %v6154_v10  ;;  %v6058_v20 = vmax.f32 %v5914_v61, 0.0 }
 0x3e0   : > { %6917 = vmatmul.mubr.bf16.gmra.mxu0 %v16856_v42  ;;  %v5358_v26 = vpop.f32.mrf.mxu0  ;;  %6644 = vmatmul.mubr.bf16.gmra.mxu1 %v6153_v16  ;;  %v4832_v42 = vadd.f32 %v20243_v11, %v20242_v40 }
 0x3e1   : > { %v6060_v29 = vmax.f32 %v5916_v46, 0.0  ;;  %v5917_v2 = vadd.f32 %v16685_v17, %v5756_v30  ;;  %v5758_v18 = vadd.f32 %v5358_v26, %v20240_v1  ;;  %6926 = vmatprep.mubr.bf16.mxu0 %v19468_v49  ;;  %v20250_v30 = vld [vmem:[#allocation69_spill] sm:$0xff] }
 0x3e2   : > { %v5360_v38 = vpop.f32.mrf.mxu0 }
 0x3e3   : > { %v6156_v6 = vpack.c.bf16 %v6060_v29, %v6057_v41  ;;  %v6061_v53 = vmax.f32 %v5917_v2, 0.0  ;;  %v5759_v32 = vadd.f32 %v5360_v38, %v20241_v12  ;;  %v5919_v58 = vadd.f32 %v16677_v28, %v5758_v18  ;;  %v20251_v18 = vld [vmem:[#allocation241_spill] sm:$0xff] }
 0x3e4   : > { %v5362_v51 = vpop.f32.mrf.mxu0 }
 0x3e5   : > { %v5761_v4 = vadd.f32 %v5362_v51, %v20244_v7  ;;  %v6157_v50 = vpack.c.bf16 %v6061_v53, %v6058_v20  ;;  %v5920_v27 = vadd.f32 %v16685_v17, %v5759_v32  ;;  %v6063_v52 = vmax.f32 %v5919_v58, 0.0  ;;  %v20253_v53 = vld [vmem:[#allocation156_spill] sm:$0xff]  ;;  %v20254_v32 = vld [vmem:[#allocation70_spill] sm:$0xff] }
 0x3e6   : > { %v5364_v13 = vpop.f32.mrf.mxu0 }
 0x3e7   : > { %v5922_v35 = vadd.f32 %v16677_v28, %v5761_v4  ;;  %v5762_v62 = vadd.f32 %v5364_v13, %v4832_v42  ;;  %6653 = vmatprep.mubr.bf16.mxu1 %v6157_v50  ;;  %v6064_v36 = vmax.f32 %v5920_v27, 0.0 }
 0x3e8   : > { %6927 = vmatmul.mubr.bf16.gmra.mxu0 %v16850_v44  ;;  %v5368_v63 = vpop.f32.mrf.mxu0  ;;  %6654 = vmatmul.mubr.bf16.gmra.mxu1 %v6156_v6  ;;  %v4838_v44 = vadd.f32 %v20248_v57, %v20247_v14  ;;  %v20252_v6 = vld [vmem:[#allocation42_spill] sm:$0xff] }
 0x3e9   : > { %v6066_v37 = vmax.f32 %v5922_v35, 0.0  ;;  %v5923_v56 = vadd.f32 %v16685_v17, %v5762_v62  ;;  %v5764_v9 = vadd.f32 %v5368_v63, %v20245_v45  ;;  %6936 = vmatprep.mubr.bf16.mxu0 %v19468_v49  ;;  %v20255_v35 = vld [vmem:[#allocation71_spill] sm:$0xff] }
 0x3ea   : > { %v5370_v47 = vpop.f32.mrf.mxu0  ;;  %v20256_v45 = vld [vmem:[#allocation243_spill] sm:$0xff] }
 0x3eb   : > { %v6159_v43 = vpack.c.bf16 %v6066_v37, %v6063_v52  ;;  %v6067_v48 = vmax.f32 %v5923_v56, 0.0  ;;  %v5765_v0 = vadd.f32 %v5370_v47, %v20246_v33  ;;  %v5925_v39 = vadd.f32 %v16677_v28, %v5764_v9  ;;  %v20259_v33 = vld [vmem:[#allocation72_spill] sm:$0xff] }
 0x3ec   : > { %v5372_v16 = vpop.f32.mrf.mxu0 }
 0x3ed   : > { %v5767_v3 = vadd.f32 %v5372_v16, %v20249_v5  ;;  %v6160_v24 = vpack.c.bf16 %v6067_v48, %v6064_v36  ;;  %v5926_v55 = vadd.f32 %v16685_v17, %v5765_v0  ;;  %v6069_v19 = vmax.f32 %v5925_v39, 0.0  ;;  %v20257_v36 = vld [vmem:[#allocation130_spill] sm:$0xff] }
 0x3ee   : > { %v5374_v54 = vpop.f32.mrf.mxu0 }
 0x3ef   : > { %v5928_v21 = vadd.f32 %v16677_v28, %v5767_v3  ;;  %v5768_v22 = vadd.f32 %v5374_v54, %v4838_v44  ;;  %6663 = vmatprep.mubr.bf16.mxu1 %v6160_v24  ;;  %v6070_v29 = vmax.f32 %v5926_v55, 0.0  ;;  %v20260_v55 = vld [vmem:[#allocation73_spill] sm:$0xff] }
 0x3f0   : > { %6937 = vmatmul.mubr.bf16.gmra.mxu0 %v16879_v25  ;;  %v5378_v10 = vpop.f32.mrf.mxu0  ;;  %6664 = vmatmul.mubr.bf16.gmra.mxu1 %v6159_v43  ;;  %v4844_v25 = vadd.f32 %v20253_v53, %v20252_v6  ;;  %v20258_v43 = vld [vmem:[#allocation158_spill] sm:$0xff] }
 0x3f1   : > { %v6072_v61 = vmax.f32 %v5928_v21, 0.0  ;;  %v5929_v46 = vadd.f32 %v16685_v17, %v5768_v22  ;;  %v5770_v26 = vadd.f32 %v5378_v10, %v20250_v30  ;;  %6946 = vmatprep.mubr.bf16.mxu0 %v19468_v49 }
 0x3f2   : > { %v5380_v41 = vpop.f32.mrf.mxu0 }
 0x3f3   : > { %v6162_v2 = vpack.c.bf16 %v6072_v61, %v6069_v19  ;;  %v6073_v1 = vmax.f32 %v5929_v46, 0.0  ;;  %v5771_v38 = vadd.f32 %v5380_v41, %v20251_v18  ;;  %v5931_v12 = vadd.f32 %v16677_v28, %v5770_v26  ;;  %v20261_v46 = vld [vmem:[#allocation245_spill] sm:$0xff]  ;;  %v20262_v41 = vld [vmem:[#allocation218_spill] sm:$0xff] }
 0x3f4   : > { %v5382_v20 = vpop.f32.mrf.mxu0 }
 0x3f5   : > { %v5773_v51 = vadd.f32 %v5382_v20, %v20254_v32  ;;  %v6163_v40 = vpack.c.bf16 %v6073_v1, %v6070_v29  ;;  %v5932_v42 = vadd.f32 %v16685_v17, %v5771_v38  ;;  %v6075_v50 = vmax.f32 %v5931_v12, 0.0  ;;  %v20263_v29 = vld [vmem:[#allocation160_spill] sm:$0xff]  ;;  %v20264_v1 = vld [vmem:[#allocation74_spill] sm:$0xff] }
 0x3f6   : > { %v5384_v11 = vpop.f32.mrf.mxu0 }
 0x3f7   : > { %v5934_v58 = vadd.f32 %v16677_v28, %v5773_v51  ;;  %v5774_v7 = vadd.f32 %v5384_v11, %v4844_v25  ;;  %6673 = vmatprep.mubr.bf16.mxu1 %v6163_v40  ;;  %v6076_v52 = vmax.f32 %v5932_v42, 0.0  ;;  %v20265_v11 = vld [vmem:[#allocation75_spill] sm:$0xff] }
 0x3f8   : > { %6947 = vmatmul.mubr.bf16.gmra.mxu0 %v16873_v34  ;;  %v5388_v4 = vpop.f32.mrf.mxu0  ;;  %6674 = vmatmul.mubr.bf16.gmra.mxu1 %v6162_v2  ;;  %v4850_v34 = vadd.f32 %v20258_v43, %v20257_v36 }
 0x3f9   : > { %v6078_v13 = vmax.f32 %v5934_v58, 0.0  ;;  %v5935_v27 = vadd.f32 %v16685_v17, %v5774_v7  ;;  %v5776_v62 = vadd.f32 %v5388_v4, %v20255_v35  ;;  %6956 = vmatprep.mubr.bf16.mxu0 %v19468_v49 }
 0x3fa   : > { %v5390_v63 = vpop.f32.mrf.mxu0 }
 0x3fb   : > { %v6165_v37 = vpack.c.bf16 %v6078_v13, %v6075_v50  ;;  %v6079_v56 = vmax.f32 %v5935_v27, 0.0  ;;  %v5777_v9 = vadd.f32 %v5390_v63, %v20256_v45  ;;  %v5937_v48 = vadd.f32 %v16677_v28, %v5776_v62  ;;  %v20266_v13 = vld [vmem:[#allocation247_spill] sm:$0xff]  ;;  %v20267_v62 = vld [vmem:[#allocation136_spill] sm:$0xff]  ;;  %v20268_v63 = vld [vmem:[#allocation78_spill] sm:$0xff] }
 0x3fc   : > { %v5392_v47 = vpop.f32.mrf.mxu0 }
 0x3fd   : > { %v5779_v0 = vadd.f32 %v5392_v47, %v20259_v33  ;;  %v6166_v16 = vpack.c.bf16 %v6079_v56, %v6076_v52  ;;  %v5938_v57 = vadd.f32 %v16685_v17, %v5777_v9  ;;  %v6081_v3 = vmax.f32 %v5937_v48, 0.0 }
 0x3fe   : > { %v5394_v14 = vpop.f32.mrf.mxu0 }
 0x3ff   : > { %v5940_v44 = vadd.f32 %v16677_v28, %v5779_v0  ;;  %v5780_v39 = vadd.f32 %v5394_v14, %v4850_v34  ;;  %6683 = vmatprep.mubr.bf16.mxu1 %v6166_v16  ;;  %v6082_v10 = vmax.f32 %v5938_v57, 0.0  ;;  %v20270_v16 = vld [vmem:[#allocation79_spill] sm:$0xff] }
 0x400   : > { %6957 = vmatmul.mubr.bf16.gmra.mxu0 %v16902_v8  ;;  %v5398_v5 = vpop.f32.mrf.mxu0  ;;  %6684 = vmatmul.mubr.bf16.gmra.mxu1 %v6165_v37  ;;  %v4856_v8 = vadd.f32 %v20263_v29, %v20262_v41  ;;  %v20269_v37 = vld [vmem:[#allocation162_spill] sm:$0xff] }
 0x401   : > { %v6084_v24 = vmax.f32 %v5940_v44, 0.0  ;;  %v5941_v54 = vadd.f32 %v16685_v17, %v5780_v39  ;;  %v5782_v21 = vadd.f32 %v5398_v5, %v20260_v55  ;;  %6966 = vmatprep.mubr.bf16.mxu0 %v19468_v49  ;;  %v20272_v55 = vld [vmem:[#allocation224_spill] sm:$0xff] }
 0x402   : > { %v5400_v22 = vpop.f32.mrf.mxu0 }
 0x403   : > { %v6168_v19 = vpack.c.bf16 %v6084_v24, %v6081_v3  ;;  %v6085_v61 = vmax.f32 %v5941_v54, 0.0  ;;  %v5783_v30 = vadd.f32 %v5400_v22, %v20261_v46  ;;  %v5943_v2 = vadd.f32 %v16677_v28, %v5782_v21  ;;  %v20271_v3 = vld [vmem:[#allocation80_spill] sm:$0xff]  ;;  %v20273_v21 = vld [vmem:[#allocation82_spill] sm:$0xff] }
 0x404   : > { %v5402_v26 = vpop.f32.mrf.mxu0 }
 0x405   : > { %v5785_v18 = vadd.f32 %v5402_v26, %v20264_v1  ;;  %v6169_v38 = vpack.c.bf16 %v6085_v61, %v6082_v10  ;;  %v5944_v6 = vadd.f32 %v16685_v17, %v5783_v30  ;;  %v6087_v32 = vmax.f32 %v5943_v2, 0.0  ;;  %v20274_v10 = vld [vmem:[#allocation81_spill] sm:$0xff] }
 0x406   : > { %v5404_v20 = vpop.f32.mrf.mxu0 }
 0x407   : > { %v5946_v53 = vadd.f32 %v16677_v28, %v5785_v18  ;;  %v5786_v25 = vadd.f32 %v5404_v20, %v4856_v8  ;;  %6693 = vmatprep.mubr.bf16.mxu1 %v6169_v38  ;;  %v6088_v7 = vmax.f32 %v5944_v6, 0.0  ;;  %v20275_v18 = vld [vmem:[#allocation168_spill] sm:$0xff] }
 0x408   : > { %6967 = vmatmul.mubr.bf16.gmra.mxu0 %v16896_v23  ;;  %v5408_v12 = vpop.f32.mrf.mxu0  ;;  %6694 = vmatmul.mubr.bf16.gmra.mxu1 %v6168_v19  ;;  %v4862_v23 = vadd.f32 %v20268_v63, %v20267_v62 }
 0x409   : > { %v6090_v51 = vmax.f32 %v5946_v53, 0.0  ;;  %v5947_v40 = vadd.f32 %v16685_v17, %v5786_v25  ;;  %v5788_v42 = vadd.f32 %v5408_v12, %v20265_v11  ;;  %6976 = vmatprep.mubr.bf16.mxu0 %v19468_v49  ;;  %v20276_v12 = vld [vmem:[#allocation169_spill] sm:$0xff]  ;;  %v20278_v11 = vld [vmem:[#allocation171_spill] sm:$0xff] }
 0x40a   : > { %v5410_v58 = vpop.f32.mrf.mxu0 }
 0x40b   : > { %v6171_v4 = vpack.c.bf16 %v6090_v51, %v6087_v32  ;;  %v6091_v50 = vmax.f32 %v5947_v40, 0.0  ;;  %v5789_v27 = vadd.f32 %v5410_v58, %v20266_v13  ;;  %v5949_v52 = vadd.f32 %v16677_v28, %v5788_v42  ;;  %v20277_v40 = vld [vmem:[#allocation142_spill] sm:$0xff] }
 0x40c   : > { %v5412_v35 = vpop.f32.mrf.mxu0  ;;  %v20279_v58 = vld [vmem:[#allocation170_spill] sm:$0xff] }
 0x40d   : > { %v5791_v56 = vadd.f32 %v5412_v35, %v20269_v37  ;;  %v6172_v45 = vpack.c.bf16 %v6091_v50, %v6088_v7  ;;  %v5950_v47 = vadd.f32 %v16685_v17, %v5789_v27  ;;  %v6093_v48 = vmax.f32 %v5949_v52, 0.0 }
 0x40e   : > { %v5414_v9 = vpop.f32.mrf.mxu0 }
 0x40f   : > { %v5952_v36 = vadd.f32 %v16677_v28, %v5791_v56  ;;  %v5792_v43 = vadd.f32 %v5414_v9, %v4862_v23  ;;  %6703 = vmatprep.mubr.bf16.mxu1 %v6172_v45  ;;  %v6094_v44 = vmax.f32 %v5950_v47, 0.0 }
 0x410   : > { %6977 = vmatmul.mubr.bf16.gmra.mxu0 %v16925_v60  ;;  %v5418_v34 = vpop.f32.mrf.mxu0  ;;  %6704 = vmatmul.mubr.bf16.gmra.mxu1 %v6171_v4  ;;  %v4868_v60 = vadd.f32 %v20273_v21, %v20272_v55 }
 0x411   : > { %v6096_v33 = vmax.f32 %v5952_v36, 0.0  ;;  %v5953_v0 = vadd.f32 %v16685_v17, %v5792_v43  ;;  %v5794_v14 = vadd.f32 %v5418_v34, %v20270_v16  ;;  %6986 = vmatprep.mubr.bf16.mxu0 %v19468_v49 }
 0x412   : > { %v5420_v57 = vpop.f32.mrf.mxu0 }
 0x413   : > { %v6174_v39 = vpack.c.bf16 %v6096_v33, %v6093_v48  ;;  %v6097_v5 = vmax.f32 %v5953_v0, 0.0  ;;  %v5795_v24 = vadd.f32 %v5420_v57, %v20271_v3  ;;  %v5955_v22 = vadd.f32 %v16677_v28, %v5794_v14 }
 0x414   : > { %v5422_v54 = vpop.f32.mrf.mxu0 }
 0x415   : > { %v5797_v19 = vadd.f32 %v5422_v54, %v20274_v10  ;;  %v6175_v61 = vpack.c.bf16 %v6097_v5, %v6094_v44  ;;  %v5956_v30 = vadd.f32 %v16685_v17, %v5795_v24  ;;  %v6099_v8 = vmax.f32 %v5955_v22, 0.0 }
 0x416   : > { %v5424_v46 = vpop.f32.mrf.mxu0 }
 0x417   : > { %v5958_v26 = vadd.f32 %v16677_v28, %v5797_v19  ;;  %v5798_v41 = vadd.f32 %v5424_v46, %v4868_v60  ;;  %6713 = vmatprep.mubr.bf16.mxu1 %v6175_v61  ;;  %v6100_v6 = vmax.f32 %v5956_v30, 0.0 }
 0x418   : > { %6987 = vmatmul.mubr.bf16.gmra.mxu0 %v16919_v15  ;;  %v5428_v29 = vpop.f32.mrf.mxu0  ;;  %6714 = vmatmul.mubr.bf16.gmra.mxu1 %v6174_v39  ;;  %v4874_v15 = vadd.f32 %v20278_v11, %v20277_v40  ;;  %v13318_v40 = vld [vmem:[%s19323_s4 + $0xc4] ss:$12 sps:$4 sm:$0xff]  }
 0x419   : > { %v6102_v2 = vmax.f32 %v5958_v26, 0.0  ;;  %v5959_v1 = vadd.f32 %v16685_v17, %v5798_v41  ;;  %v5800_v38 = vadd.f32 %v5428_v29, %v20275_v18  ;;  %6996 = vmatprep.mubr.bf16.mxu0 %v19468_v49 }
 0x41a   : > { %v5430_v20 = vpop.f32.mrf.mxu0 }
 0x41b   : > { %v6177_v53 = vpack.c.bf16 %v6102_v2, %v6099_v8  ;;  %v6103_v25 = vmax.f32 %v5959_v1, 0.0  ;;  %v5801_v32 = vadd.f32 %v5430_v20, %v20276_v12  ;;  %v5961_v42 = vadd.f32 %v16677_v28, %v5800_v38 }
 0x41c   : > { %v5432_v51 = vpop.f32.mrf.mxu0 }
 0x41d   : > { %v5803_v7 = vadd.f32 %v5432_v51, %v20279_v58  ;;  %v6178_v4 = vpack.c.bf16 %v6103_v25, %v6100_v6  ;;  %v5962_v13 = vadd.f32 %v16685_v17, %v5801_v32  ;;  %v6105_v62 = vmax.f32 %v5961_v42, 0.0  ;;  %v13315_v32 = vld [vmem:[%s19323_s4 + $0x4] ss:$12 sps:$4 sm:$0xff]  }
 0x41e   : > { %v5434_v50 = vpop.f32.mrf.mxu0 }
 0x41f   : > { %v5964_v27 = vadd.f32 %v16677_v28, %v5803_v7  ;;  %v5804_v35 = vadd.f32 %v5434_v50, %v4874_v15  ;;  %6723 = vmatprep.mubr.bf16.mxu1 %v6178_v4  ;;  %v6106_v52 = vmax.f32 %v5962_v13, 0.0 }
 0x420   : > { %6997 = vmatmul.mubr.bf16.gmra.mxu0 %v16944_v59  ;;  %6724 = vmatmul.mubr.bf16.gmra.mxu1 %v6177_v53 }
 0x421   : > { %v6108_v63 = vmax.f32 %v5964_v27, 0.0  ;;  %v5965_v23 = vadd.f32 %v16685_v17, %v5804_v35  ;;  %7006 = vmatprep.mubr.bf16.mxu0 %v19468_v49 }
 0x423   : > { %v6180_v37 = vpack.c.bf16 %v6108_v63, %v6105_v62  ;;  %v6109_v56 = vmax.f32 %v5965_v23, 0.0 }
 0x425   : > { %v6181_v45 = vpack.c.bf16 %v6109_v56, %v6106_v52 }
 0x427   : > { %6733 = vmatprep.mubr.bf16.mxu1 %v6181_v45 }
 0x428   : > { %7007 = vmatmul.mubr.bf16.gmra.mxu0 %v16939_v31  ;;  %6734 = vmatmul.mubr.bf16.gmra.mxu1 %v6180_v37 }
 0x429   : > { %7257 = vmatprep.mubr.bf16.mxu1 %v13315_v32  ;;  %7684 = vmatprep.mubr.bf16.mxu0 %v13318_v40 }
 0x430   : > { %v6778_v28 = vpop.f32.mrf.mxu0  ;;  %v6505_v9 = vpop.f32.mrf.mxu1 }
 0x431   : > { %v6779_v36 = vadd.f32 %v6778_v28, %v6505_v9 }
 0x432   : > { %v6780_v47 = vpop.f32.mrf.mxu0  ;;  %v6507_v59 = vpop.f32.mrf.mxu1 }
 0x433   : > { %v17075_v34 = vadd.f32 %v6780_v47, %v6507_v59 }
 0x434   : > { %v6782_v43 = vpop.f32.mrf.mxu0  ;;  %v6509_v17 = vpop.f32.mrf.mxu1 }
 0x435   : > { %20280 = vst [vmem:[#allocation172_spill] sm:$0xff] %v17075_v34  ;;  %v6783_v33 = vadd.f32 %v6782_v43, %v6509_v17 }
 0x436   : > { %v17077_v48 = vpop.f32.mrf.mxu0  ;;  %v17079_v0 = vpop.f32.mrf.mxu1 }
 0x437   : > { %20281 = vst [vmem:[#allocation88_spill] sm:$0xff] %v17077_v48  ;;  %20282 = vst [vmem:[#allocation173_spill] sm:$0xff] %v17079_v0  ;;  %v17081_v14 = vpack.c.bf16 %v6783_v33, %v6779_v36 }
 0x438   : > { %v6788_v16 = vpop.f32.mrf.mxu0  ;;  %v6515_v57 = vpop.f32.mrf.mxu1 }
 0x439   : > { %20283 = vst [vmem:[#allocation89_spill] sm:$0xff] %v17081_v14  ;;  %v6789_v44 = vadd.f32 %v6788_v16, %v6515_v57 }
 0x43a   : > { %v6790_v31 = vpop.f32.mrf.mxu0  ;;  %v6517_v39 = vpop.f32.mrf.mxu1 }
 0x43b   : > { %v17083_v3 = vadd.f32 %v6790_v31, %v6517_v39 }
 0x43c   : > { %v6792_v5 = vpop.f32.mrf.mxu0  ;;  %v6519_v24 = vpop.f32.mrf.mxu1 }
 0x43d   : > { %20284 = vst [vmem:[#allocation175_spill] sm:$0xff] %v17083_v3  ;;  %v6793_v55 = vadd.f32 %v6792_v5, %v6519_v24 }
 0x43e   : > { %v17085_v54 = vpop.f32.mrf.mxu0  ;;  %v17087_v21 = vpop.f32.mrf.mxu1 }
 0x43f   : > { %v17089_v60 = vpack.c.bf16 %v6793_v55, %v6789_v44 }
 0x440   : > { %v6798_v22 = vpop.f32.mrf.mxu0  ;;  %v6525_v10 = vpop.f32.mrf.mxu1 }
 0x441   : > { %20285 = vst [vmem:[#allocation91_spill] sm:$0xff] %v17089_v60  ;;  %v17091_v19 = vadd.f32 %v6798_v22, %v6525_v10 }
 0x442   : > { %v17093_v61 = vpop.f32.mrf.mxu0  ;;  %v17095_v46 = vpop.f32.mrf.mxu1 }
 0x443   : > { %20286 = vst [vmem:[#allocation177_spill] sm:$0xff] %v17091_v19 }
 0x444   : > { %v17097_v30 = vpop.f32.mrf.mxu0  ;;  %v17099_v26 = vpop.f32.mrf.mxu1 }
 0x446   : > { %v17101_v41 = vpop.f32.mrf.mxu0  ;;  %v17103_v29 = vpop.f32.mrf.mxu1 }
 0x448   : > { %v17105_v8 = vpop.f32.mrf.mxu0  ;;  %v17107_v2 = vpop.f32.mrf.mxu1 }
 0x44a   : > { %v17109_v1 = vpop.f32.mrf.mxu0  ;;  %v17111_v18 = vpop.f32.mrf.mxu1 }
 0x44c   : > { %v17113_v38 = vpop.f32.mrf.mxu0  ;;  %v17115_v20 = vpop.f32.mrf.mxu1 }
 0x44e   : > { %v17117_v6 = vpop.f32.mrf.mxu0  ;;  %v17119_v53 = vpop.f32.mrf.mxu1 }
 0x450   : > { %v17121_v25 = vpop.f32.mrf.mxu0  ;;  %v17123_v12 = vpop.f32.mrf.mxu1 }
 0x452   : > { %v17128_v51 = vpop.f32.mrf.mxu0  ;;  %v17133_v11 = vpop.f32.mrf.mxu1 }
 0x454   : > { %v17135_v15 = vpop.f32.mrf.mxu0  ;;  %v17137_v42 = vpop.f32.mrf.mxu1 }
 0x456   : > { %v6824_v58 = vpop.f32.mrf.mxu0  ;;  %v6551_v7 = vpop.f32.mrf.mxu1 }
 0x458   : > { %v6828_v4 = vpop.f32.mrf.mxu0  ;;  %v6555_v50 = vpop.f32.mrf.mxu1 }
 0x45a   : > { %v6830_v13 = vpop.f32.mrf.mxu0  ;;  %v6557_v27 = vpop.f32.mrf.mxu1 }
 0x45c   : > { %v6832_v35 = vpop.f32.mrf.mxu0  ;;  %v6559_v62 = vpop.f32.mrf.mxu1 }
 0x45e   : > { %v6834_v63 = vpop.f32.mrf.mxu0  ;;  %v6561_v23 = vpop.f32.mrf.mxu1 }
 0x45f   : > { %v6835_v0 = vadd.f32 %v6834_v63, %v6561_v23  ;;  %v6825_v23 = vadd.f32 %v6824_v58, %v6551_v7  ;;  %v6815_v7 = vadd.f32 %v17117_v6, %v17119_v53  ;;  %v6813_v6 = vadd.f32 %v17113_v38, %v17115_v20 }
 0x460   : > { %v6838_v52 = vpop.f32.mrf.mxu0  ;;  %v6565_v37 = vpop.f32.mrf.mxu1  ;;  %v6801_v38 = vadd.f32 %v17093_v61, %v17095_v46 }
 0x462   : > { %v6840_v56 = vpop.f32.mrf.mxu0  ;;  %v6567_v45 = vpop.f32.mrf.mxu1 }
 0x463   : > { %v6841_v40 = vadd.f32 %v6840_v56, %v6567_v45  ;;  %v6831_v45 = vadd.f32 %v6830_v13, %v6557_v27  ;;  %v6821_v27 = vadd.f32 %v17128_v51, %v17133_v11  ;;  %v6819_v11 = vadd.f32 %v17121_v25, %v17123_v12 }
 0x464   : > { %v6842_v28 = vpop.f32.mrf.mxu0  ;;  %v6569_v9 = vpop.f32.mrf.mxu1  ;;  %v6805_v12 = vadd.f32 %v17101_v41, %v17103_v29  ;;  %v6803_v41 = vadd.f32 %v17097_v30, %v17099_v26  ;;  %v20305_v30 = vld [vmem:[#allocation177_spill] sm:$0xff] }
 0x465   : > { %v6843_v34 = vadd.f32 %v6842_v28, %v6569_v9 }
 0x466   : > { %v6844_v47 = vpop.f32.mrf.mxu0  ;;  %v6571_v36 = vpop.f32.mrf.mxu1  ;;  %v17234_v26 = vpack.c.bf16 %v6803_v41, %v20305_v30 }
 0x467   : > { %v6845_v5 = vadd.f32 %v6844_v47, %v6571_v36  ;;  %v6839_v36 = vadd.f32 %v6838_v52, %v6565_v37  ;;  %v17159_v52 = vpack.c.bf16 %v6835_v0, %v6831_v45  ;;  %v6823_v0 = vadd.f32 %v17135_v15, %v17137_v42 }
 0x468   : > { %v6848_v59 = vpop.f32.mrf.mxu0  ;;  %v6575_v43 = vpop.f32.mrf.mxu1  ;;  %v6811_v15 = vadd.f32 %v17109_v1, %v17111_v18  ;;  %20306 = vst [vmem:[#allocation111_spill] sm:$0xff] %v17234_v26 }
 0x469   : > { %v6849_v10 = vadd.f32 %v6848_v59, %v6575_v43  ;;  %v17143_v19 = vpack.c.bf16 %v6845_v5, %v6841_v40  ;;  %20294 = vst [vmem:[#allocation185_spill] sm:$0xff] %v17159_v52  ;;  %v6829_v43 = vadd.f32 %v6828_v4, %v6555_v50  ;;  %v17175_v4 = vpack.c.bf16 %v6825_v23, %v6821_v27  ;;  %v20313_v23 = vld [vmem:[#allocation91_spill] sm:$0xff] }
 0x46a   : > { %v6850_v17 = vpop.f32.mrf.mxu0  ;;  %v6577_v33 = vpop.f32.mrf.mxu1  ;;  %v17191_v53 = vpack.c.bf16 %v6823_v0, %v6819_v11 }
 0x46b   : > { %v6851_v24 = vadd.f32 %v6850_v17, %v6577_v33  ;;  %20289 = vst [vmem:[#allocation95_spill] sm:$0xff] %v17143_v19  ;;  %20297 = vst [vmem:[#allocation103_spill] sm:$0xff] %v17175_v4  ;;  %v17197_v33 = vpack.c.bf16 %v6815_v7, %v6811_v15 }
 0x46c   : > { %v6852_v16 = vpop.f32.mrf.mxu0  ;;  %v6579_v57 = vpop.f32.mrf.mxu1  ;;  %20299 = vst [vmem:[#allocation105_spill] sm:$0xff] %v17191_v53 }
 0x46d   : > { %v6853_v44 = vadd.f32 %v6852_v16, %v6579_v57  ;;  %20300 = vst [vmem:[#allocation191_spill] sm:$0xff] %v17197_v33  ;;  %v6809_v57 = vadd.f32 %v17105_v8, %v17107_v2  ;;  %v6795_v2 = vadd.f32 %v17085_v54, %v17087_v21  ;;  %v20307_v21 = vld [vmem:[#allocation173_spill] sm:$0xff] }
 0x46e   : > { %v6854_v31 = vpop.f32.mrf.mxu0  ;;  %v6581_v39 = vpop.f32.mrf.mxu1 }
 0x46f   : > { %v6855_v55 = vadd.f32 %v6854_v31, %v6581_v39  ;;  %v17141_v3 = vpack.c.bf16 %v6853_v44, %v6849_v10  ;;  %v17215_v29 = vpack.c.bf16 %v6813_v6, %v6809_v57  ;;  %v17221_v39 = vpack.c.bf16 %v6805_v12, %v6801_v38 }
 0x470   : > { %v6858_v22 = vpop.f32.mrf.mxu0  ;;  %v6585_v32 = vpop.f32.mrf.mxu1 }
 0x471   : > { %v17139_v49 = vpack.c.bf16 %v6855_v55, %v6851_v24  ;;  %v6859_v14 = vadd.f32 %v6858_v22, %v6585_v32  ;;  %20288 = vst [vmem:[#allocation179_spill] sm:$0xff] %v17141_v3  ;;  %20303 = vst [vmem:[#allocation109_spill] sm:$0xff] %v17215_v29  ;;  %v20308_v24 = vld [vmem:[#allocation88_spill] sm:$0xff]  ;;  %v20309_v22 = vld [vmem:[#allocation175_spill] sm:$0xff] }
 0x472   : > { %v6860_v60 = vpop.f32.mrf.mxu0  ;;  %v6587_v48 = vpop.f32.mrf.mxu1  ;;  %20304 = vst [vmem:[#allocation195_spill] sm:$0xff] %v17221_v39  ;;  %v6785_v55 = vadd.f32 %v20308_v24, %v20307_v21  ;;  %v17241_v10 = vpack.c.bf16 %v6795_v2, %v20309_v22 }
 0x473   : > { %20287 = vst [vmem:[#allocation93_spill] sm:$0xff] %v17139_v49  ;;  %v17145_v16 = vadd.f32 %v6860_v60, %v6587_v48  ;;  %7225 = vmatprep.subr.bf16.mxu1 %v17139_v49  ;;  %7652 = vmatprep.subr.bf16.mxu0 %v17139_v49  ;;  %v6833_v48 = vadd.f32 %v6832_v35, %v6559_v62 }
 0x474   : > { %v6862_v47 = vpop.f32.mrf.mxu0  ;;  %v6589_v56 = vpop.f32.mrf.mxu1  ;;  %7226 = vmatpush1.bf16.msra.mxu1 %v17141_v3  ;;  %7653 = vmatpush1.bf16.msra.mxu0 %v17141_v3  ;;  %v17155_v60 = vpack.c.bf16 %v6843_v34, %v6839_v36  ;;  %20310 = vst [vmem:[#allocation197_spill] sm:$0xff] %v17241_v10 }
 0x475   : > { %20290 = vst [vmem:[#allocation181_spill] sm:$0xff] %v17145_v16  ;;  %v6863_v28 = vadd.f32 %v6862_v47, %v6589_v56  ;;  %7227 = vmatprep.subr.bf16.mxu1 %v17143_v19  ;;  %7654 = vmatprep.subr.bf16.mxu0 %v17143_v19  ;;  %v20311_v56 = vld [vmem:[#allocation172_spill] sm:$0xff] }
 0x476   : > { %v17151_v9 = vpop.f32.mrf.mxu0  ;;  %20292 = vst [vmem:[#allocation183_spill] sm:$0xff] %v17155_v60  ;;  %v17157_v63 = vpop.f32.mrf.mxu1  ;;  %v17256_v45 = vpack.c.bf16 %v6785_v55, %v20311_v56 }
 0x477   : > { %20291 = vst [vmem:[#allocation97_spill] sm:$0xff] %v17151_v9  ;;  %20293 = vst [vmem:[#allocation99_spill] sm:$0xff] %v17157_v63  ;;  %v17161_v37 = vpack.c.bf16 %v6863_v28, %v6859_v14  ;;  %v17171_v14 = vpack.c.bf16 %v6833_v48, %v6829_v43 }
 0x478   : > { %v6868_v59 = vpop.f32.mrf.mxu0  ;;  %v6595_v13 = vpop.f32.mrf.mxu1  ;;  %7228 = vmatpush1.bf16.msra.mxu1 %v17155_v60  ;;  %7655 = vmatpush1.bf16.msra.mxu0 %v17155_v60  ;;  %20312 = vst [vmem:[#allocation113_spill] sm:$0xff] %v17256_v45 }
 0x479   : > { %20295 = vst [vmem:[#allocation101_spill] sm:$0xff] %v17161_v37  ;;  %v6869_v35 = vadd.f32 %v6868_v59, %v6595_v13  ;;  %7229 = vmatprep.subr.bf16.mxu1 %v17159_v52  ;;  %7656 = vmatprep.subr.bf16.mxu0 %v17159_v52  ;;  %20296 = vst [vmem:[#allocation187_spill] sm:$0xff] %v17171_v14 }
 0x47a   : > { %v6870_v34 = vpop.f32.mrf.mxu0  ;;  %v6597_v58 = vpop.f32.mrf.mxu1 }
 0x47b   : > { %v17177_v50 = vadd.f32 %v6870_v34, %v6597_v58 }
 0x47c   : > { %v6872_v51 = vpop.f32.mrf.mxu0  ;;  %v6599_v62 = vpop.f32.mrf.mxu1  ;;  %7230 = vmatpush1.bf16.msra.mxu1 %v17171_v14  ;;  %7657 = vmatpush1.bf16.msra.mxu0 %v17171_v14 }
 0x47d   : > { %20298 = vst [vmem:[#allocation189_spill] sm:$0xff] %v17177_v50  ;;  %v6873_v42 = vadd.f32 %v6872_v51, %v6599_v62  ;;  %7231 = vmatprep.subr.bf16.mxu1 %v17175_v4  ;;  %7658 = vmatprep.subr.bf16.mxu0 %v17175_v4 }
 0x47e   : > { %v17185_v17 = vpop.f32.mrf.mxu0  ;;  %v17193_v25 = vpop.f32.mrf.mxu1 }
 0x47f   : > { %v17199_v1 = vpack.c.bf16 %v6873_v42, %v6869_v35  ;;  %v20314_v35 = vld [vmem:[#allocation89_spill] sm:$0xff] }
 0x480   : > { %v6878_v18 = vpop.f32.mrf.mxu0  ;;  %v6605_v31 = vpop.f32.mrf.mxu1  ;;  %7232 = vmatpush1.bf16.msra.mxu1 %v17191_v53  ;;  %7659 = vmatpush1.bf16.msra.mxu0 %v17191_v53 }
 0x481   : > { %20301 = vst [vmem:[#allocation107_spill] sm:$0xff] %v17199_v1  ;;  %v17207_v20 = vadd.f32 %v6878_v18, %v6605_v31  ;;  %7233 = vmatprep.subr.bf16.mxu1 %v17197_v33  ;;  %7660 = vmatprep.subr.bf16.mxu0 %v17197_v33 }
 0x482   : > { %v17209_v44 = vpop.f32.mrf.mxu0  ;;  %v17217_v8 = vpop.f32.mrf.mxu1 }
 0x483   : > { %20302 = vst [vmem:[#allocation193_spill] sm:$0xff] %v17207_v20 }
 0x484   : > { %v17223_v61 = vpop.f32.mrf.mxu0  ;;  %v17225_v46 = vpop.f32.mrf.mxu1  ;;  %7234 = vmatpush1.bf16.msra.mxu1 %v17215_v29  ;;  %7661 = vmatpush1.bf16.msra.mxu0 %v17215_v29 }
 0x485   : > { %7235 = vmatprep.subr.bf16.mxu1 %v17221_v39  ;;  %7662 = vmatprep.subr.bf16.mxu0 %v17221_v39 }
 0x486   : > { %v17229_v5 = vpop.f32.mrf.mxu0  ;;  %v17236_v54 = vpop.f32.mrf.mxu1 }
 0x488   : > { %v17243_v32 = vpop.f32.mrf.mxu0  ;;  %v17245_v40 = vpop.f32.mrf.mxu1  ;;  %7236 = vmatpush1.bf16.msra.mxu1 %v17234_v26  ;;  %7663 = vmatpush1.bf16.msra.mxu0 %v17234_v26 }
 0x489   : > { %7237 = vmatprep.subr.bf16.mxu1 %v17241_v10  ;;  %7664 = vmatprep.subr.bf16.mxu0 %v17241_v10 }
 0x48a   : > { %v17249_v47 = vpop.f32.mrf.mxu0  ;;  %v17253_v36 = vpop.f32.mrf.mxu1 }
 0x48c   : > { %v17258_v28 = vpop.f32.mrf.mxu0  ;;  %v17260_v48 = vpop.f32.mrf.mxu1  ;;  %7238 = vmatpush1.bf16.msra.mxu1 %v20313_v23  ;;  %7665 = vmatpush1.bf16.msra.mxu0 %v20313_v23 }
 0x48d   : > { %7239 = vmatprep.subr.bf16.mxu1 %v17256_v45  ;;  %7666 = vmatprep.subr.bf16.mxu0 %v17256_v45 }
 0x48e   : > { %v17264_v59 = vpop.f32.mrf.mxu0  ;;  %v17268_v43 = vpop.f32.mrf.mxu1 }
 0x490   : > { %v17270_v13 = vpop.f32.mrf.mxu0  ;;  %v17272_v27 = vpop.f32.mrf.mxu1  ;;  %7240 = vmatpush1.bf16.msra.mxu1 %v20314_v35  ;;  %7667 = vmatpush1.bf16.msra.mxu0 %v20314_v35 }
 0x492   : > { %v17276_v34 = vpop.f32.mrf.mxu0  ;;  %v17278_v0 = vpop.f32.mrf.mxu1 }
 0x494   : > { %v17280_v58 = vpop.f32.mrf.mxu0  ;;  %v17282_v7 = vpop.f32.mrf.mxu1 }
 0x496   : > { %v6904_v51 = vpop.f32.mrf.mxu0  ;;  %v6631_v11 = vpop.f32.mrf.mxu1 }
 0x498   : > { %v6908_v62 = vpop.f32.mrf.mxu0  ;;  %v6635_v15 = vpop.f32.mrf.mxu1 }
 0x49a   : > { %v6910_v42 = vpop.f32.mrf.mxu0  ;;  %v6637_v6 = vpop.f32.mrf.mxu1 }
 0x49c   : > { %v6912_v12 = vpop.f32.mrf.mxu0  ;;  %v6639_v18 = vpop.f32.mrf.mxu1 }
 0x49e   : > { %v6914_v57 = vpop.f32.mrf.mxu0  ;;  %v6641_v31 = vpop.f32.mrf.mxu1 }
 0x49f   : > { %v6915_v63 = vadd.f32 %v6914_v57, %v6641_v31  ;;  %v6889_v57 = vadd.f32 %v17243_v32, %v17245_v40  ;;  %v6875_v40 = vadd.f32 %v17185_v17, %v17193_v25  ;;  %v20331_v25 = vld [vmem:[#allocation99_spill] sm:$0xff] }
 0x4a0   : > { %v6918_v38 = vpop.f32.mrf.mxu0  ;;  %v6645_v41 = vpop.f32.mrf.mxu1 }
 0x4a2   : > { %v6920_v2 = vpop.f32.mrf.mxu0  ;;  %v6647_v30 = vpop.f32.mrf.mxu1 }
 0x4a3   : > { %v6921_v3 = vadd.f32 %v6920_v2, %v6647_v30  ;;  %v20332_v30 = vld [vmem:[#allocation97_spill] sm:$0xff] }
 0x4a4   : > { %v6922_v21 = vpop.f32.mrf.mxu0  ;;  %v6649_v24 = vpop.f32.mrf.mxu1 }
 0x4a5   : > { %v6923_v16 = vadd.f32 %v6922_v21, %v6649_v24  ;;  %v6865_v21 = vadd.f32 %v20332_v30, %v20331_v25  ;;  %v20333_v24 = vld [vmem:[#allocation189_spill] sm:$0xff] }
 0x4a6   : > { %v6924_v55 = vpop.f32.mrf.mxu0  ;;  %v6651_v22 = vpop.f32.mrf.mxu1  ;;  %v13328_v30 = vld [vmem:[%s19324_s5 + $0x110] ss:$8 sps:$4 sm:$0xff]  }
 0x4a7   : > { %v6925_v53 = vadd.f32 %v6924_v55, %v6651_v22  ;;  %v17386_v55 = vpack.c.bf16 %v6875_v40, %v20333_v24  ;;  %v13325_v40 = vld [vmem:[%s19323_s4 + $0x18] ss:$12 sps:$4 sm:$0xff]  }
 0x4a8   : > { %v6928_v56 = vpop.f32.mrf.mxu0  ;;  %v6655_v35 = vpop.f32.mrf.mxu1 }
 0x4a9   : > { %v6929_v60 = vadd.f32 %v6928_v56, %v6655_v35  ;;  %v17288_v20 = vpack.c.bf16 %v6925_v53, %v6921_v3  ;;  %v6913_v3 = vadd.f32 %v6912_v12, %v6639_v18  ;;  %v6901_v35 = vadd.f32 %v17276_v34, %v17278_v0  ;;  %20334 = vst [vmem:[#allocation129_spill] sm:$0xff] %v17386_v55 }
 0x4aa   : > { %v6930_v45 = vpop.f32.mrf.mxu0  ;;  %v6657_v23 = vpop.f32.mrf.mxu1  ;;  %v6899_v0 = vadd.f32 %v17270_v13, %v17272_v27  ;;  %v6885_v27 = vadd.f32 %v17229_v5, %v17236_v54  ;;  %v6883_v5 = vadd.f32 %v17223_v61, %v17225_v46  ;;  %v20329_v61 = vld [vmem:[#allocation193_spill] sm:$0xff] }
 0x4ab   : > { %v6931_v4 = vadd.f32 %v6930_v45, %v6657_v23  ;;  %20317 = vst [vmem:[#allocation201_spill] sm:$0xff] %v17288_v20  ;;  %v6909_v45 = vadd.f32 %v6908_v62, %v6635_v15 }
 0x4ac   : > { %v6932_v10 = vpop.f32.mrf.mxu0  ;;  %v6659_v26 = vpop.f32.mrf.mxu1  ;;  %v17379_v46 = vpack.c.bf16 %v6883_v5, %v20329_v61  ;;  %v13391_v61 = vld [vmem:[%s19323_s4 + $0xd8] ss:$12 sps:$4 sm:$0xff]  }
 0x4ad   : > { %v6933_v29 = vadd.f32 %v6932_v10, %v6659_v26 }
 0x4ae   : > { %v6934_v39 = vpop.f32.mrf.mxu0  ;;  %v6661_v33 = vpop.f32.mrf.mxu1  ;;  %20330 = vst [vmem:[#allocation213_spill] sm:$0xff] %v17379_v46 }
 0x4af   : > { %v6935_v14 = vadd.f32 %v6934_v39, %v6661_v33  ;;  %v17286_v50 = vpack.c.bf16 %v6933_v29, %v6929_v60  ;;  %v6919_v33 = vadd.f32 %v6918_v38, %v6645_v41 }
 0x4b0   : > { %v6938_v52 = vpop.f32.mrf.mxu0  ;;  %v6665_v19 = vpop.f32.mrf.mxu1 }
 0x4b1   : > { %v17284_v49 = vpack.c.bf16 %v6935_v14, %v6931_v4  ;;  %v6939_v37 = vadd.f32 %v6938_v52, %v6665_v19  ;;  %20316 = vst [vmem:[#allocation115_spill] sm:$0xff] %v17286_v50  ;;  %v6911_v19 = vadd.f32 %v6910_v42, %v6637_v6  ;;  %v6905_v4 = vadd.f32 %v6904_v51, %v6631_v11 }
 0x4b2   : > { %v6940_v1 = vpop.f32.mrf.mxu0  ;;  %v6667_v9 = vpop.f32.mrf.mxu1  ;;  %v6895_v11 = vadd.f32 %v17264_v59, %v17268_v43  ;;  %v6893_v59 = vadd.f32 %v17258_v28, %v17260_v48  ;;  %v6881_v28 = vadd.f32 %v17209_v44, %v17217_v8 }
 0x4b3   : > { %20315 = vst [vmem:[#allocation199_spill] sm:$0xff] %v17284_v49  ;;  %v17290_v26 = vadd.f32 %v6940_v1, %v6667_v9  ;;  %7241 = vmatprep.subr.bf16.mxu1 %v17284_v49  ;;  %7668 = vmatprep.subr.bf16.mxu0 %v17284_v49  ;;  %v17300_v9 = vpack.c.bf16 %v6923_v16, %v6919_v33 }
 0x4b4   : > { %v6942_v10 = vpop.f32.mrf.mxu0  ;;  %v6669_v39 = vpop.f32.mrf.mxu1  ;;  %7242 = vmatpush2.bf16.msra.mxu1 %v17286_v50  ;;  %7669 = vmatpush2.bf16.msra.mxu0 %v17286_v50  ;;  %v17304_v53 = vpack.c.bf16 %v6915_v63, %v6911_v19  ;;  %v6903_v63 = vadd.f32 %v17280_v58, %v17282_v7  ;;  %v17320_v62 = vpack.c.bf16 %v6905_v4, %v6901_v35  ;;  %v20337_v4 = vld [vmem:[#allocation107_spill] sm:$0xff] }
 0x4b5   : > { %20318 = vst [vmem:[#allocation117_spill] sm:$0xff] %v17290_v26  ;;  %v6943_v60 = vadd.f32 %v6942_v10, %v6669_v39  ;;  %7243 = vmatprep.subr.bf16.mxu1 %v17288_v20  ;;  %7670 = vmatprep.subr.bf16.mxu0 %v17288_v20  ;;  %20319 = vst [vmem:[#allocation203_spill] sm:$0xff] %v17300_v9  ;;  %v6891_v58 = vadd.f32 %v17249_v47, %v17253_v36  ;;  %v20335_v39 = vld [vmem:[#allocation181_spill] sm:$0xff] }
 0x4b6   : > { %v17296_v52 = vpop.f32.mrf.mxu0  ;;  %v17302_v14 = vpop.f32.mrf.mxu1  ;;  %20320 = vst [vmem:[#allocation119_spill] sm:$0xff] %v17304_v53  ;;  %20323 = vst [vmem:[#allocation207_spill] sm:$0xff] %v17320_v62  ;;  %v17336_v43 = vpack.c.bf16 %v6903_v63, %v6899_v0  ;;  %v17360_v54 = vpack.c.bf16 %v6893_v59, %v6889_v57  ;;  %v17366_v41 = vpack.c.bf16 %v6885_v27, %v6881_v28  ;;  %v13393_v59 = vld [vmem:[%s19323_s4 + $0xdc] ss:$12 sps:$4 sm:$0xff]  }
 0x4b7   : > { %v17306_v1 = vpack.c.bf16 %v6943_v60, %v6939_v37  ;;  %v17316_v37 = vpack.c.bf16 %v6913_v3, %v6909_v45  ;;  %v17342_v18 = vpack.c.bf16 %v6895_v11, %v6891_v58  ;;  %v17401_v19 = vpack.c.bf16 %v6865_v21, %v20335_v39  ;;  %v13321_v45 = vld [vmem:[%s19324_s5 + $0x134] ss:$8 sps:$4 sm:$0xff]   ;;  %v13319_v11 = vld [vmem:[%s19324_s5 + $0x130] ss:$8 sps:$4 sm:$0xff]   ;;  %v13333_v39 = vld [vmem:[%s19324_s5 + $0x104] ss:$8 sps:$4 sm:$0xff]  }
 0x4b8   : > { %v6948_v29 = vpop.f32.mrf.mxu0  ;;  %v6675_v23 = vpop.f32.mrf.mxu1  ;;  %7244 = vmatpush2.bf16.msra.mxu1 %v17300_v9  ;;  %7671 = vmatpush2.bf16.msra.mxu0 %v17300_v9  ;;  %20324 = vst [vmem:[#allocation123_spill] sm:$0xff] %v17336_v43  ;;  %20327 = vst [vmem:[#allocation211_spill] sm:$0xff] %v17360_v54  ;;  %v13336_v21 = vld [vmem:[%s19323_s4 + $0x34] ss:$12 sps:$4 sm:$0xff]  }
 0x4b9   : > { %20321 = vst [vmem:[#allocation205_spill] sm:$0xff] %v17306_v1  ;;  %v6949_v42 = vadd.f32 %v6948_v29, %v6675_v23  ;;  %7245 = vmatprep.subr.bf16.mxu1 %v17304_v53  ;;  %7672 = vmatprep.subr.bf16.mxu0 %v17304_v53  ;;  %20322 = vst [vmem:[#allocation121_spill] sm:$0xff] %v17316_v37  ;;  %v13349_v9 = vld [vmem:[%s19324_s5 + $0xc0] ss:$8 sps:$4 sm:$0xff]   ;;  %v13357_v20 = vld [vmem:[%s19324_s5 + $0x174] ss:$8 sps:$4 sm:$0xff]  }
 0x4ba   : > { %v6950_v16 = vpop.f32.mrf.mxu0  ;;  %v6677_v51 = vpop.f32.mrf.mxu1  ;;  %20325 = vst [vmem:[#allocation209_spill] sm:$0xff] %v17342_v18  ;;  %20328 = vst [vmem:[#allocation127_spill] sm:$0xff] %v17366_v41 }
 0x4bb   : > { %v17322_v15 = vadd.f32 %v6950_v16, %v6677_v51  ;;  %20336 = vst [vmem:[#allocation215_spill] sm:$0xff] %v17401_v19  ;;  %v13316_v16 = vld [vmem:[%s19323_s4 + $0xc0] ss:$12 sps:$4 sm:$0xff]   ;;  %v20338_v51 = vld [vmem:[#allocation101_spill] sm:$0xff] }
 0x4bc   : > { %v6952_v34 = vpop.f32.mrf.mxu0  ;;  %v6679_v6 = vpop.f32.mrf.mxu1  ;;  %7246 = vmatpush2.bf16.msra.mxu1 %v17316_v37  ;;  %7673 = vmatpush2.bf16.msra.mxu0 %v17316_v37 }
 0x4bd   : > { %v6953_v7 = vadd.f32 %v6952_v34, %v6679_v6  ;;  %7247 = vmatprep.subr.bf16.mxu1 %v17320_v62  ;;  %7674 = vmatprep.subr.bf16.mxu0 %v17320_v62  ;;  %v13327_v34 = vld [vmem:[%s19323_s4 + $0x1c] ss:$12 sps:$4 sm:$0xff]   ;;  %v13324_v6 = vld [vmem:[%s19324_s5 + $0x124] ss:$8 sps:$4 sm:$0xff]  }
 0x4be   : > { %v17330_v12 = vpop.f32.mrf.mxu0  ;;  %v17338_v13 = vpop.f32.mrf.mxu1 }
 0x4bf   : > { %v17344_v47 = vpack.c.bf16 %v6953_v7, %v6949_v42  ;;  %v13313_v42 = vld [vmem:[%s19323_s4] ss:$12 sps:$4 sm:$0xff]  }
 0x4c0   : > { %v6958_v36 = vpop.f32.mrf.mxu0  ;;  %v6685_v31 = vpop.f32.mrf.mxu1  ;;  %7248 = vmatpush2.bf16.msra.mxu1 %v17336_v43  ;;  %7675 = vmatpush2.bf16.msra.mxu0 %v17336_v43  ;;  %v13351_v43 = vld [vmem:[%s19324_s5 + $0xc4] ss:$8 sps:$4 sm:$0xff]  }
 0x4c1   : > { %20326 = vst [vmem:[#allocation125_spill] sm:$0xff] %v17344_v47  ;;  %v17352_v48 = vadd.f32 %v6958_v36, %v6685_v31  ;;  %7249 = vmatprep.subr.bf16.mxu1 %v17342_v18  ;;  %7676 = vmatprep.subr.bf16.mxu0 %v17342_v18  ;;  %v13322_v36 = vld [vmem:[%s19324_s5 + $0x120] ss:$8 sps:$4 sm:$0xff]   ;;  %v13330_v31 = vld [vmem:[%s19324_s5 + $0x114] ss:$8 sps:$4 sm:$0xff]  }
 0x4c2   : > { %v17354_v38 = vpop.f32.mrf.mxu0  ;;  %v17362_v32 = vpop.f32.mrf.mxu1 }
 0x4c4   : > { %v17368_v44 = vpop.f32.mrf.mxu0  ;;  %v17370_v8 = vpop.f32.mrf.mxu1  ;;  %7250 = vmatpush2.bf16.msra.mxu1 %v17360_v54  ;;  %7677 = vmatpush2.bf16.msra.mxu0 %v17360_v54  ;;  %v13343_v54 = vld [vmem:[%s19323_s4 + $0x48] ss:$12 sps:$4 sm:$0xff]  }
 0x4c5   : > { %7251 = vmatprep.subr.bf16.mxu1 %v17366_v41  ;;  %7678 = vmatprep.subr.bf16.mxu0 %v17366_v41  ;;  %v13348_v41 = vld [vmem:[%s19324_s5 + $0xd4] ss:$8 sps:$4 sm:$0xff]  }
 0x4c6   : > { %v17374_v2 = vpop.f32.mrf.mxu0  ;;  %v17381_v17 = vpop.f32.mrf.mxu1 }
 0x4c8   : > { %v17388_v22 = vpop.f32.mrf.mxu0  ;;  %v17390_v56 = vpop.f32.mrf.mxu1  ;;  %7252 = vmatpush2.bf16.msra.mxu1 %v17379_v46  ;;  %7679 = vmatpush2.bf16.msra.mxu0 %v17379_v46  ;;  %v13340_v46 = vld [vmem:[%s19324_s5 + $0xe0] ss:$8 sps:$4 sm:$0xff]  }
 0x4c9   : > { %7253 = vmatprep.subr.bf16.mxu1 %v17386_v55  ;;  %7680 = vmatprep.subr.bf16.mxu0 %v17386_v55 }
 0x4ca   : > { %v17394_v10 = vpop.f32.mrf.mxu0  ;;  %v17398_v33 = vpop.f32.mrf.mxu1 }
 0x4cc   : > { %v17403_v60 = vpop.f32.mrf.mxu0  ;;  %v17405_v3 = vpop.f32.mrf.mxu1  ;;  %7254 = vmatpush2.bf16.msra.mxu1 %v20337_v4  ;;  %7681 = vmatpush2.bf16.msra.mxu0 %v20337_v4 }
 0x4cd   : > { %7255 = vmatprep.subr.bf16.mxu1 %v17401_v19  ;;  %7682 = vmatprep.subr.bf16.mxu0 %v17401_v19 }
 0x4ce   : > { %v17409_v29 = vpop.f32.mrf.mxu0  ;;  %v17416_v23 = vpop.f32.mrf.mxu1 }
 0x4d0   : > { %v17418_v35 = vpop.f32.mrf.mxu0  ;;  %v17426_v63 = vpop.f32.mrf.mxu1  ;;  %7256 = vmatpush2.bf16.msra.mxu1 %v20338_v51  ;;  %7683 = vmatpush2.bf16.msra.mxu0 %v20338_v51  ;;  %v13342_v51 = vld [vmem:[%s19324_s5 + $0xe4] ss:$8 sps:$4 sm:$0xff]  }
 0x4d1   : > { %8064 = vmatprep.subr.bf16.mxu0 %v13321_v45 }
 0x4d2   : > { %v17436_v0 = vpop.f32.mrf.mxu0  ;;  %v17441_v58 = vpop.f32.mrf.mxu1 }
 0x4d3   : > { %7258 = vmatmul.mubr.bf16.vlgmr.msra.gmra.mxu1 %v13313_v42  ;;  %7685 = vmatmul.mubr.bf16.vlgmr.msra.gmra.mxu0 %v13316_v16  ;;  %v13403_v16 = vld [vmem:[%s19323_s4 + $0xf4] ss:$12 sps:$4 sm:$0xff]  }
 0x4d4   : > { %v17443_v7 = vpop.f32.mrf.mxu0  ;;  %v17448_v27 = vpop.f32.mrf.mxu1  ;;  %8065 = vmatpush1.bf16.msra.mxu0 %v13319_v11  ;;  %7267 = vmatprep.mubr.bf16.mxu1 %v13327_v34  ;;  %v13331_v34 = vld [vmem:[%s19324_s5 + $0x100] ss:$8 sps:$4 sm:$0xff]  }
 0x4d5   : > { %8066 = vmatprep.subr.bf16.mxu0 %v13324_v6  ;;  %7694 = vmatprep.mubr.bf16.mxu0 %v13393_v59  ;;  %v13339_v59 = vld [vmem:[%s19324_s5 + $0xf4] ss:$8 sps:$4 sm:$0xff]  }
 0x4d6   : > { %v17453_v57 = vpop.f32.mrf.mxu0  ;;  %v17458_v28 = vpop.f32.mrf.mxu1 }
 0x4d8   : > { %v17460_v5 = vpop.f32.mrf.mxu0  ;;  %v17468_v25 = vpop.f32.mrf.mxu1  ;;  %8067 = vmatpush1.bf16.msra.mxu0 %v13322_v36 }
 0x4d9   : > { %8068 = vmatprep.subr.bf16.mxu0 %v13330_v31 }
 0x4da   : > { %v17476_v24 = vpop.f32.mrf.mxu0  ;;  %v17481_v45 = vpop.f32.mrf.mxu1 }
 0x4db   : > { %7268 = vmatmul.mubr.bf16.gmra.mxu1 %v13325_v40  ;;  %7695 = vmatmul.mubr.bf16.gmra.mxu0 %v13391_v61  ;;  %v13334_v40 = vld [vmem:[%s19323_s4 + $0x30] ss:$12 sps:$4 sm:$0xff]  }
 0x4dc   : > { %v17483_v42 = vpop.f32.mrf.mxu0  ;;  %v17488_v11 = vpop.f32.mrf.mxu1  ;;  %8069 = vmatpush1.bf16.msra.mxu0 %v13328_v30  ;;  %7277 = vmatprep.mubr.bf16.mxu1 %v13336_v21  ;;  %v13401_v61 = vld [vmem:[%s19323_s4 + $0xf0] ss:$12 sps:$4 sm:$0xff]  }
 0x4dd   : > { %8070 = vmatprep.subr.bf16.mxu0 %v13333_v39  ;;  %7704 = vmatprep.mubr.bf16.mxu0 %v13403_v16  ;;  %v13337_v21 = vld [vmem:[%s19324_s5 + $0xf0] ss:$8 sps:$4 sm:$0xff]  }
 0x4de   : > { %v17493_v6 = vpop.f32.mrf.mxu0  ;;  %v17498_v36 = vpop.f32.mrf.mxu1  ;;  %v13345_v39 = vld [vmem:[%s19323_s4 + $0x4c] ss:$12 sps:$4 sm:$0xff]  }
 0x4e0   : > { %v17500_v31 = vpop.f32.mrf.mxu0  ;;  %v17508_v30 = vpop.f32.mrf.mxu1  ;;  %8071 = vmatpush1.bf16.msra.mxu0 %v13331_v34  ;;  %v13413_v34 = vld [vmem:[%s19323_s4 + $0x10c] ss:$12 sps:$4 sm:$0xff]  }
 0x4e1   : > { %8072 = vmatprep.subr.bf16.mxu0 %v13339_v59 }
 0x4e2   : > { %v7000_v16 = vpop.f32.mrf.mxu0  ;;  %v6727_v19 = vpop.f32.mrf.mxu1 }
 0x4e3   : > { %7278 = vmatmul.mubr.bf16.gmra.mxu1 %v13334_v40  ;;  %7705 = vmatmul.mubr.bf16.gmra.mxu0 %v13401_v61 }
 0x4e4   : > { %v7002_v4 = vpop.f32.mrf.mxu0  ;;  %v6729_v55 = vpop.f32.mrf.mxu1  ;;  %8073 = vmatpush1.bf16.msra.mxu0 %v13337_v21  ;;  %7287 = vmatprep.mubr.bf16.mxu1 %v13345_v39  ;;  %v13411_v21 = vld [vmem:[%s19323_s4 + $0x108] ss:$12 sps:$4 sm:$0xff]   ;;  %v13354_v39 = vld [vmem:[%s19323_s4 + $0x64] ss:$12 sps:$4 sm:$0xff]  }
 0x4e5   : > { %8074 = vmatprep.subr.bf16.mxu0 %v13342_v51  ;;  %7714 = vmatprep.mubr.bf16.mxu0 %v13413_v34  ;;  %v13346_v51 = vld [vmem:[%s19324_s5 + $0xd0] ss:$8 sps:$4 sm:$0xff]  }
 0x4e6   : > { %v7004_v59 = vpop.f32.mrf.mxu0  ;;  %v6731_v40 = vpop.f32.mrf.mxu1 }
 0x4e7   : > { %v7005_v50 = vadd.f32 %v7004_v59, %v6731_v40  ;;  %v13370_v40 = vld [vmem:[%s19323_s4 + $0x90] ss:$12 sps:$4 sm:$0xff]  }
 0x4e8   : > { %v7008_v61 = vpop.f32.mrf.mxu0  ;;  %v6735_v18 = vpop.f32.mrf.mxu1  ;;  %8075 = vmatpush1.bf16.msra.mxu0 %v13340_v46  ;;  %v13423_v46 = vld [vmem:[%s19323_s4 + $0x124] ss:$12 sps:$4 sm:$0xff]  }
 0x4e9   : > { %8076 = vmatprep.subr.bf16.mxu0 %v13348_v41  ;;  %v7009_v47 = vadd.f32 %v7008_v61, %v6735_v18  ;;  %v13363_v18 = vld [vmem:[%s19323_s4 + $0x7c] ss:$12 sps:$4 sm:$0xff]  }
 0x4ea   : > { %v7010_v34 = vpop.f32.mrf.mxu0  ;;  %v6737_v62 = vpop.f32.mrf.mxu1 }
 0x4eb   : > { %7288 = vmatmul.mubr.bf16.gmra.mxu1 %v13343_v54  ;;  %7715 = vmatmul.mubr.bf16.gmra.mxu0 %v13411_v21  ;;  %v7011_v49 = vadd.f32 %v7010_v34, %v6737_v62 }
 0x4ec   : > { %v7012_v37 = vpop.f32.mrf.mxu0  ;;  %v6739_v53 = vpop.f32.mrf.mxu1  ;;  %8077 = vmatpush1.bf16.msra.mxu0 %v13346_v51  ;;  %7297 = vmatprep.mubr.bf16.mxu1 %v13354_v39  ;;  %v13352_v51 = vld [vmem:[%s19323_s4 + $0x60] ss:$12 sps:$4 sm:$0xff]   ;;  %v7001_v39 = vadd.f32 %v7000_v16, %v6727_v19  ;;  %v13366_v19 = vld [vmem:[%s19324_s5 + $0x154] ss:$8 sps:$4 sm:$0xff]  }
 0x4ed   : > { %8078 = vmatprep.subr.bf16.mxu0 %v13351_v43  ;;  %7724 = vmatprep.mubr.bf16.mxu0 %v13423_v46  ;;  %v7013_v54 = vadd.f32 %v7012_v37, %v6739_v53  ;;  %v13355_v43 = vld [vmem:[%s19324_s5 + $0x170] ss:$8 sps:$4 sm:$0xff]   ;;  %v13360_v53 = vld [vmem:[%s19324_s5 + $0x164] ss:$8 sps:$4 sm:$0xff]   ;;  %v7003_v37 = vadd.f32 %v7002_v4, %v6729_v55  ;;  %v13358_v55 = vld [vmem:[%s19324_s5 + $0x160] ss:$8 sps:$4 sm:$0xff]   ;;  %v6993_v4 = vadd.f32 %v17483_v42, %v17488_v11 }
 0x4ee   : > { %v7014_v41 = vpop.f32.mrf.mxu0  ;;  %v6741_v21 = vpop.f32.mrf.mxu1  ;;  %v13364_v42 = vld [vmem:[%s19324_s5 + $0x150] ss:$8 sps:$4 sm:$0xff]   ;;  %v13372_v11 = vld [vmem:[%s19323_s4 + $0x94] ss:$12 sps:$4 sm:$0xff]  }
 0x4ef   : > { %v7015_v1 = vadd.f32 %v7014_v41, %v6741_v21  ;;  %v17563_v62 = vpack.c.bf16 %v7013_v54, %v7009_v47  ;;  %v6999_v47 = vadd.f32 %v17500_v31, %v17508_v30  ;;  %v13367_v16 = vld [vmem:[%s19324_s5 + $0x140] ss:$8 sps:$4 sm:$0xff]   ;;  %v20344_v46 = vld [vmem:[#allocation205_spill] sm:$0xff]  ;;  %v13378_v54 = vld [vmem:[%s19323_s4 + $0x38] ss:$12 sps:$4 sm:$0xff]  }
 0x4f0   : > { %8079 = vmatpush1.bf16.msra.mxu0 %v13349_v9  ;;  %v13421_v9 = vld [vmem:[%s19323_s4 + $0x120] ss:$12 sps:$4 sm:$0xff]   ;;  %v13379_v21 = vld [vmem:[%s19323_s4 + $0x50] ss:$12 sps:$4 sm:$0xff]  }
 0x4f1   : > { %v17558_v26 = vpack.c.bf16 %v7015_v1, %v7011_v49  ;;  %8088 = vmatprep.subr.bf16.mxu0 %v13357_v20  ;;  %v6995_v49 = vadd.f32 %v17493_v6, %v17498_v36  ;;  %v17573_v1 = vpack.c.bf16 %v7005_v50, %v7001_v39  ;;  %v13433_v20 = vld [vmem:[%s19323_s4 + $0x13c] ss:$12 sps:$4 sm:$0xff]   ;;  %v6991_v50 = vadd.f32 %v17476_v24, %v17481_v45  ;;  %v13361_v24 = vld [vmem:[%s19323_s4 + $0x78] ss:$12 sps:$4 sm:$0xff]   ;;  %v13377_v41 = vld [vmem:[%s19323_s4 + $0x20] ss:$12 sps:$4 sm:$0xff]  }
 0x4f2   : > { %v17593_v6 = vpack.c.bf16 %v7003_v37, %v6999_v47  ;;  %v6985_v36 = vadd.f32 %v17453_v57, %v17458_v28  ;;  %v6989_v45 = vadd.f32 %v17460_v5, %v17468_v25  ;;  %v6981_v57 = vadd.f32 %v17436_v0, %v17441_v58  ;;  %v13369_v28 = vld [vmem:[%s19324_s5 + $0x144] ss:$8 sps:$4 sm:$0xff]   ;;  %v13383_v37 = vld [vmem:[%s19323_s4 + $0xb0] ss:$12 sps:$4 sm:$0xff]  }
 0x4f3   : > { %20339 = vst [vmem:[#allocation131_spill] sm:$0xff] %v17558_v26  ;;  %7298 = vmatmul.mubr.bf16.gmra.mxu1 %v13352_v51  ;;  %7338 = vmatprep.subr.bf16.mxu1 %v17558_v26  ;;  %v17597_v31 = vpack.c.bf16 %v6995_v49, %v6991_v50  ;;  %v6983_v5 = vadd.f32 %v17443_v7, %v17448_v27  ;;  %v13431_v0 = vld [vmem:[%s19323_s4 + $0x138] ss:$12 sps:$4 sm:$0xff]   ;;  %v13443_v7 = vld [vmem:[%s19323_s4 + $0x154] ss:$12 sps:$4 sm:$0xff]  }
 0x4f4   : > { %7339 = vmatpush1.bf16.msra.mxu1 %v17563_v62  ;;  %8089 = vmatpush2.bf16.msra.mxu0 %v13355_v43  ;;  %v17616_v25 = vpack.c.bf16 %v6993_v4, %v6989_v45  ;;  %v6975_v58 = vadd.f32 %v17409_v29, %v17416_v23  ;;  %v17626_v30 = vpack.c.bf16 %v6985_v36, %v6981_v57  ;;  %v13386_v51 = vld [vmem:[%s19324_s5 + $0x74] ss:$8 sps:$4 sm:$0xff]   ;;  %v13381_v39 = vld [vmem:[%s19323_s4 + $0x80] ss:$12 sps:$4 sm:$0xff]   ;;  %v13394_v50 = vld [vmem:[%s19324_s5 + $0x50] ss:$8 sps:$4 sm:$0xff]  }
 0x4f5   : > { %7340 = vmatprep.subr.bf16.mxu1 %v17573_v1  ;;  %8090 = vmatprep.subr.bf16.mxu0 %v13360_v53  ;;  %v6979_v27 = vadd.f32 %v17418_v35, %v17426_v63  ;;  %v6971_v29 = vadd.f32 %v17394_v10, %v17398_v33  ;;  %v6973_v23 = vadd.f32 %v17403_v60, %v17405_v3  ;;  %v13375_v33 = vld [vmem:[%s19323_s4 + $0xac] ss:$12 sps:$4 sm:$0xff]   ;;  %v13380_v43 = vld [vmem:[%s19323_s4 + $0x68] ss:$12 sps:$4 sm:$0xff]  }
 0x4f6   : > { %7307 = vmatprep.mubr.bf16.mxu1 %v13363_v18  ;;  %7725 = vmatmul.mubr.bf16.gmra.mxu0 %v13421_v9  ;;  %v6965_v35 = vadd.f32 %v17374_v2, %v17381_v17  ;;  %v6969_v10 = vadd.f32 %v17388_v22, %v17390_v56  ;;  %v6961_v2 = vadd.f32 %v17354_v38, %v17362_v32  ;;  %v20340_v17 = vld [vmem:[#allocation93_spill] sm:$0xff]  ;;  %v13447_v38 = vld [vmem:[%s19323_s4 + $0x16c] ss:$12 sps:$4 sm:$0xff]   ;;  %v13398_v4 = vld [vmem:[%s19324_s5 + $0x40] ss:$8 sps:$4 sm:$0xff]  }
 0x4f7   : > { %7734 = vmatprep.mubr.bf16.mxu0 %v13433_v20  ;;  %v17642_v59 = vpack.c.bf16 %v6983_v5, %v6979_v27  ;;  %v17646_v63 = vpack.c.bf16 %v6975_v58, %v6971_v29  ;;  %v6963_v60 = vadd.f32 %v17368_v44, %v17370_v8  ;;  %v13441_v22 = vld [vmem:[%s19323_s4 + $0x150] ss:$12 sps:$4 sm:$0xff]   ;;  %v6955_v56 = vadd.f32 %v17330_v12, %v17338_v13  ;;  %v13373_v13 = vld [vmem:[%s19323_s4 + $0xa8] ss:$12 sps:$4 sm:$0xff]   ;;  %v13382_v53 = vld [vmem:[%s19323_s4 + $0x98] ss:$12 sps:$4 sm:$0xff]  }
 0x4f8   : > { %7341 = vmatpush1.bf16.msra.mxu1 %v17593_v6  ;;  %8091 = vmatpush2.bf16.msra.mxu0 %v13358_v55  ;;  %v17663_v3 = vpack.c.bf16 %v6973_v23, %v6969_v10  ;;  %v17670_v61 = vpack.c.bf16 %v6965_v35, %v6961_v2  ;;  %v6945_v44 = vadd.f32 %v17296_v52, %v17302_v14  ;;  %v20341_v8 = vld [vmem:[#allocation117_spill] sm:$0xff]  ;;  %v20343_v14 = vmov 0   ;;  %v13390_v49 = vld [vmem:[%s19324_s5 + $0x64] ss:$8 sps:$4 sm:$0xff]   ;;  %v13388_v20 = vld [vmem:[%s19324_s5 + $0x60] ss:$8 sps:$4 sm:$0xff]  }
 0x4f9   : > { %7342 = vmatprep.subr.bf16.mxu1 %v17597_v31  ;;  %8092 = vmatprep.subr.bf16.mxu0 %v13366_v19  ;;  %v17678_v32 = vpack.c.bf16 %v6963_v60, %v17352_v48  ;;  %v17683_v12 = vpack.c.bf16 %v6955_v56, %v17322_v15  ;;  %v13445_v48 = vld [vmem:[%s19323_s4 + $0x168] ss:$12 sps:$4 sm:$0xff]   ;;  %v13384_v9 = vld [vmem:[%s19324_s5 + $0x70] ss:$8 sps:$4 sm:$0xff]   ;;  %v13397_v55 = vld [vmem:[%s19323_s4 + $0xe0] ss:$12 sps:$4 sm:$0xff]  }
 0x4fa   : > { %v17694_v34 = vpack.c.bf16 %v6945_v44, %v20341_v8  ;;  %v20342_v52 = vld [vmem:[#allocation125_spill] sm:$0xff]  ;;  %v13400_v19 = vld [vmem:[%s19324_s5 + $0x44] ss:$8 sps:$4 sm:$0xff]   ;;  %v13408_v57 = vld [vmem:[%s19324_s5 + $0x20] ss:$8 sps:$4 sm:$0xff]  }
 0x4fb   : > { %7308 = vmatmul.mubr.bf16.gmra.mxu1 %v13361_v24  ;;  %v13376_v15 = vld [vmem:[%s19323_s4 + $0x8] ss:$12 sps:$4 sm:$0xff]   ;;  %v13407_v24 = vld [vmem:[%s19323_s4 + $0xf8] ss:$12 sps:$4 sm:$0xff]   ;;  %v13417_v5 = vld [vmem:[%s19323_s4 + $0x110] ss:$12 sps:$4 sm:$0xff]  }
 0x4fc   : > { %7343 = vmatpush1.bf16.msra.mxu1 %v17616_v25  ;;  %8093 = vmatpush2.bf16.msra.mxu0 %v13364_v42  ;;  %v13387_v18 = vld [vmem:[%s19323_s4 + $0xc8] ss:$12 sps:$4 sm:$0xff]   ;;  %v13404_v45 = vld [vmem:[%s19324_s5 + $0x30] ss:$8 sps:$4 sm:$0xff]   ;;  %v13410_v42 = vld [vmem:[%s19324_s5 + $0x24] ss:$8 sps:$4 sm:$0xff]  }
 0x4fd   : > { %7344 = vmatprep.subr.bf16.mxu1 %v17626_v30  ;;  %8094 = vmatprep.subr.bf16.mxu0 %v13369_v28  ;;  %v13396_v47 = vld [vmem:[%s19324_s5 + $0x54] ss:$8 sps:$4 sm:$0xff]   ;;  %v13418_v58 = vld [vmem:[%s19324_s5] ss:$8 sps:$4 sm:$0xff]   ;;  %v13430_v29 = vld [vmem:[%s19324_s5 + $0xa4] ss:$8 sps:$4 sm:$0xff]  }
 0x4fe   : > { %7317 = vmatprep.mubr.bf16.mxu1 %v13372_v11  ;;  %7735 = vmatmul.mubr.bf16.gmra.mxu0 %v13431_v0  ;;  %v13406_v36 = vld [vmem:[%s19324_s5 + $0x34] ss:$8 sps:$4 sm:$0xff]   ;;  %v13414_v11 = vld [vmem:[%s19324_s5 + $0x10] ss:$8 sps:$4 sm:$0xff]   ;;  %v13420_v0 = vld [vmem:[%s19324_s5 + $0x4] ss:$8 sps:$4 sm:$0xff]  }
 0x4ff   : > { %7744 = vmatprep.mubr.bf16.mxu0 %v13443_v7  ;;  %v13416_v28 = vld [vmem:[%s19324_s5 + $0x14] ss:$8 sps:$4 sm:$0xff]   ;;  %v13428_v23 = vld [vmem:[%s19324_s5 + $0xa0] ss:$8 sps:$4 sm:$0xff]   ;;  %v13434_v10 = vld [vmem:[%s19324_s5 + $0x90] ss:$8 sps:$4 sm:$0xff]  }
 0x500   : > { %7345 = vmatpush1.bf16.msra.mxu1 %v17642_v59  ;;  %8095 = vmatpush2.bf16.msra.mxu0 %v13367_v16  ;;  %v13426_v7 = vld [vmem:[%s19324_s5 + $0xb4] ss:$8 sps:$4 sm:$0xff]   ;;  %v13424_v16 = vld [vmem:[%s19324_s5 + $0xb0] ss:$8 sps:$4 sm:$0xff]   ;;  %v13438_v2 = vld [vmem:[%s19324_s5 + $0x80] ss:$8 sps:$4 sm:$0xff]  }
 0x501   : > { %7346 = vmatprep.subr.bf16.mxu1 %v17646_v63  ;;  %8595 = vmatprep.subr.bf16.mxu0 %v20340_v17  ;;  %v13427_v27 = vld [vmem:[%s19323_s4 + $0x128] ss:$12 sps:$4 sm:$0xff]   ;;  %v13444_v60 = vld [vmem:[%s19323_s4 + $0x158] ss:$12 sps:$4 sm:$0xff]  }
 0x502   : > { %v13436_v35 = vld [vmem:[%s19324_s5 + $0x94] ss:$8 sps:$4 sm:$0xff]  }
 0x503   : > { %7318 = vmatmul.mubr.bf16.gmra.mxu1 %v13370_v40  ;;  %v13437_v40 = vld [vmem:[%s19323_s4 + $0x140] ss:$12 sps:$4 sm:$0xff]  }
 0x504   : > { %7347 = vmatpush1.bf16.msra.mxu1 %v17663_v3  ;;  %7327 = vmatprep.mubr.bf16.mxu1 %v13375_v33  ;;  %v13440_v33 = vld [vmem:[%s19324_s5 + $0x84] ss:$8 sps:$4 sm:$0xff]  }
 0x505   : > { %7348 = vmatprep.subr.bf16.mxu1 %v17670_v61 }
 0x506   : > { %7745 = vmatmul.mubr.bf16.gmra.mxu0 %v13441_v22  ;;  %v13448_v22 = vld [vmem:[%s19323_s4 + $0x170] ss:$12 sps:$4 sm:$0xff]  }
 0x507   : > { %7754 = vmatprep.mubr.bf16.mxu0 %v13447_v38 }
 0x508   : > { %7349 = vmatpush1.bf16.msra.mxu1 %v17678_v32 }
 0x509   : > { %7350 = vmatprep.subr.bf16.mxu1 %v17683_v12 }
 0x50b   : > { %7328 = vmatmul.mubr.bf16.gmra.mxu1 %v13373_v13 }
 0x50c   : > { %7351 = vmatpush1.bf16.msra.mxu1 %v20342_v52  ;;  %7370 = vmatprep.mubr.bf16.mxu1 %v20343_v14 }
 0x50d   : > { %7352 = vmatprep.subr.bf16.mxu1 %v17694_v34 }
 0x50e   : > { %7755 = vmatmul.mubr.bf16.gmra.mxu0 %v13445_v48 }
 0x510   : > { %7353 = vmatpush1.bf16.msra.mxu1 %v20344_v46 }
 0x511   : > { %7765 = vmatprep.subr.bf16.mxu1 %v17558_v26 }
 0x513   : > { %7371 = vmatmul.mubr.bf16.vlgmr.msra.gmra.mxu1 %v13376_v15 }
 0x514   : > { %7766 = vmatpush1.bf16.msra.mxu1 %v17563_v62  ;;  %7380 = vmatprep.mubr.bf16.mxu1 %v20343_v14 }
 0x515   : > { %7767 = vmatprep.subr.bf16.mxu1 %v17573_v1 }
 0x518   : > { %7768 = vmatpush1.bf16.msra.mxu1 %v17593_v6 }
 0x519   : > { %7769 = vmatprep.subr.bf16.mxu1 %v17597_v31 }
 0x51b   : > { %7381 = vmatmul.mubr.bf16.gmra.mxu1 %v13377_v41 }
 0x51c   : > { %7770 = vmatpush1.bf16.msra.mxu1 %v17616_v25  ;;  %7390 = vmatprep.mubr.bf16.mxu1 %v20343_v14 }
 0x51d   : > { %7771 = vmatprep.subr.bf16.mxu1 %v17626_v30 }
 0x520   : > { %7772 = vmatpush1.bf16.msra.mxu1 %v17642_v59 }
 0x521   : > { %7773 = vmatprep.subr.bf16.mxu1 %v17646_v63 }
 0x523   : > { %7391 = vmatmul.mubr.bf16.gmra.mxu1 %v13378_v54 }
 0x524   : > { %7774 = vmatpush1.bf16.msra.mxu1 %v17663_v3  ;;  %7400 = vmatprep.mubr.bf16.mxu1 %v20343_v14 }
 0x525   : > { %7775 = vmatprep.subr.bf16.mxu1 %v17670_v61 }
 0x528   : > { %7776 = vmatpush1.bf16.msra.mxu1 %v17678_v32 }
 0x529   : > { %7777 = vmatprep.subr.bf16.mxu1 %v17683_v12 }
 0x52b   : > { %7401 = vmatmul.mubr.bf16.gmra.mxu1 %v13379_v21 }
 0x52c   : > { %7778 = vmatpush1.bf16.msra.mxu1 %v20342_v52  ;;  %7410 = vmatprep.mubr.bf16.mxu1 %v20343_v14 }
 0x52d   : > { %7779 = vmatprep.subr.bf16.mxu1 %v17694_v34 }
 0x530   : > { %7780 = vmatpush1.bf16.msra.mxu1 %v20344_v46 }
 0x531   : > { %8321 = vmatprep.subr.bf16.mxu1 %v13386_v51 }
 0x533   : > { %7411 = vmatmul.mubr.bf16.gmra.mxu1 %v13380_v43 }
 0x534   : > { %7420 = vmatprep.mubr.bf16.mxu1 %v20343_v14 }
 0x53b   : > { %7421 = vmatmul.mubr.bf16.gmra.mxu1 %v13381_v39 }
 0x53c   : > { %7430 = vmatprep.mubr.bf16.mxu1 %v20343_v14 }
 0x543   : > { %7431 = vmatmul.mubr.bf16.gmra.mxu1 %v13382_v53 }
 0x544   : > { %7440 = vmatprep.mubr.bf16.mxu1 %v20343_v14 }
 0x54b   : > { %7441 = vmatmul.mubr.bf16.gmra.mxu1 %v13383_v37 }
 0x54c   : > { %7797 = vmatprep.mubr.bf16.mxu1 %v20343_v14 }
 0x553   : > { %7798 = vmatmul.mubr.bf16.vlgmr.msra.gmra.mxu1 %v13387_v18 }
 0x554   : > { %8322 = vmatpush1.bf16.msra.mxu1 %v13384_v9  ;;  %7807 = vmatprep.mubr.bf16.mxu1 %v20343_v14 }
 0x555   : > { %8323 = vmatprep.subr.bf16.mxu1 %v13390_v49 }
 0x558   : > { %8324 = vmatpush1.bf16.msra.mxu1 %v13388_v20 }
 0x559   : > { %8325 = vmatprep.subr.bf16.mxu1 %v13396_v47 }
 0x55b   : > { %7808 = vmatmul.mubr.bf16.gmra.mxu1 %v13397_v55 }
 0x55c   : > { %8326 = vmatpush1.bf16.msra.mxu1 %v13394_v50  ;;  %7817 = vmatprep.mubr.bf16.mxu1 %v20343_v14 }
 0x55d   : > { %8327 = vmatprep.subr.bf16.mxu1 %v13400_v19 }
 0x560   : > { %8328 = vmatpush1.bf16.msra.mxu1 %v13398_v4 }
 0x561   : > { %8329 = vmatprep.subr.bf16.mxu1 %v13406_v36 }
 0x563   : > { %7818 = vmatmul.mubr.bf16.gmra.mxu1 %v13407_v24 }
 0x564   : > { %8330 = vmatpush1.bf16.msra.mxu1 %v13404_v45  ;;  %7827 = vmatprep.mubr.bf16.mxu1 %v20343_v14 }
 0x565   : > { %8331 = vmatprep.subr.bf16.mxu1 %v13410_v42 }
 0x568   : > { %8332 = vmatpush1.bf16.msra.mxu1 %v13408_v57 }
 0x569   : > { %8333 = vmatprep.subr.bf16.mxu1 %v13416_v28 }
 0x56b   : > { %7828 = vmatmul.mubr.bf16.gmra.mxu1 %v13417_v5 }
 0x56c   : > { %8334 = vmatpush1.bf16.msra.mxu1 %v13414_v11  ;;  %7837 = vmatprep.mubr.bf16.mxu1 %v20343_v14 }
 0x56d   : > { %8335 = vmatprep.subr.bf16.mxu1 %v13420_v0 }
 0x570   : > { %8336 = vmatpush1.bf16.msra.mxu1 %v13418_v58 }
 0x571   : > { %8345 = vmatprep.subr.bf16.mxu1 %v13426_v7 }
 0x573   : > { %7838 = vmatmul.mubr.bf16.gmra.mxu1 %v13427_v27 }
 0x574   : > { %8346 = vmatpush2.bf16.msra.mxu1 %v13424_v16  ;;  %7847 = vmatprep.mubr.bf16.mxu1 %v20343_v14 }
 0x575   : > { %8347 = vmatprep.subr.bf16.mxu1 %v13430_v29 }
 0x578   : > { %8348 = vmatpush2.bf16.msra.mxu1 %v13428_v23 }
 0x579   : > { %8349 = vmatprep.subr.bf16.mxu1 %v13436_v35 }
 0x57b   : > { %7848 = vmatmul.mubr.bf16.gmra.mxu1 %v13437_v40 }
 0x57c   : > { %8350 = vmatpush2.bf16.msra.mxu1 %v13434_v10  ;;  %7857 = vmatprep.mubr.bf16.mxu1 %v20343_v14 }
 0x57d   : > { %8351 = vmatprep.subr.bf16.mxu1 %v13440_v33 }
 0x580   : > { %8352 = vmatpush2.bf16.msra.mxu1 %v13438_v2 }
 0x581   : > { %8708 = vmatprep.subr.bf16.mxu1 %v17558_v26 }
 0x583   : > { %7858 = vmatmul.mubr.bf16.gmra.mxu1 %v13444_v60 }
 0x584   : > { %7867 = vmatprep.mubr.bf16.mxu1 %v20343_v14 }
 0x58b   : > { %7868 = vmatmul.mubr.bf16.gmra.mxu1 %v13448_v22 }
 0x593   : > { %v7259_v56 = vpop.f32.mrf.mxu1  ;;  %v17896_v7 = vpop.f32.mrf.mxu0 }
 0x594   : > { %20346 = vst [vmem:[#allocation133_spill] sm:$0xff] %v17896_v7 }
 0x595   : > { %v7261_v38 = vpop.f32.mrf.mxu1  ;;  %v17898_v35 = vpop.f32.mrf.mxu0 }
 0x597   : > { %v7263_v44 = vpop.f32.mrf.mxu1  ;;  %v17900_v26 = vpop.f32.mrf.mxu0 }
 0x599   : > { %v7265_v13 = vpop.f32.mrf.mxu1 }
 0x59b   : > { %v7269_v48 = vpop.f32.mrf.mxu1 }
 0x59d   : > { %v7271_v8 = vpop.f32.mrf.mxu1 }
 0x59f   : > { %v7273_v15 = vpop.f32.mrf.mxu1 }
 0x5a1   : > { %v7275_v41 = vpop.f32.mrf.mxu1 }
 0x5a3   : > { %v7279_v54 = vpop.f32.mrf.mxu1 }
 0x5a5   : > { %v17852_v21 = vpop.f32.mrf.mxu1 }
 0x5a7   : > { %v7283_v51 = vpop.f32.mrf.mxu1 }
 0x5a9   : > { %v17854_v43 = vpop.f32.mrf.mxu1 }
 0x5ab   : > { %v17856_v39 = vpop.f32.mrf.mxu1 }
 0x5ad   : > { %v17858_v53 = vpop.f32.mrf.mxu1 }
 0x5af   : > { %v17860_v37 = vpop.f32.mrf.mxu1 }
 0x5b1   : > { %v17862_v18 = vpop.f32.mrf.mxu1 }
 0x5b3   : > { %v17864_v9 = vpop.f32.mrf.mxu1 }
 0x5b5   : > { %v17866_v49 = vpop.f32.mrf.mxu1 }
 0x5b7   : > { %v17868_v20 = vpop.f32.mrf.mxu1 }
 0x5b9   : > { %v17870_v47 = vpop.f32.mrf.mxu1 }
 0x5bb   : > { %v17872_v55 = vpop.f32.mrf.mxu1 }
 0x5bd   : > { %v17874_v50 = vpop.f32.mrf.mxu1 }
 0x5bf   : > { %v17876_v19 = vpop.f32.mrf.mxu1 }
 0x5c1   : > { %v17878_v4 = vpop.f32.mrf.mxu1 }
 0x5c3   : > { %v17880_v36 = vpop.f32.mrf.mxu1 }
 0x5c5   : > { %v17882_v24 = vpop.f32.mrf.mxu1 }
 0x5c7   : > { %v17884_v45 = vpop.f32.mrf.mxu1 }
 0x5c9   : > { %v17886_v42 = vpop.f32.mrf.mxu1 }
 0x5cb   : > { %v17888_v57 = vpop.f32.mrf.mxu1 }
 0x5cd   : > { %v17890_v28 = vpop.f32.mrf.mxu1 }
 0x5cf   : > { %v17892_v5 = vpop.f32.mrf.mxu1 }
 0x5d1   : > { %v17894_v11 = vpop.f32.mrf.mxu1 }
 0x5d2   : > { %20345 = vst [vmem:[#allocation217_spill] sm:$0xff] %v17894_v11 }
 0x5d3   : > { %v7372_v0 = vpop.f32.mrf.mxu1 }
 0x5d4   : > { %v7373_v16 = vadd.f32 %v7372_v0, %v7259_v56 }
 0x5d5   : > { %v7374_v58 = vpop.f32.mrf.mxu1 }
 0x5d6   : > { %v7375_v40 = vadd.f32 %v7374_v58, %v7261_v38  ;;  %v17905_v38 = vpop.f32.mrf.mxu0 }
 0x5d7   : > { %v7376_v27 = vpop.f32.mrf.mxu1 }
 0x5d8   : > { %v7377_v29 = vadd.f32 %v7376_v27, %v7263_v44 }
 0x5d9   : > { %v7378_v23 = vpop.f32.mrf.mxu1 }
 0x5da   : > { %v7451_v10 = vpack.c.bf16 %v7377_v29, %v7373_v16  ;;  %v7379_v33 = vadd.f32 %v7378_v23, %v7265_v13  ;;  %v17909_v29 = vpop.f32.mrf.mxu0 }
 0x5db   : > { %v7382_v2 = vpop.f32.mrf.mxu1 }
 0x5dc   : > { %v7452_v60 = vpack.c.bf16 %v7379_v33, %v7375_v40  ;;  %v7383_v7 = vadd.f32 %v7382_v2, %v7269_v48 }
 0x5dd   : > { %v7384_v22 = vpop.f32.mrf.mxu1 }
 0x5de   : > { %12129 = vmatprep.mubr.msk.bf16.mxu1 %vm8039_vm2, %v7452_v60  ;;  %v7385_v44 = vadd.f32 %v7384_v22, %v7271_v8 }
 0x5df   : > { %v7386_v14 = vpop.f32.mrf.mxu1  ;;  %8354 = vmatmul.mubr.bf16.vlgmr.msra.gmra.mxu1 %v7451_v10 }
 0x5e0   : > { %v7387_v11 = vadd.f32 %v7386_v14, %v7273_v15  ;;  %8709 = vmatpush1.bf16.msra.mxu1 %v17563_v62 }
 0x5e1   : > { %8710 = vmatprep.subr.bf16.mxu1 %v17573_v1  ;;  %v7388_v56 = vpop.f32.mrf.mxu1 }
 0x5e2   : > { %v7453_v13 = vpack.c.bf16 %v7387_v11, %v7383_v7  ;;  %v7389_v0 = vadd.f32 %v7388_v56, %v7275_v41  ;;  %v17914_v41 = vpop.f32.mrf.mxu0 }
 0x5e3   : > { %v7392_v58 = vpop.f32.mrf.mxu1 }
 0x5e4   : > { %v7454_v27 = vpack.c.bf16 %v7389_v0, %v7385_v44  ;;  %8711 = vmatpush1.bf16.msra.mxu1 %v17593_v6  ;;  %v7393_v48 = vadd.f32 %v7392_v58, %v7279_v54 }
 0x5e5   : > { %8712 = vmatprep.subr.bf16.mxu1 %v17597_v31  ;;  %v7394_v16 = vpop.f32.mrf.mxu1 }
 0x5e6   : > { %12130 = vmatprep.mubr.msk.bf16.mxu1 %vm8039_vm2, %v7454_v27  ;;  %v7395_v11 = vadd.f32 %v7394_v16, %v17852_v21 }
 0x5e7   : > { %v7396_v14 = vpop.f32.mrf.mxu1  ;;  %8364 = vmatmul.mubr.bf16.gmra.mxu1 %v7453_v13 }
 0x5e8   : > { %v7397_v15 = vadd.f32 %v7396_v14, %v7283_v51  ;;  %8713 = vmatpush1.bf16.msra.mxu1 %v17616_v25  ;;  %v17920_v51 = vpop.f32.mrf.mxu0 }
 0x5e9   : > { %8714 = vmatprep.subr.bf16.mxu1 %v17626_v30  ;;  %v7398_v8 = vpop.f32.mrf.mxu1 }
 0x5ea   : > { %v7455_v7 = vpack.c.bf16 %v7397_v15, %v7393_v48  ;;  %v7399_v23 = vadd.f32 %v7398_v8, %v17854_v43  ;;  %v17927_v60 = vpop.f32.mrf.mxu0 }
 0x5eb   : > { %v7402_v40 = vpop.f32.mrf.mxu1 }
 0x5ec   : > { %v7456_v10 = vpack.c.bf16 %v7399_v23, %v7395_v11  ;;  %8715 = vmatpush1.bf16.msra.mxu1 %v17642_v59  ;;  %v7403_v2 = vadd.f32 %v7402_v40, %v17856_v39 }
 0x5ed   : > { %8716 = vmatprep.subr.bf16.mxu1 %v17646_v63  ;;  %v7404_v54 = vpop.f32.mrf.mxu1 }
 0x5ee   : > { %12131 = vmatprep.mubr.msk.bf16.mxu1 %vm8039_vm2, %v7456_v10  ;;  %v7405_v22 = vadd.f32 %v7404_v54, %v17858_v53 }
 0x5ef   : > { %v7406_v33 = vpop.f32.mrf.mxu1  ;;  %8374 = vmatmul.mubr.bf16.gmra.mxu1 %v7455_v7 }
 0x5f0   : > { %v7407_v21 = vadd.f32 %v7406_v33, %v17860_v37  ;;  %8717 = vmatpush1.bf16.msra.mxu1 %v17663_v3  ;;  %v17933_v37 = vpop.f32.mrf.mxu0 }
 0x5f1   : > { %8718 = vmatprep.subr.bf16.mxu1 %v17670_v61  ;;  %v7408_v43 = vpop.f32.mrf.mxu1 }
 0x5f2   : > { %v7457_v56 = vpack.c.bf16 %v7407_v21, %v7403_v2  ;;  %v7409_v44 = vadd.f32 %v7408_v43, %v17862_v18  ;;  %v17940_v16 = vpop.f32.mrf.mxu0 }
 0x5f3   : > { %v7412_v13 = vpop.f32.mrf.mxu1 }
 0x5f4   : > { %v7458_v0 = vpack.c.bf16 %v7409_v44, %v7405_v22  ;;  %8719 = vmatpush1.bf16.msra.mxu1 %v17678_v32  ;;  %v7413_v27 = vadd.f32 %v7412_v13, %v17864_v9 }
 0x5f5   : > { %8720 = vmatprep.subr.bf16.mxu1 %v17683_v12  ;;  %v7414_v39 = vpop.f32.mrf.mxu1 }
 0x5f6   : > { %12132 = vmatprep.mubr.msk.bf16.mxu1 %vm8039_vm2, %v7458_v0  ;;  %v7415_v14 = vadd.f32 %v7414_v39, %v17866_v49 }
 0x5f7   : > { %v7416_v58 = vpop.f32.mrf.mxu1  ;;  %8384 = vmatmul.mubr.bf16.gmra.mxu1 %v7457_v56 }
 0x5f8   : > { %v7417_v53 = vadd.f32 %v7416_v58, %v17868_v20  ;;  %8721 = vmatpush1.bf16.msra.mxu1 %v20342_v52  ;;  %v17946_v20 = vpop.f32.mrf.mxu0 }
 0x5f9   : > { %8722 = vmatprep.subr.bf16.mxu1 %v17694_v34  ;;  %v7418_v18 = vpop.f32.mrf.mxu1 }
 0x5fa   : > { %v7459_v48 = vpack.c.bf16 %v7417_v53, %v7413_v27  ;;  %v7419_v15 = vadd.f32 %v7418_v18, %v17870_v47  ;;  %v17951_v10 = vpop.f32.mrf.mxu0 }
 0x5fb   : > { %v7422_v8 = vpop.f32.mrf.mxu1 }
 0x5fc   : > { %v7460_v11 = vpack.c.bf16 %v7419_v15, %v7415_v14  ;;  %8723 = vmatpush1.bf16.msra.mxu1 %v20344_v46  ;;  %v7423_v23 = vadd.f32 %v7422_v8, %v17872_v55  ;;  %v17955_v22 = vpop.f32.mrf.mxu0 }
 0x5fd   : > { %9312 = vmatprep.subr.bf16.mxu1 %v20340_v17  ;;  %v7424_v9 = vpop.f32.mrf.mxu1 }
 0x5fe   : > { %12133 = vmatprep.mubr.msk.bf16.mxu1 %vm8039_vm2, %v7460_v11  ;;  %v7425_v47 = vadd.f32 %v7424_v9, %v17874_v50  ;;  %v17960_v13 = vpop.f32.mrf.mxu0 }
 0x5ff   : > { %v7426_v7 = vpop.f32.mrf.mxu1  ;;  %8394 = vmatmul.mubr.bf16.gmra.mxu1 %v7459_v48 }
 0x600   : > { %v7427_v49 = vadd.f32 %v7426_v7, %v17876_v19  ;;  %v17964_v53 = vpop.f32.mrf.mxu0 }
 0x601   : > { %v7428_v40 = vpop.f32.mrf.mxu1 }
 0x602   : > { %v7461_v54 = vpack.c.bf16 %v7427_v49, %v7423_v23  ;;  %v7429_v33 = vadd.f32 %v7428_v40, %v17878_v4  ;;  %v17969_v48 = vpop.f32.mrf.mxu0 }
 0x603   : > { %v7432_v2 = vpop.f32.mrf.mxu1 }
 0x604   : > { %v7462_v21 = vpack.c.bf16 %v7429_v33, %v7425_v47  ;;  %v7433_v55 = vadd.f32 %v7432_v2, %v17880_v36  ;;  %v17973_v23 = vpop.f32.mrf.mxu0  ;;  %v20349_v33 = vld [vmem:[#allocation133_spill] sm:$0xff] }
 0x605   : > { %v7434_v43 = vpop.f32.mrf.mxu1 }
 0x606   : > { %12134 = vmatprep.mubr.msk.bf16.mxu1 %vm8039_vm2, %v7462_v21  ;;  %v7435_v50 = vadd.f32 %v7434_v43, %v17882_v24  ;;  %v17978_v47 = vpop.f32.mrf.mxu0  ;;  %v13449_v43 = vld [vmem:[%s19323_s4 + $0x188] ss:$12 sps:$4 sm:$0xff]  }
 0x607   : > { %v7436_v56 = vpop.f32.mrf.mxu1  ;;  %8404 = vmatmul.mubr.bf16.gmra.mxu1 %v7461_v54 }
 0x608   : > { %v7437_v19 = vadd.f32 %v7436_v56, %v17884_v45 }
 0x609   : > { %v7438_v44 = vpop.f32.mrf.mxu1 }
 0x60a   : > { %v7463_v0 = vpack.c.bf16 %v7437_v19, %v7433_v55  ;;  %v7439_v4 = vadd.f32 %v7438_v44, %v17886_v42  ;;  %v20347_v42 = vld [vmem:[#allocation217_spill] sm:$0xff]  ;;  %v17986_v44 = vpop.f32.mrf.mxu0 }
 0x60b   : > { %v7442_v39 = vpop.f32.mrf.mxu1 }
 0x60c   : > { %v7464_v58 = vpack.c.bf16 %v7439_v4, %v7435_v50  ;;  %v7443_v36 = vadd.f32 %v7442_v39, %v17888_v57  ;;  %v20348_v57 = vmov 0   ;;  %v20351_v50 = vld [vmem:[#allocation95_spill] sm:$0xff]  ;;  %v17994_v4 = vpop.f32.mrf.mxu0 }
 0x60d   : > { %v7444_v27 = vpop.f32.mrf.mxu1 }
 0x60e   : > { %12135 = vmatprep.mubr.msk.bf16.mxu1 %vm8039_vm2, %v7464_v58  ;;  %v7445_v24 = vadd.f32 %v7444_v27, %v17890_v28 }
 0x60f   : > { %v7446_v18 = vpop.f32.mrf.mxu1  ;;  %8414 = vmatmul.mubr.bf16.gmra.mxu1 %v7463_v0 }
 0x610   : > { %v7447_v45 = vadd.f32 %v7446_v18, %v17892_v5 }
 0x611   : > { %v7448_v14 = vpop.f32.mrf.mxu1 }
 0x612   : > { %v7465_v15 = vpack.c.bf16 %v7447_v45, %v7443_v36  ;;  %v7449_v8 = vadd.f32 %v7448_v14, %v20347_v42  ;;  %v20352_v45 = vld [vmem:[#allocation183_spill] sm:$0xff] }
 0x613   : > { %v7799_v11 = vpop.f32.mrf.mxu1 }
 0x614   : > { %v7466_v9 = vpack.c.bf16 %v7449_v8, %v7445_v24  ;;  %v7800_v2 = vadd.f32 %v7799_v11, %v20349_v33  ;;  %v20353_v24 = vld [vmem:[#allocation185_spill] sm:$0xff]  ;;  %v20355_v8 = vld [vmem:[#allocation103_spill] sm:$0xff] }
 0x615   : > { %v7801_v7 = vpop.f32.mrf.mxu1 }
 0x616   : > { %12136 = vmatprep.mubr.msk.bf16.mxu1 %vm8039_vm2, %v7466_v9  ;;  %v7802_v28 = vadd.f32 %v7801_v7, %v17898_v35  ;;  %v20350_v35 = vld [vmem:[#allocation179_spill] sm:$0xff] }
 0x617   : > { %v7803_v49 = vpop.f32.mrf.mxu1  ;;  %8424 = vmatmul.mubr.bf16.gmra.mxu1 %v7465_v15  ;;  %v20354_v15 = vld [vmem:[#allocation187_spill] sm:$0xff] }
 0x618   : > { %8740 = vmatprep.mubr.bf16.mxu1 %v20348_v57  ;;  %v7804_v5 = vadd.f32 %v7803_v49, %v17900_v26 }
 0x619   : > { %v7805_v40 = vpop.f32.mrf.mxu1 }
 0x61a   : > { %v7806_v54 = vadd.f32 %v7805_v40, %v17905_v38  ;;  %v7878_v55 = vpack.c.bf16 %v7804_v5, %v7800_v2  ;;  %v20357_v2 = vld [vmem:[#allocation191_spill] sm:$0xff] }
 0x61b   : > { %v7809_v21 = vpop.f32.mrf.mxu1 }
 0x61c   : > { %v7879_v56 = vpack.c.bf16 %v7806_v54, %v7802_v28  ;;  %v7810_v27 = vadd.f32 %v7809_v21, %v17909_v29  ;;  %v20356_v54 = vld [vmem:[#allocation105_spill] sm:$0xff] }
 0x61d   : > { %v7811_v19 = vpop.f32.mrf.mxu1  ;;  %v20358_v21 = vld [vmem:[#allocation109_spill] sm:$0xff] }
 0x61e   : > { %12097 = vmatprep.mubr.msk.bf16.mxu0 %vm8039_vm2, %v7879_v56  ;;  %v7812_v39 = vadd.f32 %v7811_v19, %v17914_v41  ;;  %v20359_v56 = vld [vmem:[#allocation195_spill] sm:$0xff] }
 0x61f   : > { %v7813_v26 = vpop.f32.mrf.mxu1  ;;  %8097 = vmatmul.mubr.bf16.vlgmr.msra.gmra.mxu0 %v7878_v55  ;;  %8741 = vmatmul.mubr.bf16.vlgmr.msra.gmra.mxu1 %v13449_v43 }
 0x620   : > { %8596 = vmatpush1.bf16.msra.mxu0 %v20350_v35  ;;  %9313 = vmatpush1.bf16.msra.mxu1 %v20350_v35  ;;  %v7814_v38 = vadd.f32 %v7813_v26, %v17920_v51  ;;  %v13450_v51 = vld [vmem:[%s19323_s4 + $0x1a0] ss:$12 sps:$4 sm:$0xff]  }
 0x621   : > { %8597 = vmatprep.subr.bf16.mxu0 %v20351_v50  ;;  %9314 = vmatprep.subr.bf16.mxu1 %v20351_v50  ;;  %v7815_v0 = vpop.f32.mrf.mxu1 }
 0x622   : > { %v7816_v58 = vadd.f32 %v7815_v0, %v17927_v60  ;;  %8750 = vmatprep.mubr.bf16.mxu1 %v20348_v57  ;;  %v7880_v14 = vpack.c.bf16 %v7814_v38, %v7810_v27  ;;  %v18007_v60 = vpop.f32.mrf.mxu0  ;;  %v20360_v27 = vld [vmem:[#allocation111_spill] sm:$0xff] }
 0x623   : > { %v7819_v18 = vpop.f32.mrf.mxu1 }
 0x624   : > { %v7881_v36 = vpack.c.bf16 %v7816_v58, %v7812_v39  ;;  %8598 = vmatpush1.bf16.msra.mxu0 %v20352_v45  ;;  %9315 = vmatpush1.bf16.msra.mxu1 %v20352_v45  ;;  %v18015_v9 = vpop.f32.mrf.mxu0  ;;  %v7820_v5 = vadd.f32 %v7819_v18, %v17933_v37  ;;  %v13452_v58 = vld [vmem:[%s19323_s4 + $0x1d0] ss:$12 sps:$4 sm:$0xff]  }
 0x625   : > { %8599 = vmatprep.subr.bf16.mxu0 %v20353_v24  ;;  %9316 = vmatprep.subr.bf16.mxu1 %v20353_v24  ;;  %v7821_v41 = vpop.f32.mrf.mxu1 }
 0x626   : > { %12098 = vmatprep.mubr.msk.bf16.mxu0 %vm8039_vm2, %v7881_v36  ;;  %v7822_v7 = vadd.f32 %v7821_v41, %v17940_v16  ;;  %v20362_v36 = vld [vmem:[#allocation91_spill] sm:$0xff]  ;;  %v20363_v41 = vld [vmem:[#allocation113_spill] sm:$0xff] }
 0x627   : > { %v7823_v29 = vpop.f32.mrf.mxu1  ;;  %8107 = vmatmul.mubr.bf16.gmra.mxu0 %v7880_v14  ;;  %8751 = vmatmul.mubr.bf16.gmra.mxu1 %v13450_v51  ;;  %v20361_v51 = vld [vmem:[#allocation197_spill] sm:$0xff] }
 0x628   : > { %8600 = vmatpush1.bf16.msra.mxu0 %v20354_v15  ;;  %9317 = vmatpush1.bf16.msra.mxu1 %v20354_v15  ;;  %v7824_v42 = vadd.f32 %v7823_v29, %v17946_v20  ;;  %v13451_v20 = vld [vmem:[%s19323_s4 + $0x1b8] ss:$12 sps:$4 sm:$0xff]  }
 0x629   : > { %8601 = vmatprep.subr.bf16.mxu0 %v20355_v8  ;;  %9318 = vmatprep.subr.bf16.mxu1 %v20355_v8  ;;  %v7825_v11 = vpop.f32.mrf.mxu1 }
 0x62a   : > { %v7826_v49 = vadd.f32 %v7825_v11, %v17951_v10  ;;  %8760 = vmatprep.mubr.bf16.mxu1 %v20348_v57  ;;  %v7882_v33 = vpack.c.bf16 %v7824_v42, %v7820_v5  ;;  %v7740_v10 = vpop.f32.mrf.mxu0 }
 0x62b   : > { %v7829_v40 = vpop.f32.mrf.mxu1 }
 0x62c   : > { %v7883_v28 = vpack.c.bf16 %v7826_v49, %v7822_v7  ;;  %8602 = vmatpush1.bf16.msra.mxu0 %v20356_v54  ;;  %9319 = vmatpush1.bf16.msra.mxu1 %v20356_v54  ;;  %v7742_v19 = vpop.f32.mrf.mxu0  ;;  %v7830_v0 = vadd.f32 %v7829_v40, %v17955_v22  ;;  %v13453_v40 = vld [vmem:[%s19323_s4 + $0x1e8] ss:$12 sps:$4 sm:$0xff]  }
 0x62d   : > { %8603 = vmatprep.subr.bf16.mxu0 %v20357_v2  ;;  %9320 = vmatprep.subr.bf16.mxu1 %v20357_v2  ;;  %v7831_v16 = vpop.f32.mrf.mxu1 }
 0x62e   : > { %12099 = vmatprep.mubr.msk.bf16.mxu0 %vm8039_vm2, %v7883_v28  ;;  %v7832_v26 = vadd.f32 %v7831_v16, %v17960_v13  ;;  %v20366_v16 = vld [vmem:[#allocation115_spill] sm:$0xff] }
 0x62f   : > { %v7833_v37 = vpop.f32.mrf.mxu1  ;;  %8117 = vmatmul.mubr.bf16.gmra.mxu0 %v7882_v33  ;;  %8761 = vmatmul.mubr.bf16.gmra.mxu1 %v13451_v20  ;;  %v20364_v20 = vld [vmem:[#allocation89_spill] sm:$0xff]  ;;  %v20365_v33 = vld [vmem:[#allocation199_spill] sm:$0xff] }
 0x630   : > { %8604 = vmatpush1.bf16.msra.mxu0 %v20358_v21  ;;  %9321 = vmatpush1.bf16.msra.mxu1 %v20358_v21  ;;  %v7834_v43 = vadd.f32 %v7833_v37, %v17964_v53 }
 0x631   : > { %8605 = vmatprep.subr.bf16.mxu0 %v20359_v56  ;;  %9322 = vmatprep.subr.bf16.mxu1 %v20359_v56  ;;  %v7835_v55 = vpop.f32.mrf.mxu1 }
 0x632   : > { %v7836_v38 = vadd.f32 %v7835_v55, %v17969_v48  ;;  %8770 = vmatprep.mubr.bf16.mxu1 %v20348_v57  ;;  %v7884_v18 = vpack.c.bf16 %v7834_v43, %v7830_v0  ;;  %v18045_v48 = vpop.f32.mrf.mxu0  ;;  %v20367_v43 = vld [vmem:[#allocation201_spill] sm:$0xff] }
 0x633   : > { %v7839_v39 = vpop.f32.mrf.mxu1 }
 0x634   : > { %v7885_v53 = vpack.c.bf16 %v7836_v38, %v7832_v26  ;;  %8606 = vmatpush1.bf16.msra.mxu0 %v20360_v27  ;;  %9323 = vmatpush1.bf16.msra.mxu1 %v20360_v27  ;;  %v7748_v42 = vpop.f32.mrf.mxu0  ;;  %v7840_v49 = vadd.f32 %v7839_v39, %v17973_v23 }
 0x635   : > { %8607 = vmatprep.subr.bf16.mxu0 %v20361_v51  ;;  %9324 = vmatprep.subr.bf16.mxu1 %v20361_v51  ;;  %v7841_v13 = vpop.f32.mrf.mxu1 }
 0x636   : > { %12100 = vmatprep.mubr.msk.bf16.mxu0 %vm8039_vm2, %v7885_v53  ;;  %v7842_v11 = vadd.f32 %v7841_v13, %v17978_v47  ;;  %v13454_v53 = vld [vmem:[%s19323_s4 + $0x200] ss:$12 sps:$4 sm:$0xff]  }
 0x637   : > { %v7843_v22 = vpop.f32.mrf.mxu1  ;;  %8127 = vmatmul.mubr.bf16.gmra.mxu0 %v7884_v18  ;;  %8771 = vmatmul.mubr.bf16.gmra.mxu1 %v13452_v58 }
 0x638   : > { %8608 = vmatpush1.bf16.msra.mxu0 %v20362_v36  ;;  %9325 = vmatpush1.bf16.msra.mxu1 %v20362_v36  ;;  %v7844_v14 = vadd.f32 %v7843_v22, %v17986_v44  ;;  %v20369_v22 = vld [vmem:[#allocation119_spill] sm:$0xff] }
 0x639   : > { %8609 = vmatprep.subr.bf16.mxu0 %v20363_v41  ;;  %9326 = vmatprep.subr.bf16.mxu1 %v20363_v41  ;;  %v7845_v29 = vpop.f32.mrf.mxu1 }
 0x63a   : > { %v7846_v7 = vadd.f32 %v7845_v29, %v17994_v4  ;;  %8780 = vmatprep.mubr.bf16.mxu1 %v20348_v57  ;;  %v7886_v28 = vpack.c.bf16 %v7844_v14, %v7840_v49  ;;  %v7750_v4 = vpop.f32.mrf.mxu0  ;;  %v20370_v14 = vld [vmem:[#allocation121_spill] sm:$0xff] }
 0x63b   : > { %v7849_v5 = vpop.f32.mrf.mxu1 }
 0x63c   : > { %v7887_v44 = vpack.c.bf16 %v7846_v7, %v7842_v11  ;;  %8610 = vmatpush1.bf16.msra.mxu0 %v20364_v20  ;;  %9327 = vmatpush1.bf16.msra.mxu1 %v20364_v20  ;;  %v7752_v26 = vpop.f32.mrf.mxu0  ;;  %v7850_v39 = vadd.f32 %v7849_v5, %v18007_v60  ;;  %v20371_v11 = vld [vmem:[#allocation207_spill] sm:$0xff] }
 0x63d   : > { %8611 = vmatprep.subr.bf16.mxu0 %v20365_v33  ;;  %9328 = vmatprep.subr.bf16.mxu1 %v20365_v33  ;;  %v7851_v47 = vpop.f32.mrf.mxu1 }
 0x63e   : > { %12101 = vmatprep.mubr.msk.bf16.mxu0 %vm8039_vm2, %v7887_v44  ;;  %v7852_v38 = vadd.f32 %v7851_v47, %v18015_v9  ;;  %v13455_v47 = vld [vmem:[%s19323_s4 + $0x218] ss:$12 sps:$4 sm:$0xff]  }
 0x63f   : > { %v7853_v23 = vpop.f32.mrf.mxu1  ;;  %8137 = vmatmul.mubr.bf16.gmra.mxu0 %v7886_v28  ;;  %8781 = vmatmul.mubr.bf16.gmra.mxu1 %v13453_v40 }
 0x640   : > { %8612 = vmatpush2.bf16.msra.mxu0 %v20366_v16  ;;  %9329 = vmatpush2.bf16.msra.mxu1 %v20366_v16  ;;  %v7854_v37 = vadd.f32 %v7853_v23, %v7740_v10  ;;  %v20368_v10 = vld [vmem:[#allocation203_spill] sm:$0xff] }
 0x641   : > { %8613 = vmatprep.subr.bf16.mxu0 %v20367_v43  ;;  %9330 = vmatprep.subr.bf16.mxu1 %v20367_v43  ;;  %v7855_v55 = vpop.f32.mrf.mxu1 }
 0x642   : > { %v7856_v0 = vadd.f32 %v7855_v55, %v7742_v19  ;;  %8790 = vmatprep.mubr.bf16.mxu1 %v20348_v57  ;;  %v7888_v13 = vpack.c.bf16 %v7854_v37, %v7850_v39  ;;  %v7756_v19 = vpop.f32.mrf.mxu0  ;;  %v20372_v37 = vld [vmem:[#allocation123_spill] sm:$0xff]  ;;  %v20373_v55 = vld [vmem:[#allocation209_spill] sm:$0xff] }
 0x643   : > { %v7859_v58 = vpop.f32.mrf.mxu1  ;;  %v20375_v39 = vld [vmem:[#allocation127_spill] sm:$0xff] }
 0x644   : > { %v7889_v18 = vpack.c.bf16 %v7856_v0, %v7852_v38  ;;  %8614 = vmatpush2.bf16.msra.mxu0 %v20368_v10  ;;  %9331 = vmatpush2.bf16.msra.mxu1 %v20368_v10  ;;  %v7758_v49 = vpop.f32.mrf.mxu0  ;;  %v7860_v44 = vadd.f32 %v7859_v58, %v18045_v48  ;;  %v20374_v38 = vld [vmem:[#allocation211_spill] sm:$0xff] }
 0x645   : > { %8615 = vmatprep.subr.bf16.mxu0 %v20369_v22  ;;  %9332 = vmatprep.subr.bf16.mxu1 %v20369_v22  ;;  %v7861_v9 = vpop.f32.mrf.mxu1 }
 0x646   : > { %12102 = vmatprep.mubr.msk.bf16.mxu0 %vm8039_vm2, %v7889_v18  ;;  %v7862_v5 = vadd.f32 %v7861_v9, %v7748_v42 }
 0x647   : > { %v7863_v60 = vpop.f32.mrf.mxu1  ;;  %8147 = vmatmul.mubr.bf16.gmra.mxu0 %v7888_v13  ;;  %8791 = vmatmul.mubr.bf16.gmra.mxu1 %v13454_v53 }
 0x648   : > { %8616 = vmatpush2.bf16.msra.mxu0 %v20370_v14  ;;  %9333 = vmatpush2.bf16.msra.mxu1 %v20370_v14  ;;  %v7864_v29 = vadd.f32 %v7863_v60, %v7750_v4  ;;  %v13456_v60 = vld [vmem:[%s19323_s4 + $0x230] ss:$12 sps:$4 sm:$0xff]  }
 0x649   : > { %8617 = vmatprep.subr.bf16.mxu0 %v20371_v11  ;;  %9334 = vmatprep.subr.bf16.mxu1 %v20371_v11  ;;  %v7865_v7 = vpop.f32.mrf.mxu1 }
 0x64a   : > { %v7866_v40 = vadd.f32 %v7865_v7, %v7752_v26  ;;  %8800 = vmatprep.mubr.bf16.mxu1 %v20348_v57  ;;  %v7890_v4 = vpack.c.bf16 %v7864_v29, %v7860_v44  ;;  %v7760_v26 = vpop.f32.mrf.mxu0  ;;  %v20376_v7 = vld [vmem:[#allocation213_spill] sm:$0xff]  ;;  %v20378_v44 = vld [vmem:[#allocation107_spill] sm:$0xff] }
 0x64b   : > { %v7869_v28 = vpop.f32.mrf.mxu1 }
 0x64c   : > { %v7891_v23 = vpack.c.bf16 %v7866_v40, %v7862_v5  ;;  %8618 = vmatpush2.bf16.msra.mxu0 %v20372_v37  ;;  %9335 = vmatpush2.bf16.msra.mxu1 %v20372_v37  ;;  %v7762_v58 = vpop.f32.mrf.mxu0  ;;  %v7870_v9 = vadd.f32 %v7869_v28, %v7756_v19  ;;  %v20377_v40 = vld [vmem:[#allocation129_spill] sm:$0xff]  ;;  %v20379_v28 = vld [vmem:[#allocation215_spill] sm:$0xff] }
 0x64d   : > { %8619 = vmatprep.subr.bf16.mxu0 %v20373_v55  ;;  %9336 = vmatprep.subr.bf16.mxu1 %v20373_v55  ;;  %v7871_v42 = vpop.f32.mrf.mxu1  ;;  %v13459_v19 = vld [vmem:[%s19323_s4 + $0x184] ss:$12 sps:$4 sm:$0xff]  }
 0x64e   : > { %12103 = vmatprep.mubr.msk.bf16.mxu0 %vm8039_vm2, %v7891_v23  ;;  %v7872_v18 = vadd.f32 %v7871_v42, %v7758_v49  ;;  %v13465_v49 = vld [vmem:[%s19323_s4 + $0x244] ss:$12 sps:$4 sm:$0xff]   ;;  %v13468_v23 = vld [vmem:[%s19324_s5 + $0x2b4] ss:$8 sps:$4 sm:$0xff]   ;;  %v13463_v42 = vld [vmem:[%s19323_s4 + $0x240] ss:$12 sps:$4 sm:$0xff]  }
 0x64f   : > { %v7873_v48 = vpop.f32.mrf.mxu1  ;;  %8157 = vmatmul.mubr.bf16.gmra.mxu0 %v7890_v4  ;;  %8801 = vmatmul.mubr.bf16.gmra.mxu1 %v13455_v47  ;;  %v13462_v47 = vld [vmem:[%s19324_s5 + $0x1f4] ss:$8 sps:$4 sm:$0xff]   ;;  %v13457_v4 = vld [vmem:[%s19323_s4 + $0x180] ss:$12 sps:$4 sm:$0xff]  }
 0x650   : > { %8620 = vmatpush2.bf16.msra.mxu0 %v20374_v38  ;;  %9337 = vmatpush2.bf16.msra.mxu1 %v20374_v38  ;;  %v7874_v0 = vadd.f32 %v7873_v48, %v7760_v26  ;;  %v20380_v26 = vld [vmem:[#allocation101_spill] sm:$0xff] }
 0x651   : > { %8621 = vmatprep.subr.bf16.mxu0 %v20375_v39  ;;  %9338 = vmatprep.subr.bf16.mxu1 %v20375_v39  ;;  %v7875_v53 = vpop.f32.mrf.mxu1  ;;  %v13460_v48 = vld [vmem:[%s19324_s5 + $0x1f0] ss:$8 sps:$4 sm:$0xff]  }
 0x652   : > { %v7876_v13 = vadd.f32 %v7875_v53, %v7762_v58  ;;  %8810 = vmatprep.mubr.bf16.mxu1 %v20348_v57  ;;  %v7892_v5 = vpack.c.bf16 %v7874_v0, %v7870_v9  ;;  %v13466_v0 = vld [vmem:[%s19324_s5 + $0x2b0] ss:$8 sps:$4 sm:$0xff]   ;;  %v13471_v58 = vld [vmem:[%s19324_s5 + $0x1e4] ss:$8 sps:$4 sm:$0xff]   ;;  %v13472_v9 = vld [vmem:[%s19324_s5 + $0x2a0] ss:$8 sps:$4 sm:$0xff]  }
 0x653   : > { %v13474_v53 = vld [vmem:[%s19324_s5 + $0x2a4] ss:$8 sps:$4 sm:$0xff]  }
 0x654   : > { %v7893_v29 = vpack.c.bf16 %v7876_v13, %v7872_v18  ;;  %8622 = vmatpush2.bf16.msra.mxu0 %v20376_v7  ;;  %9339 = vmatpush2.bf16.msra.mxu1 %v20376_v7  ;;  %v13477_v18 = vld [vmem:[%s19323_s4 + $0x19c] ss:$12 sps:$4 sm:$0xff]  }
 0x655   : > { %8623 = vmatprep.subr.bf16.mxu0 %v20377_v40  ;;  %9340 = vmatprep.subr.bf16.mxu1 %v20377_v40  ;;  %v13469_v13 = vld [vmem:[%s19324_s5 + $0x1e0] ss:$8 sps:$4 sm:$0xff]  }
 0x656   : > { %12104 = vmatprep.mubr.msk.bf16.mxu0 %vm8039_vm2, %v7893_v29  ;;  %v13483_v29 = vld [vmem:[%s19324_s5 + $0x294] ss:$8 sps:$4 sm:$0xff]  }
 0x657   : > { %8167 = vmatmul.mubr.bf16.gmra.mxu0 %v7892_v5  ;;  %8811 = vmatmul.mubr.bf16.gmra.mxu1 %v13456_v60  ;;  %v13480_v60 = vld [vmem:[%s19324_s5 + $0x1d4] ss:$8 sps:$4 sm:$0xff]   ;;  %v13475_v5 = vld [vmem:[%s19323_s4 + $0x198] ss:$12 sps:$4 sm:$0xff]  }
 0x658   : > { %8624 = vmatpush2.bf16.msra.mxu0 %v20378_v44  ;;  %9341 = vmatpush2.bf16.msra.mxu1 %v20378_v44 }
 0x659   : > { %8625 = vmatprep.subr.bf16.mxu0 %v20379_v28  ;;  %9342 = vmatprep.subr.bf16.mxu1 %v20379_v28 }
 0x65a   : > { %8627 = vmatprep.mubr.bf16.mxu0 %v13459_v19  ;;  %9344 = vmatprep.mubr.bf16.mxu1 %v13465_v49  ;;  %v13478_v19 = vld [vmem:[%s19324_s5 + $0x1d0] ss:$8 sps:$4 sm:$0xff]  }
 0x65b   : > { %v13481_v49 = vld [vmem:[%s19324_s5 + $0x290] ss:$8 sps:$4 sm:$0xff]  }
 0x65c   : > { %8626 = vmatpush2.bf16.msra.mxu0 %v20380_v26  ;;  %9343 = vmatpush2.bf16.msra.mxu1 %v20380_v26 }
 0x65d   : > { %9006 = vmatprep.subr.bf16.mxu0 %v13462_v47  ;;  %9723 = vmatprep.subr.bf16.mxu1 %v13468_v23  ;;  %v13486_v47 = vld [vmem:[%s19324_s5 + $0x1c4] ss:$8 sps:$4 sm:$0xff]  }
 0x65e   : > { %v13489_v23 = vld [vmem:[%s19324_s5 + $0x284] ss:$8 sps:$4 sm:$0xff]  }
 0x65f   : > { %8628 = vmatmul.mubr.bf16.vlgmr.msra.gmra.mxu0 %v13457_v4  ;;  %9345 = vmatmul.mubr.bf16.vlgmr.msra.gmra.mxu1 %v13463_v42  ;;  %v13492_v4 = vld [vmem:[%s19323_s4 + $0x1b4] ss:$12 sps:$4 sm:$0xff]  }
 0x660   : > { %9007 = vmatpush1.bf16.msra.mxu0 %v13460_v48  ;;  %9724 = vmatpush1.bf16.msra.mxu1 %v13466_v0  ;;  %v13484_v42 = vld [vmem:[%s19324_s5 + $0x1c0] ss:$8 sps:$4 sm:$0xff]   ;;  %v13495_v0 = vld [vmem:[%s19324_s5 + $0x1b4] ss:$8 sps:$4 sm:$0xff]  }
 0x661   : > { %9008 = vmatprep.subr.bf16.mxu0 %v13471_v58  ;;  %9725 = vmatprep.subr.bf16.mxu1 %v13474_v53  ;;  %v13487_v48 = vld [vmem:[%s19324_s5 + $0x280] ss:$8 sps:$4 sm:$0xff]   ;;  %v13498_v58 = vld [vmem:[%s19324_s5 + $0x274] ss:$8 sps:$4 sm:$0xff]  }
 0x662   : > { %8637 = vmatprep.mubr.bf16.mxu0 %v13477_v18  ;;  %v13490_v53 = vld [vmem:[%s19323_s4 + $0x1b0] ss:$12 sps:$4 sm:$0xff]  }
 0x663   : > { %v13493_v18 = vld [vmem:[%s19324_s5 + $0x1b0] ss:$8 sps:$4 sm:$0xff]  }
 0x664   : > { %9009 = vmatpush1.bf16.msra.mxu0 %v13469_v13  ;;  %9726 = vmatpush1.bf16.msra.mxu1 %v13472_v9  ;;  %v13496_v13 = vld [vmem:[%s19324_s5 + $0x270] ss:$8 sps:$4 sm:$0xff]   ;;  %v13501_v9 = vld [vmem:[%s19324_s5 + $0x1a4] ss:$8 sps:$4 sm:$0xff]  }
 0x665   : > { %9010 = vmatprep.subr.bf16.mxu0 %v13480_v60  ;;  %9727 = vmatprep.subr.bf16.mxu1 %v13483_v29  ;;  %v13504_v60 = vld [vmem:[%s19324_s5 + $0x264] ss:$8 sps:$4 sm:$0xff]  }
 0x666   : > { %v13507_v29 = vld [vmem:[%s19323_s4 + $0x1cc] ss:$12 sps:$4 sm:$0xff]  }
 0x667   : > { %8638 = vmatmul.mubr.bf16.gmra.mxu0 %v13475_v5  ;;  %v13499_v5 = vld [vmem:[%s19324_s5 + $0x1a0] ss:$8 sps:$4 sm:$0xff]  }
 0x668   : > { %9011 = vmatpush1.bf16.msra.mxu0 %v13478_v19  ;;  %9728 = vmatpush1.bf16.msra.mxu1 %v13481_v49  ;;  %v13502_v19 = vld [vmem:[%s19324_s5 + $0x260] ss:$8 sps:$4 sm:$0xff]   ;;  %v13510_v49 = vld [vmem:[%s19324_s5 + $0x194] ss:$8 sps:$4 sm:$0xff]  }
 0x669   : > { %9012 = vmatprep.subr.bf16.mxu0 %v13486_v47  ;;  %9729 = vmatprep.subr.bf16.mxu1 %v13489_v23  ;;  %v13513_v47 = vld [vmem:[%s19324_s5 + $0x254] ss:$8 sps:$4 sm:$0xff]  }
 0x66a   : > { %8647 = vmatprep.mubr.bf16.mxu0 %v13492_v4  ;;  %v13505_v23 = vld [vmem:[%s19323_s4 + $0x1c8] ss:$12 sps:$4 sm:$0xff]   ;;  %v13508_v4 = vld [vmem:[%s19324_s5 + $0x190] ss:$8 sps:$4 sm:$0xff]  }
 0x66c   : > { %9013 = vmatpush1.bf16.msra.mxu0 %v13484_v42  ;;  %9730 = vmatpush1.bf16.msra.mxu1 %v13487_v48  ;;  %v13511_v42 = vld [vmem:[%s19324_s5 + $0x250] ss:$8 sps:$4 sm:$0xff]   ;;  %v13516_v48 = vld [vmem:[%s19324_s5 + $0x184] ss:$8 sps:$4 sm:$0xff]  }
 0x66d   : > { %9014 = vmatprep.subr.bf16.mxu0 %v13495_v0  ;;  %9731 = vmatprep.subr.bf16.mxu1 %v13498_v58  ;;  %v13519_v0 = vld [vmem:[%s19324_s5 + $0x244] ss:$8 sps:$4 sm:$0xff]  }
 0x66e   : > { %v13522_v58 = vld [vmem:[%s19323_s4 + $0x1e4] ss:$12 sps:$4 sm:$0xff]  }
 0x66f   : > { %8648 = vmatmul.mubr.bf16.gmra.mxu0 %v13490_v53  ;;  %v13514_v53 = vld [vmem:[%s19324_s5 + $0x180] ss:$8 sps:$4 sm:$0xff]  }
 0x670   : > { %9015 = vmatpush1.bf16.msra.mxu0 %v13493_v18  ;;  %9732 = vmatpush1.bf16.msra.mxu1 %v13496_v13  ;;  %v13517_v18 = vld [vmem:[%s19324_s5 + $0x240] ss:$8 sps:$4 sm:$0xff]   ;;  %v13525_v13 = vld [vmem:[%s19324_s5 + $0x234] ss:$8 sps:$4 sm:$0xff]  }
 0x671   : > { %9016 = vmatprep.subr.bf16.mxu0 %v13501_v9  ;;  %9733 = vmatprep.subr.bf16.mxu1 %v13504_v60  ;;  %v13528_v9 = vld [vmem:[%s19324_s5 + $0x2f4] ss:$8 sps:$4 sm:$0xff]   ;;  %v13520_v60 = vld [vmem:[%s19323_s4 + $0x1e0] ss:$12 sps:$4 sm:$0xff]  }
 0x672   : > { %8657 = vmatprep.mubr.bf16.mxu0 %v13507_v29  ;;  %v13523_v29 = vld [vmem:[%s19324_s5 + $0x230] ss:$8 sps:$4 sm:$0xff]  }
 0x674   : > { %9017 = vmatpush1.bf16.msra.mxu0 %v13499_v5  ;;  %9734 = vmatpush1.bf16.msra.mxu1 %v13502_v19  ;;  %v13526_v5 = vld [vmem:[%s19324_s5 + $0x2f0] ss:$8 sps:$4 sm:$0xff]   ;;  %v13531_v19 = vld [vmem:[%s19324_s5 + $0x224] ss:$8 sps:$4 sm:$0xff]  }
 0x675   : > { %9018 = vmatprep.subr.bf16.mxu0 %v13510_v49  ;;  %9735 = vmatprep.subr.bf16.mxu1 %v13513_v47  ;;  %v13534_v49 = vld [vmem:[%s19324_s5 + $0x2e4] ss:$8 sps:$4 sm:$0xff]   ;;  %v13537_v47 = vld [vmem:[%s19323_s4 + $0x1fc] ss:$12 sps:$4 sm:$0xff]  }
 0x677   : > { %8658 = vmatmul.mubr.bf16.gmra.mxu0 %v13505_v23  ;;  %v13529_v23 = vld [vmem:[%s19324_s5 + $0x220] ss:$8 sps:$4 sm:$0xff]  }
 0x678   : > { %9019 = vmatpush1.bf16.msra.mxu0 %v13508_v4  ;;  %9736 = vmatpush1.bf16.msra.mxu1 %v13511_v42  ;;  %v13532_v4 = vld [vmem:[%s19324_s5 + $0x2e0] ss:$8 sps:$4 sm:$0xff]   ;;  %v13540_v42 = vld [vmem:[%s19324_s5 + $0x214] ss:$8 sps:$4 sm:$0xff]  }
 0x679   : > { %9020 = vmatprep.subr.bf16.mxu0 %v13516_v48  ;;  %9737 = vmatprep.subr.bf16.mxu1 %v13519_v0  ;;  %v13543_v48 = vld [vmem:[%s19324_s5 + $0x2d4] ss:$8 sps:$4 sm:$0xff]   ;;  %v13535_v0 = vld [vmem:[%s19323_s4 + $0x1f8] ss:$12 sps:$4 sm:$0xff]  }
 0x67a   : > { %8667 = vmatprep.mubr.bf16.mxu0 %v13522_v58  ;;  %v13538_v58 = vld [vmem:[%s19324_s5 + $0x210] ss:$8 sps:$4 sm:$0xff]  }
 0x67c   : > { %9021 = vmatpush1.bf16.msra.mxu0 %v13514_v53  ;;  %9738 = vmatpush1.bf16.msra.mxu1 %v13517_v18  ;;  %v13541_v53 = vld [vmem:[%s19324_s5 + $0x2d0] ss:$8 sps:$4 sm:$0xff]   ;;  %v13546_v18 = vld [vmem:[%s19324_s5 + $0x204] ss:$8 sps:$4 sm:$0xff]  }
 0x67d   : > { %9030 = vmatprep.subr.bf16.mxu0 %v13525_v13  ;;  %9747 = vmatprep.subr.bf16.mxu1 %v13528_v9  ;;  %v13549_v13 = vld [vmem:[%s19324_s5 + $0x2c4] ss:$8 sps:$4 sm:$0xff]   ;;  %v13552_v9 = vld [vmem:[%s19323_s4 + $0x214] ss:$12 sps:$4 sm:$0xff]  }
 0x67f   : > { %8668 = vmatmul.mubr.bf16.gmra.mxu0 %v13520_v60  ;;  %v13544_v60 = vld [vmem:[%s19324_s5 + $0x200] ss:$8 sps:$4 sm:$0xff]  }
 0x680   : > { %9031 = vmatpush2.bf16.msra.mxu0 %v13523_v29  ;;  %9748 = vmatpush2.bf16.msra.mxu1 %v13526_v5  ;;  %v13547_v29 = vld [vmem:[%s19324_s5 + $0x2c0] ss:$8 sps:$4 sm:$0xff]   ;;  %v13550_v5 = vld [vmem:[%s19323_s4 + $0x210] ss:$12 sps:$4 sm:$0xff]  }
 0x681   : > { %9032 = vmatprep.subr.bf16.mxu0 %v13531_v19  ;;  %9749 = vmatprep.subr.bf16.mxu1 %v13534_v49  ;;  %v13555_v19 = vld [vmem:[%s19323_s4 + $0x22c] ss:$12 sps:$4 sm:$0xff]   ;;  %v20381_v49 = vld [vmem:[#allocation131_spill] sm:$0xff] }
 0x682   : > { %8677 = vmatprep.mubr.bf16.mxu0 %v13537_v47  ;;  %v13553_v47 = vld [vmem:[%s19323_s4 + $0x228] ss:$12 sps:$4 sm:$0xff]  }
 0x684   : > { %9033 = vmatpush2.bf16.msra.mxu0 %v13529_v23  ;;  %9750 = vmatpush2.bf16.msra.mxu1 %v13532_v4 }
 0x685   : > { %9034 = vmatprep.subr.bf16.mxu0 %v13540_v42  ;;  %9751 = vmatprep.subr.bf16.mxu1 %v13543_v48 }
 0x687   : > { %8678 = vmatmul.mubr.bf16.gmra.mxu0 %v13535_v0 }
 0x688   : > { %9035 = vmatpush2.bf16.msra.mxu0 %v13538_v58  ;;  %9752 = vmatpush2.bf16.msra.mxu1 %v13541_v53 }
 0x689   : > { %9036 = vmatprep.subr.bf16.mxu0 %v13546_v18  ;;  %9753 = vmatprep.subr.bf16.mxu1 %v13549_v13 }
 0x68a   : > { %8687 = vmatprep.mubr.bf16.mxu0 %v13552_v9 }
 0x68c   : > { %9037 = vmatpush2.bf16.msra.mxu0 %v13544_v60  ;;  %9754 = vmatpush2.bf16.msra.mxu1 %v13547_v29 }
 0x68d   : > { %9425 = vmatprep.subr.bf16.mxu0 %v20381_v49  ;;  %10142 = vmatprep.subr.bf16.mxu1 %v20381_v49 }
 0x68f   : > { %8688 = vmatmul.mubr.bf16.gmra.mxu0 %v13550_v5 }
 0x690   : > { %8697 = vmatprep.mubr.bf16.mxu0 %v13555_v19 }
 0x697   : > { %8698 = vmatmul.mubr.bf16.gmra.mxu0 %v13553_v47 }
 0x69f   : > { %v8355_v23 = vpop.f32.mrf.mxu1 }
 0x6a1   : > { %v8357_v4 = vpop.f32.mrf.mxu1 }
 0x6a3   : > { %v8359_v42 = vpop.f32.mrf.mxu1 }
 0x6a5   : > { %v18313_v48 = vpop.f32.mrf.mxu1 }
 0x6a6   : > { %20382 = vst [vmem:[#allocation219_spill] sm:$0xff] %v18313_v48 }
 0x6a7   : > { %v8365_v0 = vpop.f32.mrf.mxu1 }
 0x6a9   : > { %v8367_v58 = vpop.f32.mrf.mxu1 }
 0x6ab   : > { %v8369_v53 = vpop.f32.mrf.mxu1 }
 0x6ad   : > { %v18315_v18 = vpop.f32.mrf.mxu1 }
 0x6ae   : > { %20383 = vst [vmem:[#allocation135_spill] sm:$0xff] %v18315_v18 }
 0x6af   : > { %v8375_v13 = vpop.f32.mrf.mxu1 }
 0x6b1   : > { %v8377_v9 = vpop.f32.mrf.mxu1 }
 0x6b3   : > { %v8379_v60 = vpop.f32.mrf.mxu1 }
 0x6b5   : > { %v18317_v29 = vpop.f32.mrf.mxu1 }
 0x6b6   : > { %20384 = vst [vmem:[#allocation221_spill] sm:$0xff] %v18317_v29 }
 0x6b7   : > { %v8385_v5 = vpop.f32.mrf.mxu1 }
 0x6b9   : > { %v8387_v19 = vpop.f32.mrf.mxu1 }
 0x6bb   : > { %v8389_v49 = vpop.f32.mrf.mxu1 }
 0x6bd   : > { %v18319_v26 = vpop.f32.mrf.mxu1 }
 0x6be   : > { %20385 = vst [vmem:[#allocation137_spill] sm:$0xff] %v18319_v26 }
 0x6bf   : > { %v18321_v47 = vpop.f32.mrf.mxu1 }
 0x6c1   : > { %v18323_v28 = vpop.f32.mrf.mxu1 }
 0x6c3   : > { %v18325_v48 = vpop.f32.mrf.mxu1 }
 0x6c5   : > { %v18327_v44 = vpop.f32.mrf.mxu1 }
 0x6c6   : > { %20386 = vst [vmem:[#allocation223_spill] sm:$0xff] %v18327_v44 }
 0x6c7   : > { %v18329_v40 = vpop.f32.mrf.mxu1 }
 0x6c9   : > { %v18331_v18 = vpop.f32.mrf.mxu1 }
 0x6cb   : > { %v18333_v7 = vpop.f32.mrf.mxu1 }
 0x6cd   : > { %v18335_v29 = vpop.f32.mrf.mxu1 }
 0x6ce   : > { %20387 = vst [vmem:[#allocation139_spill] sm:$0xff] %v18335_v29 }
 0x6cf   : > { %v18337_v39 = vpop.f32.mrf.mxu1 }
 0x6d1   : > { %v18339_v38 = vpop.f32.mrf.mxu1 }
 0x6d3   : > { %v18341_v26 = vpop.f32.mrf.mxu1 }
 0x6d5   : > { %v18343_v55 = vpop.f32.mrf.mxu1 }
 0x6d6   : > { %20388 = vst [vmem:[#allocation225_spill] sm:$0xff] %v18343_v55 }
 0x6d7   : > { %v18345_v37 = vpop.f32.mrf.mxu1 }
 0x6d9   : > { %v18347_v11 = vpop.f32.mrf.mxu1 }
 0x6db   : > { %v18349_v44 = vpop.f32.mrf.mxu1 }
 0x6dd   : > { %v18351_v22 = vpop.f32.mrf.mxu1 }
 0x6de   : > { %20389 = vst [vmem:[#allocation141_spill] sm:$0xff] %v18351_v22 }
 0x6df   : > { %v8098_v14 = vpop.f32.mrf.mxu0  ;;  %v18355_v43 = vpop.f32.mrf.mxu1 }
 0x6e0   : > { %v18353_v10 = vadd.f32 %v8355_v23, %v8098_v14 }
 0x6e1   : > { %v8100_v29 = vpop.f32.mrf.mxu0  ;;  %v18363_v41 = vpop.f32.mrf.mxu1 }
 0x6e2   : > { %v18357_v16 = vadd.f32 %v8357_v4, %v8100_v29  ;;  %v13559_v4 = vld [vmem:[%s19323_s4 + $0x25c] ss:$12 sps:$4 sm:$0xff]  }
 0x6e3   : > { %v8102_v33 = vpop.f32.mrf.mxu0  ;;  %v18367_v56 = vpop.f32.mrf.mxu1  ;;  %9354 = vmatprep.mubr.bf16.mxu1 %v13559_v4  ;;  %v13561_v4 = vld [vmem:[%s19323_s4 + $0x270] ss:$12 sps:$4 sm:$0xff]  }
 0x6e4   : > { %v18359_v20 = vadd.f32 %v8359_v42, %v8102_v33  ;;  %v13557_v33 = vld [vmem:[%s19323_s4 + $0x258] ss:$12 sps:$4 sm:$0xff]  }
 0x6e5   : > { %v18361_v55 = vpop.f32.mrf.mxu0  ;;  %9355 = vmatmul.mubr.bf16.gmra.mxu1 %v13557_v33 }
 0x6e6   : > { %20390 = vst [vmem:[#allocation227_spill] sm:$0xff] %v18361_v55 }
 0x6e7   : > { %v8108_v36 = vpop.f32.mrf.mxu0 }
 0x6e8   : > { %v18365_v51 = vadd.f32 %v8365_v0, %v8108_v36  ;;  %v18381_v36 = vpop.f32.mrf.mxu1 }
 0x6e9   : > { %v8110_v27 = vpop.f32.mrf.mxu0 }
 0x6ea   : > { %v18369_v14 = vadd.f32 %v8367_v58, %v8110_v27  ;;  %v18385_v22 = vpop.f32.mrf.mxu1 }
 0x6eb   : > { %v8112_v23 = vpop.f32.mrf.mxu0 }
 0x6ec   : > { %v18374_v29 = vadd.f32 %v8369_v53, %v8112_v23  ;;  %v13563_v23 = vld [vmem:[%s19323_s4 + $0x274] ss:$12 sps:$4 sm:$0xff]  }
 0x6ed   : > { %v18379_v42 = vpop.f32.mrf.mxu0  ;;  %9364 = vmatprep.mubr.bf16.mxu1 %v13563_v23  ;;  %v13565_v23 = vld [vmem:[%s19323_s4 + $0x288] ss:$12 sps:$4 sm:$0xff]  }
 0x6ee   : > { %20391 = vst [vmem:[#allocation143_spill] sm:$0xff] %v18374_v29  ;;  %20392 = vst [vmem:[#allocation229_spill] sm:$0xff] %v18379_v42  ;;  %9365 = vmatmul.mubr.bf16.gmra.mxu1 %v13561_v4 }
 0x6ef   : > { %v8118_v0 = vpop.f32.mrf.mxu0 }
 0x6f0   : > { %v18383_v27 = vadd.f32 %v8375_v13, %v8118_v0  ;;  %v18399_v13 = vpop.f32.mrf.mxu1 }
 0x6f1   : > { %v8120_v58 = vpop.f32.mrf.mxu0 }
 0x6f2   : > { %v18387_v55 = vadd.f32 %v8377_v9, %v8120_v58  ;;  %v18403_v42 = vpop.f32.mrf.mxu1 }
 0x6f3   : > { %v8122_v53 = vpop.f32.mrf.mxu0 }
 0x6f4   : > { %20393 = vst [vmem:[#allocation145_spill] sm:$0xff] %v18387_v55  ;;  %v18392_v29 = vadd.f32 %v8379_v60, %v8122_v53  ;;  %v13567_v53 = vld [vmem:[%s19323_s4 + $0x28c] ss:$12 sps:$4 sm:$0xff]  }
 0x6f5   : > { %v18397_v33 = vpop.f32.mrf.mxu0  ;;  %9374 = vmatprep.mubr.bf16.mxu1 %v13567_v53  ;;  %v13569_v53 = vld [vmem:[%s19323_s4 + $0x2a0] ss:$12 sps:$4 sm:$0xff]  }
 0x6f6   : > { %20394 = vst [vmem:[#allocation231_spill] sm:$0xff] %v18392_v29  ;;  %20395 = vst [vmem:[#allocation147_spill] sm:$0xff] %v18397_v33  ;;  %9375 = vmatmul.mubr.bf16.gmra.mxu1 %v13565_v23 }
 0x6f7   : > { %v8128_v0 = vpop.f32.mrf.mxu0 }
 0x6f8   : > { %v18401_v9 = vadd.f32 %v8385_v5, %v8128_v0  ;;  %v18417_v5 = vpop.f32.mrf.mxu1 }
 0x6f9   : > { %v8130_v58 = vpop.f32.mrf.mxu0 }
 0x6fa   : > { %20396 = vst [vmem:[#allocation233_spill] sm:$0xff] %v18401_v9  ;;  %v18405_v55 = vadd.f32 %v8387_v19, %v8130_v58  ;;  %v18422_v33 = vpop.f32.mrf.mxu1 }
 0x6fb   : > { %v8132_v60 = vpop.f32.mrf.mxu0 }
 0x6fc   : > { %20397 = vst [vmem:[#allocation149_spill] sm:$0xff] %v18405_v55  ;;  %v18410_v29 = vadd.f32 %v8389_v49, %v8132_v60  ;;  %v18438_v23 = vpop.f32.mrf.mxu1 }
 0x6fd   : > { %v18415_v4 = vpop.f32.mrf.mxu0 }
 0x6fe   : > { %20398 = vst [vmem:[#allocation235_spill] sm:$0xff] %v18410_v29  ;;  %20399 = vst [vmem:[#allocation190_spill] sm:$0xff] %v18415_v4  ;;  %v13571_v29 = vld [vmem:[%s19323_s4 + $0x2a4] ss:$12 sps:$4 sm:$0xff]  }
 0x6ff   : > { %v8138_v0 = vpop.f32.mrf.mxu0  ;;  %9384 = vmatprep.mubr.bf16.mxu1 %v13571_v29  ;;  %v13573_v29 = vld [vmem:[%s19323_s4 + $0x2b8] ss:$12 sps:$4 sm:$0xff]  }
 0x700   : > { %v18420_v19 = vadd.f32 %v18321_v47, %v8138_v0  ;;  %9385 = vmatmul.mubr.bf16.gmra.mxu1 %v13569_v53 }
 0x701   : > { %v8140_v58 = vpop.f32.mrf.mxu0 }
 0x702   : > { %20400 = vst [vmem:[#allocation151_spill] sm:$0xff] %v18420_v19  ;;  %v18425_v49 = vadd.f32 %v18323_v28, %v8140_v58 }
 0x703   : > { %v8142_v60 = vpop.f32.mrf.mxu0 }
 0x704   : > { %20401 = vst [vmem:[#allocation237_spill] sm:$0xff] %v18425_v49  ;;  %v18431_v4 = vadd.f32 %v18325_v48, %v8142_v60  ;;  %v18443_v49 = vpop.f32.mrf.mxu1 }
 0x705   : > { %v18436_v47 = vpop.f32.mrf.mxu0 }
 0x706   : > { %20402 = vst [vmem:[#allocation106_spill] sm:$0xff] %v18431_v4  ;;  %20403 = vst [vmem:[#allocation153_spill] sm:$0xff] %v18436_v47  ;;  %v13575_v4 = vld [vmem:[%s19323_s4 + $0x2bc] ss:$12 sps:$4 sm:$0xff]   ;;  %v18459_v53 = vpop.f32.mrf.mxu1 }
 0x707   : > { %v8148_v28 = vpop.f32.mrf.mxu0  ;;  %9394 = vmatprep.mubr.bf16.mxu1 %v13575_v4  ;;  %v13577_v4 = vld [vmem:[%s19323_s4 + $0x2d0] ss:$12 sps:$4 sm:$0xff]  }
 0x708   : > { %v18441_v0 = vadd.f32 %v18329_v40, %v8148_v28  ;;  %9395 = vmatmul.mubr.bf16.gmra.mxu1 %v13573_v29 }
 0x709   : > { %v8150_v58 = vpop.f32.mrf.mxu0 }
 0x70a   : > { %20404 = vst [vmem:[#allocation240_spill] sm:$0xff] %v18441_v0  ;;  %v18446_v48 = vadd.f32 %v18331_v18, %v8150_v58 }
 0x70b   : > { %v8152_v60 = vpop.f32.mrf.mxu0 }
 0x70c   : > { %20405 = vst [vmem:[#allocation155_spill] sm:$0xff] %v18446_v48  ;;  %v18452_v47 = vadd.f32 %v18333_v7, %v8152_v60  ;;  %v18464_v48 = vpop.f32.mrf.mxu1 }
 0x70d   : > { %v18457_v40 = vpop.f32.mrf.mxu0 }
 0x70e   : > { %20406 = vst [vmem:[#allocation242_spill] sm:$0xff] %v18452_v47  ;;  %20407 = vst [vmem:[#allocation157_spill] sm:$0xff] %v18457_v40  ;;  %v13579_v47 = vld [vmem:[%s19323_s4 + $0x2d4] ss:$12 sps:$4 sm:$0xff]   ;;  %v18480_v29 = vpop.f32.mrf.mxu1 }
 0x70f   : > { %v8158_v18 = vpop.f32.mrf.mxu0  ;;  %9404 = vmatprep.mubr.bf16.mxu1 %v13579_v47  ;;  %v13581_v47 = vld [vmem:[%s19323_s4 + $0x2e8] ss:$12 sps:$4 sm:$0xff]  }
 0x710   : > { %v18462_v28 = vadd.f32 %v18337_v39, %v8158_v18  ;;  %9405 = vmatmul.mubr.bf16.gmra.mxu1 %v13577_v4 }
 0x711   : > { %v8160_v58 = vpop.f32.mrf.mxu0 }
 0x712   : > { %20408 = vst [vmem:[#allocation244_spill] sm:$0xff] %v18462_v28  ;;  %v18467_v7 = vadd.f32 %v18339_v38, %v8160_v58 }
 0x713   : > { %v8162_v60 = vpop.f32.mrf.mxu0 }
 0x714   : > { %20409 = vst [vmem:[#allocation23_spill] sm:$0xff] %v18467_v7  ;;  %v18473_v40 = vadd.f32 %v18341_v26, %v8162_v60  ;;  %v18485_v7 = vpop.f32.mrf.mxu1 }
 0x715   : > { %v18478_v39 = vpop.f32.mrf.mxu0 }
 0x716   : > { %20410 = vst [vmem:[#allocation159_spill] sm:$0xff] %v18473_v40  ;;  %20411 = vst [vmem:[#allocation246_spill] sm:$0xff] %v18478_v39  ;;  %v13583_v40 = vld [vmem:[%s19323_s4 + $0x2ec] ss:$12 sps:$4 sm:$0xff]   ;;  %v18501_v4 = vpop.f32.mrf.mxu1 }
 0x717   : > { %v8168_v38 = vpop.f32.mrf.mxu0  ;;  %9414 = vmatprep.mubr.bf16.mxu1 %v13583_v40 }
 0x718   : > { %v18483_v18 = vadd.f32 %v18345_v37, %v8168_v38  ;;  %9415 = vmatmul.mubr.bf16.gmra.mxu1 %v13581_v47 }
 0x719   : > { %v8170_v58 = vpop.f32.mrf.mxu0 }
 0x71a   : > { %20412 = vst [vmem:[#allocation161_spill] sm:$0xff] %v18483_v18  ;;  %v18488_v26 = vadd.f32 %v18347_v11, %v8170_v58  ;;  %v18503_v58 = vpop.f32.mrf.mxu1 }
 0x71b   : > { %v8172_v60 = vpop.f32.mrf.mxu0 }
 0x71c   : > { %20413 = vst [vmem:[#allocation248_spill] sm:$0xff] %v18488_v26  ;;  %v18494_v39 = vadd.f32 %v18349_v44, %v8172_v60  ;;  %v18506_v44 = vpop.f32.mrf.mxu1 }
 0x71d   : > { %v18499_v37 = vpop.f32.mrf.mxu0 }
 0x71e   : > { %20414 = vst [vmem:[#allocation249_spill] sm:$0xff] %v18494_v39  ;;  %20415 = vst [vmem:[#allocation250_spill] sm:$0xff] %v18499_v37  ;;  %v8786_v55 = vpop.f32.mrf.mxu1 }
 0x71f   : > { %v8629_v11 = vpop.f32.mrf.mxu0 }
 0x720   : > { %v8743_v37 = vadd.f32 %v18355_v43, %v8629_v11 }
 0x721   : > { %v8631_v38 = vpop.f32.mrf.mxu0 }
 0x722   : > { %v8745_v60 = vadd.f32 %v18363_v41, %v8631_v38 }
 0x723   : > { %v8633_v26 = vpop.f32.mrf.mxu0 }
 0x724   : > { %v8747_v18 = vadd.f32 %v18367_v56, %v8633_v26  ;;  %v8788_v26 = vpop.f32.mrf.mxu1 }
 0x725   : > { %v8635_v28 = vpop.f32.mrf.mxu0 }
 0x726   : > { %v8749_v39 = vadd.f32 %v18381_v36, %v8635_v28  ;;  %v8821_v40 = vpack.c.bf16 %v8747_v18, %v8743_v37  ;;  %v18520_v11 = vpop.f32.mrf.mxu1 }
 0x727   : > { %v8639_v0 = vpop.f32.mrf.mxu0 }
 0x728   : > { %v8822_v19 = vpack.c.bf16 %v8749_v39, %v8745_v60  ;;  %v8753_v28 = vadd.f32 %v18385_v22, %v8639_v0 }
 0x729   : > { %v8641_v47 = vpop.f32.mrf.mxu0 }
 0x72a   : > { %12241 = vmatprep.mubr.msk.bf16.mxu0 %vm8039_vm2, %v8822_v19  ;;  %v8755_v36 = vadd.f32 %v18399_v13, %v8641_v47 }
 0x72b   : > { %v8643_v9 = vpop.f32.mrf.mxu0  ;;  %9039 = vmatmul.mubr.bf16.vlgmr.msra.gmra.mxu0 %v8821_v40 }
 0x72c   : > { %9426 = vmatpush1.bf16.msra.mxu0 %v17563_v62  ;;  %v8757_v56 = vadd.f32 %v18403_v42, %v8643_v9  ;;  %v8794_v9 = vpop.f32.mrf.mxu1 }
 0x72d   : > { %9427 = vmatprep.subr.bf16.mxu0 %v17573_v1  ;;  %v8645_v41 = vpop.f32.mrf.mxu0 }
 0x72e   : > { %v8759_v43 = vadd.f32 %v18417_v5, %v8645_v41  ;;  %v8823_v19 = vpack.c.bf16 %v8757_v56, %v8753_v28  ;;  %v8796_v41 = vpop.f32.mrf.mxu1 }
 0x72f   : > { %v8649_v39 = vpop.f32.mrf.mxu0 }
 0x730   : > { %v8824_v18 = vpack.c.bf16 %v8759_v43, %v8755_v36  ;;  %9428 = vmatpush1.bf16.msra.mxu0 %v17593_v6  ;;  %v8763_v38 = vadd.f32 %v18422_v33, %v8649_v39 }
 0x731   : > { %9429 = vmatprep.subr.bf16.mxu0 %v17597_v31  ;;  %v8651_v37 = vpop.f32.mrf.mxu0 }
 0x732   : > { %12242 = vmatprep.mubr.msk.bf16.mxu0 %vm8039_vm2, %v8824_v18  ;;  %v8765_v5 = vadd.f32 %v18438_v23, %v8651_v37 }
 0x733   : > { %v8653_v42 = vpop.f32.mrf.mxu0  ;;  %9049 = vmatmul.mubr.bf16.gmra.mxu0 %v8823_v19 }
 0x734   : > { %9430 = vmatpush1.bf16.msra.mxu0 %v17616_v25  ;;  %v8767_v13 = vadd.f32 %v18443_v49, %v8653_v42 }
 0x735   : > { %9431 = vmatprep.subr.bf16.mxu0 %v17626_v30  ;;  %v8655_v22 = vpop.f32.mrf.mxu0 }
 0x736   : > { %v8769_v0 = vadd.f32 %v18459_v53, %v8655_v22  ;;  %v8825_v47 = vpack.c.bf16 %v8767_v13, %v8763_v38  ;;  %v8798_v53 = vpop.f32.mrf.mxu1 }
 0x737   : > { %v8659_v60 = vpop.f32.mrf.mxu0 }
 0x738   : > { %v8826_v40 = vpack.c.bf16 %v8769_v0, %v8765_v5  ;;  %9432 = vmatpush1.bf16.msra.mxu0 %v17642_v59  ;;  %v8773_v28 = vadd.f32 %v18464_v48, %v8659_v60  ;;  %v8802_v42 = vpop.f32.mrf.mxu1 }
 0x739   : > { %9433 = vmatprep.subr.bf16.mxu0 %v17646_v63  ;;  %v8661_v56 = vpop.f32.mrf.mxu0 }
 0x73a   : > { %12243 = vmatprep.mubr.msk.bf16.mxu0 %vm8039_vm2, %v8826_v40  ;;  %v8775_v36 = vadd.f32 %v18480_v29, %v8661_v56  ;;  %v8804_v48 = vpop.f32.mrf.mxu1 }
 0x73b   : > { %v8663_v49 = vpop.f32.mrf.mxu0  ;;  %9059 = vmatmul.mubr.bf16.gmra.mxu0 %v8825_v47 }
 0x73c   : > { %9434 = vmatpush1.bf16.msra.mxu0 %v17663_v3  ;;  %v8777_v23 = vadd.f32 %v18485_v7, %v8663_v49  ;;  %v8806_v47 = vpop.f32.mrf.mxu1 }
 0x73d   : > { %9435 = vmatprep.subr.bf16.mxu0 %v17670_v61  ;;  %v8665_v33 = vpop.f32.mrf.mxu0 }
 0x73e   : > { %v8779_v43 = vadd.f32 %v18501_v4, %v8665_v33  ;;  %v8827_v19 = vpack.c.bf16 %v8777_v23, %v8773_v28  ;;  %v8808_v23 = vpop.f32.mrf.mxu1 }
 0x73f   : > { %v8669_v39 = vpop.f32.mrf.mxu0 }
 0x740   : > { %v8828_v18 = vpack.c.bf16 %v8779_v43, %v8775_v36  ;;  %9436 = vmatpush1.bf16.msra.mxu0 %v17678_v32  ;;  %v8783_v5 = vadd.f32 %v18503_v58, %v8669_v39  ;;  %v8812_v39 = vpop.f32.mrf.mxu1 }
 0x741   : > { %9437 = vmatprep.subr.bf16.mxu0 %v17683_v12  ;;  %v8671_v37 = vpop.f32.mrf.mxu0 }
 0x742   : > { %12244 = vmatprep.mubr.msk.bf16.mxu0 %vm8039_vm2, %v8828_v18  ;;  %v8785_v13 = vadd.f32 %v18506_v44, %v8671_v37  ;;  %v8814_v37 = vpop.f32.mrf.mxu1 }
 0x743   : > { %v8673_v7 = vpop.f32.mrf.mxu0  ;;  %9069 = vmatmul.mubr.bf16.gmra.mxu0 %v8827_v19 }
 0x744   : > { %9438 = vmatpush1.bf16.msra.mxu0 %v20342_v52  ;;  %v8787_v29 = vadd.f32 %v8786_v55, %v8673_v7 }
 0x745   : > { %9439 = vmatprep.subr.bf16.mxu0 %v17694_v34  ;;  %v8675_v4 = vpop.f32.mrf.mxu0 }
 0x746   : > { %v8789_v22 = vadd.f32 %v8788_v26, %v8675_v4  ;;  %v8829_v60 = vpack.c.bf16 %v8787_v29, %v8783_v5 }
 0x747   : > { %v8679_v0 = vpop.f32.mrf.mxu0 }
 0x748   : > { %v8830_v38 = vpack.c.bf16 %v8789_v22, %v8785_v13  ;;  %9440 = vmatpush1.bf16.msra.mxu0 %v20344_v46  ;;  %v8793_v58 = vadd.f32 %v18520_v11, %v8679_v0  ;;  %v8816_v11 = vpop.f32.mrf.mxu1 }
 0x749   : > { %10029 = vmatprep.subr.bf16.mxu0 %v20340_v17  ;;  %v8681_v40 = vpop.f32.mrf.mxu0 }
 0x74a   : > { %12245 = vmatprep.mubr.msk.bf16.mxu0 %vm8039_vm2, %v8830_v38  ;;  %v8795_v44 = vadd.f32 %v8794_v9, %v8681_v40  ;;  %v8818_v38 = vpop.f32.mrf.mxu1 }
 0x74b   : > { %v8683_v55 = vpop.f32.mrf.mxu0  ;;  %9079 = vmatmul.mubr.bf16.gmra.mxu0 %v8829_v60 }
 0x74c   : > { %v8797_v56 = vadd.f32 %v8796_v41, %v8683_v55 }
 0x74d   : > { %v8685_v49 = vpop.f32.mrf.mxu0 }
 0x74e   : > { %v8799_v26 = vadd.f32 %v8798_v53, %v8685_v49  ;;  %v8831_v43 = vpack.c.bf16 %v8797_v56, %v8793_v58  ;;  %v20422_v49 = vld [vmem:[#allocation199_spill] sm:$0xff] }
 0x74f   : > { %v8689_v33 = vpop.f32.mrf.mxu0  ;;  %v20425_v58 = vld [vmem:[#allocation203_spill] sm:$0xff] }
 0x750   : > { %v8832_v36 = vpack.c.bf16 %v8799_v26, %v8795_v44  ;;  %v8803_v29 = vadd.f32 %v8802_v42, %v8689_v33  ;;  %v13556_v42 = vld [vmem:[%s19323_s4 + $0x248] ss:$12 sps:$4 sm:$0xff]   ;;  %v13576_v26 = vld [vmem:[%s19323_s4 + $0x2c0] ss:$12 sps:$4 sm:$0xff]  }
 0x751   : > { %v8691_v28 = vpop.f32.mrf.mxu0  ;;  %v20424_v44 = vld [vmem:[#allocation201_spill] sm:$0xff]  ;;  %v20426_v33 = vld [vmem:[#allocation119_spill] sm:$0xff] }
 0x752   : > { %12246 = vmatprep.mubr.msk.bf16.mxu0 %vm8039_vm2, %v8832_v36  ;;  %v8805_v7 = vadd.f32 %v8804_v48, %v8691_v28  ;;  %v13560_v48 = vld [vmem:[%s19323_s4 + $0x260] ss:$12 sps:$4 sm:$0xff]   ;;  %v20427_v36 = vld [vmem:[#allocation121_spill] sm:$0xff]  ;;  %v13580_v28 = vld [vmem:[%s19323_s4 + $0x2d8] ss:$12 sps:$4 sm:$0xff]  }
 0x753   : > { %v8693_v17 = vpop.f32.mrf.mxu0  ;;  %9089 = vmatmul.mubr.bf16.gmra.mxu0 %v8831_v43  ;;  %v20428_v43 = vld [vmem:[#allocation207_spill] sm:$0xff] }
 0x754   : > { %v8807_v18 = vadd.f32 %v8806_v47, %v8693_v17  ;;  %v20430_v17 = vld [vmem:[#allocation209_spill] sm:$0xff] }
 0x755   : > { %v8695_v19 = vpop.f32.mrf.mxu0 }
 0x756   : > { %v8809_v41 = vadd.f32 %v8808_v23, %v8695_v19  ;;  %v8833_v53 = vpack.c.bf16 %v8807_v18, %v8803_v29  ;;  %v20423_v23 = vld [vmem:[#allocation115_spill] sm:$0xff] }
 0x757   : > { %v8699_v4 = vpop.f32.mrf.mxu0  ;;  %v20431_v18 = vld [vmem:[#allocation211_spill] sm:$0xff] }
 0x758   : > { %v8834_v9 = vpack.c.bf16 %v8809_v41, %v8805_v7  ;;  %v8813_v47 = vadd.f32 %v8812_v39, %v8699_v4  ;;  %v20429_v39 = vld [vmem:[#allocation123_spill] sm:$0xff]  ;;  %v20433_v7 = vld [vmem:[#allocation213_spill] sm:$0xff] }
 0x759   : > { %v8701_v13 = vpop.f32.mrf.mxu0  ;;  %v20432_v19 = vld [vmem:[#allocation127_spill] sm:$0xff]  ;;  %v20434_v41 = vld [vmem:[#allocation129_spill] sm:$0xff] }
 0x75a   : > { %12247 = vmatprep.mubr.msk.bf16.mxu0 %vm8039_vm2, %v8834_v9  ;;  %v8815_v60 = vadd.f32 %v8814_v37, %v8701_v13  ;;  %v13584_v37 = vld [vmem:[%s19323_s4 + $0x2f0] ss:$12 sps:$4 sm:$0xff]   ;;  %v20435_v29 = vld [vmem:[#allocation107_spill] sm:$0xff] }
 0x75b   : > { %v8703_v22 = vpop.f32.mrf.mxu0  ;;  %9099 = vmatmul.mubr.bf16.gmra.mxu0 %v8833_v53  ;;  %v20436_v4 = vld [vmem:[#allocation215_spill] sm:$0xff]  ;;  %v20437_v9 = vld [vmem:[#allocation101_spill] sm:$0xff] }
 0x75c   : > { %v8817_v5 = vadd.f32 %v8816_v11, %v8703_v22  ;;  %v18618_v22 = vpop.f32.mrf.mxu1 }
 0x75d   : > { %v8705_v0 = vpop.f32.mrf.mxu0 }
 0x75e   : > { %v8819_v40 = vadd.f32 %v8818_v38, %v8705_v0  ;;  %v8835_v56 = vpack.c.bf16 %v8817_v5, %v8813_v47  ;;  %v13585_v38 = vld [vmem:[%s19323_s4 + $0x300] ss:$12 sps:$4 sm:$0xff]   ;;  %v18634_v47 = vpop.f32.mrf.mxu1 }
 0x760   : > { %v8836_v55 = vpack.c.bf16 %v8819_v40, %v8815_v60  ;;  %v13587_v60 = vld [vmem:[%s19323_s4 + $0x304] ss:$12 sps:$4 sm:$0xff]  }
 0x762   : > { %12248 = vmatprep.mubr.msk.bf16.mxu0 %vm8039_vm2, %v8836_v55 }
 0x763   : > { %9109 = vmatmul.mubr.bf16.gmra.mxu0 %v8835_v56 }
 0x764   : > { %9457 = vmatprep.mubr.bf16.mxu0 %v20348_v57 }
 0x76b   : > { %9458 = vmatmul.mubr.bf16.vlgmr.msra.gmra.mxu0 %v13556_v42  ;;  %v18639_v42 = vpop.f32.mrf.mxu1 }
 0x76c   : > { %10030 = vmatpush1.bf16.msra.mxu0 %v20350_v35  ;;  %9467 = vmatprep.mubr.bf16.mxu0 %v20348_v57  ;;  %v13564_v35 = vld [vmem:[%s19323_s4 + $0x278] ss:$12 sps:$4 sm:$0xff]  }
 0x76d   : > { %10031 = vmatprep.subr.bf16.mxu0 %v20351_v50  ;;  %v20416_v50 = vld [vmem:[#allocation195_spill] sm:$0xff] }
 0x770   : > { %10032 = vmatpush1.bf16.msra.mxu0 %v20352_v45  ;;  %v13568_v45 = vld [vmem:[%s19323_s4 + $0x290] ss:$12 sps:$4 sm:$0xff]  }
 0x771   : > { %10033 = vmatprep.subr.bf16.mxu0 %v20353_v24  ;;  %v20417_v24 = vld [vmem:[#allocation111_spill] sm:$0xff] }
 0x773   : > { %9468 = vmatmul.mubr.bf16.gmra.mxu0 %v13560_v48 }
 0x774   : > { %10034 = vmatpush1.bf16.msra.mxu0 %v20354_v15  ;;  %9477 = vmatprep.mubr.bf16.mxu0 %v20348_v57  ;;  %v20418_v15 = vld [vmem:[#allocation197_spill] sm:$0xff] }
 0x775   : > { %10035 = vmatprep.subr.bf16.mxu0 %v20355_v8  ;;  %v20419_v8 = vld [vmem:[#allocation91_spill] sm:$0xff] }
 0x778   : > { %10036 = vmatpush1.bf16.msra.mxu0 %v20356_v54  ;;  %v20420_v54 = vld [vmem:[#allocation113_spill] sm:$0xff] }
 0x779   : > { %10037 = vmatprep.subr.bf16.mxu0 %v20357_v2  ;;  %v13572_v2 = vld [vmem:[%s19323_s4 + $0x2a8] ss:$12 sps:$4 sm:$0xff]  }
 0x77b   : > { %9478 = vmatmul.mubr.bf16.gmra.mxu0 %v13564_v35 }
 0x77c   : > { %10038 = vmatpush1.bf16.msra.mxu0 %v20358_v21  ;;  %9487 = vmatprep.mubr.bf16.mxu0 %v20348_v57  ;;  %v20421_v21 = vld [vmem:[#allocation89_spill] sm:$0xff] }
 0x77d   : > { %10039 = vmatprep.subr.bf16.mxu0 %v20416_v50  ;;  %v13591_v50 = vld [vmem:[%s19323_s4 + $0x31c] ss:$12 sps:$4 sm:$0xff]  }
 0x780   : > { %10040 = vmatpush1.bf16.msra.mxu0 %v20417_v24 }
 0x781   : > { %10041 = vmatprep.subr.bf16.mxu0 %v20418_v15  ;;  %v18655_v15 = vpop.f32.mrf.mxu1 }
 0x783   : > { %9488 = vmatmul.mubr.bf16.gmra.mxu0 %v13568_v45  ;;  %v20439_v45 = vld [vmem:[#allocation143_spill] sm:$0xff] }
 0x784   : > { %10042 = vmatpush1.bf16.msra.mxu0 %v20419_v8  ;;  %9497 = vmatprep.mubr.bf16.mxu0 %v20348_v57 }
 0x785   : > { %10043 = vmatprep.subr.bf16.mxu0 %v20420_v54 }
 0x788   : > { %10044 = vmatpush1.bf16.msra.mxu0 %v20421_v21  ;;  %v20441_v21 = vld [vmem:[#allocation145_spill] sm:$0xff] }
 0x789   : > { %10045 = vmatprep.subr.bf16.mxu0 %v20422_v49 }
 0x78b   : > { %9498 = vmatmul.mubr.bf16.gmra.mxu0 %v13572_v2 }
 0x78c   : > { %10046 = vmatpush2.bf16.msra.mxu0 %v20423_v23  ;;  %9507 = vmatprep.mubr.bf16.mxu0 %v20348_v57 }
 0x78d   : > { %10047 = vmatprep.subr.bf16.mxu0 %v20424_v44  ;;  %v13593_v44 = vld [vmem:[%s19323_s4 + $0x330] ss:$12 sps:$4 sm:$0xff]  }
 0x790   : > { %10048 = vmatpush2.bf16.msra.mxu0 %v20425_v58  ;;  %v20442_v58 = vld [vmem:[#allocation231_spill] sm:$0xff] }
 0x791   : > { %10049 = vmatprep.subr.bf16.mxu0 %v20426_v33 }
 0x793   : > { %9508 = vmatmul.mubr.bf16.gmra.mxu0 %v13576_v26  ;;  %v13595_v26 = vld [vmem:[%s19323_s4 + $0x334] ss:$12 sps:$4 sm:$0xff]  }
 0x794   : > { %10050 = vmatpush2.bf16.msra.mxu0 %v20427_v36  ;;  %9517 = vmatprep.mubr.bf16.mxu0 %v20348_v57 }
 0x795   : > { %10051 = vmatprep.subr.bf16.mxu0 %v20428_v43 }
 0x798   : > { %10052 = vmatpush2.bf16.msra.mxu0 %v20429_v39 }
 0x799   : > { %10053 = vmatprep.subr.bf16.mxu0 %v20430_v17 }
 0x79b   : > { %9518 = vmatmul.mubr.bf16.gmra.mxu0 %v13580_v28  ;;  %v20444_v28 = vld [vmem:[#allocation233_spill] sm:$0xff] }
 0x79c   : > { %10054 = vmatpush2.bf16.msra.mxu0 %v20431_v18  ;;  %9527 = vmatprep.mubr.bf16.mxu0 %v20348_v57 }
 0x79d   : > { %10055 = vmatprep.subr.bf16.mxu0 %v20432_v19  ;;  %v20445_v19 = vld [vmem:[#allocation149_spill] sm:$0xff] }
 0x7a0   : > { %10056 = vmatpush2.bf16.msra.mxu0 %v20433_v7 }
 0x7a1   : > { %10057 = vmatprep.subr.bf16.mxu0 %v20434_v41  ;;  %v13597_v41 = vld [vmem:[%s19323_s4 + $0x348] ss:$12 sps:$4 sm:$0xff]  }
 0x7a3   : > { %9528 = vmatmul.mubr.bf16.gmra.mxu0 %v13584_v37 }
 0x7a4   : > { %10058 = vmatpush2.bf16.msra.mxu0 %v20435_v29  ;;  %10061 = vmatprep.mubr.bf16.mxu0 %v13587_v60  ;;  %v13599_v29 = vld [vmem:[%s19323_s4 + $0x34c] ss:$12 sps:$4 sm:$0xff]  }
 0x7a5   : > { %10059 = vmatprep.subr.bf16.mxu0 %v20436_v4  ;;  %v18660_v2 = vpop.f32.mrf.mxu1  ;;  %v20446_v4 = vld [vmem:[#allocation235_spill] sm:$0xff] }
 0x7a7   : > { %v18676_v36 = vpop.f32.mrf.mxu1 }
 0x7a8   : > { %10060 = vmatpush2.bf16.msra.mxu0 %v20437_v9 }
 0x7a9   : > { %v18681_v18 = vpop.f32.mrf.mxu1 }
 0x7ab   : > { %10062 = vmatmul.mubr.bf16.vlgmr.msra.gmra.mxu0 %v13585_v38  ;;  %v20448_v38 = vld [vmem:[#allocation151_spill] sm:$0xff] }
 0x7ac   : > { %10071 = vmatprep.mubr.bf16.mxu0 %v13591_v50 }
 0x7eb   : > { %v9040_v53 = vpop.f32.mrf.mxu0 }
 0x7ec   : > { %v18616_v13 = vadd.f32 %v9040_v53, %v18353_v10 }
 0x7ed   : > { %v9042_v11 = vpop.f32.mrf.mxu0 }
 0x7ee   : > { %v18621_v5 = vadd.f32 %v9042_v11, %v18357_v16  ;;  %v18697_v11 = vpop.f32.mrf.mxu1 }
 0x7ef   : > { %v9044_v0 = vpop.f32.mrf.mxu0 }
 0x7f0   : > { %v18630_v40 = vadd.f32 %v9044_v0, %v18359_v20  ;;  %v13589_v20 = vld [vmem:[%s19323_s4 + $0x318] ss:$12 sps:$4 sm:$0xff]  }
 0x7f1   : > { %v18632_v10 = vpop.f32.mrf.mxu0  ;;  %10072 = vmatmul.mubr.bf16.gmra.mxu0 %v13589_v20 }
 0x7f2   : > { %20438 = vst [vmem:[#allocation251_spill] sm:$0xff] %v18632_v10  ;;  %10081 = vmatprep.mubr.bf16.mxu0 %v13595_v26 }
 0x7f3   : > { %v9050_v16 = vpop.f32.mrf.mxu0 }
 0x7f4   : > { %v18637_v55 = vadd.f32 %v9050_v16, %v18365_v51 }
 0x7f5   : > { %v9052_v56 = vpop.f32.mrf.mxu0 }
 0x7f6   : > { %v18642_v48 = vadd.f32 %v9052_v56, %v18369_v14  ;;  %v18702_v56 = vpop.f32.mrf.mxu1 }
 0x7f7   : > { %v9054_v35 = vpop.f32.mrf.mxu0 }
 0x7f8   : > { %v18651_v24 = vadd.f32 %v9054_v35, %v20439_v45  ;;  %v20449_v35 = vld [vmem:[#allocation237_spill] sm:$0xff]  ;;  %v13601_v45 = vld [vmem:[%s19323_s4 + $0x360] ss:$12 sps:$4 sm:$0xff]  }
 0x7f9   : > { %v18653_v51 = vpop.f32.mrf.mxu0  ;;  %10082 = vmatmul.mubr.bf16.gmra.mxu0 %v13593_v44  ;;  %v18718_v44 = vpop.f32.mrf.mxu1 }
 0x7fa   : > { %20440 = vst [vmem:[#allocation252_spill] sm:$0xff] %v18653_v51  ;;  %10091 = vmatprep.mubr.bf16.mxu0 %v13599_v29  ;;  %v13605_v29 = vld [vmem:[%s19323_s4 + $0x378] ss:$12 sps:$4 sm:$0xff]  }
 0x7fb   : > { %v9060_v14 = vpop.f32.mrf.mxu0 }
 0x7fc   : > { %v18658_v8 = vadd.f32 %v9060_v14, %v18383_v27  ;;  %v13603_v14 = vld [vmem:[%s19323_s4 + $0x364] ss:$12 sps:$4 sm:$0xff]  }
 0x7fd   : > { %v9062_v54 = vpop.f32.mrf.mxu0 }
 0x7fe   : > { %v18663_v49 = vadd.f32 %v9062_v54, %v20441_v21  ;;  %v20450_v54 = vld [vmem:[#allocation106_spill] sm:$0xff] }
 0x7ff   : > { %v9064_v23 = vpop.f32.mrf.mxu0 }
 0x800   : > { %v18672_v33 = vadd.f32 %v9064_v23, %v20442_v58  ;;  %v20452_v58 = vld [vmem:[#allocation240_spill] sm:$0xff] }
 0x801   : > { %v18674_v27 = vpop.f32.mrf.mxu0  ;;  %10092 = vmatmul.mubr.bf16.gmra.mxu0 %v13597_v41 }
 0x802   : > { %20443 = vst [vmem:[#allocation253_spill] sm:$0xff] %v18674_v27  ;;  %10101 = vmatprep.mubr.bf16.mxu0 %v13603_v14  ;;  %v20467_v27 = vld [vmem:[#allocation248_spill] sm:$0xff] }
 0x803   : > { %v9070_v43 = vpop.f32.mrf.mxu0 }
 0x804   : > { %v18679_v39 = vadd.f32 %v9070_v43, %v20444_v28 }
 0x805   : > { %v9072_v17 = vpop.f32.mrf.mxu0 }
 0x806   : > { %v18684_v37 = vadd.f32 %v9072_v17, %v20445_v19  ;;  %v18723_v17 = vpop.f32.mrf.mxu1  ;;  %v20453_v19 = vld [vmem:[#allocation155_spill] sm:$0xff] }
 0x807   : > { %v9074_v7 = vpop.f32.mrf.mxu0 }
 0x808   : > { %v18693_v9 = vadd.f32 %v9074_v7, %v20446_v4  ;;  %v13607_v4 = vld [vmem:[%s19323_s4 + $0x37c] ss:$12 sps:$4 sm:$0xff]  }
 0x809   : > { %v18695_v53 = vpop.f32.mrf.mxu0  ;;  %10102 = vmatmul.mubr.bf16.gmra.mxu0 %v13601_v45  ;;  %v20458_v45 = vld [vmem:[#allocation244_spill] sm:$0xff] }
 0x80a   : > { %20447 = vst [vmem:[#allocation254_spill] sm:$0xff] %v18695_v53  ;;  %10111 = vmatprep.mubr.bf16.mxu0 %v13607_v4  ;;  %v13611_v4 = vld [vmem:[%s19323_s4 + $0x394] ss:$12 sps:$4 sm:$0xff]  }
 0x80b   : > { %v9080_v0 = vpop.f32.mrf.mxu0 }
 0x80c   : > { %v18700_v60 = vadd.f32 %v9080_v0, %v20448_v38  ;;  %v20455_v0 = vld [vmem:[#allocation242_spill] sm:$0xff] }
 0x80d   : > { %v9082_v16 = vpop.f32.mrf.mxu0 }
 0x80e   : > { %v18705_v20 = vadd.f32 %v9082_v16, %v20449_v35  ;;  %v18739_v35 = vpop.f32.mrf.mxu1 }
 0x80f   : > { %v9084_v50 = vpop.f32.mrf.mxu0 }
 0x810   : > { %v18714_v21 = vadd.f32 %v9084_v50, %v20450_v54 }
 0x811   : > { %v18716_v23 = vpop.f32.mrf.mxu0  ;;  %10112 = vmatmul.mubr.bf16.gmra.mxu0 %v13605_v29  ;;  %v20462_v29 = vld [vmem:[#allocation159_spill] sm:$0xff] }
 0x812   : > { %20451 = vst [vmem:[#allocation255_spill] sm:$0xff] %v18716_v23  ;;  %10121 = vmatprep.mubr.bf16.mxu0 %v13611_v4  ;;  %v13615_v4 = vld [vmem:[%s19323_s4 + $0x3ac] ss:$12 sps:$4 sm:$0xff]  }
 0x813   : > { %v9090_v26 = vpop.f32.mrf.mxu0 }
 0x814   : > { %v18721_v43 = vadd.f32 %v9090_v26, %v20452_v58  ;;  %v18744_v26 = vpop.f32.mrf.mxu1  ;;  %v20460_v58 = vld [vmem:[#allocation23_spill] sm:$0xff] }
 0x815   : > { %v9092_v28 = vpop.f32.mrf.mxu0 }
 0x816   : > { %v18726_v7 = vadd.f32 %v9092_v28, %v20453_v19 }
 0x817   : > { %v9094_v41 = vpop.f32.mrf.mxu0 }
 0x818   : > { %20454 = vst [vmem:[#allocation256_spill] sm:$0xff] %v18726_v7  ;;  %v18735_v38 = vadd.f32 %v9094_v41, %v20455_v0  ;;  %v13609_v41 = vld [vmem:[%s19323_s4 + $0x390] ss:$12 sps:$4 sm:$0xff]  }
 0x819   : > { %v18737_v16 = vpop.f32.mrf.mxu0  ;;  %10122 = vmatmul.mubr.bf16.gmra.mxu0 %v13609_v41  ;;  %v20469_v41 = vld [vmem:[#allocation249_spill] sm:$0xff] }
 0x81a   : > { %20456 = vst [vmem:[#allocation257_spill] sm:$0xff] %v18735_v38  ;;  %20457 = vst [vmem:[#allocation3_spill] sm:$0xff] %v18737_v16  ;;  %10131 = vmatprep.mubr.bf16.mxu0 %v13615_v4 }
 0x81b   : > { %v9100_v50 = vpop.f32.mrf.mxu0 }
 0x81c   : > { %v18742_v14 = vadd.f32 %v9100_v50, %v20458_v45  ;;  %v18760_v45 = vpop.f32.mrf.mxu1 }
 0x81d   : > { %v9102_v54 = vpop.f32.mrf.mxu0 }
 0x81e   : > { %20459 = vst [vmem:[#allocation174_spill] sm:$0xff] %v18742_v14  ;;  %v18747_v28 = vadd.f32 %v9102_v54, %v20460_v58  ;;  %v20465_v58 = vld [vmem:[#allocation161_spill] sm:$0xff]  ;;  %v18765_v53 = vpop.f32.mrf.mxu1 }
 0x81f   : > { %v9104_v19 = vpop.f32.mrf.mxu0 }
 0x820   : > { %20461 = vst [vmem:[#allocation4_spill] sm:$0xff] %v18747_v28  ;;  %v18756_v0 = vadd.f32 %v9104_v19, %v20462_v29  ;;  %v13613_v19 = vld [vmem:[%s19323_s4 + $0x3a8] ss:$12 sps:$4 sm:$0xff]  }
 0x821   : > { %v18758_v50 = vpop.f32.mrf.mxu0  ;;  %10132 = vmatmul.mubr.bf16.gmra.mxu0 %v13613_v19 }
 0x822   : > { %20463 = vst [vmem:[#allocation90_spill] sm:$0xff] %v18756_v0  ;;  %20464 = vst [vmem:[#allocation5_spill] sm:$0xff] %v18758_v50 }
 0x823   : > { %v9110_v54 = vpop.f32.mrf.mxu0 }
 0x824   : > { %v18763_v16 = vadd.f32 %v9110_v54, %v20465_v58  ;;  %v18781_v58 = vpop.f32.mrf.mxu1 }
 0x825   : > { %v9112_v23 = vpop.f32.mrf.mxu0 }
 0x826   : > { %20466 = vst [vmem:[#allocation176_spill] sm:$0xff] %v18763_v16  ;;  %v18768_v51 = vadd.f32 %v9112_v23, %v20467_v27  ;;  %v18783_v50 = vpop.f32.mrf.mxu1 }
 0x827   : > { %v9114_v10 = vpop.f32.mrf.mxu0 }
 0x828   : > { %20468 = vst [vmem:[#allocation6_spill] sm:$0xff] %v18768_v51  ;;  %v18777_v29 = vadd.f32 %v9114_v10, %v20469_v41  ;;  %v18786_v28 = vpop.f32.mrf.mxu1 }
 0x829   : > { %v18779_v54 = vpop.f32.mrf.mxu0 }
 0x82a   : > { %20470 = vst [vmem:[#allocation92_spill] sm:$0xff] %v18777_v29  ;;  %20471 = vst [vmem:[#allocation7_spill] sm:$0xff] %v18779_v54  ;;  %v9390_v38 = vpop.f32.mrf.mxu1 }
 0x82b   : > { %v9459_v27 = vpop.f32.mrf.mxu0 }
 0x82c   : > { %v9460_v41 = vadd.f32 %v9459_v27, %v18618_v22 }
 0x82d   : > { %v9461_v23 = vpop.f32.mrf.mxu0 }
 0x82e   : > { %v9462_v14 = vadd.f32 %v9461_v23, %v18634_v47 }
 0x82f   : > { %v9463_v51 = vpop.f32.mrf.mxu0 }
 0x830   : > { %v9464_v16 = vadd.f32 %v9463_v51, %v18639_v42  ;;  %v9392_v51 = vpop.f32.mrf.mxu1 }
 0x831   : > { %v9465_v0 = vpop.f32.mrf.mxu0 }
 0x832   : > { %v9466_v10 = vadd.f32 %v9465_v0, %v18655_v15  ;;  %v9538_v4 = vpack.c.bf16 %v9464_v16, %v9460_v41  ;;  %v9396_v27 = vpop.f32.mrf.mxu1 }
 0x833   : > { %v9469_v54 = vpop.f32.mrf.mxu0 }
 0x834   : > { %v9539_v29 = vpack.c.bf16 %v9466_v10, %v9462_v14  ;;  %v9470_v16 = vadd.f32 %v9469_v54, %v18660_v2 }
 0x835   : > { %v9471_v19 = vpop.f32.mrf.mxu0 }
 0x836   : > { %12353 = vmatprep.mubr.msk.bf16.mxu1 %vm8039_vm2, %v9539_v29  ;;  %v9472_v15 = vadd.f32 %v9471_v19, %v18676_v36 }
 0x837   : > { %v9473_v7 = vpop.f32.mrf.mxu0  ;;  %9756 = vmatmul.mubr.bf16.vlgmr.msra.gmra.mxu1 %v9538_v4 }
 0x838   : > { %10143 = vmatpush1.bf16.msra.mxu1 %v17563_v62  ;;  %v9474_v42 = vadd.f32 %v9473_v7, %v18681_v18  ;;  %v9398_v18 = vpop.f32.mrf.mxu1 }
 0x839   : > { %10144 = vmatprep.subr.bf16.mxu1 %v17573_v1  ;;  %v9475_v47 = vpop.f32.mrf.mxu0 }
 0x83a   : > { %v9476_v22 = vadd.f32 %v9475_v47, %v18697_v11  ;;  %v9540_v29 = vpack.c.bf16 %v9474_v42, %v9470_v16  ;;  %v9400_v10 = vpop.f32.mrf.mxu1 }
 0x83b   : > { %v9479_v14 = vpop.f32.mrf.mxu0 }
 0x83c   : > { %v9541_v0 = vpack.c.bf16 %v9476_v22, %v9472_v15  ;;  %10145 = vmatpush1.bf16.msra.mxu1 %v17593_v6 }
 0x83d   : > { %10146 = vmatprep.subr.bf16.mxu1 %v17597_v31  ;;  %v9481_v62 = vpop.f32.mrf.mxu0  ;;  %v9480_v31 = vadd.f32 %v9479_v14, %v18702_v56 }
 0x83e   : > { %12354 = vmatprep.mubr.msk.bf16.mxu1 %vm8039_vm2, %v9541_v0  ;;  %v9482_v11 = vadd.f32 %v9481_v62, %v18718_v44 }
 0x83f   : > { %v9483_v1 = vpop.f32.mrf.mxu0  ;;  %9766 = vmatmul.mubr.bf16.gmra.mxu1 %v9540_v29 }
 0x840   : > { %10147 = vmatpush1.bf16.msra.mxu1 %v17616_v25  ;;  %v9484_v36 = vadd.f32 %v9483_v1, %v18723_v17  ;;  %v9402_v17 = vpop.f32.mrf.mxu1 }
 0x841   : > { %10148 = vmatprep.subr.bf16.mxu1 %v17626_v30  ;;  %v9485_v2 = vpop.f32.mrf.mxu0 }
 0x842   : > { %v9486_v6 = vadd.f32 %v9485_v2, %v18739_v35  ;;  %v9542_v23 = vpack.c.bf16 %v9484_v36, %v9480_v31  ;;  %v9406_v42 = vpop.f32.mrf.mxu1 }
 0x843   : > { %v9489_v7 = vpop.f32.mrf.mxu0 }
 0x844   : > { %v9543_v54 = vpack.c.bf16 %v9486_v6, %v9482_v11  ;;  %10149 = vmatpush1.bf16.msra.mxu1 %v17642_v59 }
 0x845   : > { %10150 = vmatprep.subr.bf16.mxu1 %v17646_v63  ;;  %v9491_v25 = vpop.f32.mrf.mxu0  ;;  %v9490_v63 = vadd.f32 %v9489_v7, %v18744_v26  ;;  %v9408_v26 = vpop.f32.mrf.mxu1 }
 0x846   : > { %12355 = vmatprep.mubr.msk.bf16.mxu1 %vm8039_vm2, %v9543_v54  ;;  %v9492_v35 = vadd.f32 %v9491_v25, %v18760_v45 }
 0x847   : > { %v9493_v30 = vpop.f32.mrf.mxu0  ;;  %9776 = vmatmul.mubr.bf16.gmra.mxu1 %v9542_v23  ;;  %v9410_v14 = vpop.f32.mrf.mxu1 }
 0x848   : > { %10151 = vmatpush1.bf16.msra.mxu1 %v17663_v3  ;;  %v9494_v44 = vadd.f32 %v9493_v30, %v18765_v53 }
 0x849   : > { %10152 = vmatprep.subr.bf16.mxu1 %v17670_v61  ;;  %v9495_v56 = vpop.f32.mrf.mxu0  ;;  %v9412_v0 = vpop.f32.mrf.mxu1 }
 0x84a   : > { %v9496_v59 = vadd.f32 %v9495_v56, %v18781_v58  ;;  %v9544_v19 = vpack.c.bf16 %v9494_v44, %v9490_v63 }
 0x84b   : > { %v9499_v41 = vpop.f32.mrf.mxu0  ;;  %v9416_v2 = vpop.f32.mrf.mxu1 }
 0x84c   : > { %v9545_v4 = vpack.c.bf16 %v9496_v59, %v9492_v35  ;;  %10153 = vmatpush1.bf16.msra.mxu1 %v17678_v32  ;;  %v9500_v32 = vadd.f32 %v9499_v41, %v18783_v50 }
 0x84d   : > { %10154 = vmatprep.subr.bf16.mxu1 %v17683_v12  ;;  %v9501_v3 = vpop.f32.mrf.mxu0  ;;  %v9418_v31 = vpop.f32.mrf.mxu1 }
 0x84e   : > { %12356 = vmatprep.mubr.msk.bf16.mxu1 %vm8039_vm2, %v9545_v4  ;;  %v9502_v58 = vadd.f32 %v9501_v3, %v18786_v28  ;;  %v13588_v3 = vld [vmem:[%s19323_s4 + $0x308] ss:$12 sps:$4 sm:$0xff]  }
 0x84f   : > { %v9503_v61 = vpop.f32.mrf.mxu0  ;;  %9786 = vmatmul.mubr.bf16.gmra.mxu1 %v9544_v19 }
 0x850   : > { %10155 = vmatpush1.bf16.msra.mxu1 %v20342_v52  ;;  %v9504_v53 = vadd.f32 %v9503_v61, %v9390_v38  ;;  %v13596_v61 = vld [vmem:[%s19323_s4 + $0x338] ss:$12 sps:$4 sm:$0xff]  }
 0x851   : > { %10156 = vmatprep.subr.bf16.mxu1 %v17694_v34  ;;  %v9505_v45 = vpop.f32.mrf.mxu0 }
 0x852   : > { %v9506_v47 = vadd.f32 %v9505_v45, %v9392_v51  ;;  %v9546_v22 = vpack.c.bf16 %v9504_v53, %v9500_v32  ;;  %v13600_v53 = vld [vmem:[%s19323_s4 + $0x350] ss:$12 sps:$4 sm:$0xff]   ;;  %v13620_v32 = vld [vmem:[%s19324_s5 + $0x360] ss:$8 sps:$4 sm:$0xff]  }
 0x853   : > { %v9509_v15 = vpop.f32.mrf.mxu0  ;;  %v13619_v45 = vld [vmem:[%s19324_s5 + $0x374] ss:$8 sps:$4 sm:$0xff]  }
 0x854   : > { %v9547_v12 = vpack.c.bf16 %v9506_v47, %v9502_v58  ;;  %10157 = vmatpush1.bf16.msra.mxu1 %v20344_v46  ;;  %v9510_v28 = vadd.f32 %v9509_v15, %v9396_v27  ;;  %v9420_v27 = vpop.f32.mrf.mxu1  ;;  %v13617_v58 = vld [vmem:[%s19324_s5 + $0x370] ss:$8 sps:$4 sm:$0xff]   ;;  %10440 = vmatprep.subr.bf16.mxu0 %v13619_v45  ;;  %v13622_v47 = vld [vmem:[%s19324_s5 + $0x364] ss:$8 sps:$4 sm:$0xff]   ;;  %v13625_v15 = vld [vmem:[%s19324_s5 + $0x354] ss:$8 sps:$4 sm:$0xff]  }
 0x855   : > { %v9511_v16 = vpop.f32.mrf.mxu0  ;;  %10441 = vmatpush1.bf16.msra.mxu0 %v13617_v58 }
 0x856   : > { %12357 = vmatprep.mubr.msk.bf16.mxu1 %vm8039_vm2, %v9547_v12  ;;  %v9512_v29 = vadd.f32 %v9511_v16, %v9398_v18  ;;  %10442 = vmatprep.subr.bf16.mxu0 %v13622_v47  ;;  %v13608_v12 = vld [vmem:[%s19323_s4 + $0x380] ss:$12 sps:$4 sm:$0xff]  }
 0x857   : > { %v9513_v52 = vpop.f32.mrf.mxu0  ;;  %9796 = vmatmul.mubr.bf16.gmra.mxu1 %v9546_v22  ;;  %v13623_v22 = vld [vmem:[%s19324_s5 + $0x350] ss:$8 sps:$4 sm:$0xff]   ;;  %v13628_v16 = vld [vmem:[%s19324_s5 + $0x344] ss:$8 sps:$4 sm:$0xff]  }
 0x858   : > { %v9514_v38 = vadd.f32 %v9513_v52, %v9400_v10  ;;  %v13631_v52 = vld [vmem:[%s19324_s5 + $0x334] ss:$8 sps:$4 sm:$0xff]  }
 0x859   : > { %v9515_v34 = vpop.f32.mrf.mxu0  ;;  %10443 = vmatpush1.bf16.msra.mxu0 %v13620_v32 }
 0x85a   : > { %v9516_v62 = vadd.f32 %v9515_v34, %v9402_v17  ;;  %v9548_v50 = vpack.c.bf16 %v9514_v38, %v9510_v28  ;;  %v9422_v17 = vpop.f32.mrf.mxu1  ;;  %10444 = vmatprep.subr.bf16.mxu0 %v13625_v15  ;;  %v13612_v38 = vld [vmem:[%s19323_s4 + $0x398] ss:$12 sps:$4 sm:$0xff]   ;;  %v13616_v28 = vld [vmem:[%s19323_s4 + $0x3b0] ss:$12 sps:$4 sm:$0xff]  }
 0x85b   : > { %v9519_v51 = vpop.f32.mrf.mxu0  ;;  %v13629_v34 = vld [vmem:[%s19324_s5 + $0x330] ss:$8 sps:$4 sm:$0xff]  }
 0x85c   : > { %v9549_v1 = vpack.c.bf16 %v9516_v62, %v9512_v29  ;;  %v9520_v23 = vadd.f32 %v9519_v51, %v9406_v42  ;;  %v13592_v42 = vld [vmem:[%s19323_s4 + $0x320] ss:$12 sps:$4 sm:$0xff]   ;;  %v13637_v62 = vld [vmem:[%s19324_s5 + $0x314] ss:$8 sps:$4 sm:$0xff]   ;;  %v13635_v51 = vld [vmem:[%s19324_s5 + $0x310] ss:$8 sps:$4 sm:$0xff]  }
 0x85d   : > { %v9521_v36 = vpop.f32.mrf.mxu0  ;;  %10445 = vmatpush1.bf16.msra.mxu0 %v13623_v22  ;;  %v13632_v29 = vld [vmem:[%s19324_s5 + $0x320] ss:$8 sps:$4 sm:$0xff]  }
 0x85e   : > { %12358 = vmatprep.mubr.msk.bf16.mxu1 %vm8039_vm2, %v9549_v1  ;;  %v9522_v7 = vadd.f32 %v9521_v36, %v9408_v26  ;;  %v13604_v26 = vld [vmem:[%s19323_s4 + $0x368] ss:$12 sps:$4 sm:$0xff]   ;;  %10446 = vmatprep.subr.bf16.mxu0 %v13628_v16  ;;  %v13641_v36 = vld [vmem:[%s19324_s5 + $0x3b0] ss:$8 sps:$4 sm:$0xff]  }
 0x85f   : > { %v9523_v46 = vpop.f32.mrf.mxu0  ;;  %9806 = vmatmul.mubr.bf16.gmra.mxu1 %v9548_v50  ;;  %v13638_v1 = vld [vmem:[%s19324_s5 + $0x300] ss:$8 sps:$4 sm:$0xff]   ;;  %v13643_v50 = vld [vmem:[%s19324_s5 + $0x3b4] ss:$8 sps:$4 sm:$0xff]  }
 0x860   : > { %v9524_v11 = vadd.f32 %v9523_v46, %v9410_v14  ;;  %v13626_v14 = vld [vmem:[%s19324_s5 + $0x340] ss:$8 sps:$4 sm:$0xff]  }
 0x861   : > { %v9525_v6 = vpop.f32.mrf.mxu0  ;;  %10447 = vmatpush1.bf16.msra.mxu0 %v13626_v14  ;;  %v13644_v46 = vld [vmem:[%s19324_s5 + $0x3a0] ss:$8 sps:$4 sm:$0xff]  }
 0x862   : > { %v9526_v54 = vadd.f32 %v9525_v6, %v9412_v0  ;;  %v9550_v18 = vpack.c.bf16 %v9524_v11, %v9520_v23  ;;  %10448 = vmatprep.subr.bf16.mxu0 %v13631_v52  ;;  %v13634_v0 = vld [vmem:[%s19324_s5 + $0x324] ss:$8 sps:$4 sm:$0xff]   ;;  %v13649_v11 = vld [vmem:[%s19324_s5 + $0x394] ss:$8 sps:$4 sm:$0xff]   ;;  %v13647_v6 = vld [vmem:[%s19324_s5 + $0x390] ss:$8 sps:$4 sm:$0xff]  }
 0x863   : > { %v9529_v25 = vpop.f32.mrf.mxu0 }
 0x864   : > { %v9551_v10 = vpack.c.bf16 %v9526_v54, %v9522_v7  ;;  %v9530_v41 = vadd.f32 %v9529_v25, %v9416_v2  ;;  %v13646_v2 = vld [vmem:[%s19324_s5 + $0x3a4] ss:$8 sps:$4 sm:$0xff]   ;;  %v13650_v7 = vld [vmem:[%s19324_s5 + $0x380] ss:$8 sps:$4 sm:$0xff]  }
 0x865   : > { %v9531_v30 = vpop.f32.mrf.mxu0  ;;  %10449 = vmatpush1.bf16.msra.mxu0 %v13629_v34 }
 0x866   : > { %12359 = vmatprep.mubr.msk.bf16.mxu1 %vm8039_vm2, %v9551_v10  ;;  %v9532_v59 = vadd.f32 %v9531_v30, %v9418_v31  ;;  %10450 = vmatprep.subr.bf16.mxu0 %v13634_v0  ;;  %v13652_v31 = vld [vmem:[%s19324_s5 + $0x384] ss:$8 sps:$4 sm:$0xff]  }
 0x867   : > { %v9533_v44 = vpop.f32.mrf.mxu0  ;;  %9816 = vmatmul.mubr.bf16.gmra.mxu1 %v9550_v18 }
 0x868   : > { %v9534_v56 = vadd.f32 %v9533_v44, %v9420_v27  ;;  %v13653_v27 = vld [vmem:[%s19326_s7 + $0x78] sm:$0xff]  }
 0x869   : > { %v9535_v35 = vpop.f32.mrf.mxu0  ;;  %10451 = vmatpush1.bf16.msra.mxu0 %v13632_v29  ;;  %v13654_v44 = vld [vmem:[%s19326_s7 + $0x38] sm:$0xff]   ;;  %12635 = vmatprep.subr.bf16.mxu1 %v13653_v27 }
 0x86a   : > { %v9536_v63 = vadd.f32 %v9535_v35, %v9422_v17  ;;  %v9552_v19 = vpack.c.bf16 %v9534_v56, %v9530_v41  ;;  %10452 = vmatprep.subr.bf16.mxu0 %v13637_v62  ;;  %v13656_v35 = vld [vmem:[%s19326_s7 + $0x30] sm:$0xff]  }
 0x86b   : > { %v18935_v10 = vpop.f32.mrf.mxu0 }
 0x86c   : > { %v9553_v4 = vpack.c.bf16 %v9536_v63, %v9532_v59  ;;  %v13657_v63 = vld [vmem:[%s19326_s7 + $0x68] sm:$0xff]  }
 0x86d   : > { %10453 = vmatpush1.bf16.msra.mxu0 %v13635_v51 }
 0x86e   : > { %12360 = vmatprep.mubr.msk.bf16.mxu1 %vm8039_vm2, %v9553_v4 }
 0x86f   : > { %9826 = vmatmul.mubr.bf16.gmra.mxu1 %v9552_v19 }
 0x870   : > { %10174 = vmatprep.mubr.bf16.mxu1 %v20348_v57 }
 0x877   : > { %10175 = vmatmul.mubr.bf16.vlgmr.msra.gmra.mxu1 %v13588_v3  ;;  %v13658_v3 = vld [vmem:[%s19326_s7 + $0x28] sm:$0xff]  }
 0x878   : > { %10184 = vmatprep.mubr.bf16.mxu1 %v20348_v57  ;;  %12636 = vmatpush3.bf16.msra.mxu1 %v13654_v44 }
 0x87f   : > { %10185 = vmatmul.mubr.bf16.gmra.mxu1 %v13592_v42 }
 0x880   : > { %10194 = vmatprep.mubr.bf16.mxu1 %v20348_v57 }
 0x887   : > { %10195 = vmatmul.mubr.bf16.gmra.mxu1 %v13596_v61  ;;  %v13659_v61 = vld [vmem:[%s19326_s7 + $0x60] sm:$0xff]  }
 0x888   : > { %10204 = vmatprep.mubr.bf16.mxu1 %v20348_v57 }
 0x88f   : > { %10205 = vmatmul.mubr.bf16.gmra.mxu1 %v13600_v53 }
 0x890   : > { %10214 = vmatprep.mubr.bf16.mxu1 %v20348_v57 }
 0x897   : > { %10215 = vmatmul.mubr.bf16.gmra.mxu1 %v13604_v26 }
 0x898   : > { %10224 = vmatprep.mubr.bf16.mxu1 %v20348_v57 }
 0x89f   : > { %10225 = vmatmul.mubr.bf16.gmra.mxu1 %v13608_v12 }
 0x8a0   : > { %10234 = vmatprep.mubr.bf16.mxu1 %v20348_v57 }
 0x8a7   : > { %10235 = vmatmul.mubr.bf16.gmra.mxu1 %v13612_v38 }
 0x8a8   : > { %10244 = vmatprep.mubr.bf16.mxu1 %v20348_v57  ;;  %v13640_v57 = vld [vmem:[%s19324_s5 + $0x304] ss:$8 sps:$4 sm:$0xff]  }
 0x8a9   : > { %10454 = vmatprep.subr.bf16.mxu0 %v13640_v57 }
 0x8aa   : > { %10455 = vmatpush1.bf16.msra.mxu0 %v13638_v1 }
 0x8ab   : > { %10464 = vmatprep.subr.bf16.mxu0 %v13643_v50 }
 0x8ae   : > { %10465 = vmatpush2.bf16.msra.mxu0 %v13641_v36 }
 0x8af   : > { %10245 = vmatmul.mubr.bf16.gmra.mxu1 %v13616_v28  ;;  %10466 = vmatprep.subr.bf16.mxu0 %v13646_v2 }
 0x8b2   : > { %10467 = vmatpush2.bf16.msra.mxu0 %v13644_v46 }
 0x8b3   : > { %10468 = vmatprep.subr.bf16.mxu0 %v13649_v11  ;;  %v20472_v11 = vld [vmem:[#allocation256_spill] sm:$0xff] }
 0x8b6   : > { %10469 = vmatpush2.bf16.msra.mxu0 %v13647_v6 }
 0x8b7   : > { %10470 = vmatprep.subr.bf16.mxu0 %v13652_v31 }
 0x8ba   : > { %10471 = vmatpush2.bf16.msra.mxu0 %v13650_v7 }
 0x8f7   : > { %v9757_v54 = vpop.f32.mrf.mxu1 }
 0x8f8   : > { %v18933_v23 = vadd.f32 %v9757_v54, %v18616_v13  ;;  %v13655_v13 = vld [vmem:[%s19326_s7 + $0x70] sm:$0xff]  }
 0x8f9   : > { %v9759_v25 = vpop.f32.mrf.mxu1  ;;  %12637 = vmatprep.subr.bf16.mxu1 %v13655_v13 }
 0x8fa   : > { %v18938_v18 = vadd.f32 %v9759_v25, %v18621_v5  ;;  %v18954_v5 = vpop.f32.mrf.mxu0  ;;  %12638 = vmatpush3.bf16.msra.mxu1 %v13656_v35 }
 0x8fb   : > { %v9761_v30 = vpop.f32.mrf.mxu1  ;;  %12639 = vmatprep.subr.bf16.mxu1 %v13657_v63  ;;  %v20476_v63 = vld [vmem:[#allocation90_spill] sm:$0xff] }
 0x8fc   : > { %v18950_v56 = vadd.f32 %v9761_v30, %v18630_v40  ;;  %v18965_v4 = vpop.f32.mrf.mxu0  ;;  %v20474_v30 = vld [vmem:[#allocation174_spill] sm:$0xff] }
 0x8fd   : > { %v18952_v17 = vpop.f32.mrf.mxu1 }
 0x8fe   : > { %v18981_v45 = vpop.f32.mrf.mxu0  ;;  %12640 = vmatpush3.bf16.msra.mxu1 %v13658_v3 }
 0x8ff   : > { %v9767_v59 = vpop.f32.mrf.mxu1  ;;  %12641 = vmatprep.subr.bf16.mxu1 %v13659_v61 }
 0x900   : > { %v18963_v41 = vadd.f32 %v9767_v59, %v18637_v55  ;;  %v18989_v32 = vpop.f32.mrf.mxu0 }
 0x901   : > { %v9769_v40 = vpop.f32.mrf.mxu1 }
 0x902   : > { %v18968_v19 = vadd.f32 %v9769_v40, %v18642_v48  ;;  %v13660_v48 = vld [vmem:[%s19326_s7 + $0x20] sm:$0xff]   ;;  %v18999_v16 = vpop.f32.mrf.mxu0 }
 0x903   : > { %v9771_v42 = vpop.f32.mrf.mxu1  ;;  %12642 = vmatpush3.bf16.msra.mxu1 %v13660_v48  ;;  %v20477_v48 = vld [vmem:[#allocation176_spill] sm:$0xff] }
 0x904   : > { %v18977_v55 = vadd.f32 %v9771_v42, %v18651_v24  ;;  %v10077_v38 = vpop.f32.mrf.mxu0 }
 0x905   : > { %v18979_v53 = vpop.f32.mrf.mxu1 }
 0x907   : > { %v9777_v26 = vpop.f32.mrf.mxu1 }
 0x908   : > { %v18987_v58 = vadd.f32 %v9777_v26, %v18658_v8 }
 0x909   : > { %v9779_v47 = vpop.f32.mrf.mxu1 }
 0x90a   : > { %v18992_v24 = vadd.f32 %v9779_v47, %v18663_v49 }
 0x90b   : > { %v9781_v15 = vpop.f32.mrf.mxu1 }
 0x90c   : > { %v18995_v12 = vadd.f32 %v9781_v15, %v18672_v33  ;;  %v10079_v33 = vpop.f32.mrf.mxu0 }
 0x90d   : > { %v18997_v22 = vpop.f32.mrf.mxu1 }
 0x90e   : > { %v19015_v57 = vpop.f32.mrf.mxu0 }
 0x90f   : > { %v9787_v14 = vpop.f32.mrf.mxu1 }
 0x910   : > { %v19002_v52 = vadd.f32 %v9787_v14, %v18679_v39  ;;  %v20478_v14 = vld [vmem:[#allocation6_spill] sm:$0xff] }
 0x911   : > { %v9789_v8 = vpop.f32.mrf.mxu1 }
 0x912   : > { %v19005_v34 = vadd.f32 %v9789_v8, %v18684_v37 }
 0x913   : > { %v9791_v49 = vpop.f32.mrf.mxu1 }
 0x914   : > { %v19008_v0 = vadd.f32 %v9791_v49, %v18693_v9  ;;  %v19025_v9 = vpop.f32.mrf.mxu0 }
 0x915   : > { %v19010_v29 = vpop.f32.mrf.mxu1 }
 0x916   : > { %v10087_v46 = vpop.f32.mrf.mxu0 }
 0x917   : > { %v9797_v62 = vpop.f32.mrf.mxu1 }
 0x918   : > { %v19013_v28 = vadd.f32 %v9797_v62, %v18700_v60  ;;  %v20480_v62 = vld [vmem:[#allocation92_spill] sm:$0xff] }
 0x919   : > { %v9799_v51 = vpop.f32.mrf.mxu1 }
 0x91a   : > { %v19018_v39 = vadd.f32 %v9799_v51, %v18705_v20  ;;  %v20473_v20 = vld [vmem:[#allocation257_spill] sm:$0xff] }
 0x91b   : > { %v9801_v1 = vpop.f32.mrf.mxu1 }
 0x91c   : > { %v19021_v37 = vadd.f32 %v9801_v1, %v18714_v21  ;;  %v10089_v21 = vpop.f32.mrf.mxu0 }
 0x91d   : > { %v19023_v50 = vpop.f32.mrf.mxu1 }
 0x91e   : > { %v19041_v13 = vpop.f32.mrf.mxu0 }
 0x91f   : > { %v9807_v36 = vpop.f32.mrf.mxu1 }
 0x920   : > { %v19028_v2 = vadd.f32 %v9807_v36, %v18721_v43  ;;  %v20475_v43 = vld [vmem:[#allocation4_spill] sm:$0xff]  ;;  %v10095_v42 = vpop.f32.mrf.mxu0 }
 0x921   : > { %v9809_v60 = vpop.f32.mrf.mxu1 }
 0x922   : > { %v19031_v6 = vadd.f32 %v9809_v60, %v20472_v11  ;;  %v10097_v15 = vpop.f32.mrf.mxu0 }
 0x923   : > { %v9811_v31 = vpop.f32.mrf.mxu1 }
 0x924   : > { %v19034_v7 = vadd.f32 %v9811_v31, %v20473_v20  ;;  %v10099_v36 = vpop.f32.mrf.mxu0 }
 0x925   : > { %v19036_v54 = vpop.f32.mrf.mxu1 }
 0x926   : > { %v19062_v31 = vpop.f32.mrf.mxu0 }
 0x927   : > { %v9817_v25 = vpop.f32.mrf.mxu1 }
 0x928   : > { %v19039_v27 = vadd.f32 %v9817_v25, %v20474_v30 }
 0x929   : > { %v9819_v44 = vpop.f32.mrf.mxu1 }
 0x92a   : > { %v19044_v35 = vadd.f32 %v9819_v44, %v20475_v43  ;;  %v10105_v44 = vpop.f32.mrf.mxu0 }
 0x92b   : > { %v9821_v59 = vpop.f32.mrf.mxu1 }
 0x92c   : > { %v19047_v40 = vadd.f32 %v9821_v59, %v20476_v63 }
 0x92d   : > { %v19049_v3 = vpop.f32.mrf.mxu1 }
 0x92f   : > { %v9827_v61 = vpop.f32.mrf.mxu1 }
 0x930   : > { %v19052_v26 = vadd.f32 %v9827_v61, %v20477_v48 }
 0x931   : > { %v9829_v47 = vpop.f32.mrf.mxu1 }
 0x932   : > { %v19055_v8 = vadd.f32 %v9829_v47, %v20478_v14 }
 0x933   : > { %v9831_v49 = vpop.f32.mrf.mxu1 }
 0x934   : > { %20479 = vst [vmem:[#allocation178_spill] sm:$0xff] %v19055_v8  ;;  %v19058_v51 = vadd.f32 %v9831_v49, %v20480_v62  ;;  %v10107_v49 = vpop.f32.mrf.mxu0 }
 0x935   : > { %v19060_v1 = vpop.f32.mrf.mxu1 }
 0x936   : > { %20481 = vst [vmem:[#allocation8_spill] sm:$0xff] %v19058_v51  ;;  %20482 = vst [vmem:[#allocation94_spill] sm:$0xff] %v19060_v1 }
 0x937   : > { %v10176_v60 = vpop.f32.mrf.mxu1 }
 0x938   : > { %v10177_v63 = vadd.f32 %v10176_v60, %v18935_v10 }
 0x939   : > { %v10178_v11 = vpop.f32.mrf.mxu1 }
 0x93a   : > { %v10179_v43 = vadd.f32 %v10178_v11, %v18954_v5 }
 0x93b   : > { %v10180_v20 = vpop.f32.mrf.mxu1 }
 0x93c   : > { %v10181_v25 = vadd.f32 %v10180_v20, %v18965_v4  ;;  %v10109_v4 = vpop.f32.mrf.mxu0 }
 0x93d   : > { %v10182_v30 = vpop.f32.mrf.mxu1 }
 0x93e   : > { %v10183_v59 = vadd.f32 %v10182_v30, %v18981_v45  ;;  %v10255_v47 = vpack.c.bf16 %v10181_v25, %v10177_v63  ;;  %v10113_v30 = vpop.f32.mrf.mxu0 }
 0x93f   : > { %v10186_v61 = vpop.f32.mrf.mxu1 }
 0x940   : > { %v10256_v48 = vpack.c.bf16 %v10183_v59, %v10179_v43  ;;  %v10187_v5 = vadd.f32 %v10186_v61, %v18989_v32  ;;  %v10115_v63 = vpop.f32.mrf.mxu0 }
 0x941   : > { %v10188_v14 = vpop.f32.mrf.mxu1 }
 0x942   : > { %12465 = vmatprep.mubr.msk.bf16.mxu0 %vm8039_vm2, %v10256_v48  ;;  %v10189_v20 = vadd.f32 %v10188_v14, %v18999_v16 }
 0x943   : > { %v10190_v62 = vpop.f32.mrf.mxu1  ;;  %10473 = vmatmul.mubr.bf16.vlgmr.msra.gmra.mxu0 %v10255_v47 }
 0x944   : > { %v10191_v51 = vadd.f32 %v10190_v62, %v10077_v38 }
 0x945   : > { %v10192_v1 = vpop.f32.mrf.mxu1 }
 0x946   : > { %v10193_v8 = vadd.f32 %v10192_v1, %v10079_v33  ;;  %v10257_v10 = vpack.c.bf16 %v10191_v51, %v10187_v5 }
 0x947   : > { %v10196_v45 = vpop.f32.mrf.mxu1 }
 0x948   : > { %v10258_v11 = vpack.c.bf16 %v10193_v8, %v10189_v20  ;;  %v10197_v16 = vadd.f32 %v10196_v45, %v19015_v57  ;;  %v10117_v8 = vpop.f32.mrf.mxu0 }
 0x949   : > { %v10198_v60 = vpop.f32.mrf.mxu1 }
 0x94a   : > { %12466 = vmatprep.mubr.msk.bf16.mxu0 %vm8039_vm2, %v10258_v11  ;;  %v10199_v38 = vadd.f32 %v10198_v60, %v19025_v9  ;;  %v10119_v62 = vpop.f32.mrf.mxu0 }
 0x94b   : > { %v10200_v25 = vpop.f32.mrf.mxu1  ;;  %10483 = vmatmul.mubr.bf16.gmra.mxu0 %v10257_v10 }
 0x94c   : > { %v10201_v43 = vadd.f32 %v10200_v25, %v10087_v46  ;;  %v10123_v45 = vpop.f32.mrf.mxu0 }
 0x94d   : > { %v10202_v59 = vpop.f32.mrf.mxu1 }
 0x94e   : > { %v10203_v48 = vadd.f32 %v10202_v59, %v10089_v21  ;;  %v10259_v32 = vpack.c.bf16 %v10201_v43, %v10197_v16  ;;  %v10125_v43 = vpop.f32.mrf.mxu0 }
 0x94f   : > { %v10206_v33 = vpop.f32.mrf.mxu1 }
 0x950   : > { %v10260_v1 = vpack.c.bf16 %v10203_v48, %v10199_v38  ;;  %v10207_v5 = vadd.f32 %v10206_v33, %v19041_v13  ;;  %v10127_v16 = vpop.f32.mrf.mxu0 }
 0x951   : > { %v10208_v61 = vpop.f32.mrf.mxu1 }
 0x952   : > { %12467 = vmatprep.mubr.msk.bf16.mxu0 %vm8039_vm2, %v10260_v1  ;;  %v10209_v46 = vadd.f32 %v10208_v61, %v10095_v42  ;;  %v10129_v61 = vpop.f32.mrf.mxu0 }
 0x953   : > { %v10210_v51 = vpop.f32.mrf.mxu1  ;;  %10493 = vmatmul.mubr.bf16.gmra.mxu0 %v10259_v32 }
 0x954   : > { %v10211_v47 = vadd.f32 %v10210_v51, %v10097_v15 }
 0x955   : > { %v10212_v14 = vpop.f32.mrf.mxu1 }
 0x956   : > { %v10213_v20 = vadd.f32 %v10212_v14, %v10099_v36  ;;  %v10261_v11 = vpack.c.bf16 %v10211_v47, %v10207_v5 }
 0x957   : > { %v10216_v9 = vpop.f32.mrf.mxu1 }
 0x958   : > { %v10262_v21 = vpack.c.bf16 %v10213_v20, %v10209_v46  ;;  %v10217_v38 = vadd.f32 %v10216_v9, %v19062_v31  ;;  %v10133_v31 = vpop.f32.mrf.mxu0 }
 0x959   : > { %v10218_v57 = vpop.f32.mrf.mxu1 }
 0x95a   : > { %12468 = vmatprep.mubr.msk.bf16.mxu0 %vm8039_vm2, %v10262_v21  ;;  %v10219_v59 = vadd.f32 %v10218_v57, %v10105_v44  ;;  %v10135_v21 = vpop.f32.mrf.mxu0 }
 0x95b   : > { %v10220_v10 = vpop.f32.mrf.mxu1  ;;  %10503 = vmatmul.mubr.bf16.gmra.mxu0 %v10261_v11 }
 0x95c   : > { %v10221_v60 = vadd.f32 %v10220_v10, %v10107_v49 }
 0x95d   : > { %v10222_v25 = vpop.f32.mrf.mxu1 }
 0x95e   : > { %v10223_v15 = vadd.f32 %v10222_v25, %v10109_v4  ;;  %v10263_v48 = vpack.c.bf16 %v10221_v60, %v10217_v38 }
 0x95f   : > { %v10226_v42 = vpop.f32.mrf.mxu1 }
 0x960   : > { %v10264_v36 = vpack.c.bf16 %v10223_v15, %v10219_v59  ;;  %v10227_v47 = vadd.f32 %v10226_v42, %v10113_v30  ;;  %v10137_v30 = vpop.f32.mrf.mxu0 }
 0x961   : > { %v10228_v13 = vpop.f32.mrf.mxu1 }
 0x962   : > { %12469 = vmatprep.mubr.msk.bf16.mxu0 %vm8039_vm2, %v10264_v36  ;;  %v10229_v51 = vadd.f32 %v10228_v13, %v10115_v63  ;;  %v10139_v15 = vpop.f32.mrf.mxu0 }
 0x963   : > { %v10230_v33 = vpop.f32.mrf.mxu1  ;;  %10513 = vmatmul.mubr.bf16.gmra.mxu0 %v10263_v48 }
 0x964   : > { %v10231_v1 = vadd.f32 %v10230_v33, %v10117_v8  ;;  %v13663_v33 = vld [vmem:[%s19326_s7 + $0x50] sm:$0xff]  }
 0x965   : > { %v10232_v32 = vpop.f32.mrf.mxu1 }
 0x966   : > { %v10233_v49 = vadd.f32 %v10232_v32, %v10119_v62  ;;  %v10265_v4 = vpack.c.bf16 %v10231_v1, %v10227_v47  ;;  %v13664_v1 = vld [vmem:[%s19326_s7 + $0x10] sm:$0xff]   ;;  %v13665_v32 = vld [vmem:[%s19326_s7 + $0x48] sm:$0xff]   ;;  %v13669_v47 = vld [vmem:[%s19327_s8 + $0x38] sm:$0xff]  }
 0x967   : > { %v10236_v14 = vpop.f32.mrf.mxu1  ;;  %12987 = vmatprep.subr.bf16.mxu0 %v13669_v47 }
 0x968   : > { %v10266_v44 = vpack.c.bf16 %v10233_v49, %v10229_v51  ;;  %v10237_v8 = vadd.f32 %v10236_v14, %v10123_v45  ;;  %v13661_v45 = vld [vmem:[%s19326_s7 + $0x58] sm:$0xff]   ;;  %v13667_v51 = vld [vmem:[%s19326_s7 + $0x40] sm:$0xff]   ;;  %v13670_v14 = vld [vmem:[%s19327_s8 + $0x30] sm:$0xff]   ;;  %12988 = vmatpush3.bf16.msra.mxu0 %v13669_v47 }
 0x969   : > { %v10238_v46 = vpop.f32.mrf.mxu1  ;;  %12643 = vmatprep.subr.bf16.mxu1 %v13661_v45  ;;  %v13668_v49 = vld [vmem:[%s19326_s7] sm:$0xff]   ;;  %12989 = vmatprep.subr.bf16.mxu0 %v13670_v14 }
 0x96a   : > { %12470 = vmatprep.mubr.msk.bf16.mxu0 %vm8039_vm2, %v10266_v44  ;;  %v10239_v11 = vadd.f32 %v10238_v46, %v10125_v43  ;;  %v13662_v43 = vld [vmem:[%s19326_s7 + $0x18] sm:$0xff]   ;;  %v13671_v44 = vld [vmem:[%s19327_s8 + $0x28] sm:$0xff]   ;;  %v10585_v46 = vld [vmem:[%s19325_s6] sm:$0x3] }
 0x96b   : > { %v10240_v20 = vpop.f32.mrf.mxu1  ;;  %10523 = vmatmul.mubr.bf16.gmra.mxu0 %v10265_v4  ;;  %12644 = vmatpush3.bf16.msra.mxu1 %v13662_v43  ;;  %v13672_v4 = vld [vmem:[%s19327_s8 + $0x20] sm:$0xff]  }
 0x96c   : > { %v10241_v5 = vadd.f32 %v10240_v20, %v10127_v16  ;;  %12645 = vmatprep.subr.bf16.mxu1 %v13663_v33  ;;  %12990 = vmatpush3.bf16.msra.mxu0 %v13670_v14  ;;  %v20483_v20 = vld [vmem:[#allocation227_spill] sm:$0xff] }
 0x96d   : > { %v10242_v9 = vpop.f32.mrf.mxu1  ;;  %12991 = vmatprep.subr.bf16.mxu0 %v13671_v44  ;;  %v20490_v45 = vld [vmem:[#allocation135_spill] sm:$0xff] }
 0x96e   : > { %v10243_v57 = vadd.f32 %v10242_v9, %v10129_v61  ;;  %v10267_v63 = vpack.c.bf16 %v10241_v5, %v10237_v8  ;;  %v13666_v61 = vld [vmem:[%s19326_s7 + $0x8] sm:$0xff]   ;;  %v20484_v5 = vld [vmem:[#allocation219_spill] sm:$0xff] }
 0x96f   : > { %v10246_v10 = vpop.f32.mrf.mxu1  ;;  %12646 = vmatpush3.bf16.msra.mxu1 %v13664_v1  ;;  %v8362_v9 = vadd.f32 %v20484_v5, %v20483_v20 }
 0x970   : > { %v10268_v60 = vpack.c.bf16 %v10243_v57, %v10239_v11  ;;  %v10247_v48 = vadd.f32 %v10246_v10, %v10133_v31  ;;  %12647 = vmatprep.subr.bf16.mxu1 %v13665_v32  ;;  %12992 = vmatpush3.bf16.msra.mxu0 %v13671_v44  ;;  %v20485_v11 = vld [vmem:[#allocation83_spill] sm:$0xff] }
 0x971   : > { %v10248_v62 = vpop.f32.mrf.mxu1  ;;  %12993 = vmatprep.subr.bf16.mxu0 %v13672_v4  ;;  %v20486_v57 = vsub.s32 0, %v20485_v11 }
 0x972   : > { %12471 = vmatprep.mubr.msk.bf16.mxu0 %vm8039_vm2, %v10268_v60  ;;  %v10249_v42 = vadd.f32 %v10248_v62, %v10135_v21  ;;  %v20487_v60 = vld [vmem:[#allocation251_spill] sm:$0xff] }
 0x973   : > { %v10250_v25 = vpop.f32.mrf.mxu1  ;;  %10533 = vmatmul.mubr.bf16.gmra.mxu0 %v10267_v63  ;;  %12648 = vmatpush3.bf16.msra.mxu1 %v13666_v61  ;;  %v19126_v8 = vrot.slane %v10585_v46, %v20486_v57  ;;  %v9122_v63 = vadd.f32 %v20487_v60, %v8362_v9  ;;  %v20491_v61 = vld [vmem:[#allocation252_spill] sm:$0xff]  ;;  %v20492_v57 = vld [vmem:[#allocation147_spill] sm:$0xff] }
 0x974   : > { %v10251_v59 = vadd.f32 %v10250_v25, %v10137_v30  ;;  %12649 = vmatprep.subr.bf16.mxu1 %v13667_v51  ;;  %12994 = vmatpush3.bf16.msra.mxu0 %v13672_v4  ;;  %v20488_v30 = vsub.s32 1, %v20485_v11 }
 0x975   : > { %v10252_v38 = vpop.f32.mrf.mxu1 }
 0x976   : > { %v10253_v36 = vadd.f32 %v10252_v38, %v10139_v15  ;;  %v10269_v16 = vpack.c.bf16 %v10251_v59, %v10247_v48  ;;  %v19132_v25 = vrot.slane %v10585_v46, %v20488_v30  ;;  %v9839_v15 = vadd.f32 %v18952_v17, %v9122_v63 }
 0x977   : > { %12650 = vmatpush3.bf16.msra.mxu1 %v13668_v49 }
 0x978   : > { %v10270_v13 = vpack.c.bf16 %v10253_v36, %v10249_v42 }
 0x97a   : > { %12472 = vmatprep.mubr.msk.bf16.mxu0 %vm8039_vm2, %v10270_v13 }
 0x97b   : > { %10543 = vmatmul.mubr.bf16.gmra.mxu0 %v10269_v16  ;;  %v20489_v16 = vld [vmem:[#allocation229_spill] sm:$0xff] }
 0xa03   : > { %v10474_v31 = vpop.f32.mrf.mxu0 }
 0xa04   : > { %v10553_v21 = vadd.f32 %v10474_v31, %v18933_v23 }
 0xa05   : > { %v10476_v10 = vpop.f32.mrf.mxu0 }
 0xa06   : > { %v10554_v62 = vadd.f32 %v10476_v10, %v18938_v18  ;;  %v10597_v38 = vadd.f32 %v19126_v8, %v10553_v21  ;;  %v8372_v18 = vadd.f32 %v20490_v45, %v20489_v16  ;;  %v20493_v10 = vld [vmem:[#allocation221_spill] sm:$0xff] }
 0xa07   : > { %v10478_v59 = vpop.f32.mrf.mxu0  ;;  %v8382_v60 = vadd.f32 %v20493_v10, %v20492_v57 }
 0xa08   : > { %v10555_v23 = vadd.f32 %v10478_v59, %v18950_v56  ;;  %v10598_v36 = vadd.f32 %v19132_v25, %v10554_v62  ;;  %v10629_v33 = vmax.f32 %v10597_v38, 0.0  ;;  %v9126_v51 = vadd.f32 %v20491_v61, %v8372_v18 }
 0xa09   : > { %v10480_v42 = vpop.f32.mrf.mxu0 }
 0xa0a   : > { %v10599_v48 = vadd.f32 %v19126_v8, %v10555_v23  ;;  %v10556_v13 = vadd.f32 %v10480_v42, %v9839_v15  ;;  %v10630_v56 = vmax.f32 %v10598_v36, 0.0  ;;  %v9843_v46 = vadd.f32 %v18979_v53, %v9126_v51 }
 0xa0b   : > { %v10484_v43 = vpop.f32.mrf.mxu0 }
 0xa0c   : > { %v10631_v1 = vmax.f32 %v10599_v48, 0.0  ;;  %v10600_v32 = vadd.f32 %v19132_v25, %v10556_v13  ;;  %v10557_v17 = vadd.f32 %v10484_v43, %v18963_v41 }
 0xa0d   : > { %v10486_v49 = vpop.f32.mrf.mxu0 }
 0xa0e   : > { %v10661_v47 = vpack.c.bf16 %v10631_v1, %v10629_v33  ;;  %v10632_v14 = vmax.f32 %v10600_v32, 0.0  ;;  %v10558_v44 = vadd.f32 %v10486_v49, %v18968_v19  ;;  %v10601_v31 = vadd.f32 %v19126_v8, %v10557_v17  ;;  %v20495_v32 = vld [vmem:[#allocation190_spill] sm:$0xff]  ;;  %v20496_v17 = vld [vmem:[#allocation137_spill] sm:$0xff] }
 0xa0f   : > { %v10488_v4 = vpop.f32.mrf.mxu0  ;;  %v8392_v61 = vadd.f32 %v20496_v17, %v20495_v32 }
 0xa10   : > { %v10559_v20 = vadd.f32 %v10488_v4, %v18977_v55  ;;  %v10662_v5 = vpack.c.bf16 %v10632_v14, %v10630_v56  ;;  %v10602_v21 = vadd.f32 %v19132_v25, %v10558_v44  ;;  %v10633_v19 = vmax.f32 %v10601_v31, 0.0  ;;  %v20494_v55 = vld [vmem:[#allocation253_spill] sm:$0xff] }
 0xa11   : > { %v10490_v9 = vpop.f32.mrf.mxu0  ;;  %v9130_v59 = vadd.f32 %v20494_v55, %v8382_v60  ;;  %v20498_v60 = vld [vmem:[#allocation153_spill] sm:$0xff] }
 0xa12   : > { %v10603_v41 = vadd.f32 %v19126_v8, %v10559_v20  ;;  %v10560_v11 = vadd.f32 %v10490_v9, %v9843_v46  ;;  %10837 = vmatprep.mubr.bf16.mxu1 %v10662_v5  ;;  %v10634_v38 = vmax.f32 %v10602_v21, 0.0 }
 0xa13   : > { %v10494_v63 = vpop.f32.mrf.mxu0  ;;  %10838 = vmatmul.mubr.bf16.vlgmr.msra.gmra.mxu1 %v10661_v47  ;;  %v9847_v13 = vadd.f32 %v18997_v22, %v9130_v59 }
 0xa14   : > { %v10635_v62 = vmax.f32 %v10603_v41, 0.0  ;;  %v10604_v53 = vadd.f32 %v19132_v25, %v10560_v11  ;;  %v10561_v30 = vadd.f32 %v10494_v63, %v18987_v58  ;;  %v20499_v63 = vld [vmem:[#allocation223_spill] sm:$0xff] }
 0xa15   : > { %v10496_v15 = vpop.f32.mrf.mxu0 }
 0xa16   : > { %v10663_v23 = vpack.c.bf16 %v10635_v62, %v10633_v19  ;;  %v10636_v42 = vmax.f32 %v10604_v53, 0.0  ;;  %v10562_v36 = vadd.f32 %v10496_v15, %v18992_v24  ;;  %v10605_v16 = vadd.f32 %v19126_v8, %v10561_v30 }
 0xa17   : > { %v10498_v48 = vpop.f32.mrf.mxu0  ;;  %v8402_v19 = vadd.f32 %v20499_v63, %v20498_v60 }
 0xa18   : > { %v10563_v45 = vadd.f32 %v10498_v48, %v18995_v12  ;;  %v10664_v18 = vpack.c.bf16 %v10636_v42, %v10634_v38  ;;  %v10606_v33 = vadd.f32 %v19132_v25, %v10562_v36  ;;  %v10637_v24 = vmax.f32 %v10605_v16, 0.0  ;;  %v20497_v12 = vld [vmem:[#allocation254_spill] sm:$0xff] }
 0xa19   : > { %v10500_v43 = vpop.f32.mrf.mxu0  ;;  %v9134_v47 = vadd.f32 %v20497_v12, %v8392_v61 }
 0xa1a   : > { %v10607_v58 = vadd.f32 %v19126_v8, %v10563_v45  ;;  %v10564_v1 = vadd.f32 %v10500_v43, %v9847_v13  ;;  %10845 = vmatprep.mubr.bf16.mxu1 %v10664_v18  ;;  %v10638_v44 = vmax.f32 %v10606_v33, 0.0 }
 0xa1b   : > { %v10504_v51 = vpop.f32.mrf.mxu0  ;;  %10846 = vmatmul.mubr.bf16.gmra.mxu1 %v10663_v23  ;;  %v9851_v5 = vadd.f32 %v19010_v29, %v9134_v47 }
 0xa1c   : > { %v10639_v49 = vmax.f32 %v10607_v58, 0.0  ;;  %v10608_v22 = vadd.f32 %v19132_v25, %v10564_v1  ;;  %v10565_v56 = vadd.f32 %v10504_v51, %v19002_v52  ;;  %v20501_v58 = vld [vmem:[#allocation157_spill] sm:$0xff]  ;;  %v20502_v1 = vld [vmem:[#allocation139_spill] sm:$0xff] }
 0xa1d   : > { %v10506_v14 = vpop.f32.mrf.mxu0  ;;  %v8412_v32 = vadd.f32 %v20502_v1, %v20501_v58  ;;  %v20510_v1 = vld [vmem:[#allocation178_spill] sm:$0xff] }
 0xa1e   : > { %v10665_v4 = vpack.c.bf16 %v10639_v49, %v10637_v24  ;;  %v10640_v46 = vmax.f32 %v10608_v22, 0.0  ;;  %v10566_v31 = vadd.f32 %v10506_v14, %v19005_v34  ;;  %v10609_v9 = vadd.f32 %v19126_v8, %v10565_v56 }
 0xa1f   : > { %v10508_v20 = vpop.f32.mrf.mxu0 }
 0xa20   : > { %v10567_v21 = vadd.f32 %v10508_v20, %v19008_v0  ;;  %v10666_v41 = vpack.c.bf16 %v10640_v46, %v10638_v44  ;;  %v10610_v57 = vadd.f32 %v19132_v25, %v10566_v31  ;;  %v10641_v34 = vmax.f32 %v10609_v9, 0.0  ;;  %v20500_v0 = vld [vmem:[#allocation255_spill] sm:$0xff] }
 0xa21   : > { %v10510_v11 = vpop.f32.mrf.mxu0  ;;  %v9138_v55 = vadd.f32 %v20500_v0, %v8402_v19 }
 0xa22   : > { %v10611_v52 = vadd.f32 %v19126_v8, %v10567_v21  ;;  %v10568_v10 = vadd.f32 %v10510_v11, %v9851_v5  ;;  %10853 = vmatprep.mubr.bf16.mxu1 %v10666_v41  ;;  %v10642_v15 = vmax.f32 %v10610_v57, 0.0  ;;  %v20504_v21 = vld [vmem:[#allocation246_spill] sm:$0xff]  ;;  %v20505_v41 = vld [vmem:[#allocation225_spill] sm:$0xff] }
 0xa23   : > { %v10514_v62 = vpop.f32.mrf.mxu0  ;;  %10854 = vmatmul.mubr.bf16.gmra.mxu1 %v10665_v4  ;;  %v9855_v48 = vadd.f32 %v19023_v50, %v9138_v55  ;;  %v8422_v11 = vadd.f32 %v20505_v41, %v20504_v21 }
 0xa24   : > { %v10643_v53 = vmax.f32 %v10611_v52, 0.0  ;;  %v10612_v29 = vadd.f32 %v19132_v25, %v10568_v10  ;;  %v10569_v30 = vadd.f32 %v10514_v62, %v19013_v28 }
 0xa25   : > { %v10516_v59 = vpop.f32.mrf.mxu0 }
 0xa26   : > { %v10667_v38 = vpack.c.bf16 %v10643_v53, %v10641_v34  ;;  %v10644_v23 = vmax.f32 %v10612_v29, 0.0  ;;  %v10570_v42 = vadd.f32 %v10516_v59, %v19018_v39  ;;  %v10613_v13 = vadd.f32 %v19126_v8, %v10569_v30 }
 0xa27   : > { %v10518_v36 = vpop.f32.mrf.mxu0 }
 0xa28   : > { %v10571_v16 = vadd.f32 %v10518_v36, %v19021_v37  ;;  %v10668_v45 = vpack.c.bf16 %v10644_v23, %v10642_v15  ;;  %v10614_v43 = vadd.f32 %v19132_v25, %v10570_v42  ;;  %v10645_v39 = vmax.f32 %v10613_v13, 0.0  ;;  %v20503_v37 = vld [vmem:[#allocation3_spill] sm:$0xff]  ;;  %v20507_v42 = vld [vmem:[#allocation250_spill] sm:$0xff]  ;;  %v20508_v36 = vld [vmem:[#allocation141_spill] sm:$0xff] }
 0xa29   : > { %v10520_v18 = vpop.f32.mrf.mxu0  ;;  %v9142_v24 = vadd.f32 %v20503_v37, %v8412_v32 }
 0xa2a   : > { %v10615_v28 = vadd.f32 %v19126_v8, %v10571_v16  ;;  %v10572_v33 = vadd.f32 %v10520_v18, %v9855_v48  ;;  %10861 = vmatprep.mubr.bf16.mxu1 %v10668_v45  ;;  %v10646_v22 = vmax.f32 %v10614_v43, 0.0  ;;  %v8432_v48 = vadd.f32 %v20508_v36, %v20507_v42 }
 0xa2b   : > { %v10524_v17 = vpop.f32.mrf.mxu0  ;;  %10862 = vmatmul.mubr.bf16.gmra.mxu1 %v10667_v38  ;;  %v9859_v44 = vadd.f32 %v19036_v54, %v9142_v24 }
 0xa2c   : > { %v10647_v61 = vmax.f32 %v10615_v28, 0.0  ;;  %v10616_v50 = vadd.f32 %v19132_v25, %v10572_v33  ;;  %v10573_v51 = vadd.f32 %v10524_v17, %v19028_v2 }
 0xa2d   : > { %v10526_v49 = vpop.f32.mrf.mxu0 }
 0xa2e   : > { %v10669_v56 = vpack.c.bf16 %v10647_v61, %v10645_v39  ;;  %v10648_v12 = vmax.f32 %v10616_v50, 0.0  ;;  %v10574_v47 = vadd.f32 %v10526_v49, %v19031_v6  ;;  %v10617_v4 = vadd.f32 %v19126_v8, %v10573_v51  ;;  %v20511_v39 = vld [vmem:[#allocation94_spill] sm:$0xff]  ;;  %v20512_v51 = vld [vmem:[#allocation8_spill] sm:$0xff] }
 0xa2f   : > { %v10528_v14 = vpop.f32.mrf.mxu0 }
 0xa30   : > { %v10575_v46 = vadd.f32 %v10528_v14, %v19034_v7  ;;  %v10670_v31 = vpack.c.bf16 %v10648_v12, %v10646_v22  ;;  %v10618_v5 = vadd.f32 %v19132_v25, %v10574_v47  ;;  %v10649_v6 = vmax.f32 %v10617_v4, 0.0  ;;  %v20506_v7 = vld [vmem:[#allocation5_spill] sm:$0xff] }
 0xa31   : > { %v10530_v20 = vpop.f32.mrf.mxu0  ;;  %v9146_v60 = vadd.f32 %v20506_v7, %v8422_v11 }
 0xa32   : > { %v10619_v2 = vadd.f32 %v19126_v8, %v10575_v46  ;;  %v10576_v9 = vadd.f32 %v10530_v20, %v9859_v44  ;;  %10869 = vmatprep.mubr.bf16.mxu1 %v10670_v31  ;;  %v10650_v19 = vmax.f32 %v10618_v5, 0.0  ;;  %v13673_v20 = vld [vmem:[%s19327_s8 + $0x18] sm:$0xff]   ;;  %v13676_v5 = vld [vmem:[%s19327_s8] sm:$0xff]  }
 0xa33   : > { %v10534_v57 = vpop.f32.mrf.mxu0  ;;  %10870 = vmatmul.mubr.bf16.gmra.mxu1 %v10669_v56  ;;  %v9863_v30 = vadd.f32 %v19049_v3, %v9146_v60  ;;  %12995 = vmatprep.subr.bf16.mxu0 %v13673_v20 }
 0xa34   : > { %v10651_v52 = vmax.f32 %v10619_v2, 0.0  ;;  %v10620_v54 = vadd.f32 %v19132_v25, %v10576_v9  ;;  %v10577_v10 = vadd.f32 %v10534_v57, %v19039_v27  ;;  %12996 = vmatpush3.bf16.msra.mxu0 %v13673_v20 }
 0xa35   : > { %v10536_v63 = vpop.f32.mrf.mxu0 }
 0xa36   : > { %v10671_v62 = vpack.c.bf16 %v10651_v52, %v10649_v6  ;;  %v10652_v34 = vmax.f32 %v10620_v54, 0.0  ;;  %v10578_v53 = vadd.f32 %v10536_v63, %v19044_v35  ;;  %v10621_v0 = vadd.f32 %v19126_v8, %v10577_v10 }
 0xa37   : > { %v10538_v29 = vpop.f32.mrf.mxu0 }
 0xa38   : > { %v10579_v55 = vadd.f32 %v10538_v29, %v19047_v40  ;;  %v10672_v59 = vpack.c.bf16 %v10652_v34, %v10650_v19  ;;  %v10622_v38 = vadd.f32 %v19132_v25, %v10578_v53  ;;  %v10653_v35 = vmax.f32 %v10621_v0, 0.0  ;;  %v20509_v40 = vld [vmem:[#allocation7_spill] sm:$0xff] }
 0xa39   : > { %v10540_v15 = vpop.f32.mrf.mxu0  ;;  %v9150_v18 = vadd.f32 %v20509_v40, %v8432_v48 }
 0xa3a   : > { %v10623_v27 = vadd.f32 %v19126_v8, %v10579_v55  ;;  %v10580_v23 = vadd.f32 %v10540_v15, %v9863_v30  ;;  %10877 = vmatprep.mubr.bf16.mxu1 %v10672_v59  ;;  %v10654_v28 = vmax.f32 %v10622_v38, 0.0 }
 0xa3b   : > { %v10544_v13 = vpop.f32.mrf.mxu0  ;;  %10878 = vmatmul.mubr.bf16.gmra.mxu1 %v10671_v62  ;;  %v9867_v61 = vadd.f32 %v20511_v39, %v9150_v18 }
 0xa3c   : > { %v10655_v16 = vmax.f32 %v10623_v27, 0.0  ;;  %v10624_v3 = vadd.f32 %v19132_v25, %v10580_v23  ;;  %v10581_v45 = vadd.f32 %v10544_v13, %v19052_v26 }
 0xa3d   : > { %v10546_v43 = vpop.f32.mrf.mxu0 }
 0xa3e   : > { %v10673_v33 = vpack.c.bf16 %v10655_v16, %v10653_v35  ;;  %v10656_v58 = vmax.f32 %v10624_v3, 0.0  ;;  %v10582_v32 = vadd.f32 %v10546_v43, %v20510_v1  ;;  %v10625_v50 = vadd.f32 %v19126_v8, %v10581_v45 }
 0xa3f   : > { %v10548_v17 = vpop.f32.mrf.mxu0 }
 0xa40   : > { %v10583_v37 = vadd.f32 %v10548_v17, %v20512_v51  ;;  %v10674_v24 = vpack.c.bf16 %v10656_v58, %v10654_v28  ;;  %v10626_v22 = vadd.f32 %v19132_v25, %v10582_v32  ;;  %v10657_v12 = vmax.f32 %v10625_v50, 0.0 }
 0xa41   : > { %v10550_v49 = vpop.f32.mrf.mxu0 }
 0xa42   : > { %v10627_v26 = vadd.f32 %v19126_v8, %v10583_v37  ;;  %v10584_v56 = vadd.f32 %v10550_v49, %v9867_v61  ;;  %10885 = vmatprep.mubr.bf16.mxu1 %v10674_v24  ;;  %v10658_v44 = vmax.f32 %v10626_v22, 0.0  ;;  %v13674_v8 = vld [vmem:[%s19327_s8 + $0x10] sm:$0xff]  }
 0xa43   : > { %10886 = vmatmul.mubr.bf16.gmra.mxu1 %v10673_v33  ;;  %12997 = vmatprep.subr.bf16.mxu0 %v13674_v8 }
 0xa44   : > { %v10659_v47 = vmax.f32 %v10627_v26, 0.0  ;;  %v10628_v14 = vadd.f32 %v19132_v25, %v10584_v56  ;;  %12998 = vmatpush3.bf16.msra.mxu0 %v13674_v8  ;;  %v13675_v25 = vld [vmem:[%s19327_s8 + $0x8] sm:$0xff]  }
 0xa45   : > { %12999 = vmatprep.subr.bf16.mxu0 %v13675_v25 }
 0xa46   : > { %v10675_v4 = vpack.c.bf16 %v10659_v47, %v10657_v12  ;;  %v10660_v46 = vmax.f32 %v10628_v14, 0.0 }
 0xa48   : > { %v10676_v31 = vpack.c.bf16 %v10660_v46, %v10658_v44  ;;  %13000 = vmatpush3.bf16.msra.mxu0 %v13675_v25  ;;  %v13705_v44 = vmov 0.0   ;;  %v13679_v46 = vld [vmem:[%s19330_s11] sm:$0xff]  }
 0xa49   : > { %13001 = vmatprep.subr.bf16.mxu0 %v13676_v5  ;;  %13039 = vmatprep.subr.bf16.mxu1 %v13705_v44 }
 0xa4a   : > { %10893 = vmatprep.mubr.bf16.mxu1 %v10676_v31 }
 0xa4b   : > { %10894 = vmatmul.mubr.bf16.gmra.mxu1 %v10675_v4  ;;  %v13678_v4 = vld [vmem:[%s19330_s11 + $0x8] sm:$0xff]  }
 0xa4c   : > { %13002 = vmatpush3.bf16.msra.mxu0 %v13676_v5  ;;  %13043 = vmatprep.mubr.msk.bf16.mxu1 %vm13706_vm3, %v13705_v44 }
 0xa4d   : > { %13019 = vmatprep.subr.bf16.mxu0 %v13705_v44  ;;  %13040 = vmatpush3.bf16.msra.mxu1 %v13678_v4 }
 0xa4e   : > { %13041 = vmatprep.subr.bf16.mxu1 %v13705_v44 }
 0xa51   : > { %13042 = vmatpush3.bf16.msra.mxu1 %v13679_v46 }
 0xad3   : > { %v12651_v2 = vpop.f32.mrf.mxu1 }
 0xad5   : > { %v12652_v9 = vpop.f32.mrf.mxu1 }
 0xad6   : > { %v12653_v11 = vadd.f32 %v12652_v9, %v12651_v2 }
 0xad7   : > { %v12654_v21 = vpop.f32.mrf.mxu1 }
 0xad9   : > { %v12655_v41 = vpop.f32.mrf.mxu1 }
 0xada   : > { %v12656_v57 = vadd.f32 %v12655_v41, %v12654_v21 }
 0xadb   : > { %v12657_v6 = vpop.f32.mrf.mxu1 }
 0xadc   : > { %v10902_v52 = vpack.c.bf16 %v12656_v57, %v12653_v11 }
 0xadd   : > { %v12658_v54 = vpop.f32.mrf.mxu1 }
 0xade   : > { %13003 = vmatprep.mubr.bf16.mxu0 %v10902_v52  ;;  %v12659_v60 = vadd.f32 %v12658_v54, %v12657_v6  ;;  %v11085_v54 = vld [vmem:[%s19328_s9 + $0x70] sm:$0xff] }
 0xadf   : > { %v12660_v10 = vpop.f32.mrf.mxu1 }
 0xae1   : > { %v12661_v7 = vpop.f32.mrf.mxu1 }
 0xae2   : > { %v12662_v63 = vadd.f32 %v12661_v7, %v12660_v10  ;;  %v11086_v7 = vld [vmem:[%s19328_s9 + $0x78] sm:$0xff] }
 0xae3   : > { %v12663_v19 = vpop.f32.mrf.mxu1 }
 0xae4   : > { %v10903_v62 = vpack.c.bf16 %v12662_v63, %v12659_v60  ;;  %v11084_v63 = vld [vmem:[%s19328_s9 + $0x68] sm:$0xff] }
 0xae5   : > { %v12664_v34 = vpop.f32.mrf.mxu1 }
 0xae6   : > { %13004 = vmatmul.mubr.bf16.vlgmr.msra.gmra.mxu0 %v10903_v62  ;;  %v12665_v30 = vadd.f32 %v12664_v34, %v12663_v19  ;;  %v11083_v34 = vld [vmem:[%s19328_s9 + $0x60] sm:$0xff] }
 0xae7   : > { %v12666_v53 = vpop.f32.mrf.mxu1 }
 0xae9   : > { %v12667_v29 = vpop.f32.mrf.mxu1 }
 0xaea   : > { %v12668_v0 = vadd.f32 %v12667_v29, %v12666_v53 }
 0xaeb   : > { %v12669_v55 = vpop.f32.mrf.mxu1 }
 0xaec   : > { %v10904_v59 = vpack.c.bf16 %v12668_v0, %v12665_v30  ;;  %v11082_v0 = vld [vmem:[%s19328_s9 + $0x58] sm:$0xff] }
 0xaed   : > { %v12670_v15 = vpop.f32.mrf.mxu1 }
 0xaee   : > { %13007 = vmatprep.mubr.bf16.mxu0 %v10904_v59  ;;  %v12671_v23 = vadd.f32 %v12670_v15, %v12669_v55  ;;  %v11081_v59 = vld [vmem:[%s19328_s9 + $0x50] sm:$0xff] }
 0xaef   : > { %v12672_v38 = vpop.f32.mrf.mxu1 }
 0xaf1   : > { %v12673_v27 = vpop.f32.mrf.mxu1 }
 0xaf2   : > { %v12674_v42 = vadd.f32 %v12673_v27, %v12672_v38  ;;  %v11080_v27 = vld [vmem:[%s19328_s9 + $0x48] sm:$0xff] }
 0xaf3   : > { %v12675_v36 = vpop.f32.mrf.mxu1 }
 0xaf4   : > { %v10905_v48 = vpack.c.bf16 %v12674_v42, %v12671_v23  ;;  %v11079_v42 = vld [vmem:[%s19328_s9 + $0x40] sm:$0xff] }
 0xaf5   : > { %v12676_v13 = vpop.f32.mrf.mxu1 }
 0xaf6   : > { %13008 = vmatmul.mubr.bf16.gmra.mxu0 %v10905_v48  ;;  %v12677_v3 = vadd.f32 %v12676_v13, %v12675_v36  ;;  %v11078_v13 = vld [vmem:[%s19328_s9 + $0x38] sm:$0xff] }
 0xaf7   : > { %v12678_v35 = vpop.f32.mrf.mxu1 }
 0xaf9   : > { %v12679_v16 = vpop.f32.mrf.mxu1 }
 0xafa   : > { %v12680_v45 = vadd.f32 %v12679_v16, %v12678_v35  ;;  %v11077_v16 = vld [vmem:[%s19328_s9 + $0x30] sm:$0xff] }
 0xafb   : > { %v12681_v40 = vpop.f32.mrf.mxu1 }
 0xafc   : > { %v10906_v18 = vpack.c.bf16 %v12680_v45, %v12677_v3 }
 0xafd   : > { %v12682_v43 = vpop.f32.mrf.mxu1 }
 0xafe   : > { %13011 = vmatprep.mubr.bf16.mxu0 %v10906_v18  ;;  %v12683_v58 = vadd.f32 %v12682_v43, %v12681_v40  ;;  %v11076_v40 = vld [vmem:[%s19328_s9 + $0x28] sm:$0xff]  ;;  %v11075_v43 = vld [vmem:[%s19328_s9 + $0x20] sm:$0xff] }
 0xaff   : > { %v12684_v28 = vpop.f32.mrf.mxu1 }
 0xb01   : > { %v12685_v33 = vpop.f32.mrf.mxu1 }
 0xb02   : > { %v12686_v1 = vadd.f32 %v12685_v33, %v12684_v28 }
 0xb03   : > { %v12687_v32 = vpop.f32.mrf.mxu1 }
 0xb04   : > { %v10907_v17 = vpack.c.bf16 %v12686_v1, %v12683_v58  ;;  %v11074_v58 = vld [vmem:[%s19328_s9 + $0x18] sm:$0xff] }
 0xb05   : > { %v12688_v39 = vpop.f32.mrf.mxu1 }
 0xb06   : > { %13012 = vmatmul.mubr.bf16.gmra.mxu0 %v10907_v17  ;;  %v12689_v51 = vadd.f32 %v12688_v39, %v12687_v32  ;;  %v11073_v32 = vld [vmem:[%s19328_s9 + $0x10] sm:$0xff] }
 0xb07   : > { %v12690_v61 = vpop.f32.mrf.mxu1 }
 0xb09   : > { %v12691_v50 = vpop.f32.mrf.mxu1 }
 0xb0a   : > { %v12692_v37 = vadd.f32 %v12691_v50, %v12690_v61  ;;  %v11072_v61 = vld [vmem:[%s19328_s9 + $0x8] sm:$0xff] }
 0xb0b   : > { %v12693_v24 = vpop.f32.mrf.mxu1 }
 0xb0c   : > { %v10908_v49 = vpack.c.bf16 %v12692_v37, %v12689_v51  ;;  %v11071_v51 = vld [vmem:[%s19328_s9] sm:$0xff] }
 0xb0d   : > { %v12694_v22 = vpop.f32.mrf.mxu1 }
 0xb0e   : > { %13015 = vmatprep.mubr.bf16.mxu0 %v10908_v49  ;;  %v12695_v12 = vadd.f32 %v12694_v22, %v12693_v24 }
 0xb0f   : > { %v12696_v26 = vpop.f32.mrf.mxu1 }
 0xb11   : > { %v12697_v56 = vpop.f32.mrf.mxu1 }
 0xb12   : > { %v12698_v47 = vadd.f32 %v12697_v56, %v12696_v26  ;;  %v13677_v26 = vld [vmem:[%s19329_s10] sm:$0xff]  }
 0xb14   : > { %v10909_v14 = vpack.c.bf16 %v12698_v47, %v12695_v12 }
 0xb16   : > { %13016 = vmatmul.mubr.bf16.gmra.mxu0 %v10909_v14 }
 0xb17   : > { %13035 = vmatprep.mubr.msk.bf16.mxu0 %vm13706_vm3, %v13705_v44 }
 0xba6   : > { %v13005_v31 = vpop.f32.mrf.mxu0 }
 0xba7   : > { %v11089_v50 = vmul.f32 %v13005_v31, %v11073_v32 }
 0xba8   : > { %v19240_v20 = vpop.f32.mrf.mxu0 }
 0xba9   : > { %v11087_v49 = vmul.f32 %v11071_v51, %v19240_v20 }
 0xbaa   : > { %v13006_v8 = vpop.f32.mrf.mxu0 }
 0xbab   : > { %v11090_v17 = vmul.f32 %v13006_v8, %v11074_v58 }
 0xbac   : > { %v11011_v25 = vpop.f32.mrf.mxu0 }
 0xbad   : > { %v11104_v37 = vpack.c.bf16 %v11090_v17, %v11089_v50  ;;  %v11088_v24 = vmul.f32 %v11072_v61, %v11011_v25 }
 0xbaf   : > { %v11103_v22 = vpack.c.bf16 %v11088_v24, %v11087_v49 }
 0xbb6   : > { %v13009_v5 = vpop.f32.mrf.mxu0 }
 0xbb7   : > { %v11093_v18 = vmul.f32 %v13009_v5, %v11077_v16 }
 0xbb8   : > { %v11024_v2 = vpop.f32.mrf.mxu0 }
 0xbb9   : > { %v11091_v1 = vmul.f32 %v11075_v43, %v11024_v2 }
 0xbba   : > { %v13010_v9 = vpop.f32.mrf.mxu0 }
 0xbbb   : > { %v11094_v3 = vmul.f32 %v13010_v9, %v11078_v13 }
 0xbbc   : > { %v11027_v21 = vpop.f32.mrf.mxu0 }
 0xbbd   : > { %v11106_v28 = vpack.c.bf16 %v11094_v3, %v11093_v18  ;;  %v11092_v33 = vmul.f32 %v11076_v40, %v11027_v21 }
 0xbbf   : > { %v11105_v39 = vpack.c.bf16 %v11092_v33, %v11091_v1 }
 0xbc6   : > { %v13013_v41 = vpop.f32.mrf.mxu0 }
 0xbc7   : > { %v11097_v23 = vmul.f32 %v13013_v41, %v11081_v59 }
 0xbc8   : > { %v11040_v11 = vpop.f32.mrf.mxu0 }
 0xbc9   : > { %v11095_v35 = vmul.f32 %v11079_v42, %v11040_v11 }
 0xbca   : > { %v13014_v57 = vpop.f32.mrf.mxu0 }
 0xbcb   : > { %v11098_v15 = vmul.f32 %v13014_v57, %v11082_v0 }
 0xbcc   : > { %v11043_v6 = vpop.f32.mrf.mxu0 }
 0xbcd   : > { %v11108_v36 = vpack.c.bf16 %v11098_v15, %v11097_v23  ;;  %v11096_v48 = vmul.f32 %v11080_v27, %v11043_v6 }
 0xbcf   : > { %v11107_v45 = vpack.c.bf16 %v11096_v48, %v11095_v35 }
 0xbd6   : > { %v13017_v52 = vpop.f32.mrf.mxu0 }
 0xbd7   : > { %v11101_v19 = vmul.f32 %v13017_v52, %v11085_v54 }
 0xbd8   : > { %v11056_v10 = vpop.f32.mrf.mxu0 }
 0xbd9   : > { %v11099_v55 = vmul.f32 %v11083_v34, %v11056_v10 }
 0xbda   : > { %v13018_v60 = vpop.f32.mrf.mxu0 }
 0xbdb   : > { %v11102_v62 = vmul.f32 %v13018_v60, %v11086_v7 }
 0xbdc   : > { %v11059_v53 = vpop.f32.mrf.mxu0 }
 0xbdd   : > { %v11110_v29 = vpack.c.bf16 %v11102_v62, %v11101_v19  ;;  %v11100_v30 = vmul.f32 %v11084_v63, %v11059_v53 }
 0xbdf   : > { %13020 = vmatpush3.bf16.msra.mxu0 %v11110_v29  ;;  %v11109_v38 = vpack.c.bf16 %v11100_v30, %v11099_v55 }
 0xbe0   : > { %13021 = vmatprep.subr.bf16.mxu0 %v13705_v44 }
 0xbe3   : > { %13022 = vmatpush3.bf16.msra.mxu0 %v11109_v38 }
 0xbe4   : > { %13023 = vmatprep.subr.bf16.mxu0 %v13705_v44 }
 0xbe7   : > { %13024 = vmatpush3.bf16.msra.mxu0 %v11108_v36 }
 0xbe8   : > { %13025 = vmatprep.subr.bf16.mxu0 %v13705_v44 }
 0xbeb   : > { %13026 = vmatpush3.bf16.msra.mxu0 %v11107_v45 }
 0xbec   : > { %13027 = vmatprep.subr.bf16.mxu0 %v13705_v44 }
 0xbef   : > { %13028 = vmatpush3.bf16.msra.mxu0 %v11106_v28 }
 0xbf0   : > { %13029 = vmatprep.subr.bf16.mxu0 %v13705_v44 }
 0xbf3   : > { %13030 = vmatpush3.bf16.msra.mxu0 %v11105_v39 }
 0xbf4   : > { %13031 = vmatprep.subr.bf16.mxu0 %v13705_v44 }
 0xbf7   : > { %13032 = vmatpush3.bf16.msra.mxu0 %v11104_v37 }
 0xbf8   : > { %13033 = vmatprep.subr.bf16.mxu0 %v13705_v44  ;;  %v12498_v44 = vld [vmem:[%s19331_s12] ss:$0 sm:$0xff] }
 0xbfb   : > { %13034 = vmatpush3.bf16.msra.mxu0 %v11103_v22 }
 0xbfe   : > { %13036 = vmatmul.mubr.bf16.vlgmr.msra.gmra.mxu0 %v13677_v26 }
 0xcbe   : > { %v11153_v56 = vpop.f32.mrf.mxu0 }
 0xcc0   : > { %v13037_v12 = vpop.f32.mrf.mxu0 }
 0xcc2   : > { %v11156_v47 = vpop.f32.mrf.mxu0 }
 0xcc3   : > { %v11160_v14 = vpack.c.bf16 %v11156_v47, %v11153_v56 }
 0xcc4   : > { %v13038_v4 = vpop.f32.mrf.mxu0 }
 0xcc5   : > { %13044 = vmatmul.mubr.msk.bf16.vlgmr.msra.gmra.mxu1 %vm11184_vm4, %v11160_v14 }
 0xd85   : > { %v11222_v46 = vpop.f32.mrf.mxu1 }
 0xd86   : > { %v11223_v31 = vadd.f32 %v12498_v44, %v11222_v46 }
 0xd87   : > { %v13045_v20 = vpop.f32.mrf.mxu1 }
 0xd88   : > { %11230 = vst.msk [vmem:[%s1441_s19] sm:$0xff] %vm11229_vm5, %v11223_v31 }
 0xd89   : > { %v11225_v8 = vpop.f32.mrf.mxu1 }
 0xd8a   : > { %v11226_v25 = vadd.f32 %v12498_v44, %v11225_v8 }
 0xd8b   : > { %v13046_v5 = vpop.f32.mrf.mxu1 }
 0xd8c   : > { %11231 = vst.msk [vmem:[%s1441_s19 + $0x8] sm:$0xff] %vm11229_vm5, %v11226_v25 }
 0xd8d PF: > { %p20_p9 = scmp.ge.s32.totalorder %s13794_s29, 4   ;;  %s20513_s25 = smov %s13698_s26 }
 0xd8e   : > { %s20514_s26 = smov %s13803_s15  ;;  %s20515_s27 = smov %s13794_s29 }
 0xd8f   :  { %22 = sbr.rel (!%p20_p9) target bundleno = 2 (0x2), region = 164 }

</bundles_post_ra>
